<compile_context>
chip_gen: v7x
topology: tpu7x:2x2x1
jax: 0.10.0
libtpu: 0.0.40
codegen_flags: <defaults>
</compile_context>

<pallas_src>
import jax
import jax.numpy as jnp
from jax.experimental import pallas as pl
from jax.experimental.pallas import tpu as pltpu

IN_DIM = 25088          # 512 * 7 * 7
HID_DIM = 5000
OUT_DIM = 102
HID_PAD = 5120          # 40 * 128 (lane-aligned hidden width; zero-padded -> safe)
OUT_PAD = 128           # lane-aligned logits width

NCORES = 2              # hidden axis split across (up to) 2 TensorCores; harmless on 1-TC chips
TK = 3584               # 25088 = 7 * 3584  (reduction tile)
TN = 1280               # 5120 = 4 * 1280   (hidden tile); 2 tiles per core
NJ = HID_PAD // (NCORES * TN)
NK = IN_DIM // TK

assert IN_DIM % TK == 0 and HID_PAD % (NCORES * TN) == 0


def classifier_kernel(x_ref, w1_ref, b1_ref, w2_ref, out_ref, acc_h):
    # grid = (core c [parallel], hidden tile j, reduction tile k); k innermost.
    j = pl.program_id(1)
    k = pl.program_id(2)
    nk = pl.num_programs(2)

    # Output block index is constant across (j, k) for a given core, so out_ref stays resident
    # in VMEM: use it directly as the partial-logits accumulator (f32).
    @pl.when((j == 0) & (k == 0))
    def _():
        out_ref[...] = jnp.zeros_like(out_ref)

    @pl.when(k == 0)
    def _():
        acc_h[...] = jnp.zeros_like(acc_h)

    # fc1 partial product for this core's hidden tile j (bf16 inputs, f32 accumulation).
    acc_h[...] += jnp.dot(x_ref[...], w1_ref[...],
                          preferred_element_type=jnp.float32)

    @pl.when(k == nk - 1)
    def _():
        # finish fc1 tile, add bias, ReLU, contract straight into the resident partial logits
        h = jnp.maximum(acc_h[...] + b1_ref[...], 0.0).astype(jnp.bfloat16)
        out_ref[...] += jnp.dot(h, w2_ref[...],
                                preferred_element_type=jnp.float32)[None, :, :]


def prepare_params(w1, b1, w2, b2):
    """One-time weight prep (hoisted out of the forward hot path):
    pad to lane-aligned widths and cast streamed weights to bf16 (zero padding keeps math exact)."""
    w1p = jnp.zeros((IN_DIM, HID_PAD), jnp.bfloat16).at[:, :HID_DIM].set(
        w1.astype(jnp.bfloat16))
    b1p = jnp.zeros((1, HID_PAD), jnp.float32).at[:, :HID_DIM].set(
        b1.astype(jnp.float32))
    w2p = jnp.zeros((HID_PAD, OUT_PAD), jnp.bfloat16).at[:HID_DIM, :OUT_DIM].set(
        w2.astype(jnp.bfloat16))
    return w1p, b1p, w2p, b2.astype(jnp.float32)


def classifier_forward(image, params):
    """image: (B, 512, 7, 7) NCHW. params: output of prepare_params.
    Returns (B, 102) softmax probabilities (f32)."""
    w1p, b1p, w2p, b2 = params
    B = image.shape[0]
    x = image.reshape(B, IN_DIM).astype(jnp.bfloat16)

    flops = 2 * B * IN_DIM * HID_PAD + 2 * B * HID_PAD * OUT_PAD
    bytes_accessed = (w1p.size * 2 + w2p.size * 2 + b1p.size * 4
                      + x.size * 2 + NCORES * B * OUT_PAD * 4)

    partials = pl.pallas_call(
        classifier_kernel,
        out_shape=jax.ShapeDtypeStruct((NCORES, B, OUT_PAD), jnp.float32),
        grid_spec=pltpu.PrefetchScalarGridSpec(
            num_scalar_prefetch=0,
            grid=(NCORES, NJ, NK),
            in_specs=[
                pl.BlockSpec((B, TK), lambda c, j, k: (0, k)),                 # x  (bf16)
                pl.BlockSpec((TK, TN), lambda c, j, k: (k, c * NJ + j)),       # w1 (bf16)
                pl.BlockSpec((1, TN), lambda c, j, k: (0, c * NJ + j)),        # b1 (f32)
                pl.BlockSpec((TN, OUT_PAD), lambda c, j, k: (c * NJ + j, 0)),  # w2 (bf16)
            ],
            out_specs=pl.BlockSpec((1, B, OUT_PAD), lambda c, j, k: (c, 0, 0)),
            scratch_shapes=[
                pltpu.VMEM((B, TN), jnp.float32),       # fc1 tile accumulator
            ],
        ),
        compiler_params=pltpu.CompilerParams(
            dimension_semantics=("parallel", "arbitrary", "arbitrary"),
            vmem_limit_bytes=48 * 1024 * 1024,
        ),
        cost_estimate=pl.CostEstimate(flops=flops, transcendentals=0,
                                      bytes_accessed=bytes_accessed),
    )(x, w1p, b1p, w2p)

    # Tiny in-jit epilogue in XLA (f32): sum per-core partial logits, add bias, softmax.
    logits = jnp.sum(partials, axis=0)[:, :OUT_DIM] + b2
    return jax.nn.softmax(logits, axis=-1)


def reference_forward(image, w1, b1, w2, b2):
    x = image.reshape(image.shape[0], IN_DIM).astype(jnp.float32)
    h = jnp.maximum(x @ w1 + b1, 0.0)
    logits = h @ w2 + b2
    return jax.nn.softmax(logits, axis=-1)


if __name__ == "__main__":
    key = jax.random.PRNGKey(0)
    k_img, k_w1, k_b1, k_w2, k_b2 = jax.random.split(key, 5)

    # torch.nn.Linear default init: U(-1/sqrt(fan_in), 1/sqrt(fan_in)).
    bound1 = 1.0 / (IN_DIM ** 0.5)
    w1 = jax.random.uniform(k_w1, (IN_DIM, HID_DIM), jnp.float32, -bound1, bound1)
    b1 = jax.random.uniform(k_b1, (HID_DIM,), jnp.float32, -bound1, bound1)
    bound2 = 1.0 / (HID_DIM ** 0.5)
    w2 = jax.random.uniform(k_w2, (HID_DIM, OUT_DIM), jnp.float32, -bound2, bound2)
    b2 = jax.random.uniform(k_b2, (OUT_DIM,), jnp.float32, -bound2, bound2)

    image = jax.random.normal(k_img, (2, 512, 7, 7), jnp.float32)  # NCHW -> flattens to (2, 25088)

    # One-time weight prep (padding + bf16 cast) outside the inference hot path.
    params = jax.tree_util.tree_map(jax.block_until_ready,
                                    prepare_params(w1, b1, w2, b2))

    fwd = jax.jit(classifier_forward)
    probs = jax.block_until_ready(fwd(image, params))
    ref = jax.block_until_ready(reference_forward(image, w1, b1, w2, b2))

    assert probs.shape == (2, OUT_DIM)
    # bf16 weights/activations (f32 accumulation) -> loosened tolerances vs f32 reference.
    assert jnp.allclose(jnp.sum(probs, axis=-1), 1.0, atol=5e-3)
    assert jnp.allclose(probs, ref, atol=5e-3), float(jnp.max(jnp.abs(probs - ref)))

    print("KERNEL_OK")
</pallas_src>

<mosaic_0001>
module attributes {stable_mosaic.version = 11 : i64} {
  func.func @classifier_kernel(%arg0: i32, %arg1: i32, %arg2: i32, %arg3: memref<2x3584xbf16, #tpu.memory_space<vmem>>, %arg4: memref<3584x1280xbf16, #tpu.memory_space<vmem>>, %arg5: memref<1x1280xf32, #tpu.memory_space<vmem>>, %arg6: memref<1280x128xbf16, #tpu.memory_space<vmem>>, %arg7: memref<1x2x128xf32, #tpu.memory_space<vmem>>, %arg8: memref<2x1280xf32, #tpu.memory_space<vmem>>) attributes {dimension_semantics = [#tpu.dimension_semantics<parallel>, #tpu.dimension_semantics<arbitrary>, #tpu.dimension_semantics<arbitrary>], iteration_bounds = array<i64: 2, 2, 7>, scalar_prefetch = 0 : i64, scratch_operands = 1 : i64, tpu.core_type = #tpu.core_type<tc>, window_params = [{transform_indices = @transform_0, window_bounds = array<i64: 2, 3584>}, {transform_indices = @transform_1, window_bounds = array<i64: 3584, 1280>}, {transform_indices = @transform_2, window_bounds = array<i64: 1, 1280>}, {transform_indices = @transform_3, window_bounds = array<i64: 1280, 128>}, {transform_indices = @transform_4, window_bounds = array<i64: 1, 2, 128>}]} {
    %c0_i32 = arith.constant 0 : i32
    %0 = arith.cmpi eq, %arg1, %c0_i32 : i32
    %c0_i32_0 = arith.constant 0 : i32
    %1 = arith.cmpi eq, %arg2, %c0_i32_0 : i32
    %2 = arith.andi %0, %1 : i1
    %3 = arith.extui %2 : i1 to i32
    %c0_i32_1 = arith.constant 0 : i32
    %4 = arith.cmpi ne, %3, %c0_i32_1 : i32
    scf.if %4 {
      %cst_12 = arith.constant 0.000000e+00 : f32
      %17 = vector.broadcast %cst_12 : f32 to vector<1x2x128xf32>
      %c0_13 = arith.constant 0 : index
      %c0_14 = arith.constant 0 : index
      %c0_15 = arith.constant 0 : index
      %18 = vector.load %arg7[%c0_13, %c0_14, %c0_15] : memref<1x2x128xf32, #tpu.memory_space<vmem>>, vector<1x2x128xf32>
      tpu.vector_store %arg7[%c0_13, %c0_14, %c0_15], %17 {strides = array<i32>} : memref<1x2x128xf32, #tpu.memory_space<vmem>>, vector<1x2x128xf32>,
    } else {
    }
    %c0_i32_2 = arith.constant 0 : i32
    %5 = arith.cmpi eq, %arg2, %c0_i32_2 : i32
    %6 = arith.extui %5 : i1 to i32
    %c0_i32_3 = arith.constant 0 : i32
    %7 = arith.cmpi ne, %6, %c0_i32_3 : i32
    scf.if %7 {
      %cst_12 = arith.constant 0.000000e+00 : f32
      %17 = vector.broadcast %cst_12 : f32 to vector<2x1280xf32>
      %c0_13 = arith.constant 0 : index
      %c0_14 = arith.constant 0 : index
      %18 = vector.load %arg8[%c0_13, %c0_14] : memref<2x1280xf32, #tpu.memory_space<vmem>>, vector<2x1280xf32>
      tpu.vector_store %arg8[%c0_13, %c0_14], %17 {strides = array<i32>} : memref<2x1280xf32, #tpu.memory_space<vmem>>, vector<2x1280xf32>,
    } else {
    }
    %c0 = arith.constant 0 : index
    %c0_4 = arith.constant 0 : index
    %8 = vector.load %arg8[%c0, %c0_4] : memref<2x1280xf32, #tpu.memory_space<vmem>>, vector<2x1280xf32>
    %c0_5 = arith.constant 0 : index
    %c0_6 = arith.constant 0 : index
    %9 = vector.load %arg3[%c0_5, %c0_6] : memref<2x3584xbf16, #tpu.memory_space<vmem>>, vector<2x3584xbf16>
    %c0_7 = arith.constant 0 : index
    %c0_8 = arith.constant 0 : index
    %10 = vector.load %arg4[%c0_7, %c0_8] : memref<3584x1280xbf16, #tpu.memory_space<vmem>>, vector<3584x1280xbf16>
    %cst = arith.constant dense<0.000000e+00> : vector<2x1280xf32>
    %11 = tpu.matmul %9, %10, %cst {dimension_numbers = #tpu.dot_dimension_numbers<[1], [0], [0], [1], [0, 0, 1, 1], [], []>} : vector<2x3584xbf16>, vector<3584x1280xbf16>, vector<2x1280xf32> -> vector<2x1280xf32>
    %12 = arith.addf %8, %11 : vector<2x1280xf32>
    %c0_9 = arith.constant 0 : index
    %c0_10 = arith.constant 0 : index
    %13 = vector.load %arg8[%c0_9, %c0_10] : memref<2x1280xf32, #tpu.memory_space<vmem>>, vector<2x1280xf32>
    tpu.vector_store %arg8[%c0_9, %c0_10], %12 {strides = array<i32>} : memref<2x1280xf32, #tpu.memory_space<vmem>>, vector<2x1280xf32>,
    %c6_i32 = arith.constant 6 : i32
    %14 = arith.cmpi eq, %arg2, %c6_i32 : i32
    %15 = arith.extui %14 : i1 to i32
    %c0_i32_11 = arith.constant 0 : i32
    %16 = arith.cmpi ne, %15, %c0_i32_11 : i32
    scf.if %16 {
      %c0_12 = arith.constant 0 : index
      %c0_13 = arith.constant 0 : index
      %17 = vector.load %arg8[%c0_12, %c0_13] : memref<2x1280xf32, #tpu.memory_space<vmem>>, vector<2x1280xf32>
      %c0_14 = arith.constant 0 : index
      %c0_15 = arith.constant 0 : index
      %18 = vector.load %arg5[%c0_14, %c0_15] : memref<1x1280xf32, #tpu.memory_space<vmem>>, vector<1x1280xf32>
      %19 = vector.broadcast %18 : vector<1x1280xf32> to vector<2x1280xf32>
      %20 = arith.addf %17, %19 : vector<2x1280xf32>
      %cst_16 = arith.constant 0.000000e+00 : f32
      %21 = vector.broadcast %cst_16 : f32 to vector<2x1280xf32>
      %22 = arith.maximumf %20, %21 : vector<2x1280xf32>
      %23 = arith.truncf %22 : vector<2x1280xf32> to vector<2x1280xbf16>
      %c0_17 = arith.constant 0 : index
      %c0_18 = arith.constant 0 : index
      %c0_19 = arith.constant 0 : index
      %24 = vector.load %arg7[%c0_17, %c0_18, %c0_19] : memref<1x2x128xf32, #tpu.memory_space<vmem>>, vector<1x2x128xf32>
      %c0_20 = arith.constant 0 : index
      %c0_21 = arith.constant 0 : index
      %25 = vector.load %arg6[%c0_20, %c0_21] : memref<1280x128xbf16, #tpu.memory_space<vmem>>, vector<1280x128xbf16>
      %cst_22 = arith.constant dense<0.000000e+00> : vector<2x128xf32>
      %26 = tpu.matmul %23, %25, %cst_22 {dimension_numbers = #tpu.dot_dimension_numbers<[1], [0], [0], [1], [0, 0, 1, 1], [], []>} : vector<2x1280xbf16>, vector<1280x128xbf16>, vector<2x128xf32> -> vector<2x128xf32>
      %27 = vector.shape_cast %26 : vector<2x128xf32> to vector<1x2x128xf32>
      %28 = arith.addf %24, %27 : vector<1x2x128xf32>
      %c0_23 = arith.constant 0 : index
      %c0_24 = arith.constant 0 : index
      %c0_25 = arith.constant 0 : index
      %29 = vector.load %arg7[%c0_23, %c0_24, %c0_25] : memref<1x2x128xf32, #tpu.memory_space<vmem>>, vector<1x2x128xf32>
      tpu.vector_store %arg7[%c0_23, %c0_24, %c0_25], %28 {strides = array<i32>} : memref<1x2x128xf32, #tpu.memory_space<vmem>>, vector<1x2x128xf32>,
    } else {
    }
    return
  }
  func.func @transform_0(%arg0: i32, %arg1: i32, %arg2: i32) -> (i32, i32) {
    %c0_i32 = arith.constant 0 : i32
    %c0_i32_0 = arith.constant 0 : i32
    return %c0_i32, %arg2 : i32, i32
  }
  func.func @transform_1(%arg0: i32, %arg1: i32, %arg2: i32) -> (i32, i32) {
    %c2_i32 = arith.constant 2 : i32
    %0 = arith.muli %arg0, %c2_i32 : i32
    %1 = arith.addi %0, %arg1 : i32
    %c0_i32 = arith.constant 0 : i32
    return %arg2, %1 : i32, i32
  }
  func.func @transform_2(%arg0: i32, %arg1: i32, %arg2: i32) -> (i32, i32) {
    %c2_i32 = arith.constant 2 : i32
    %0 = arith.muli %arg0, %c2_i32 : i32
    %1 = arith.addi %0, %arg1 : i32
    %c0_i32 = arith.constant 0 : i32
    %c0_i32_0 = arith.constant 0 : i32
    return %c0_i32, %1 : i32, i32
  }
  func.func @transform_3(%arg0: i32, %arg1: i32, %arg2: i32) -> (i32, i32) {
    %c2_i32 = arith.constant 2 : i32
    %0 = arith.muli %arg0, %c2_i32 : i32
    %1 = arith.addi %0, %arg1 : i32
    %c0_i32 = arith.constant 0 : i32
    %c0_i32_0 = arith.constant 0 : i32
    return %1, %c0_i32 : i32, i32
  }
  func.func @transform_4(%arg0: i32, %arg1: i32, %arg2: i32) -> (i32, i32, i32) {
    %c0_i32 = arith.constant 0 : i32
    %c0_i32_0 = arith.constant 0 : i32
    %c0_i32_1 = arith.constant 0 : i32
    return %arg0, %c0_i32, %c0_i32_0 : i32, i32, i32
  }
}

</mosaic_0001>

<bundles_post_ra>
// kernel: classifier_forward.1
= control target key start
LH: loop header
LB: loop body
LE: loop exit
PB: predicated region body
PF: predicated region fallthrough
CT: control target
= control target key end

     0   :  { %s27328_s0 = inlined_call_operand.vmem [shape: bf16[2,25088], index: 0, kind: input, shape index: {}]   ;;  %s27329_s1 = inlined_call_operand.hbm [shape: bf16[25088,5120], index: 1, kind: input, shape index: {}]   ;;  %s27330_s2 = inlined_call_operand.vmem [shape: f32[1,5120], index: 2, kind: input, shape index: {}]   ;;  %s27331_s3 = inlined_call_operand.vmem [shape: bf16[5120,128], index: 3, kind: input, shape index: {}]   ;;  %s27332_s4 = inlined_call_operand.vmem [shape: f32[2,2,128], index: 4, kind: output, shape index: {}]  }
   0x1   :  { %27337 = sst [smem:[#allocation10_spill]] %s27332_s4 }
   0x2   :  { %9 = vsyncpa [#allocation4], 0 }
   0x3   :  { %11 = vsyncpa [#allocation4 + $0x1], 0  ;;  %s24460_s15 = smov 0   ;;  %s24462_s16 = smov 0  }
   0x4   :  { %s24464_s17 = smov 0   ;;  %s24466_s18 = smov 0  }
   0x5   :  { %s24468_s19 = smov 0   ;;  %s24470_s20 = smov 0  }
   0x6   :  { %s24472_s21 = smov 0   ;;  %s24474_s22 = smov 0  }
   0x7   :  { %s24476_s23 = smov 0   ;;  %s24478_s24 = smov 0  }
   0x8 LB: > { %27338 = sst [smem:[#allocation6_spill]] %s24417_s22  ;;  %s18060_s25 = sadd.s32 4294967295, %s24425_s24   ;;  %s24425_s24 = sphi %s24478_s24, %s17_s24   ;;  %s24421_s23 = sphi %s24476_s23, %s27357_s23   ;;  %s24417_s22 = sphi %s24474_s22, %s27356_s22   ;;  %s24413_s21 = sphi %s24472_s21, %s27355_s21   ;;  %s24409_s20 = sphi %s24470_s20, %s27348_s20   ;;  %s24405_s19 = sphi %s24468_s19, %s27347_s19   ;;  %s24401_s18 = sphi %s24466_s18, %s27354_s18   ;;  %s24397_s17 = sphi %s24464_s17, %s27353_s17   ;;  %s24393_s16 = sphi %s24462_s16, %s27352_s16   ;;  %s24389_s15 = sphi %s24460_s15, %s27351_s15  }
   0x9   : > { %27339 = sst [smem:[#allocation7_spill]] %s24421_s23  ;;  %s29_s26 = sadd.s32 1, %s24413_s21 }
   0xa   : > { %p30_p0 = scmp.ge.s32.totalorder %s29_s26, 7  ;;  %s32_s27 = sadd.s32 1, %s24417_s22 }
   0xb   : > { %s36_s28 = sadd.s32 1, %s24421_s23  ;;  %s18062_s29 = sshll.u32 %s24421_s23, 1 }
   0xc   : > { %s27359_s26 = smov (%p30_p0, %s29_s26), 0  ;;  %s27361_s27 = smov (!%p30_p0, %s32_s27), %s24417_s22 }
   0xd   : > { %27340 = sst [smem:[#allocation8_spill]] %s27359_s26  ;;  %s67_s30 = sadd.s32 %s24417_s22, %s18062_s29 }
   0xe   : > { %s70_s5 = ssub.s32 %s24413_s21, %s27359_s26  ;;  %p34_p1 = scmp.ge.s32.totalorder %s27361_s27, 2 }
   0xf   : > { %s75_s6 = sadd.s32 1, %s24397_s17  ;;  %p82_p2 = scmp.ne.s32.totalorder %s24397_s17, %s24393_s16 }
  0x10   : > { %p83_p3 = scmp.eq.s32.totalorder %s24425_s24, 0  ;;  %s27363_s27 = smov (%p34_p1, %s27361_s27), 0 }
  0x11   : > { %s27365_s28 = smov (!%p34_p1, %s36_s28), %s24421_s23  ;;  %p88_p5 = scmp.ne.s32.totalorder %s24393_s16, %s24389_s15 }
  0x12   : > { %p24528_p4 = por %p83_p3, %p82_p2  ;;  %p38_p6 = scmp.ge.s32.totalorder %s27365_s28, 2 }
  0x13   : > { %p89_p7 = scmp.eq.s32.totalorder %s18060_s25, 0  ;;  %p20779_p8 = scmp.lt.s32.totalorder %s24425_s24, 28 }
  0x14   : > { %s27367_s28 = smov (%p38_p6, %s27365_s28), 0  ;;  %s206_s9 = sand.u32 1, %s24397_s17  }
  0x15   : > { %27342 = sst [smem:[#allocation9_spill]] %s27367_s28  ;;  %p24537_p9 = por %p89_p7, %p88_p5 }
  0x16   : > { %s18063_s10 = sshll.u32 %s27367_s28, 1  ;;  %s20770_s12 = smul.u32 17920, %s206_s9 }
  0x17   : > { %s69_s11 = sadd.s32 %s18063_s10, %s27363_s27  ;;  %s214_s15 = smul.u32 10, %s67_s30 }
  0x18   : > { %s71_s13 = ssub.s32 %s67_s30, %s69_s11  ;;  %s20780_s25 = smul.u32 17920, %s24413_s21 }
  0x19   : > { %s72_s14 = sor.u32 %s71_s13, %s70_s5  ;;  %s210_s29 = scalar_lea.vmem [#allocation3], %s20770_s12 }
  0x1a   : > { %p73_p10 = scmp.eq.s32.totalorder %s72_s14, 0  ;;  %s222_s26 = sshll.u32 %s210_s29, 4  ;;  %s24548_s26 = int_to_ptr.vmem [resolvable:$true] %s222_s26 }
  0x1b   : > { %s219_s22 = sadd.s32 %s20780_s25, %s214_s15  ;;  %p24554_p11 = pnand %p20779_p8, %p24528_p4 }
  0x1c   : > { %s24546_s23 = scalar_select %p73_p10, %s24397_s17, %s75_s6  }
  0x1d   : > { %s18071_s4 = sshll.u32 %s219_s22, 6  ;;  %s24564_s5 = scalar_lea.sflag [#allocation4], %s206_s9 }
  0x1e   : > { %s24561_s30 = scalar_lea.hbm %s27329_s1, %s18071_s4  ;;  %p24315_p0 = pneg %p24554_p11 }
  0x1f   : > { %s24313_s22 = scalar_lea.hbm %s24561_s30, 286720  ;;  %s24318_s4 = scalar_lea.hbm %s27329_s1, 8028160 }
  0x20   : > { %p24314_p13 = scmp.ne.s32.totalorder %s24561_s30, %s24313_s22  ;;  %p24319_p3 = scmp.lt.u32.totalorder %s24561_s30, %s27329_s1 }
  0x21   : > { %p24320_p4 = scmp.lt.u32.totalorder %s24318_s4, %s24313_s22  ;;  %p24322_p6 = scmp.lt.u32.totalorder %s24313_s22, %s24561_s30 }
  0x22   : > { %p24316_p1 = pnand %p24315_p0, %p24314_p13 }
  0x23   : > { %p24321_p5 = por %p24320_p4, %p24319_p3 }
  0x24   : > { %p24317_p2 = pneg %p24316_p1 }
  0x25   : > { %p24323_p7 = por %p24322_p6, %p24321_p5 }
  0x27   : > { %p24324_p8 = pnand %p24323_p7, %p24317_p2 }
  0x29   : > { %24327 = shalt.err (!%p24324_p8)
}
  0x2a   : > { %s24328_s9 = scalar_lea.vmem %s24548_s26, 286720  ;;  %s24427_s14 = smov [#allocation3]  }
  0x2b   : > { %p24329_p10 = scmp.ne.s32.totalorder %s24548_s26, %s24328_s9  ;;  %s24333_s15 = sshll.u32 %s24427_s14, 4  ;;  %s24334_s15 = int_to_ptr.vmem [resolvable:$false] %s24333_s15 }
  0x2c   : > { %s24335_s25 = scalar_lea.vmem %s24334_s15, 573440  ;;  %p24336_p12 = scmp.lt.s32.totalorder %s24548_s26, %s24334_s15 }
  0x2d   : > { %p24331_p13 = pnand %p24329_p10, %p24315_p0  ;;  %p24337_p3 = scmp.lt.s32.totalorder %s24335_s25, %s24328_s9 }
  0x2f   : > { %p24332_p1 = pneg %p24331_p13  ;;  %p24338_p4 = por %p24337_p3, %p24336_p12 }
  0x31   : > { %p24339_p5 = pnand %p24338_p4, %p24332_p1 }
  0x33   : > { %24342 = shalt.err (!%p24339_p5)
}
  0x34   : > { %s24428_s29 = smov 2560   ;;  %s24429_s10 = smov 640  }
  0x35   : > { %s24430_s11 = smov 40   ;;  %p255_p0 = scmp.lt.s32.totalorder %s24425_s24, 29 }
  0x36   : > { %20778 = dma.hbm_to_vmem [thread:$0]  (!%p24554_p11), %s24561_s30, 286720, %s24548_s26, %s24564_s5, %s24428_s29, %s24429_s10, %s24430_s11  }
  0x37   : > { %p27345_p2 = scmp.ge.s32.totalorder %s24425_s24, 1 }
  0x39   : > { %p256_p6 = pnand %p27345_p2, %p255_p0 }
  0x3a   : > { %s261_s22 = sand.u32 (!%p256_p6), 1, %s24393_s16  }
  0x3b   : > { %259 = sbr.rel (%p256_p6) target bundleno = 2848 (0xb20), region = 36  ;;  %s262_s7 = scalar_lea.sflag (!%p256_p6), [#allocation4], %s261_s22 }
  0x3c   : > { %s20772_s6 = smul.u32 (!%p256_p6), 17920, %s261_s22 }
  0x3e   : > { %s24596_s4 = scalar_lea.vmem (!%p256_p6), [#allocation3], %s20772_s6 }
  0x42   : > { %24384 = dma.done.wait (%p24537_p9), %s262_s7, 286720  }
  0x43   : > { %24386 = vsyncadd (%p24537_p9), %s262_s7, 4294680576  ;;  %s306_s26 = smul.u32 28, %s24401_s18  ;;  %s18073_s28 = sshll.u32 %s24409_s20, 1 }
  0x44   : > { %s316_s30 = sadd.s32 %s24405_s19, %s18073_s28  ;;  %p334_p11 = scmp.lt.s32.totalorder %s24409_s20, 1 }
  0x45   : > { %p307_p12 = scmp.lt.s32.totalorder %s306_s26, 195  ;;  %s317_s5 = smul.u32 10, %s316_s30 }
  0x46   : > { %s326_s12 = smul.u32 160, %s316_s30  ;;  %p339_p7 = scmp.eq.s32.totalorder %s24405_s19, 0 }
  0x47   : > { %s27369_s26 = smov (!%p307_p12, %s306_s26), 195  ;;  %p318_p8 = scmp.lt.s32.totalorder %s317_s5, 39 }
  0x48   : > { %p327_p10 = scmp.lt.s32.totalorder %s326_s12, 639  ;;  %s24610_s9 = scalar_lea.vmem %s27328_s0, %s27369_s26 }
  0x49   : > { %p340_p9 = scmp.eq.s32.totalorder %s24401_s18, 0  ;;  %s27371_s5 = smov (!%p318_p8, %s317_s5), 39 }
  0x4a   : > { %s27373_s12 = smov (!%p327_p10, %s326_s12), 639  ;;  %s24616_s25 = scalar_lea.vmem %s27330_s2, %s27371_s5 }
  0x4b   : > { %p341_p13 = pnand %p340_p9, %p339_p7  ;;  %s18075_s29 = sshll.u32 %s27373_s12, 2 }
  0x4c   : > { %s24621_s11 = scalar_lea.vmem %s27331_s3, %s18075_s29  ;;  %s27375_s20 = smov (!%p334_p11, %s24409_s20), 1  ;;  %v24431_v0 = vmov (!%p341_p13), 0.0  }
  0x4d   : > { %s18076_s22 = sshll.u32 %s27375_s20, 1  ;;  %s27346_s26 = sld [smem:[#allocation10_spill]] }
  0x4e   : > { %344 = sbr.rel (%p341_p13) target bundleno = 85 (0x55), region = 44 }
  0x53   : > { %s24629_s28 = scalar_lea.vmem %s27346_s26, %s18076_s22 }
  0x54   : > { %345 = vst [vmem:[%s24629_s28] sm:$0x3] (!%p341_p13), %v24431_v0 }
  0x55 PF: > { %p18077_p1 = scmp.ne.s32.totalorder %s24401_s18, 0 }
  0x56   : > { %v24432_v1 = vmov (!%p18077_p1), 0.0  }
  0x57   : > { %348 = sbr.rel (%p18077_p1) target bundleno = 94 (0x5e), region = 48  ;;  %349 = vst [vmem:[#allocation2] sm:$0xff] (!%p18077_p1), %v24432_v1  ;;  %350 = vst [vmem:[#allocation2 + $0x8] sm:$0xff] (!%p18077_p1), %v24432_v1 }
  0x58   : > { %351 = vst [vmem:[#allocation2 + $0x10] sm:$0xf] (!%p18077_p1), %v24432_v1 }
  0x5e PF: > { %v20868_v2 = vld [vmem:[%s24596_s4 + $0x4] ss:$40 sps:$4 sm:$0xff]   ;;  %v20872_v4 = vld [vmem:[%s24596_s4] ss:$40 sps:$4 sm:$0xff]   ;;  %v20874_v6 = vld [vmem:[%s24596_s4 + $0x54] ss:$40 sps:$4 sm:$0xff]   ;;  %v2607_v42 = vlaneseq }
  0x5f   : > { %v20870_v3 = vld [vmem:[%s24596_s4 + $0x2304] ss:$40 sps:$4 sm:$0xff]   ;;  %14002 = vmatprep.subr.bf16.mxu1 %v20868_v2  ;;  %v20873_v5 = vld [vmem:[%s24596_s4 + $0x2300] ss:$40 sps:$4 sm:$0xff]   ;;  %v20876_v7 = vld [vmem:[%s24596_s4 + $0x2354] ss:$40 sps:$4 sm:$0xff]  }
  0x60   : > { %14289 = vmatprep.subr.bf16.mxu0 %v20870_v3  ;;  %14003 = vmatpush1.bf16.msra.mxu1 %v20872_v4  ;;  %v20878_v8 = vld [vmem:[%s24596_s4 + $0x50] ss:$40 sps:$4 sm:$0xff]   ;;  %v20880_v10 = vld [vmem:[%s24596_s4 + $0xa4] ss:$40 sps:$4 sm:$0xff]   ;;  %v20884_v12 = vld [vmem:[%s24596_s4 + $0xa0] ss:$40 sps:$4 sm:$0xff]  }
  0x61   : > { %14290 = vmatpush1.bf16.msra.mxu0 %v20873_v5  ;;  %14004 = vmatprep.subr.bf16.mxu1 %v20874_v6  ;;  %v20879_v9 = vld [vmem:[%s24596_s4 + $0x2350] ss:$40 sps:$4 sm:$0xff]   ;;  %v20882_v11 = vld [vmem:[%s24596_s4 + $0x23a4] ss:$40 sps:$4 sm:$0xff]   ;;  %v20885_v13 = vld [vmem:[%s24596_s4 + $0x23a0] ss:$40 sps:$4 sm:$0xff]  }
  0x62   : > { %14291 = vmatprep.subr.bf16.mxu0 %v20876_v7  ;;  %v20886_v14 = vld [vmem:[%s24596_s4 + $0xf4] ss:$40 sps:$4 sm:$0xff]   ;;  %v20890_v16 = vld [vmem:[%s24596_s4 + $0xf0] ss:$40 sps:$4 sm:$0xff]   ;;  %v20892_v18 = vld [vmem:[%s24596_s4 + $0x144] ss:$40 sps:$4 sm:$0xff]  }
  0x63   : > { %v20888_v15 = vld [vmem:[%s24596_s4 + $0x23f4] ss:$40 sps:$4 sm:$0xff]   ;;  %v20891_v17 = vld [vmem:[%s24596_s4 + $0x23f0] ss:$40 sps:$4 sm:$0xff]   ;;  %v20894_v19 = vld [vmem:[%s24596_s4 + $0x2444] ss:$40 sps:$4 sm:$0xff]  }
  0x64   : > { %14005 = vmatpush1.bf16.msra.mxu1 %v20878_v8  ;;  %v20896_v20 = vld [vmem:[%s24596_s4 + $0x140] ss:$40 sps:$4 sm:$0xff]   ;;  %v20898_v22 = vld [vmem:[%s24596_s4 + $0x194] ss:$40 sps:$4 sm:$0xff]   ;;  %v20902_v24 = vld [vmem:[%s24596_s4 + $0x190] ss:$40 sps:$4 sm:$0xff]  }
  0x65   : > { %14292 = vmatpush1.bf16.msra.mxu0 %v20879_v9  ;;  %14006 = vmatprep.subr.bf16.mxu1 %v20880_v10  ;;  %v20897_v21 = vld [vmem:[%s24596_s4 + $0x2440] ss:$40 sps:$4 sm:$0xff]   ;;  %v20900_v23 = vld [vmem:[%s24596_s4 + $0x2494] ss:$40 sps:$4 sm:$0xff]   ;;  %v20903_v25 = vld [vmem:[%s24596_s4 + $0x2490] ss:$40 sps:$4 sm:$0xff]  }
  0x66   : > { %14293 = vmatprep.subr.bf16.mxu0 %v20882_v11  ;;  %v20904_v26 = vld [vmem:[%s24596_s4 + $0x1e4] ss:$40 sps:$4 sm:$0xff]   ;;  %v20908_v28 = vld [vmem:[%s24596_s4 + $0x1e0] ss:$40 sps:$4 sm:$0xff]   ;;  %v20910_v30 = vld [vmem:[%s24596_s4 + $0x234] ss:$40 sps:$4 sm:$0xff]  }
  0x67   : > { %v20906_v27 = vld [vmem:[%s24596_s4 + $0x24e4] ss:$40 sps:$4 sm:$0xff]   ;;  %v20909_v29 = vld [vmem:[%s24596_s4 + $0x24e0] ss:$40 sps:$4 sm:$0xff]   ;;  %v20912_v31 = vld [vmem:[%s24596_s4 + $0x2534] ss:$40 sps:$4 sm:$0xff]  }
  0x68   : > { %14007 = vmatpush1.bf16.msra.mxu1 %v20884_v12  ;;  %v20914_v32 = vld [vmem:[%s24596_s4 + $0x230] ss:$40 sps:$4 sm:$0xff]   ;;  %v20916_v34 = vld [vmem:[%s24596_s4 + $0x284] ss:$40 sps:$4 sm:$0xff]   ;;  %v20920_v36 = vld [vmem:[%s24596_s4 + $0x280] ss:$40 sps:$4 sm:$0xff]  }
  0x69   : > { %14294 = vmatpush1.bf16.msra.mxu0 %v20885_v13  ;;  %14008 = vmatprep.subr.bf16.mxu1 %v20886_v14  ;;  %v20915_v33 = vld [vmem:[%s24596_s4 + $0x2530] ss:$40 sps:$4 sm:$0xff]   ;;  %v20918_v35 = vld [vmem:[%s24596_s4 + $0x2584] ss:$40 sps:$4 sm:$0xff]   ;;  %v20921_v37 = vld [vmem:[%s24596_s4 + $0x2580] ss:$40 sps:$4 sm:$0xff]  }
  0x6a   : > { %14295 = vmatprep.subr.bf16.mxu0 %v20888_v15  ;;  %v20922_v38 = vld [vmem:[%s24596_s4 + $0x2d4] ss:$40 sps:$4 sm:$0xff]   ;;  %v24433_v40 = vmov 1966171168   ;;  %v20926_v43 = vld [vmem:[%s24596_s4 + $0x2d0] ss:$40 sps:$4 sm:$0xff]  }
  0x6b   : > { %v20924_v39 = vld [vmem:[%s24596_s4 + $0x25d4] ss:$40 sps:$4 sm:$0xff]   ;;  %v2605_v41 = vunpack.c.l.s4 %v24433_v40  ;;  %v20927_v44 = vld [vmem:[%s24596_s4 + $0x25d0] ss:$40 sps:$4 sm:$0xff]   ;;  %v20928_v45 = vld [vmem:[%s24596_s4 + $0x324] ss:$40 sps:$4 sm:$0xff]  }
  0x6c   : > { %14009 = vmatpush1.bf16.msra.mxu1 %v20890_v16  ;;  %v20930_v46 = vld [vmem:[%s24596_s4 + $0x2624] ss:$40 sps:$4 sm:$0xff]   ;;  %v24675_v48 = vshrl.u32 %v2607_v42, 7  ;;  %v20932_v49 = vld [vmem:[%s24596_s4 + $0x320] ss:$40 sps:$4 sm:$0xff]   ;;  %v356_v58 = vld [vmem:[%s24610_s9 + $0x8] sm:$0xff] }
  0x6d   : > { %14296 = vmatpush1.bf16.msra.mxu0 %v20891_v17  ;;  %14010 = vmatprep.subr.bf16.mxu1 %v20892_v18  ;;  %v2606_v47 = vunpack.c.0.s8 %v2605_v41  ;;  %v20933_v50 = vld [vmem:[%s24596_s4 + $0x2620] ss:$40 sps:$4 sm:$0xff]   ;;  %v20934_v51 = vld [vmem:[%s24596_s4 + $0x374] ss:$40 sps:$4 sm:$0xff]   ;;  %v24685_v54 = vld [vmem:[%s24610_s9] sm:$0xff]  ;;  %v2652_v62 = vcombine.high %v356_v58, %v356_v58  ;;  %p20319_p3 = scmp.ne.s32.totalorder %s24401_s18, 6 }
  0x6e   : > { %14297 = vmatprep.subr.bf16.mxu0 %v20894_v19  ;;  %v20936_v52 = vld [vmem:[%s24596_s4 + $0x2674] ss:$40 sps:$4 sm:$0xff]   ;;  %v20938_v55 = vld [vmem:[%s24596_s4 + $0x370] ss:$40 sps:$4 sm:$0xff]   ;;  %v20940_v59 = vld [vmem:[%s24596_s4 + $0x3c4] ss:$40 sps:$4 sm:$0xff]  }
  0x6f   : > { %v24682_v53 = vsub.s32 %v2606_v47, %v24675_v48  ;;  %v20939_v57 = vld [vmem:[%s24596_s4 + $0x2670] ss:$40 sps:$4 sm:$0xff]   ;;  %v20942_v60 = vld [vmem:[%s24596_s4 + $0x26c4] ss:$40 sps:$4 sm:$0xff]   ;;  %v20944_v1 = vld [vmem:[%s24596_s4 + $0x3c0] ss:$40 sps:$4 sm:$0xff]  }
  0x70   : > { %14011 = vmatpush1.bf16.msra.mxu1 %v20896_v20  ;;  %v20945_v2 = vld [vmem:[%s24596_s4 + $0x26c0] ss:$40 sps:$4 sm:$0xff]   ;;  %v20946_v3 = vld [vmem:[%s24596_s4 + $0x414] ss:$40 sps:$4 sm:$0xff]   ;;  %v20950_v7 = vld [vmem:[%s24596_s4 + $0x410] ss:$40 sps:$4 sm:$0xff]  }
  0x71   : > { %14298 = vmatpush1.bf16.msra.mxu0 %v20897_v21  ;;  %14012 = vmatprep.subr.bf16.mxu1 %v20898_v22  ;;  %v2610_v56 = vrot.slane %v24685_v54, %v24682_v53  ;;  %v2666_v0 = vrot.slane %v2652_v62, %v24682_v53  ;;  %v20948_v4 = vld [vmem:[%s24596_s4 + $0x2714] ss:$40 sps:$4 sm:$0xff]   ;;  %v20951_v8 = vld [vmem:[%s24596_s4 + $0x2710] ss:$40 sps:$4 sm:$0xff]   ;;  %v20952_v9 = vld [vmem:[%s24596_s4 + $0x464] ss:$40 sps:$4 sm:$0xff]  }
  0x72   : > { %14299 = vmatprep.subr.bf16.mxu0 %v20900_v23  ;;  %v20954_v10 = vld [vmem:[%s24596_s4 + $0x2764] ss:$40 sps:$4 sm:$0xff]   ;;  %v20956_v12 = vld [vmem:[%s24596_s4 + $0x460] ss:$40 sps:$4 sm:$0xff]   ;;  %v20958_v14 = vld [vmem:[%s24596_s4 + $0x4b4] ss:$40 sps:$4 sm:$0xff]  }
  0x73   : > { %v2618_v61 = vcombine.high %v2610_v56, %v2610_v56  ;;  %v2668_v5 = vcombine.high %v2666_v0, %v2666_v0  ;;  %v20957_v13 = vld [vmem:[%s24596_s4 + $0x2760] ss:$40 sps:$4 sm:$0xff]   ;;  %v20960_v15 = vld [vmem:[%s24596_s4 + $0x27b4] ss:$40 sps:$4 sm:$0xff]   ;;  %v24720_v16 = vrot.slane %v2666_v0, %v24682_v53  ;;  %v20962_v17 = vld [vmem:[%s24596_s4 + $0x4b0] ss:$40 sps:$4 sm:$0xff]   ;;  %v24727_v21 = vrot.slane %v2610_v56, %v24682_v53 }
  0x74   : > { %14013 = vmatpush1.bf16.msra.mxu1 %v20902_v24  ;;  %v20963_v18 = vld [vmem:[%s24596_s4 + $0x27b0] ss:$40 sps:$4 sm:$0xff]   ;;  %v20966_v19 = vld [vmem:[%s24596_s4 + $0x504] ss:$40 sps:$4 sm:$0xff]   ;;  %v20964_v23 = vld [vmem:[%s24596_s4 + $0x500] ss:$40 sps:$4 sm:$0xff]  }
  0x75   : > { %14300 = vmatpush1.bf16.msra.mxu0 %v20903_v25  ;;  %14014 = vmatprep.subr.bf16.mxu1 %v20904_v26  ;;  %v24695_v63 = vrot.slane %v2618_v61, %v24682_v53  ;;  %v24704_v6 = vrot.slane %v2668_v5, %v24682_v53  ;;  %v20970_v20 = vld [vmem:[%s24596_s4 + $0x2804] ss:$40 sps:$4 sm:$0xff]   ;;  %v24731_v22 = vcombine.high %v24720_v16, %v24720_v16  ;;  %v20968_v24 = vld [vmem:[%s24596_s4 + $0x2800] ss:$40 sps:$4 sm:$0xff]   ;;  %v20973_v25 = vld [vmem:[%s24596_s4 + $0x554] ss:$40 sps:$4 sm:$0xff]  }
  0x76   : > { %14301 = vmatprep.subr.bf16.mxu0 %v20906_v27  ;;  %v20976_v26 = vld [vmem:[%s24596_s4 + $0x2854] ss:$40 sps:$4 sm:$0xff]   ;;  %v20989_v40 = vld [vmem:[%s24596_s4 + $0x640] ss:$40 sps:$4 sm:$0xff]   ;;  %v21006_v47 = vld [vmem:[%s24596_s4 + $0x29e4] ss:$40 sps:$4 sm:$0xff]  }
  0x77   : > { %14034 = vmatprep.mubr.bf16.mxu1 %v24695_v63  ;;  %v24712_v11 = vcombine.high %v24704_v6, %v24704_v6  ;;  %v24739_v27 = vcombine.high %v24695_v63, %v24695_v63  ;;  %v20992_v41 = vld [vmem:[%s24596_s4 + $0x2940] ss:$40 sps:$4 sm:$0xff]   ;;  %v20997_v42 = vld [vmem:[%s24596_s4 + $0x694] ss:$40 sps:$4 sm:$0xff]   ;;  %v21007_v58 = vld [vmem:[%s24596_s4 + $0x730] ss:$40 sps:$4 sm:$0xff]  }
  0x78   : > { %14015 = vmatpush1.bf16.msra.mxu1 %v20908_v28  ;;  %v20971_v28 = vld [vmem:[%s24596_s4 + $0x550] ss:$40 sps:$4 sm:$0xff]   ;;  %v21012_v56 = vld [vmem:[%s24596_s4 + $0x2a34] ss:$40 sps:$4 sm:$0xff]   ;;  %v21018_v62 = vld [vmem:[%s24596_s4 + $0x2a84] ss:$40 sps:$4 sm:$0xff]  }
  0x79   : > { %14302 = vmatpush1.bf16.msra.mxu0 %v20909_v29  ;;  %14016 = vmatprep.subr.bf16.mxu1 %v20910_v30  ;;  %v20974_v29 = vld [vmem:[%s24596_s4 + $0x2850] ss:$40 sps:$4 sm:$0xff]   ;;  %v20979_v30 = vld [vmem:[%s24596_s4 + $0x5a4] ss:$40 sps:$4 sm:$0xff]   ;;  %v21013_v0 = vld [vmem:[%s24596_s4 + $0x780] ss:$40 sps:$4 sm:$0xff]  }
  0x7a   : > { %14303 = vmatprep.subr.bf16.mxu0 %v20912_v31  ;;  %14321 = vmatprep.mubr.bf16.mxu0 %v24712_v11  ;;  %v20982_v31 = vld [vmem:[%s24596_s4 + $0x28a4] ss:$40 sps:$4 sm:$0xff]   ;;  %v21022_v5 = vld [vmem:[%s24596_s4 + $0x2ad0] ss:$40 sps:$4 sm:$0xff]  }
  0x7c   : > { %14017 = vmatpush1.bf16.msra.mxu1 %v20914_v32  ;;  %v20977_v32 = vld [vmem:[%s24596_s4 + $0x5a0] ss:$40 sps:$4 sm:$0xff]  }
  0x7d   : > { %14304 = vmatpush1.bf16.msra.mxu0 %v20915_v33  ;;  %14018 = vmatprep.subr.bf16.mxu1 %v20916_v34  ;;  %v20980_v33 = vld [vmem:[%s24596_s4 + $0x28a0] ss:$40 sps:$4 sm:$0xff]   ;;  %v20985_v34 = vld [vmem:[%s24596_s4 + $0x5f4] ss:$40 sps:$4 sm:$0xff]  }
  0x7e   : > { %14305 = vmatprep.subr.bf16.mxu0 %v20918_v35  ;;  %v20988_v35 = vld [vmem:[%s24596_s4 + $0x28f4] ss:$40 sps:$4 sm:$0xff]  }
  0x80   : > { %14019 = vmatpush1.bf16.msra.mxu1 %v20920_v36  ;;  %v20983_v36 = vld [vmem:[%s24596_s4 + $0x5f0] ss:$40 sps:$4 sm:$0xff]  }
  0x81   : > { %14306 = vmatpush1.bf16.msra.mxu0 %v20921_v37  ;;  %14020 = vmatprep.subr.bf16.mxu1 %v20922_v38  ;;  %v20986_v37 = vld [vmem:[%s24596_s4 + $0x28f0] ss:$40 sps:$4 sm:$0xff]   ;;  %v20991_v38 = vld [vmem:[%s24596_s4 + $0x644] ss:$40 sps:$4 sm:$0xff]  }
  0x82   : > { %14307 = vmatprep.subr.bf16.mxu0 %v20924_v39  ;;  %v20994_v39 = vld [vmem:[%s24596_s4 + $0x2944] ss:$40 sps:$4 sm:$0xff]  }
  0x84   : > { %14021 = vmatpush1.bf16.msra.mxu1 %v20926_v43  ;;  %v21000_v43 = vld [vmem:[%s24596_s4 + $0x2994] ss:$40 sps:$4 sm:$0xff]  }
  0x85   : > { %14308 = vmatpush1.bf16.msra.mxu0 %v20927_v44  ;;  %14022 = vmatprep.subr.bf16.mxu1 %v20928_v45  ;;  %v20995_v44 = vld [vmem:[%s24596_s4 + $0x690] ss:$40 sps:$4 sm:$0xff]  }
  0x86   : > { %14309 = vmatprep.subr.bf16.mxu0 %v20930_v46  ;;  %v20998_v45 = vld [vmem:[%s24596_s4 + $0x2990] ss:$40 sps:$4 sm:$0xff]   ;;  %v21003_v46 = vld [vmem:[%s24596_s4 + $0x6e4] ss:$40 sps:$4 sm:$0xff]  }
  0x88   : > { %14023 = vmatpush1.bf16.msra.mxu1 %v20932_v49  ;;  %v21001_v49 = vld [vmem:[%s24596_s4 + $0x6e0] ss:$40 sps:$4 sm:$0xff]  }
  0x89   : > { %14310 = vmatpush1.bf16.msra.mxu0 %v20933_v50  ;;  %14024 = vmatprep.subr.bf16.mxu1 %v20934_v51  ;;  %v24766_v50 = vld [vmem:[%s24610_s9 + $0x10] sm:$0xff] }
  0x8a   : > { %14311 = vmatprep.subr.bf16.mxu0 %v20936_v52  ;;  %v21004_v51 = vld [vmem:[%s24596_s4 + $0x29e0] ss:$40 sps:$4 sm:$0xff]   ;;  %v21009_v52 = vld [vmem:[%s24596_s4 + $0x734] ss:$40 sps:$4 sm:$0xff]  }
  0x8c   : > { %14025 = vmatpush1.bf16.msra.mxu1 %v20938_v55  ;;  %v24772_v55 = vrot.slane %v24766_v50, %v24682_v53 }
  0x8d   : > { %14312 = vmatpush1.bf16.msra.mxu0 %v20939_v57  ;;  %14026 = vmatprep.subr.bf16.mxu1 %v20940_v59  ;;  %v21010_v59 = vld [vmem:[%s24596_s4 + $0x2a30] ss:$40 sps:$4 sm:$0xff]  }
  0x8e   : > { %14313 = vmatprep.subr.bf16.mxu0 %v20942_v60  ;;  %v2716_v57 = vcombine.high %v24772_v55, %v24772_v55  ;;  %v21015_v60 = vld [vmem:[%s24596_s4 + $0x784] ss:$40 sps:$4 sm:$0xff]  }
  0x90   : > { %14027 = vmatpush1.bf16.msra.mxu1 %v20944_v1  ;;  %v24781_v61 = vrot.slane %v2716_v57, %v24682_v53  ;;  %v21016_v1 = vld [vmem:[%s24596_s4 + $0x2a80] ss:$40 sps:$4 sm:$0xff]  }
  0x91   : > { %14314 = vmatpush1.bf16.msra.mxu0 %v20945_v2  ;;  %14028 = vmatprep.subr.bf16.mxu1 %v20946_v3  ;;  %v21021_v2 = vld [vmem:[%s24596_s4 + $0x7d4] ss:$40 sps:$4 sm:$0xff]   ;;  %v21076_v57 = vld [vmem:[%s24596_s4 + $0x2da0] ss:$40 sps:$4 sm:$0xff]  }
  0x92   : > { %14315 = vmatprep.subr.bf16.mxu0 %v20948_v4  ;;  %v21024_v3 = vld [vmem:[%s24596_s4 + $0x2ad4] ss:$40 sps:$4 sm:$0xff]   ;;  %v21019_v4 = vld [vmem:[%s24596_s4 + $0x7d0] ss:$40 sps:$4 sm:$0xff]  }
  0x94   : > { %14029 = vmatpush1.bf16.msra.mxu1 %v20950_v7  ;;  %v21027_v7 = vld [vmem:[%s24596_s4 + $0x824] ss:$40 sps:$4 sm:$0xff]  }
  0x95   : > { %14316 = vmatpush1.bf16.msra.mxu0 %v20951_v8  ;;  %14030 = vmatprep.subr.bf16.mxu1 %v20952_v9  ;;  %v21030_v8 = vld [vmem:[%s24596_s4 + $0x2b24] ss:$40 sps:$4 sm:$0xff]   ;;  %v21025_v9 = vld [vmem:[%s24596_s4 + $0x820] ss:$40 sps:$4 sm:$0xff]  }
  0x96   : > { %14317 = vmatprep.subr.bf16.mxu0 %v20954_v10  ;;  %v21028_v10 = vld [vmem:[%s24596_s4 + $0x2b20] ss:$40 sps:$4 sm:$0xff]  }
  0x98   : > { %14031 = vmatpush1.bf16.msra.mxu1 %v20956_v12  ;;  %v21033_v12 = vld [vmem:[%s24596_s4 + $0x874] ss:$40 sps:$4 sm:$0xff]  }
  0x99   : > { %14318 = vmatpush1.bf16.msra.mxu0 %v20957_v13  ;;  %14032 = vmatprep.subr.bf16.mxu1 %v20958_v14  ;;  %v21036_v13 = vld [vmem:[%s24596_s4 + $0x2b74] ss:$40 sps:$4 sm:$0xff]   ;;  %v21031_v14 = vld [vmem:[%s24596_s4 + $0x870] ss:$40 sps:$4 sm:$0xff]  }
  0x9a   : > { %14319 = vmatprep.subr.bf16.mxu0 %v20960_v15  ;;  %v21034_v15 = vld [vmem:[%s24596_s4 + $0x2b70] ss:$40 sps:$4 sm:$0xff]  }
  0x9c   : > { %14033 = vmatpush1.bf16.msra.mxu1 %v20962_v17  ;;  %v21039_v17 = vld [vmem:[%s24596_s4 + $0x8c4] ss:$40 sps:$4 sm:$0xff]  }
  0x9d   : > { %14320 = vmatpush1.bf16.msra.mxu0 %v20963_v18  ;;  %14043 = vmatprep.subr.bf16.mxu1 %v20966_v19  ;;  %v21042_v18 = vld [vmem:[%s24596_s4 + $0x2bc4] ss:$40 sps:$4 sm:$0xff]   ;;  %v21037_v19 = vld [vmem:[%s24596_s4 + $0x8c0] ss:$40 sps:$4 sm:$0xff]  }
  0x9e   : > { %14330 = vmatprep.subr.bf16.mxu0 %v20970_v20  ;;  %v21040_v20 = vld [vmem:[%s24596_s4 + $0x2bc0] ss:$40 sps:$4 sm:$0xff]  }
  0x9f   : > { %14035 = vmatmul.mubr.bf16.vlgmr.msra.gmra.mrb[0].mxu1 %v24727_v21 }
  0xa0   : > { %14322 = vmatmul.mubr.bf16.vlgmr.msra.gmra.mrb[0].mxu0 %v24731_v22  ;;  %14044 = vmatpush1.bf16.msra.mxu1 %v20964_v23  ;;  %v21045_v23 = vld [vmem:[%s24596_s4 + $0x914] ss:$40 sps:$4 sm:$0xff]  }
  0xa1   : > { %14331 = vmatpush1.bf16.msra.mxu0 %v20968_v24  ;;  %14045 = vmatprep.subr.bf16.mxu1 %v20973_v25  ;;  %v21048_v24 = vld [vmem:[%s24596_s4 + $0x2c14] ss:$40 sps:$4 sm:$0xff]   ;;  %v21043_v25 = vld [vmem:[%s24596_s4 + $0x910] ss:$40 sps:$4 sm:$0xff]  }
  0xa2   : > { %14332 = vmatprep.subr.bf16.mxu0 %v20976_v26  ;;  %14075 = vmatprep.mubr.bf16.mxu1 %v24739_v27  ;;  %v21046_v26 = vld [vmem:[%s24596_s4 + $0x2c10] ss:$40 sps:$4 sm:$0xff]  }
  0xa3   : > { %14362 = vmatprep.mubr.bf16.mxu0 %v24781_v61 }
  0xa4   : > { %14046 = vmatpush1.bf16.msra.mxu1 %v20971_v28  ;;  %v21051_v28 = vld [vmem:[%s24596_s4 + $0x964] ss:$40 sps:$4 sm:$0xff]  }
  0xa5   : > { %14333 = vmatpush1.bf16.msra.mxu0 %v20974_v29  ;;  %14047 = vmatprep.subr.bf16.mxu1 %v20979_v30  ;;  %v21054_v29 = vld [vmem:[%s24596_s4 + $0x2c64] ss:$40 sps:$4 sm:$0xff]   ;;  %v2603_v30 = vcombine.high %v24685_v54, %v24685_v54  ;;  %v21058_v54 = vld [vmem:[%s24596_s4 + $0x2cb0] ss:$40 sps:$4 sm:$0xff]  }
  0xa6   : > { %14334 = vmatprep.subr.bf16.mxu0 %v20982_v31  ;;  %v21049_v31 = vld [vmem:[%s24596_s4 + $0x960] ss:$40 sps:$4 sm:$0xff]  }
  0xa8   : > { %14048 = vmatpush1.bf16.msra.mxu1 %v20977_v32  ;;  %v21052_v32 = vld [vmem:[%s24596_s4 + $0x2c60] ss:$40 sps:$4 sm:$0xff]  }
  0xa9   : > { %14335 = vmatpush1.bf16.msra.mxu0 %v20980_v33  ;;  %14049 = vmatprep.subr.bf16.mxu1 %v20985_v34  ;;  %v21057_v33 = vld [vmem:[%s24596_s4 + $0x9b4] ss:$40 sps:$4 sm:$0xff]  }
  0xaa   : > { %14336 = vmatprep.subr.bf16.mxu0 %v20988_v35  ;;  %v21060_v34 = vld [vmem:[%s24596_s4 + $0x2cb4] ss:$40 sps:$4 sm:$0xff]   ;;  %v24816_v35 = vrot.slane %v2603_v30, %v24682_v53  ;;  %v21123_v30 = vld [vmem:[%s24596_s4 + $0xd24] ss:$40 sps:$4 sm:$0xff]  }
  0xac   : > { %14050 = vmatpush1.bf16.msra.mxu1 %v20983_v36  ;;  %v21055_v36 = vld [vmem:[%s24596_s4 + $0x9b0] ss:$40 sps:$4 sm:$0xff]  }
  0xad   : > { %14337 = vmatpush1.bf16.msra.mxu0 %v20986_v37  ;;  %14051 = vmatprep.subr.bf16.mxu1 %v20991_v38  ;;  %v21063_v37 = vld [vmem:[%s24596_s4 + $0xa04] ss:$40 sps:$4 sm:$0xff]  }
  0xae   : > { %14338 = vmatprep.subr.bf16.mxu0 %v20994_v39  ;;  %v21066_v38 = vld [vmem:[%s24596_s4 + $0x2d04] ss:$40 sps:$4 sm:$0xff]   ;;  %v2619_v39 = vcombine.high %v24816_v35, %v24816_v35 }
  0xb0   : > { %14052 = vmatpush1.bf16.msra.mxu1 %v20989_v40  ;;  %v21061_v40 = vld [vmem:[%s24596_s4 + $0xa00] ss:$40 sps:$4 sm:$0xff]  }
  0xb1   : > { %14339 = vmatpush1.bf16.msra.mxu0 %v20992_v41  ;;  %14053 = vmatprep.subr.bf16.mxu1 %v20997_v42  ;;  %v24827_v41 = vcombine.high %v24727_v21, %v24727_v21  ;;  %v24831_v42 = vrot.slane %v24772_v55, %v24682_v53  ;;  %v21078_v55 = vld [vmem:[%s24596_s4 + $0x2da4] ss:$40 sps:$4 sm:$0xff]  }
  0xb2   : > { %14340 = vmatprep.subr.bf16.mxu0 %v21000_v43  ;;  %v21064_v43 = vld [vmem:[%s24596_s4 + $0x2d00] ss:$40 sps:$4 sm:$0xff]  }
  0xb4   : > { %14054 = vmatpush1.bf16.msra.mxu1 %v20995_v44  ;;  %v21069_v44 = vld [vmem:[%s24596_s4 + $0xa54] ss:$40 sps:$4 sm:$0xff]  }
  0xb5   : > { %14341 = vmatpush1.bf16.msra.mxu0 %v20998_v45  ;;  %14055 = vmatprep.subr.bf16.mxu1 %v21003_v46  ;;  %v21072_v45 = vld [vmem:[%s24596_s4 + $0x2d54] ss:$40 sps:$4 sm:$0xff]   ;;  %v24837_v46 = vrot.slane %v2619_v39, %v24682_v53  ;;  %v21138_v39 = vld [vmem:[%s24596_s4 + $0x30c4] ss:$40 sps:$4 sm:$0xff]  }
  0xb6   : > { %14342 = vmatprep.subr.bf16.mxu0 %v21006_v47  ;;  %v24841_v47 = vcombine.high %v24781_v61, %v24781_v61 }
  0xb8   : > { %14056 = vmatpush1.bf16.msra.mxu1 %v21001_v49  ;;  %v21067_v49 = vld [vmem:[%s24596_s4 + $0xa50] ss:$40 sps:$4 sm:$0xff]  }
  0xb9   : > { %14343 = vmatpush1.bf16.msra.mxu0 %v21004_v51  ;;  %14057 = vmatprep.subr.bf16.mxu1 %v21009_v52  ;;  %v21070_v51 = vld [vmem:[%s24596_s4 + $0x2d50] ss:$40 sps:$4 sm:$0xff]   ;;  %v21075_v52 = vld [vmem:[%s24596_s4 + $0xaa4] ss:$40 sps:$4 sm:$0xff]  }
  0xba   : > { %14344 = vmatprep.subr.bf16.mxu0 %v21012_v56  ;;  %v21073_v56 = vld [vmem:[%s24596_s4 + $0xaa0] ss:$40 sps:$4 sm:$0xff]  }
  0xbc   : > { %14058 = vmatpush1.bf16.msra.mxu1 %v21007_v58  ;;  %v21081_v58 = vld [vmem:[%s24596_s4 + $0xaf4] ss:$40 sps:$4 sm:$0xff]  }
  0xbd   : > { %14345 = vmatpush1.bf16.msra.mxu0 %v21010_v59  ;;  %14059 = vmatprep.subr.bf16.mxu1 %v21015_v60  ;;  %v21084_v59 = vld [vmem:[%s24596_s4 + $0x2df4] ss:$40 sps:$4 sm:$0xff]   ;;  %v21079_v60 = vld [vmem:[%s24596_s4 + $0xaf0] ss:$40 sps:$4 sm:$0xff]  }
  0xbe   : > { %14346 = vmatprep.subr.bf16.mxu0 %v21018_v62  ;;  %v21082_v62 = vld [vmem:[%s24596_s4 + $0x2df0] ss:$40 sps:$4 sm:$0xff]  }
  0xc0   : > { %14060 = vmatpush1.bf16.msra.mxu1 %v21013_v0  ;;  %v21087_v0 = vld [vmem:[%s24596_s4 + $0xb44] ss:$40 sps:$4 sm:$0xff]  }
  0xc1   : > { %14347 = vmatpush1.bf16.msra.mxu0 %v21016_v1  ;;  %14061 = vmatprep.subr.bf16.mxu1 %v21021_v2  ;;  %v21090_v1 = vld [vmem:[%s24596_s4 + $0x2e44] ss:$40 sps:$4 sm:$0xff]   ;;  %v21085_v2 = vld [vmem:[%s24596_s4 + $0xb40] ss:$40 sps:$4 sm:$0xff]  }
  0xc2   : > { %14348 = vmatprep.subr.bf16.mxu0 %v21024_v3  ;;  %v21088_v3 = vld [vmem:[%s24596_s4 + $0x2e40] ss:$40 sps:$4 sm:$0xff]  }
  0xc4   : > { %14062 = vmatpush1.bf16.msra.mxu1 %v21019_v4  ;;  %v21093_v4 = vld [vmem:[%s24596_s4 + $0xb94] ss:$40 sps:$4 sm:$0xff]  }
  0xc5   : > { %14349 = vmatpush1.bf16.msra.mxu0 %v21022_v5  ;;  %14063 = vmatprep.subr.bf16.mxu1 %v21027_v7  ;;  %v21096_v5 = vld [vmem:[%s24596_s4 + $0x2e94] ss:$40 sps:$4 sm:$0xff]   ;;  %v21091_v7 = vld [vmem:[%s24596_s4 + $0xb90] ss:$40 sps:$4 sm:$0xff]  }
  0xc6   : > { %14350 = vmatprep.subr.bf16.mxu0 %v21030_v8  ;;  %v21094_v8 = vld [vmem:[%s24596_s4 + $0x2e90] ss:$40 sps:$4 sm:$0xff]  }
  0xc8   : > { %14064 = vmatpush1.bf16.msra.mxu1 %v21025_v9  ;;  %v21099_v9 = vld [vmem:[%s24596_s4 + $0xbe4] ss:$40 sps:$4 sm:$0xff]  }
  0xc9   : > { %14351 = vmatpush1.bf16.msra.mxu0 %v21028_v10  ;;  %14065 = vmatprep.subr.bf16.mxu1 %v21033_v12  ;;  %v21102_v10 = vld [vmem:[%s24596_s4 + $0x2ee4] ss:$40 sps:$4 sm:$0xff]   ;;  %v21097_v12 = vld [vmem:[%s24596_s4 + $0xbe0] ss:$40 sps:$4 sm:$0xff]  }
  0xca   : > { %14352 = vmatprep.subr.bf16.mxu0 %v21036_v13  ;;  %v21100_v13 = vld [vmem:[%s24596_s4 + $0x2ee0] ss:$40 sps:$4 sm:$0xff]  }
  0xcc   : > { %14066 = vmatpush1.bf16.msra.mxu1 %v21031_v14  ;;  %v21105_v14 = vld [vmem:[%s24596_s4 + $0xc34] ss:$40 sps:$4 sm:$0xff]  }
  0xcd   : > { %14353 = vmatpush1.bf16.msra.mxu0 %v21034_v15  ;;  %14067 = vmatprep.subr.bf16.mxu1 %v21039_v17  ;;  %v21108_v15 = vld [vmem:[%s24596_s4 + $0x2f34] ss:$40 sps:$4 sm:$0xff]   ;;  %v21103_v17 = vld [vmem:[%s24596_s4 + $0xc30] ss:$40 sps:$4 sm:$0xff]  }
  0xce   : > { %14354 = vmatprep.subr.bf16.mxu0 %v21042_v18  ;;  %v21106_v18 = vld [vmem:[%s24596_s4 + $0x2f30] ss:$40 sps:$4 sm:$0xff]  }
  0xd0   : > { %14068 = vmatpush1.bf16.msra.mxu1 %v21037_v19  ;;  %v21111_v19 = vld [vmem:[%s24596_s4 + $0xc84] ss:$40 sps:$4 sm:$0xff]  }
  0xd1   : > { %14355 = vmatpush1.bf16.msra.mxu0 %v21040_v20  ;;  %14069 = vmatprep.subr.bf16.mxu1 %v21045_v23  ;;  %v21114_v20 = vld [vmem:[%s24596_s4 + $0x2f84] ss:$40 sps:$4 sm:$0xff]   ;;  %v21109_v23 = vld [vmem:[%s24596_s4 + $0xc80] ss:$40 sps:$4 sm:$0xff]  }
  0xd2   : > { %14356 = vmatprep.subr.bf16.mxu0 %v21048_v24  ;;  %v21112_v24 = vld [vmem:[%s24596_s4 + $0x2f80] ss:$40 sps:$4 sm:$0xff]  }
  0xd4   : > { %14070 = vmatpush1.bf16.msra.mxu1 %v21043_v25  ;;  %v21117_v25 = vld [vmem:[%s24596_s4 + $0xcd4] ss:$40 sps:$4 sm:$0xff]  }
  0xd5   : > { %14357 = vmatpush1.bf16.msra.mxu0 %v21046_v26  ;;  %14071 = vmatprep.subr.bf16.mxu1 %v21051_v28  ;;  %v21120_v26 = vld [vmem:[%s24596_s4 + $0x2fd4] ss:$40 sps:$4 sm:$0xff]   ;;  %v21115_v28 = vld [vmem:[%s24596_s4 + $0xcd0] ss:$40 sps:$4 sm:$0xff]  }
  0xd6   : > { %14358 = vmatprep.subr.bf16.mxu0 %v21054_v29  ;;  %v21118_v29 = vld [vmem:[%s24596_s4 + $0x2fd0] ss:$40 sps:$4 sm:$0xff]  }
  0xd8   : > { %14072 = vmatpush1.bf16.msra.mxu1 %v21049_v31  ;;  %v21126_v31 = vld [vmem:[%s24596_s4 + $0x3024] ss:$40 sps:$4 sm:$0xff]  }
  0xd9   : > { %14359 = vmatpush1.bf16.msra.mxu0 %v21052_v32  ;;  %14073 = vmatprep.subr.bf16.mxu1 %v21057_v33  ;;  %v21121_v32 = vld [vmem:[%s24596_s4 + $0xd20] ss:$40 sps:$4 sm:$0xff]  }
  0xda   : > { %14360 = vmatprep.subr.bf16.mxu0 %v21060_v34  ;;  %v21124_v33 = vld [vmem:[%s24596_s4 + $0x3020] ss:$40 sps:$4 sm:$0xff]   ;;  %v21129_v34 = vld [vmem:[%s24596_s4 + $0xd74] ss:$40 sps:$4 sm:$0xff]  }
  0xdc   : > { %14074 = vmatpush1.bf16.msra.mxu1 %v21055_v36  ;;  %v21132_v36 = vld [vmem:[%s24596_s4 + $0x3074] ss:$40 sps:$4 sm:$0xff]  }
  0xdd   : > { %14361 = vmatpush1.bf16.msra.mxu0 %v21058_v54  ;;  %14084 = vmatprep.subr.bf16.mxu1 %v21063_v37  ;;  %v21127_v54 = vld [vmem:[%s24596_s4 + $0xd70] ss:$40 sps:$4 sm:$0xff]  }
  0xde   : > { %14371 = vmatprep.subr.bf16.mxu0 %v21066_v38  ;;  %v21130_v37 = vld [vmem:[%s24596_s4 + $0x3070] ss:$40 sps:$4 sm:$0xff]   ;;  %v21135_v38 = vld [vmem:[%s24596_s4 + $0xdc4] ss:$40 sps:$4 sm:$0xff]  }
  0xdf   : > { %14076 = vmatmul.mubr.bf16.vlgmr.msra.gmra.mrb[0].mxu1 %v24827_v41 }
  0xe0   : > { %14363 = vmatmul.mubr.bf16.vlgmr.msra.gmra.mrb[0].mxu0 %v24831_v42  ;;  %14085 = vmatpush1.bf16.msra.mxu1 %v21061_v40  ;;  %v21133_v40 = vld [vmem:[%s24596_s4 + $0xdc0] ss:$40 sps:$4 sm:$0xff]  }
  0xe1   : > { %14372 = vmatpush1.bf16.msra.mxu0 %v21064_v43  ;;  %14086 = vmatprep.subr.bf16.mxu1 %v21069_v44  ;;  %v21136_v43 = vld [vmem:[%s24596_s4 + $0x30c0] ss:$40 sps:$4 sm:$0xff]   ;;  %v21141_v44 = vld [vmem:[%s24596_s4 + $0xe14] ss:$40 sps:$4 sm:$0xff]  }
  0xe2   : > { %14373 = vmatprep.subr.bf16.mxu0 %v21072_v45  ;;  %14116 = vmatprep.mubr.bf16.mxu1 %v24837_v46  ;;  %v21144_v45 = vld [vmem:[%s24596_s4 + $0x3114] ss:$40 sps:$4 sm:$0xff]  }
  0xe3   : > { %14403 = vmatprep.mubr.bf16.mxu0 %v24841_v47 }
  0xe4   : > { %14087 = vmatpush1.bf16.msra.mxu1 %v21067_v49  ;;  %v21139_v49 = vld [vmem:[%s24596_s4 + $0xe10] ss:$40 sps:$4 sm:$0xff]  }
  0xe5   : > { %14374 = vmatpush1.bf16.msra.mxu0 %v21070_v51  ;;  %14088 = vmatprep.subr.bf16.mxu1 %v21075_v52  ;;  %v21142_v51 = vld [vmem:[%s24596_s4 + $0x3110] ss:$40 sps:$4 sm:$0xff]   ;;  %v21147_v52 = vld [vmem:[%s24596_s4 + $0xe64] ss:$40 sps:$4 sm:$0xff]  }
  0xe6   : > { %14375 = vmatprep.subr.bf16.mxu0 %v21078_v55  ;;  %v21150_v55 = vld [vmem:[%s24596_s4 + $0x3164] ss:$40 sps:$4 sm:$0xff]  }
  0xe8   : > { %14089 = vmatpush1.bf16.msra.mxu1 %v21073_v56  ;;  %v2701_v56 = vcombine.high %v24766_v50, %v24766_v50  ;;  %v21154_v50 = vld [vmem:[%s24596_s4 + $0x31b0] ss:$40 sps:$4 sm:$0xff]  }
  0xe9   : > { %14376 = vmatpush1.bf16.msra.mxu0 %v21076_v57  ;;  %14090 = vmatprep.subr.bf16.mxu1 %v21081_v58  ;;  %v21145_v57 = vld [vmem:[%s24596_s4 + $0xe60] ss:$40 sps:$4 sm:$0xff]  }
  0xea   : > { %14377 = vmatprep.subr.bf16.mxu0 %v21084_v59  ;;  %v21148_v58 = vld [vmem:[%s24596_s4 + $0x3160] ss:$40 sps:$4 sm:$0xff]   ;;  %v21153_v59 = vld [vmem:[%s24596_s4 + $0xeb4] ss:$40 sps:$4 sm:$0xff]  }
  0xec   : > { %14091 = vmatpush1.bf16.msra.mxu1 %v21079_v60  ;;  %v21156_v60 = vld [vmem:[%s24596_s4 + $0x31b4] ss:$40 sps:$4 sm:$0xff]  }
  0xed   : > { %14378 = vmatpush1.bf16.msra.mxu0 %v21082_v62  ;;  %14092 = vmatprep.subr.bf16.mxu1 %v21087_v0  ;;  %v24906_v62 = vrot.slane %v2701_v56, %v24682_v53  ;;  %v21151_v0 = vld [vmem:[%s24596_s4 + $0xeb0] ss:$40 sps:$4 sm:$0xff]   ;;  %v21217_v56 = vld [vmem:[%s24596_s4 + $0x34d4] ss:$40 sps:$4 sm:$0xff]  }
  0xee   : > { %14379 = vmatprep.subr.bf16.mxu0 %v21090_v1  ;;  %v21160_v1 = vld [vmem:[%s24596_s4 + $0xf04] ss:$40 sps:$4 sm:$0xff]  }
  0xf0   : > { %14093 = vmatpush1.bf16.msra.mxu1 %v21085_v2  ;;  %v21163_v2 = vld [vmem:[%s24596_s4 + $0x3204] ss:$40 sps:$4 sm:$0xff]  }
  0xf1   : > { %14380 = vmatpush1.bf16.msra.mxu0 %v21088_v3  ;;  %14094 = vmatprep.subr.bf16.mxu1 %v21093_v4  ;;  %v2717_v3 = vcombine.high %v24906_v62, %v24906_v62  ;;  %v21158_v4 = vld [vmem:[%s24596_s4 + $0xf00] ss:$40 sps:$4 sm:$0xff]  }
  0xf2   : > { %14381 = vmatprep.subr.bf16.mxu0 %v21096_v5  ;;  %v24917_v5 = vrot.slane %v24816_v35, %v24682_v53 }
  0xf3   : > { %v24931_v35 = vrot.slane %v2717_v3, %v24682_v53  ;;  %v21224_v3 = vld [vmem:[%s24596_s4 + $0x1270] ss:$40 sps:$4 sm:$0xff]  }
  0xf4   : > { %14095 = vmatpush1.bf16.msra.mxu1 %v21091_v7  ;;  %v24921_v7 = vcombine.high %v24831_v42, %v24831_v42 }
  0xf5   : > { %14382 = vmatpush1.bf16.msra.mxu0 %v21094_v8  ;;  %14096 = vmatprep.subr.bf16.mxu1 %v21099_v9  ;;  %v21161_v8 = vld [vmem:[%s24596_s4 + $0x3200] ss:$40 sps:$4 sm:$0xff]   ;;  %v21166_v9 = vld [vmem:[%s24596_s4 + $0xf54] ss:$40 sps:$4 sm:$0xff]  }
  0xf6   : > { %14383 = vmatprep.subr.bf16.mxu0 %v21102_v10  ;;  %v21169_v10 = vld [vmem:[%s24596_s4 + $0x3254] ss:$40 sps:$4 sm:$0xff]  }
  0xf8   : > { %14097 = vmatpush1.bf16.msra.mxu1 %v21097_v12  ;;  %v24928_v12 = vcombine.high %v24837_v46, %v24837_v46 }
  0xf9   : > { %14384 = vmatpush1.bf16.msra.mxu0 %v21100_v13  ;;  %14098 = vmatprep.subr.bf16.mxu1 %v21105_v14  ;;  %v21164_v13 = vld [vmem:[%s24596_s4 + $0xf50] ss:$40 sps:$4 sm:$0xff]  }
  0xfa   : > { %14385 = vmatprep.subr.bf16.mxu0 %v21108_v15  ;;  %v21167_v14 = vld [vmem:[%s24596_s4 + $0x3250] ss:$40 sps:$4 sm:$0xff]   ;;  %v21172_v15 = vld [vmem:[%s24596_s4 + $0xfa4] ss:$40 sps:$4 sm:$0xff]  }
  0xfc   : > { %14099 = vmatpush1.bf16.msra.mxu1 %v21103_v17  ;;  %v21175_v17 = vld [vmem:[%s24596_s4 + $0x32a4] ss:$40 sps:$4 sm:$0xff]  }
  0xfd   : > { %14386 = vmatpush1.bf16.msra.mxu0 %v21106_v18  ;;  %14100 = vmatprep.subr.bf16.mxu1 %v21111_v19  ;;  %v21170_v18 = vld [vmem:[%s24596_s4 + $0xfa0] ss:$40 sps:$4 sm:$0xff]  }
  0xfe   : > { %14387 = vmatprep.subr.bf16.mxu0 %v21114_v20  ;;  %v21173_v19 = vld [vmem:[%s24596_s4 + $0x32a0] ss:$40 sps:$4 sm:$0xff]   ;;  %v21178_v20 = vld [vmem:[%s24596_s4 + $0xff4] ss:$40 sps:$4 sm:$0xff]  }
 0x100   : > { %14101 = vmatpush1.bf16.msra.mxu1 %v21109_v23  ;;  %v21181_v23 = vld [vmem:[%s24596_s4 + $0x32f4] ss:$40 sps:$4 sm:$0xff]  }
 0x101   : > { %14388 = vmatpush1.bf16.msra.mxu0 %v21112_v24  ;;  %14102 = vmatprep.subr.bf16.mxu1 %v21117_v25  ;;  %v21176_v24 = vld [vmem:[%s24596_s4 + $0xff0] ss:$40 sps:$4 sm:$0xff]  }
 0x102   : > { %14389 = vmatprep.subr.bf16.mxu0 %v21120_v26  ;;  %v21179_v25 = vld [vmem:[%s24596_s4 + $0x32f0] ss:$40 sps:$4 sm:$0xff]   ;;  %v21184_v26 = vld [vmem:[%s24596_s4 + $0x1044] ss:$40 sps:$4 sm:$0xff]  }
 0x104   : > { %14103 = vmatpush1.bf16.msra.mxu1 %v21115_v28  ;;  %v21187_v28 = vld [vmem:[%s24596_s4 + $0x3344] ss:$40 sps:$4 sm:$0xff]  }
 0x105   : > { %14390 = vmatpush1.bf16.msra.mxu0 %v21118_v29  ;;  %14104 = vmatprep.subr.bf16.mxu1 %v21123_v30  ;;  %v21182_v29 = vld [vmem:[%s24596_s4 + $0x1040] ss:$40 sps:$4 sm:$0xff]  }
 0x106   : > { %14391 = vmatprep.subr.bf16.mxu0 %v21126_v31  ;;  %v21185_v30 = vld [vmem:[%s24596_s4 + $0x3340] ss:$40 sps:$4 sm:$0xff]   ;;  %v21190_v31 = vld [vmem:[%s24596_s4 + $0x1094] ss:$40 sps:$4 sm:$0xff]  }
 0x108   : > { %14105 = vmatpush1.bf16.msra.mxu1 %v21121_v32  ;;  %v21193_v32 = vld [vmem:[%s24596_s4 + $0x3394] ss:$40 sps:$4 sm:$0xff]  }
 0x109   : > { %14392 = vmatpush1.bf16.msra.mxu0 %v21124_v33  ;;  %14106 = vmatprep.subr.bf16.mxu1 %v21129_v34  ;;  %v21188_v33 = vld [vmem:[%s24596_s4 + $0x1090] ss:$40 sps:$4 sm:$0xff]  }
 0x10a   : > { %14393 = vmatprep.subr.bf16.mxu0 %v21132_v36  ;;  %v21191_v34 = vld [vmem:[%s24596_s4 + $0x3390] ss:$40 sps:$4 sm:$0xff]   ;;  %v21196_v36 = vld [vmem:[%s24596_s4 + $0x10e4] ss:$40 sps:$4 sm:$0xff]  }
 0x10c   : > { %14107 = vmatpush1.bf16.msra.mxu1 %v21127_v54  ;;  %v21199_v54 = vld [vmem:[%s24596_s4 + $0x33e4] ss:$40 sps:$4 sm:$0xff]  }
 0x10d   : > { %14394 = vmatpush1.bf16.msra.mxu0 %v21130_v37  ;;  %14108 = vmatprep.subr.bf16.mxu1 %v21135_v38  ;;  %v21194_v37 = vld [vmem:[%s24596_s4 + $0x10e0] ss:$40 sps:$4 sm:$0xff]  }
 0x10e   : > { %14395 = vmatprep.subr.bf16.mxu0 %v21138_v39  ;;  %v21197_v38 = vld [vmem:[%s24596_s4 + $0x33e0] ss:$40 sps:$4 sm:$0xff]   ;;  %v21202_v39 = vld [vmem:[%s24596_s4 + $0x1134] ss:$40 sps:$4 sm:$0xff]  }
 0x110   : > { %14109 = vmatpush1.bf16.msra.mxu1 %v21133_v40  ;;  %v21205_v40 = vld [vmem:[%s24596_s4 + $0x3434] ss:$40 sps:$4 sm:$0xff]  }
 0x111   : > { %14396 = vmatpush1.bf16.msra.mxu0 %v21136_v43  ;;  %14110 = vmatprep.subr.bf16.mxu1 %v21141_v44  ;;  %v21200_v43 = vld [vmem:[%s24596_s4 + $0x1130] ss:$40 sps:$4 sm:$0xff]  }
 0x112   : > { %14397 = vmatprep.subr.bf16.mxu0 %v21144_v45  ;;  %v21203_v44 = vld [vmem:[%s24596_s4 + $0x3430] ss:$40 sps:$4 sm:$0xff]   ;;  %v21208_v45 = vld [vmem:[%s24596_s4 + $0x1184] ss:$40 sps:$4 sm:$0xff]  }
 0x114   : > { %14111 = vmatpush1.bf16.msra.mxu1 %v21139_v49  ;;  %v21211_v49 = vld [vmem:[%s24596_s4 + $0x3484] ss:$40 sps:$4 sm:$0xff]  }
 0x115   : > { %14398 = vmatpush1.bf16.msra.mxu0 %v21142_v51  ;;  %14112 = vmatprep.subr.bf16.mxu1 %v21147_v52  ;;  %v21206_v51 = vld [vmem:[%s24596_s4 + $0x1180] ss:$40 sps:$4 sm:$0xff]  }
 0x116   : > { %14399 = vmatprep.subr.bf16.mxu0 %v21150_v55  ;;  %v21209_v52 = vld [vmem:[%s24596_s4 + $0x3480] ss:$40 sps:$4 sm:$0xff]   ;;  %v21214_v55 = vld [vmem:[%s24596_s4 + $0x11d4] ss:$40 sps:$4 sm:$0xff]  }
 0x118   : > { %14113 = vmatpush1.bf16.msra.mxu1 %v21145_v57  ;;  %v21212_v57 = vld [vmem:[%s24596_s4 + $0x11d0] ss:$40 sps:$4 sm:$0xff]  }
 0x119   : > { %14400 = vmatpush1.bf16.msra.mxu0 %v21148_v58  ;;  %14114 = vmatprep.subr.bf16.mxu1 %v21153_v59  ;;  %v21215_v58 = vld [vmem:[%s24596_s4 + $0x34d0] ss:$40 sps:$4 sm:$0xff]   ;;  %v21220_v59 = vld [vmem:[%s24596_s4 + $0x1224] ss:$40 sps:$4 sm:$0xff]  }
 0x11a   : > { %14401 = vmatprep.subr.bf16.mxu0 %v21156_v60  ;;  %v21223_v60 = vld [vmem:[%s24596_s4 + $0x3524] ss:$40 sps:$4 sm:$0xff]  }
 0x11c   : > { %14115 = vmatpush1.bf16.msra.mxu1 %v21151_v0  ;;  %v21218_v0 = vld [vmem:[%s24596_s4 + $0x1220] ss:$40 sps:$4 sm:$0xff]  }
 0x11d   : > { %14402 = vmatpush1.bf16.msra.mxu0 %v21154_v50  ;;  %14125 = vmatprep.subr.bf16.mxu1 %v21160_v1  ;;  %v21221_v50 = vld [vmem:[%s24596_s4 + $0x3520] ss:$40 sps:$4 sm:$0xff]   ;;  %v21226_v1 = vld [vmem:[%s24596_s4 + $0x1274] ss:$40 sps:$4 sm:$0xff]  }
 0x11e   : > { %14412 = vmatprep.subr.bf16.mxu0 %v21163_v2  ;;  %v21229_v2 = vld [vmem:[%s24596_s4 + $0x3574] ss:$40 sps:$4 sm:$0xff]  }
 0x11f   : > { %14117 = vmatmul.mubr.bf16.vlgmr.msra.gmra.mrb[0].mxu1 %v24917_v5 }
 0x120   : > { %14404 = vmatmul.mubr.bf16.vlgmr.msra.gmra.mrb[0].mxu0 %v24921_v7  ;;  %14126 = vmatpush1.bf16.msra.mxu1 %v21158_v4  ;;  %v21227_v4 = vld [vmem:[%s24596_s4 + $0x3570] ss:$40 sps:$4 sm:$0xff]  }
 0x121   : > { %14413 = vmatpush1.bf16.msra.mxu0 %v21161_v8  ;;  %14127 = vmatprep.subr.bf16.mxu1 %v21166_v9  ;;  %v21232_v8 = vld [vmem:[%s24596_s4 + $0x12c4] ss:$40 sps:$4 sm:$0xff]  }
 0x122   : > { %14414 = vmatprep.subr.bf16.mxu0 %v21169_v10  ;;  %14157 = vmatprep.mubr.bf16.mxu1 %v24928_v12  ;;  %v21235_v9 = vld [vmem:[%s24596_s4 + $0x35c4] ss:$40 sps:$4 sm:$0xff]   ;;  %v21230_v10 = vld [vmem:[%s24596_s4 + $0x12c0] ss:$40 sps:$4 sm:$0xff]  }
 0x123   : > { %14444 = vmatprep.mubr.bf16.mxu0 %v24931_v35 }
 0x124   : > { %14128 = vmatpush1.bf16.msra.mxu1 %v21164_v13  ;;  %v21233_v13 = vld [vmem:[%s24596_s4 + $0x35c0] ss:$40 sps:$4 sm:$0xff]  }
 0x125   : > { %14415 = vmatpush1.bf16.msra.mxu0 %v21167_v14  ;;  %14129 = vmatprep.subr.bf16.mxu1 %v21172_v15  ;;  %v21238_v14 = vld [vmem:[%s24596_s4 + $0x1314] ss:$40 sps:$4 sm:$0xff]  }
 0x126   : > { %14416 = vmatprep.subr.bf16.mxu0 %v21175_v17  ;;  %v21241_v15 = vld [vmem:[%s24596_s4 + $0x3614] ss:$40 sps:$4 sm:$0xff]   ;;  %v21236_v17 = vld [vmem:[%s24596_s4 + $0x1310] ss:$40 sps:$4 sm:$0xff]  }
 0x128   : > { %14130 = vmatpush1.bf16.msra.mxu1 %v21170_v18  ;;  %v21239_v18 = vld [vmem:[%s24596_s4 + $0x3610] ss:$40 sps:$4 sm:$0xff]  }
 0x129   : > { %14417 = vmatpush1.bf16.msra.mxu0 %v21173_v19  ;;  %14131 = vmatprep.subr.bf16.mxu1 %v21178_v20  ;;  %v21244_v19 = vld [vmem:[%s24596_s4 + $0x1364] ss:$40 sps:$4 sm:$0xff]  }
 0x12a   : > { %14418 = vmatprep.subr.bf16.mxu0 %v21181_v23  ;;  %v21247_v20 = vld [vmem:[%s24596_s4 + $0x3664] ss:$40 sps:$4 sm:$0xff]   ;;  %v21242_v23 = vld [vmem:[%s24596_s4 + $0x1360] ss:$40 sps:$4 sm:$0xff]  }
 0x12c   : > { %14132 = vmatpush1.bf16.msra.mxu1 %v21176_v24  ;;  %v21245_v24 = vld [vmem:[%s24596_s4 + $0x3660] ss:$40 sps:$4 sm:$0xff]  }
 0x12d   : > { %14419 = vmatpush1.bf16.msra.mxu0 %v21179_v25  ;;  %14133 = vmatprep.subr.bf16.mxu1 %v21184_v26  ;;  %v21250_v25 = vld [vmem:[%s24596_s4 + $0x13b4] ss:$40 sps:$4 sm:$0xff]  }
 0x12e   : > { %14420 = vmatprep.subr.bf16.mxu0 %v21187_v28  ;;  %v21253_v26 = vld [vmem:[%s24596_s4 + $0x36b4] ss:$40 sps:$4 sm:$0xff]  }
 0x12f   : > { %v24994_v28 = vld.sshfl [vmem:[%s24610_s9 + $0x8] sm:$0xff pattern:$0x75316420] }
 0x130   : > { %14134 = vmatpush1.bf16.msra.mxu1 %v21182_v29  ;;  %v21248_v29 = vld [vmem:[%s24596_s4 + $0x13b0] ss:$40 sps:$4 sm:$0xff]  }
 0x131   : > { %14421 = vmatpush1.bf16.msra.mxu0 %v21185_v30  ;;  %14135 = vmatprep.subr.bf16.mxu1 %v21190_v31  ;;  %v21251_v30 = vld [vmem:[%s24596_s4 + $0x36b0] ss:$40 sps:$4 sm:$0xff]   ;;  %v21256_v31 = vld [vmem:[%s24596_s4 + $0x1404] ss:$40 sps:$4 sm:$0xff]  }
 0x132   : > { %14422 = vmatprep.subr.bf16.mxu0 %v21193_v32  ;;  %v21260_v32 = vld [vmem:[%s24596_s4 + $0x3704] ss:$40 sps:$4 sm:$0xff]  }
 0x134   : > { %14136 = vmatpush1.bf16.msra.mxu1 %v21188_v33  ;;  %v2667_v33 = vcombine.high %v24994_v28, %v24994_v28 }
 0x135   : > { %14423 = vmatpush1.bf16.msra.mxu0 %v21191_v34  ;;  %14137 = vmatprep.subr.bf16.mxu1 %v21196_v36  ;;  %v21254_v34 = vld [vmem:[%s24596_s4 + $0x1400] ss:$40 sps:$4 sm:$0xff]   ;;  %v25005_v36 = vcombine.high %v24917_v5, %v24917_v5 }
 0x136   : > { %14424 = vmatprep.subr.bf16.mxu0 %v21199_v54  ;;  %v25009_v54 = vrot.slane %v24906_v62, %v24682_v53  ;;  %v21261_v62 = vld [vmem:[%s24596_s4 + $0x1450] ss:$40 sps:$4 sm:$0xff]  }
 0x138   : > { %14138 = vmatpush1.bf16.msra.mxu1 %v21194_v37  ;;  %v21258_v37 = vld [vmem:[%s24596_s4 + $0x3700] ss:$40 sps:$4 sm:$0xff]  }
 0x139   : > { %14425 = vmatpush1.bf16.msra.mxu0 %v21197_v38  ;;  %14139 = vmatprep.subr.bf16.mxu1 %v21202_v39  ;;  %v21263_v38 = vld [vmem:[%s24596_s4 + $0x1454] ss:$40 sps:$4 sm:$0xff]  }
 0x13a   : > { %14426 = vmatprep.subr.bf16.mxu0 %v21205_v40  ;;  %v21266_v39 = vld [vmem:[%s24596_s4 + $0x3754] ss:$40 sps:$4 sm:$0xff]   ;;  %v25015_v40 = vrot.slane %v2667_v33, %v24682_v53  ;;  %v21315_v33 = vld [vmem:[%s24596_s4 + $0x1720] ss:$40 sps:$4 sm:$0xff]  }
 0x13c   : > { %14140 = vmatpush1.bf16.msra.mxu1 %v21200_v43  ;;  %v25019_v43 = vcombine.high %v24931_v35, %v24931_v35 }
 0x13d   : > { %14427 = vmatpush1.bf16.msra.mxu0 %v21203_v44  ;;  %14141 = vmatprep.subr.bf16.mxu1 %v21208_v45  ;;  %v21264_v44 = vld [vmem:[%s24596_s4 + $0x3750] ss:$40 sps:$4 sm:$0xff]   ;;  %v21269_v45 = vld [vmem:[%s24596_s4 + $0x14a4] ss:$40 sps:$4 sm:$0xff]  }
 0x13e   : > { %14428 = vmatprep.subr.bf16.mxu0 %v21211_v49  ;;  %v21272_v49 = vld [vmem:[%s24596_s4 + $0x37a4] ss:$40 sps:$4 sm:$0xff]  }
 0x140   : > { %14142 = vmatpush1.bf16.msra.mxu1 %v21206_v51  ;;  %v21267_v51 = vld [vmem:[%s24596_s4 + $0x14a0] ss:$40 sps:$4 sm:$0xff]  }
 0x141   : > { %14429 = vmatpush1.bf16.msra.mxu0 %v21209_v52  ;;  %14143 = vmatprep.subr.bf16.mxu1 %v21214_v55  ;;  %v21270_v52 = vld [vmem:[%s24596_s4 + $0x37a0] ss:$40 sps:$4 sm:$0xff]   ;;  %v21275_v55 = vld [vmem:[%s24596_s4 + $0x14f4] ss:$40 sps:$4 sm:$0xff]  }
 0x142   : > { %14430 = vmatprep.subr.bf16.mxu0 %v21217_v56  ;;  %v21278_v56 = vld [vmem:[%s24596_s4 + $0x37f4] ss:$40 sps:$4 sm:$0xff]  }
 0x144   : > { %14144 = vmatpush1.bf16.msra.mxu1 %v21212_v57  ;;  %v21273_v57 = vld [vmem:[%s24596_s4 + $0x14f0] ss:$40 sps:$4 sm:$0xff]  }
 0x145   : > { %14431 = vmatpush1.bf16.msra.mxu0 %v21215_v58  ;;  %14145 = vmatprep.subr.bf16.mxu1 %v21220_v59  ;;  %v21276_v58 = vld [vmem:[%s24596_s4 + $0x37f0] ss:$40 sps:$4 sm:$0xff]   ;;  %v21281_v59 = vld [vmem:[%s24596_s4 + $0x1544] ss:$40 sps:$4 sm:$0xff]  }
 0x146   : > { %14432 = vmatprep.subr.bf16.mxu0 %v21223_v60  ;;  %v21284_v60 = vld [vmem:[%s24596_s4 + $0x3844] ss:$40 sps:$4 sm:$0xff]  }
 0x148   : > { %14146 = vmatpush1.bf16.msra.mxu1 %v21218_v0  ;;  %v21279_v0 = vld [vmem:[%s24596_s4 + $0x1540] ss:$40 sps:$4 sm:$0xff]  }
 0x149   : > { %14433 = vmatpush1.bf16.msra.mxu0 %v21221_v50  ;;  %14147 = vmatprep.subr.bf16.mxu1 %v21226_v1  ;;  %v21282_v50 = vld [vmem:[%s24596_s4 + $0x3840] ss:$40 sps:$4 sm:$0xff]   ;;  %v21287_v1 = vld [vmem:[%s24596_s4 + $0x1594] ss:$40 sps:$4 sm:$0xff]  }
 0x14a   : > { %14434 = vmatprep.subr.bf16.mxu0 %v21229_v2  ;;  %v21290_v2 = vld [vmem:[%s24596_s4 + $0x3894] ss:$40 sps:$4 sm:$0xff]  }
 0x14c   : > { %14148 = vmatpush1.bf16.msra.mxu1 %v21224_v3  ;;  %v21285_v3 = vld [vmem:[%s24596_s4 + $0x1590] ss:$40 sps:$4 sm:$0xff]  }
 0x14d   : > { %14435 = vmatpush1.bf16.msra.mxu0 %v21227_v4  ;;  %14149 = vmatprep.subr.bf16.mxu1 %v21232_v8  ;;  %v21288_v4 = vld [vmem:[%s24596_s4 + $0x3890] ss:$40 sps:$4 sm:$0xff]   ;;  %v21293_v8 = vld [vmem:[%s24596_s4 + $0x15e4] ss:$40 sps:$4 sm:$0xff]  }
 0x14e   : > { %14436 = vmatprep.subr.bf16.mxu0 %v21235_v9  ;;  %v21296_v9 = vld [vmem:[%s24596_s4 + $0x38e4] ss:$40 sps:$4 sm:$0xff]  }
 0x150   : > { %14150 = vmatpush1.bf16.msra.mxu1 %v21230_v10  ;;  %v21291_v10 = vld [vmem:[%s24596_s4 + $0x15e0] ss:$40 sps:$4 sm:$0xff]  }
 0x151   : > { %14437 = vmatpush1.bf16.msra.mxu0 %v21233_v13  ;;  %14151 = vmatprep.subr.bf16.mxu1 %v21238_v14  ;;  %v21294_v13 = vld [vmem:[%s24596_s4 + $0x38e0] ss:$40 sps:$4 sm:$0xff]   ;;  %v21299_v14 = vld [vmem:[%s24596_s4 + $0x1634] ss:$40 sps:$4 sm:$0xff]  }
 0x152   : > { %14438 = vmatprep.subr.bf16.mxu0 %v21241_v15  ;;  %v21302_v15 = vld [vmem:[%s24596_s4 + $0x3934] ss:$40 sps:$4 sm:$0xff]  }
 0x154   : > { %14152 = vmatpush1.bf16.msra.mxu1 %v21236_v17  ;;  %v21297_v17 = vld [vmem:[%s24596_s4 + $0x1630] ss:$40 sps:$4 sm:$0xff]  }
 0x155   : > { %14439 = vmatpush1.bf16.msra.mxu0 %v21239_v18  ;;  %14153 = vmatprep.subr.bf16.mxu1 %v21244_v19  ;;  %v21300_v18 = vld [vmem:[%s24596_s4 + $0x3930] ss:$40 sps:$4 sm:$0xff]   ;;  %v21305_v19 = vld [vmem:[%s24596_s4 + $0x1684] ss:$40 sps:$4 sm:$0xff]  }
 0x156   : > { %14440 = vmatprep.subr.bf16.mxu0 %v21247_v20  ;;  %v21308_v20 = vld [vmem:[%s24596_s4 + $0x3984] ss:$40 sps:$4 sm:$0xff]  }
 0x158   : > { %14154 = vmatpush1.bf16.msra.mxu1 %v21242_v23  ;;  %v21303_v23 = vld [vmem:[%s24596_s4 + $0x1680] ss:$40 sps:$4 sm:$0xff]  }
 0x159   : > { %14441 = vmatpush1.bf16.msra.mxu0 %v21245_v24  ;;  %14155 = vmatprep.subr.bf16.mxu1 %v21250_v25  ;;  %v21306_v24 = vld [vmem:[%s24596_s4 + $0x3980] ss:$40 sps:$4 sm:$0xff]   ;;  %v21311_v25 = vld [vmem:[%s24596_s4 + $0x16d4] ss:$40 sps:$4 sm:$0xff]  }
 0x15a   : > { %14442 = vmatprep.subr.bf16.mxu0 %v21253_v26  ;;  %v21314_v26 = vld [vmem:[%s24596_s4 + $0x39d4] ss:$40 sps:$4 sm:$0xff]  }
 0x15c   : > { %14156 = vmatpush1.bf16.msra.mxu1 %v21248_v29  ;;  %v21309_v29 = vld [vmem:[%s24596_s4 + $0x16d0] ss:$40 sps:$4 sm:$0xff]  }
 0x15d   : > { %14443 = vmatpush1.bf16.msra.mxu0 %v21251_v30  ;;  %14166 = vmatprep.subr.bf16.mxu1 %v21256_v31  ;;  %v21312_v30 = vld [vmem:[%s24596_s4 + $0x39d0] ss:$40 sps:$4 sm:$0xff]   ;;  %v21317_v31 = vld [vmem:[%s24596_s4 + $0x1724] ss:$40 sps:$4 sm:$0xff]  }
 0x15e   : > { %14453 = vmatprep.subr.bf16.mxu0 %v21260_v32  ;;  %v21320_v32 = vld [vmem:[%s24596_s4 + $0x3a24] ss:$40 sps:$4 sm:$0xff]  }
 0x15f   : > { %14158 = vmatmul.mubr.bf16.vlgmr.msra.gmra.mrb[0].mxu1 %v25005_v36 }
 0x160   : > { %14445 = vmatmul.mubr.bf16.vlgmr.msra.gmra.mrb[0].mxu0 %v25009_v54  ;;  %14167 = vmatpush1.bf16.msra.mxu1 %v21254_v34  ;;  %v21318_v34 = vld [vmem:[%s24596_s4 + $0x3a20] ss:$40 sps:$4 sm:$0xff]  }
 0x161   : > { %14454 = vmatpush1.bf16.msra.mxu0 %v21258_v37  ;;  %14168 = vmatprep.subr.bf16.mxu1 %v21263_v38  ;;  %v21323_v37 = vld [vmem:[%s24596_s4 + $0x1774] ss:$40 sps:$4 sm:$0xff]  }
 0x162   : > { %14455 = vmatprep.subr.bf16.mxu0 %v21266_v39  ;;  %14198 = vmatprep.mubr.bf16.mxu1 %v25015_v40  ;;  %v21326_v38 = vld [vmem:[%s24596_s4 + $0x3a74] ss:$40 sps:$4 sm:$0xff]   ;;  %v21321_v39 = vld [vmem:[%s24596_s4 + $0x1770] ss:$40 sps:$4 sm:$0xff]  }
 0x163   : > { %14485 = vmatprep.mubr.bf16.mxu0 %v25019_v43 }
 0x164   : > { %14169 = vmatpush1.bf16.msra.mxu1 %v21261_v62  ;;  %v21324_v62 = vld [vmem:[%s24596_s4 + $0x3a70] ss:$40 sps:$4 sm:$0xff]  }
 0x165   : > { %14456 = vmatpush1.bf16.msra.mxu0 %v21264_v44  ;;  %14170 = vmatprep.subr.bf16.mxu1 %v21269_v45  ;;  %v21329_v44 = vld [vmem:[%s24596_s4 + $0x17c4] ss:$40 sps:$4 sm:$0xff]  }
 0x166   : > { %14457 = vmatprep.subr.bf16.mxu0 %v21272_v49  ;;  %v21332_v45 = vld [vmem:[%s24596_s4 + $0x3ac4] ss:$40 sps:$4 sm:$0xff]   ;;  %v21327_v49 = vld [vmem:[%s24596_s4 + $0x17c0] ss:$40 sps:$4 sm:$0xff]  }
 0x168   : > { %14171 = vmatpush1.bf16.msra.mxu1 %v21267_v51  ;;  %v21330_v51 = vld [vmem:[%s24596_s4 + $0x3ac0] ss:$40 sps:$4 sm:$0xff]  }
 0x169   : > { %14458 = vmatpush1.bf16.msra.mxu0 %v21270_v52  ;;  %14172 = vmatprep.subr.bf16.mxu1 %v21275_v55  ;;  %v21335_v52 = vld [vmem:[%s24596_s4 + $0x1814] ss:$40 sps:$4 sm:$0xff]  }
 0x16a   : > { %14459 = vmatprep.subr.bf16.mxu0 %v21278_v56  ;;  %v21338_v55 = vld [vmem:[%s24596_s4 + $0x3b14] ss:$40 sps:$4 sm:$0xff]   ;;  %v21333_v56 = vld [vmem:[%s24596_s4 + $0x1810] ss:$40 sps:$4 sm:$0xff]  }
 0x16c   : > { %14173 = vmatpush1.bf16.msra.mxu1 %v21273_v57  ;;  %v21336_v57 = vld [vmem:[%s24596_s4 + $0x3b10] ss:$40 sps:$4 sm:$0xff]  }
 0x16d   : > { %14460 = vmatpush1.bf16.msra.mxu0 %v21276_v58  ;;  %14174 = vmatprep.subr.bf16.mxu1 %v21281_v59  ;;  %v21341_v58 = vld [vmem:[%s24596_s4 + $0x1864] ss:$40 sps:$4 sm:$0xff]  }
 0x16e   : > { %14461 = vmatprep.subr.bf16.mxu0 %v21284_v60  ;;  %v21344_v59 = vld [vmem:[%s24596_s4 + $0x3b64] ss:$40 sps:$4 sm:$0xff]   ;;  %v21339_v60 = vld [vmem:[%s24596_s4 + $0x1860] ss:$40 sps:$4 sm:$0xff]  }
 0x170   : > { %14175 = vmatpush1.bf16.msra.mxu1 %v21279_v0  ;;  %v21342_v0 = vld [vmem:[%s24596_s4 + $0x3b60] ss:$40 sps:$4 sm:$0xff]  }
 0x171   : > { %14462 = vmatpush1.bf16.msra.mxu0 %v21282_v50  ;;  %14176 = vmatprep.subr.bf16.mxu1 %v21287_v1  ;;  %v21347_v50 = vld [vmem:[%s24596_s4 + $0x18b4] ss:$40 sps:$4 sm:$0xff]  }
 0x172   : > { %14463 = vmatprep.subr.bf16.mxu0 %v21290_v2  ;;  %v21350_v1 = vld [vmem:[%s24596_s4 + $0x3bb4] ss:$40 sps:$4 sm:$0xff]   ;;  %v25082_v2 = vld.sshfl [vmem:[%s24610_s9 + $0x18] sm:$0x33 pattern:$0x75316420] }
 0x174   : > { %14177 = vmatpush1.bf16.msra.mxu1 %v21285_v3  ;;  %v21345_v3 = vld [vmem:[%s24596_s4 + $0x18b0] ss:$40 sps:$4 sm:$0xff]  }
 0x175   : > { %14464 = vmatpush1.bf16.msra.mxu0 %v21288_v4  ;;  %14178 = vmatprep.subr.bf16.mxu1 %v21293_v8  ;;  %v21348_v4 = vld [vmem:[%s24596_s4 + $0x3bb0] ss:$40 sps:$4 sm:$0xff]   ;;  %v21353_v8 = vld [vmem:[%s24596_s4 + $0x1904] ss:$40 sps:$4 sm:$0xff]  }
 0x176   : > { %14465 = vmatprep.subr.bf16.mxu0 %v21296_v9  ;;  %v21356_v9 = vld [vmem:[%s24596_s4 + $0x3c04] ss:$40 sps:$4 sm:$0xff]  }
 0x178   : > { %14179 = vmatpush1.bf16.msra.mxu1 %v21291_v10  ;;  %v21351_v10 = vld [vmem:[%s24596_s4 + $0x1900] ss:$40 sps:$4 sm:$0xff]  }
 0x179   : > { %14466 = vmatpush1.bf16.msra.mxu0 %v21294_v13  ;;  %14180 = vmatprep.subr.bf16.mxu1 %v21299_v14  ;;  %v21354_v13 = vld [vmem:[%s24596_s4 + $0x3c00] ss:$40 sps:$4 sm:$0xff]   ;;  %v2757_v14 = vcombine.high %v25082_v2, %v25082_v2 }
 0x17a   : > { %14467 = vmatprep.subr.bf16.mxu0 %v21302_v15  ;;  %v25094_v15 = vrot.slane %v24994_v28, %v24682_v53 }
 0x17b   : > { %v25107_v28 = vrot.slane %v2757_v14, %v24682_v53  ;;  %v21413_v14 = vld [vmem:[%s24596_s4 + $0x1c24] ss:$40 sps:$4 sm:$0xff]  }
 0x17c   : > { %14181 = vmatpush1.bf16.msra.mxu1 %v21297_v17  ;;  %v25098_v17 = vcombine.high %v25009_v54, %v25009_v54 }
 0x17d   : > { %14468 = vmatpush1.bf16.msra.mxu0 %v21300_v18  ;;  %14182 = vmatprep.subr.bf16.mxu1 %v21305_v19  ;;  %v21359_v18 = vld [vmem:[%s24596_s4 + $0x1954] ss:$40 sps:$4 sm:$0xff]  }
 0x17e   : > { %14469 = vmatprep.subr.bf16.mxu0 %v21308_v20  ;;  %v21362_v19 = vld [vmem:[%s24596_s4 + $0x3c54] ss:$40 sps:$4 sm:$0xff]   ;;  %v25104_v20 = vcombine.high %v25015_v40, %v25015_v40 }
 0x180   : > { %14183 = vmatpush1.bf16.msra.mxu1 %v21303_v23  ;;  %v21357_v23 = vld [vmem:[%s24596_s4 + $0x1950] ss:$40 sps:$4 sm:$0xff]  }
 0x181   : > { %14470 = vmatpush1.bf16.msra.mxu0 %v21306_v24  ;;  %14184 = vmatprep.subr.bf16.mxu1 %v21311_v25  ;;  %v21360_v24 = vld [vmem:[%s24596_s4 + $0x3c50] ss:$40 sps:$4 sm:$0xff]   ;;  %v21365_v25 = vld [vmem:[%s24596_s4 + $0x19a4] ss:$40 sps:$4 sm:$0xff]  }
 0x182   : > { %14471 = vmatprep.subr.bf16.mxu0 %v21314_v26  ;;  %v21368_v26 = vld [vmem:[%s24596_s4 + $0x3ca4] ss:$40 sps:$4 sm:$0xff]  }
 0x184   : > { %14185 = vmatpush1.bf16.msra.mxu1 %v21309_v29  ;;  %v21363_v29 = vld [vmem:[%s24596_s4 + $0x19a0] ss:$40 sps:$4 sm:$0xff]  }
 0x185   : > { %14472 = vmatpush1.bf16.msra.mxu0 %v21312_v30  ;;  %14186 = vmatprep.subr.bf16.mxu1 %v21317_v31  ;;  %v21366_v30 = vld [vmem:[%s24596_s4 + $0x3ca0] ss:$40 sps:$4 sm:$0xff]   ;;  %v21371_v31 = vld [vmem:[%s24596_s4 + $0x19f4] ss:$40 sps:$4 sm:$0xff]  }
 0x186   : > { %14473 = vmatprep.subr.bf16.mxu0 %v21320_v32  ;;  %v21374_v32 = vld [vmem:[%s24596_s4 + $0x3cf4] ss:$40 sps:$4 sm:$0xff]  }
 0x188   : > { %14187 = vmatpush1.bf16.msra.mxu1 %v21315_v33  ;;  %v21369_v33 = vld [vmem:[%s24596_s4 + $0x19f0] ss:$40 sps:$4 sm:$0xff]  }
 0x189   : > { %14474 = vmatpush1.bf16.msra.mxu0 %v21318_v34  ;;  %14188 = vmatprep.subr.bf16.mxu1 %v21323_v37  ;;  %v21372_v34 = vld [vmem:[%s24596_s4 + $0x3cf0] ss:$40 sps:$4 sm:$0xff]   ;;  %v21377_v37 = vld [vmem:[%s24596_s4 + $0x1a44] ss:$40 sps:$4 sm:$0xff]  }
 0x18a   : > { %14475 = vmatprep.subr.bf16.mxu0 %v21326_v38  ;;  %v21380_v38 = vld [vmem:[%s24596_s4 + $0x3d44] ss:$40 sps:$4 sm:$0xff]  }
 0x18c   : > { %14189 = vmatpush1.bf16.msra.mxu1 %v21321_v39  ;;  %v21375_v39 = vld [vmem:[%s24596_s4 + $0x1a40] ss:$40 sps:$4 sm:$0xff]  }
 0x18d   : > { %14476 = vmatpush1.bf16.msra.mxu0 %v21324_v62  ;;  %14190 = vmatprep.subr.bf16.mxu1 %v21329_v44  ;;  %v21378_v62 = vld [vmem:[%s24596_s4 + $0x3d40] ss:$40 sps:$4 sm:$0xff]   ;;  %v21383_v44 = vld [vmem:[%s24596_s4 + $0x1a94] ss:$40 sps:$4 sm:$0xff]  }
 0x18e   : > { %14477 = vmatprep.subr.bf16.mxu0 %v21332_v45  ;;  %v21386_v45 = vld [vmem:[%s24596_s4 + $0x3d94] ss:$40 sps:$4 sm:$0xff]  }
 0x190   : > { %14191 = vmatpush1.bf16.msra.mxu1 %v21327_v49  ;;  %v21381_v49 = vld [vmem:[%s24596_s4 + $0x1a90] ss:$40 sps:$4 sm:$0xff]  }
 0x191   : > { %14478 = vmatpush1.bf16.msra.mxu0 %v21330_v51  ;;  %14192 = vmatprep.subr.bf16.mxu1 %v21335_v52  ;;  %v21384_v51 = vld [vmem:[%s24596_s4 + $0x3d90] ss:$40 sps:$4 sm:$0xff]   ;;  %v21389_v52 = vld [vmem:[%s24596_s4 + $0x1ae4] ss:$40 sps:$4 sm:$0xff]  }
 0x192   : > { %14479 = vmatprep.subr.bf16.mxu0 %v21338_v55  ;;  %v21392_v55 = vld [vmem:[%s24596_s4 + $0x3de4] ss:$40 sps:$4 sm:$0xff]  }
 0x194   : > { %14193 = vmatpush1.bf16.msra.mxu1 %v21333_v56  ;;  %v21387_v56 = vld [vmem:[%s24596_s4 + $0x1ae0] ss:$40 sps:$4 sm:$0xff]  }
 0x195   : > { %14480 = vmatpush1.bf16.msra.mxu0 %v21336_v57  ;;  %14194 = vmatprep.subr.bf16.mxu1 %v21341_v58  ;;  %v21390_v57 = vld [vmem:[%s24596_s4 + $0x3de0] ss:$40 sps:$4 sm:$0xff]   ;;  %v21395_v58 = vld [vmem:[%s24596_s4 + $0x1b34] ss:$40 sps:$4 sm:$0xff]  }
 0x196   : > { %14481 = vmatprep.subr.bf16.mxu0 %v21344_v59  ;;  %v21398_v59 = vld [vmem:[%s24596_s4 + $0x3e34] ss:$40 sps:$4 sm:$0xff]  }
 0x198   : > { %14195 = vmatpush1.bf16.msra.mxu1 %v21339_v60  ;;  %v21393_v60 = vld [vmem:[%s24596_s4 + $0x1b30] ss:$40 sps:$4 sm:$0xff]  }
 0x199   : > { %14482 = vmatpush1.bf16.msra.mxu0 %v21342_v0  ;;  %14196 = vmatprep.subr.bf16.mxu1 %v21347_v50  ;;  %v21396_v0 = vld [vmem:[%s24596_s4 + $0x3e30] ss:$40 sps:$4 sm:$0xff]   ;;  %v21401_v50 = vld [vmem:[%s24596_s4 + $0x1b84] ss:$40 sps:$4 sm:$0xff]  }
 0x19a   : > { %14483 = vmatprep.subr.bf16.mxu0 %v21350_v1  ;;  %v21404_v1 = vld [vmem:[%s24596_s4 + $0x3e84] ss:$40 sps:$4 sm:$0xff]  }
 0x19c   : > { %14197 = vmatpush1.bf16.msra.mxu1 %v21345_v3  ;;  %v21399_v3 = vld [vmem:[%s24596_s4 + $0x1b80] ss:$40 sps:$4 sm:$0xff]  }
 0x19d   : > { %14484 = vmatpush1.bf16.msra.mxu0 %v21348_v4  ;;  %14207 = vmatprep.subr.bf16.mxu1 %v21353_v8  ;;  %v21402_v4 = vld [vmem:[%s24596_s4 + $0x3e80] ss:$40 sps:$4 sm:$0xff]   ;;  %v21407_v8 = vld [vmem:[%s24596_s4 + $0x1bd4] ss:$40 sps:$4 sm:$0xff]  }
 0x19e   : > { %14494 = vmatprep.subr.bf16.mxu0 %v21356_v9  ;;  %v21410_v9 = vld [vmem:[%s24596_s4 + $0x3ed4] ss:$40 sps:$4 sm:$0xff]  }
 0x19f   : > { %14199 = vmatmul.mubr.bf16.vlgmr.msra.gmra.mrb[0].mxu1 %v25094_v15 }
 0x1a0   : > { %14486 = vmatmul.mubr.bf16.vlgmr.msra.gmra.mrb[0].mxu0 %v25098_v17  ;;  %14208 = vmatpush1.bf16.msra.mxu1 %v21351_v10  ;;  %v21405_v10 = vld [vmem:[%s24596_s4 + $0x1bd0] ss:$40 sps:$4 sm:$0xff]  }
 0x1a1   : > { %14495 = vmatpush1.bf16.msra.mxu0 %v21354_v13  ;;  %14209 = vmatprep.subr.bf16.mxu1 %v21359_v18  ;;  %v21408_v13 = vld [vmem:[%s24596_s4 + $0x3ed0] ss:$40 sps:$4 sm:$0xff]   ;;  %v21416_v18 = vld [vmem:[%s24596_s4 + $0x3f24] ss:$40 sps:$4 sm:$0xff]  }
 0x1a2   : > { %14496 = vmatprep.subr.bf16.mxu0 %v21362_v19  ;;  %14239 = vmatprep.mubr.bf16.mxu1 %v25104_v20  ;;  %v21411_v19 = vld [vmem:[%s24596_s4 + $0x1c20] ss:$40 sps:$4 sm:$0xff]  }
 0x1a3   : > { %14526 = vmatprep.mubr.bf16.mxu0 %v25107_v28 }
 0x1a4   : > { %14210 = vmatpush1.bf16.msra.mxu1 %v21357_v23  ;;  %v21414_v23 = vld [vmem:[%s24596_s4 + $0x3f20] ss:$40 sps:$4 sm:$0xff]  }
 0x1a5   : > { %14497 = vmatpush1.bf16.msra.mxu0 %v21360_v24  ;;  %14211 = vmatprep.subr.bf16.mxu1 %v21365_v25  ;;  %v21419_v24 = vld [vmem:[%s24596_s4 + $0x1c74] ss:$40 sps:$4 sm:$0xff]  }
 0x1a6   : > { %14498 = vmatprep.subr.bf16.mxu0 %v21368_v26  ;;  %v21422_v25 = vld [vmem:[%s24596_s4 + $0x3f74] ss:$40 sps:$4 sm:$0xff]   ;;  %v21417_v26 = vld [vmem:[%s24596_s4 + $0x1c70] ss:$40 sps:$4 sm:$0xff]  }
 0x1a8   : > { %14212 = vmatpush1.bf16.msra.mxu1 %v21363_v29  ;;  %v21420_v29 = vld [vmem:[%s24596_s4 + $0x3f70] ss:$40 sps:$4 sm:$0xff]  }
 0x1a9   : > { %14499 = vmatpush1.bf16.msra.mxu0 %v21366_v30  ;;  %14213 = vmatprep.subr.bf16.mxu1 %v21371_v31  ;;  %v21425_v30 = vld [vmem:[%s24596_s4 + $0x1cc4] ss:$40 sps:$4 sm:$0xff]  }
 0x1aa   : > { %14500 = vmatprep.subr.bf16.mxu0 %v21374_v32  ;;  %v21428_v31 = vld [vmem:[%s24596_s4 + $0x3fc4] ss:$40 sps:$4 sm:$0xff]   ;;  %v21423_v32 = vld [vmem:[%s24596_s4 + $0x1cc0] ss:$40 sps:$4 sm:$0xff]  }
 0x1ac   : > { %14214 = vmatpush1.bf16.msra.mxu1 %v21369_v33  ;;  %v21426_v33 = vld [vmem:[%s24596_s4 + $0x3fc0] ss:$40 sps:$4 sm:$0xff]  }
 0x1ad   : > { %14501 = vmatpush1.bf16.msra.mxu0 %v21372_v34  ;;  %14215 = vmatprep.subr.bf16.mxu1 %v21377_v37  ;;  %v21431_v34 = vld [vmem:[%s24596_s4 + $0x1d14] ss:$40 sps:$4 sm:$0xff]  }
 0x1ae   : > { %14502 = vmatprep.subr.bf16.mxu0 %v21380_v38  ;;  %v21434_v37 = vld [vmem:[%s24596_s4 + $0x4014] ss:$40 sps:$4 sm:$0xff]   ;;  %v21429_v38 = vld [vmem:[%s24596_s4 + $0x1d10] ss:$40 sps:$4 sm:$0xff]  }
 0x1b0   : > { %14216 = vmatpush1.bf16.msra.mxu1 %v21375_v39  ;;  %v21432_v39 = vld [vmem:[%s24596_s4 + $0x4010] ss:$40 sps:$4 sm:$0xff]  }
 0x1b1   : > { %14503 = vmatpush1.bf16.msra.mxu0 %v21378_v62  ;;  %14217 = vmatprep.subr.bf16.mxu1 %v21383_v44  ;;  %v21437_v62 = vld [vmem:[%s24596_s4 + $0x1d64] ss:$40 sps:$4 sm:$0xff]  }
 0x1b2   : > { %14504 = vmatprep.subr.bf16.mxu0 %v21386_v45  ;;  %v21440_v44 = vld [vmem:[%s24596_s4 + $0x4064] ss:$40 sps:$4 sm:$0xff]   ;;  %v21435_v45 = vld [vmem:[%s24596_s4 + $0x1d60] ss:$40 sps:$4 sm:$0xff]  }
 0x1b4   : > { %14218 = vmatpush1.bf16.msra.mxu1 %v21381_v49  ;;  %v21438_v49 = vld [vmem:[%s24596_s4 + $0x4060] ss:$40 sps:$4 sm:$0xff]  }
 0x1b5   : > { %14505 = vmatpush1.bf16.msra.mxu0 %v21384_v51  ;;  %14219 = vmatprep.subr.bf16.mxu1 %v21389_v52  ;;  %v21443_v51 = vld [vmem:[%s24596_s4 + $0x1db4] ss:$40 sps:$4 sm:$0xff]  }
 0x1b6   : > { %14506 = vmatprep.subr.bf16.mxu0 %v21392_v55  ;;  %v21446_v52 = vld [vmem:[%s24596_s4 + $0x40b4] ss:$40 sps:$4 sm:$0xff]   ;;  %v21441_v55 = vld [vmem:[%s24596_s4 + $0x1db0] ss:$40 sps:$4 sm:$0xff]  }
 0x1b8   : > { %14220 = vmatpush1.bf16.msra.mxu1 %v21387_v56  ;;  %v21444_v56 = vld [vmem:[%s24596_s4 + $0x40b0] ss:$40 sps:$4 sm:$0xff]  }
 0x1b9   : > { %14507 = vmatpush1.bf16.msra.mxu0 %v21390_v57  ;;  %14221 = vmatprep.subr.bf16.mxu1 %v21395_v58  ;;  %v21449_v57 = vld [vmem:[%s24596_s4 + $0x1e04] ss:$40 sps:$4 sm:$0xff]  }
 0x1ba   : > { %14508 = vmatprep.subr.bf16.mxu0 %v21398_v59  ;;  %v21452_v58 = vld [vmem:[%s24596_s4 + $0x4104] ss:$40 sps:$4 sm:$0xff]   ;;  %v25175_v59 = vcombine.high %v25094_v15, %v25094_v15 }
 0x1bc   : > { %14222 = vmatpush1.bf16.msra.mxu1 %v21393_v60  ;;  %v25179_v60 = vrot.slane %v25082_v2, %v24682_v53  ;;  %v21453_v53 = vld [vmem:[%s24596_s4 + $0x1e50] ss:$40 sps:$4 sm:$0xff]  }
 0x1bd   : > { %14509 = vmatpush1.bf16.msra.mxu0 %v21396_v0  ;;  %14223 = vmatprep.subr.bf16.mxu1 %v21401_v50  ;;  %v21447_v0 = vld [vmem:[%s24596_s4 + $0x1e00] ss:$40 sps:$4 sm:$0xff]   ;;  %v21456_v2 = vld [vmem:[%s24596_s4 + $0x4150] ss:$40 sps:$4 sm:$0xff]  }
 0x1be   : > { %14510 = vmatprep.subr.bf16.mxu0 %v21404_v1  ;;  %v21450_v50 = vld [vmem:[%s24596_s4 + $0x4100] ss:$40 sps:$4 sm:$0xff]   ;;  %v21455_v1 = vld [vmem:[%s24596_s4 + $0x1e54] ss:$40 sps:$4 sm:$0xff]  }
 0x1c0   : > { %14224 = vmatpush1.bf16.msra.mxu1 %v21399_v3  ;;  %v21458_v3 = vld [vmem:[%s24596_s4 + $0x4154] ss:$40 sps:$4 sm:$0xff]  }
 0x1c1   : > { %14511 = vmatpush1.bf16.msra.mxu0 %v21402_v4  ;;  %14225 = vmatprep.subr.bf16.mxu1 %v21407_v8  ;;  %v25187_v4 = vcombine.high %v25107_v28, %v25107_v28  ;;  %v21461_v8 = vld [vmem:[%s24596_s4 + $0x1ea4] ss:$40 sps:$4 sm:$0xff]  }
 0x1c2   : > { %14512 = vmatprep.subr.bf16.mxu0 %v21410_v9  ;;  %v21464_v9 = vld [vmem:[%s24596_s4 + $0x41a4] ss:$40 sps:$4 sm:$0xff]  }
 0x1c4   : > { %14226 = vmatpush1.bf16.msra.mxu1 %v21405_v10  ;;  %v21459_v10 = vld [vmem:[%s24596_s4 + $0x1ea0] ss:$40 sps:$4 sm:$0xff]  }
 0x1c5   : > { %14513 = vmatpush1.bf16.msra.mxu0 %v21408_v13  ;;  %14227 = vmatprep.subr.bf16.mxu1 %v21413_v14  ;;  %v21462_v13 = vld [vmem:[%s24596_s4 + $0x41a0] ss:$40 sps:$4 sm:$0xff]   ;;  %v21467_v14 = vld [vmem:[%s24596_s4 + $0x1ef4] ss:$40 sps:$4 sm:$0xff]  }
 0x1c6   : > { %14514 = vmatprep.subr.bf16.mxu0 %v21416_v18  ;;  %v21470_v18 = vld [vmem:[%s24596_s4 + $0x41f4] ss:$40 sps:$4 sm:$0xff]  }
 0x1c8   : > { %14228 = vmatpush1.bf16.msra.mxu1 %v21411_v19  ;;  %v21465_v19 = vld [vmem:[%s24596_s4 + $0x1ef0] ss:$40 sps:$4 sm:$0xff]  }
 0x1c9   : > { %14515 = vmatpush1.bf16.msra.mxu0 %v21414_v23  ;;  %14229 = vmatprep.subr.bf16.mxu1 %v21419_v24  ;;  %v21468_v23 = vld [vmem:[%s24596_s4 + $0x41f0] ss:$40 sps:$4 sm:$0xff]   ;;  %v21473_v24 = vld [vmem:[%s24596_s4 + $0x1f44] ss:$40 sps:$4 sm:$0xff]  }
 0x1ca   : > { %14516 = vmatprep.subr.bf16.mxu0 %v21422_v25  ;;  %v21476_v25 = vld [vmem:[%s24596_s4 + $0x4244] ss:$40 sps:$4 sm:$0xff]  }
 0x1cc   : > { %14230 = vmatpush1.bf16.msra.mxu1 %v21417_v26  ;;  %v21471_v26 = vld [vmem:[%s24596_s4 + $0x1f40] ss:$40 sps:$4 sm:$0xff]  }
 0x1cd   : > { %14517 = vmatpush1.bf16.msra.mxu0 %v21420_v29  ;;  %14231 = vmatprep.subr.bf16.mxu1 %v21425_v30  ;;  %v21474_v29 = vld [vmem:[%s24596_s4 + $0x4240] ss:$40 sps:$4 sm:$0xff]   ;;  %v21479_v30 = vld [vmem:[%s24596_s4 + $0x1f94] ss:$40 sps:$4 sm:$0xff]  }
 0x1ce   : > { %14518 = vmatprep.subr.bf16.mxu0 %v21428_v31  ;;  %v21482_v31 = vld [vmem:[%s24596_s4 + $0x4294] ss:$40 sps:$4 sm:$0xff]  }
 0x1d0   : > { %14232 = vmatpush1.bf16.msra.mxu1 %v21423_v32  ;;  %v21477_v32 = vld [vmem:[%s24596_s4 + $0x1f90] ss:$40 sps:$4 sm:$0xff]  }
 0x1d1   : > { %14519 = vmatpush1.bf16.msra.mxu0 %v21426_v33  ;;  %14233 = vmatprep.subr.bf16.mxu1 %v21431_v34  ;;  %v21480_v33 = vld [vmem:[%s24596_s4 + $0x4290] ss:$40 sps:$4 sm:$0xff]   ;;  %v21485_v34 = vld [vmem:[%s24596_s4 + $0x1fe4] ss:$40 sps:$4 sm:$0xff]  }
 0x1d2   : > { %14520 = vmatprep.subr.bf16.mxu0 %v21434_v37  ;;  %v21488_v37 = vld [vmem:[%s24596_s4 + $0x42e4] ss:$40 sps:$4 sm:$0xff]  }
 0x1d4   : > { %14234 = vmatpush1.bf16.msra.mxu1 %v21429_v38  ;;  %v21483_v38 = vld [vmem:[%s24596_s4 + $0x1fe0] ss:$40 sps:$4 sm:$0xff]  }
 0x1d5   : > { %14521 = vmatpush1.bf16.msra.mxu0 %v21432_v39  ;;  %14235 = vmatprep.subr.bf16.mxu1 %v21437_v62  ;;  %v21486_v39 = vld [vmem:[%s24596_s4 + $0x42e0] ss:$40 sps:$4 sm:$0xff]   ;;  %v21491_v62 = vld [vmem:[%s24596_s4 + $0x2034] ss:$40 sps:$4 sm:$0xff]  }
 0x1d6   : > { %14522 = vmatprep.subr.bf16.mxu0 %v21440_v44  ;;  %v21494_v44 = vld [vmem:[%s24596_s4 + $0x4334] ss:$40 sps:$4 sm:$0xff]  }
 0x1d8   : > { %14236 = vmatpush1.bf16.msra.mxu1 %v21435_v45  ;;  %v21489_v45 = vld [vmem:[%s24596_s4 + $0x2030] ss:$40 sps:$4 sm:$0xff]  }
 0x1d9   : > { %14523 = vmatpush1.bf16.msra.mxu0 %v21438_v49  ;;  %14237 = vmatprep.subr.bf16.mxu1 %v21443_v51  ;;  %v21492_v49 = vld [vmem:[%s24596_s4 + $0x4330] ss:$40 sps:$4 sm:$0xff]   ;;  %v21497_v51 = vld [vmem:[%s24596_s4 + $0x2084] ss:$40 sps:$4 sm:$0xff]  }
 0x1da   : > { %14524 = vmatprep.subr.bf16.mxu0 %v21446_v52  ;;  %v21500_v52 = vld [vmem:[%s24596_s4 + $0x4384] ss:$40 sps:$4 sm:$0xff]  }
 0x1dc   : > { %14238 = vmatpush1.bf16.msra.mxu1 %v21441_v55  ;;  %v21495_v55 = vld [vmem:[%s24596_s4 + $0x2080] ss:$40 sps:$4 sm:$0xff]  }
 0x1dd   : > { %14525 = vmatpush1.bf16.msra.mxu0 %v21444_v56  ;;  %14248 = vmatprep.subr.bf16.mxu1 %v21449_v57  ;;  %v21498_v56 = vld [vmem:[%s24596_s4 + $0x4380] ss:$40 sps:$4 sm:$0xff]   ;;  %v21503_v57 = vld [vmem:[%s24596_s4 + $0x20d4] ss:$40 sps:$4 sm:$0xff]  }
 0x1de   : > { %14535 = vmatprep.subr.bf16.mxu0 %v21452_v58  ;;  %v21506_v58 = vld [vmem:[%s24596_s4 + $0x43d4] ss:$40 sps:$4 sm:$0xff]  }
 0x1df   : > { %14240 = vmatmul.mubr.bf16.vlgmr.msra.gmra.mrb[0].mxu1 %v25175_v59 }
 0x1e0   : > { %14527 = vmatmul.mubr.bf16.vlgmr.msra.gmra.mrb[0].mxu0 %v25179_v60  ;;  %14249 = vmatpush1.bf16.msra.mxu1 %v21447_v0  ;;  %v21501_v0 = vld [vmem:[%s24596_s4 + $0x20d0] ss:$40 sps:$4 sm:$0xff]  }
 0x1e1   : > { %14536 = vmatpush1.bf16.msra.mxu0 %v21450_v50  ;;  %14250 = vmatprep.subr.bf16.mxu1 %v21455_v1  ;;  %v21504_v50 = vld [vmem:[%s24596_s4 + $0x43d0] ss:$40 sps:$4 sm:$0xff]   ;;  %v21509_v1 = vld [vmem:[%s24596_s4 + $0x2124] ss:$40 sps:$4 sm:$0xff]  }
 0x1e2   : > { %14537 = vmatprep.subr.bf16.mxu0 %v21458_v3  ;;  %14280 = vmatprep.mubr.bf16.mxu1 %v24704_v6  ;;  %v21512_v3 = vld [vmem:[%s24596_s4 + $0x4424] ss:$40 sps:$4 sm:$0xff]  }
 0x1e3   : > { %14567 = vmatprep.mubr.bf16.mxu0 %v25187_v4 }
 0x1e4   : > { %14251 = vmatpush1.bf16.msra.mxu1 %v21453_v53  ;;  %v21507_v53 = vld [vmem:[%s24596_s4 + $0x2120] ss:$40 sps:$4 sm:$0xff]  }
 0x1e5   : > { %14538 = vmatpush1.bf16.msra.mxu0 %v21456_v2  ;;  %14252 = vmatprep.subr.bf16.mxu1 %v21461_v8  ;;  %v21510_v2 = vld [vmem:[%s24596_s4 + $0x4420] ss:$40 sps:$4 sm:$0xff]   ;;  %v21515_v8 = vld [vmem:[%s24596_s4 + $0x2174] ss:$40 sps:$4 sm:$0xff]  }
 0x1e6   : > { %14539 = vmatprep.subr.bf16.mxu0 %v21464_v9  ;;  %v21518_v9 = vld [vmem:[%s24596_s4 + $0x4474] ss:$40 sps:$4 sm:$0xff]  }
 0x1e8   : > { %14253 = vmatpush1.bf16.msra.mxu1 %v21459_v10  ;;  %v21513_v10 = vld [vmem:[%s24596_s4 + $0x2170] ss:$40 sps:$4 sm:$0xff]  }
 0x1e9   : > { %14540 = vmatpush1.bf16.msra.mxu0 %v21462_v13  ;;  %14254 = vmatprep.subr.bf16.mxu1 %v21467_v14  ;;  %v21516_v13 = vld [vmem:[%s24596_s4 + $0x4470] ss:$40 sps:$4 sm:$0xff]   ;;  %v21521_v14 = vld [vmem:[%s24596_s4 + $0x21c4] ss:$40 sps:$4 sm:$0xff]  }
 0x1ea   : > { %14541 = vmatprep.subr.bf16.mxu0 %v21470_v18  ;;  %v21524_v18 = vld [vmem:[%s24596_s4 + $0x44c4] ss:$40 sps:$4 sm:$0xff]  }
 0x1ec   : > { %14255 = vmatpush1.bf16.msra.mxu1 %v21465_v19  ;;  %v21519_v19 = vld [vmem:[%s24596_s4 + $0x21c0] ss:$40 sps:$4 sm:$0xff]  }
 0x1ed   : > { %14542 = vmatpush1.bf16.msra.mxu0 %v21468_v23  ;;  %14256 = vmatprep.subr.bf16.mxu1 %v21473_v24  ;;  %v21522_v23 = vld [vmem:[%s24596_s4 + $0x44c0] ss:$40 sps:$4 sm:$0xff]   ;;  %v21527_v24 = vld [vmem:[%s24596_s4 + $0x2214] ss:$40 sps:$4 sm:$0xff]  }
 0x1ee   : > { %14543 = vmatprep.subr.bf16.mxu0 %v21476_v25  ;;  %v21530_v25 = vld [vmem:[%s24596_s4 + $0x4514] ss:$40 sps:$4 sm:$0xff]  }
 0x1f0   : > { %14257 = vmatpush1.bf16.msra.mxu1 %v21471_v26  ;;  %v21525_v26 = vld [vmem:[%s24596_s4 + $0x2210] ss:$40 sps:$4 sm:$0xff]  }
 0x1f1   : > { %14544 = vmatpush1.bf16.msra.mxu0 %v21474_v29  ;;  %14258 = vmatprep.subr.bf16.mxu1 %v21479_v30  ;;  %v21528_v29 = vld [vmem:[%s24596_s4 + $0x4510] ss:$40 sps:$4 sm:$0xff]   ;;  %v21533_v30 = vld [vmem:[%s24596_s4 + $0x2264] ss:$40 sps:$4 sm:$0xff]  }
 0x1f2   : > { %14545 = vmatprep.subr.bf16.mxu0 %v21482_v31  ;;  %v21536_v31 = vld [vmem:[%s24596_s4 + $0x4564] ss:$40 sps:$4 sm:$0xff]  }
 0x1f4   : > { %14259 = vmatpush1.bf16.msra.mxu1 %v21477_v32  ;;  %v21531_v32 = vld [vmem:[%s24596_s4 + $0x2260] ss:$40 sps:$4 sm:$0xff]  }
 0x1f5   : > { %14546 = vmatpush1.bf16.msra.mxu0 %v21480_v33  ;;  %14260 = vmatprep.subr.bf16.mxu1 %v21485_v34  ;;  %v21534_v33 = vld [vmem:[%s24596_s4 + $0x4560] ss:$40 sps:$4 sm:$0xff]   ;;  %v21539_v34 = vld [vmem:[%s24596_s4 + $0x22b4] ss:$40 sps:$4 sm:$0xff]  }
 0x1f6   : > { %14547 = vmatprep.subr.bf16.mxu0 %v21488_v37  ;;  %v21542_v37 = vld [vmem:[%s24596_s4 + $0x45b4] ss:$40 sps:$4 sm:$0xff]  }
 0x1f8   : > { %14261 = vmatpush1.bf16.msra.mxu1 %v21483_v38  ;;  %v21537_v38 = vld [vmem:[%s24596_s4 + $0x22b0] ss:$40 sps:$4 sm:$0xff]  }
 0x1f9   : > { %14548 = vmatpush1.bf16.msra.mxu0 %v21486_v39  ;;  %14262 = vmatprep.subr.bf16.mxu1 %v21491_v62  ;;  %v21540_v39 = vld [vmem:[%s24596_s4 + $0x45b0] ss:$40 sps:$4 sm:$0xff]   ;;  %v21545_v62 = vld [vmem:[%s24596_s4 + $0xc] ss:$40 sps:$4 sm:$0xff]  }
 0x1fa   : > { %14549 = vmatprep.subr.bf16.mxu0 %v21494_v44  ;;  %v21548_v44 = vld [vmem:[%s24596_s4 + $0x14] ss:$40 sps:$4 sm:$0xff]  }
 0x1fc   : > { %14263 = vmatpush1.bf16.msra.mxu1 %v21489_v45  ;;  %v25255_v45 = vcombine.high %v25179_v60, %v25179_v60 }
 0x1fd   : > { %14550 = vmatpush1.bf16.msra.mxu0 %v21492_v49  ;;  %14264 = vmatprep.subr.bf16.mxu1 %v21497_v51  ;;  %v21543_v49 = vld [vmem:[%s24596_s4 + $0x8] ss:$40 sps:$4 sm:$0xff]  }
 0x1fe   : > { %14551 = vmatprep.subr.bf16.mxu0 %v21500_v52  ;;  %v21546_v51 = vld [vmem:[%s24596_s4 + $0x10] ss:$40 sps:$4 sm:$0xff]   ;;  %v21551_v52 = vld [vmem:[%s24596_s4 + $0x5c] ss:$40 sps:$4 sm:$0xff]  }
 0x200   : > { %14265 = vmatpush1.bf16.msra.mxu1 %v21495_v55  ;;  %v21554_v55 = vld [vmem:[%s24596_s4 + $0x64] ss:$40 sps:$4 sm:$0xff]  }
 0x201   : > { %14552 = vmatpush1.bf16.msra.mxu0 %v21498_v56  ;;  %14266 = vmatprep.subr.bf16.mxu1 %v21503_v57  ;;  %v21549_v56 = vld [vmem:[%s24596_s4 + $0x58] ss:$40 sps:$4 sm:$0xff]  }
 0x202   : > { %14553 = vmatprep.subr.bf16.mxu0 %v21506_v58  ;;  %v21552_v57 = vld [vmem:[%s24596_s4 + $0x60] ss:$40 sps:$4 sm:$0xff]   ;;  %v21557_v58 = vld [vmem:[%s24596_s4 + $0xac] ss:$40 sps:$4 sm:$0xff]  }
 0x204   : > { %14267 = vmatpush1.bf16.msra.mxu1 %v21501_v0  ;;  %v21560_v0 = vld [vmem:[%s24596_s4 + $0xb4] ss:$40 sps:$4 sm:$0xff]  }
 0x205   : > { %14554 = vmatpush1.bf16.msra.mxu0 %v21504_v50  ;;  %14268 = vmatprep.subr.bf16.mxu1 %v21509_v1  ;;  %v21555_v50 = vld [vmem:[%s24596_s4 + $0xa8] ss:$40 sps:$4 sm:$0xff]  }
 0x206   : > { %14555 = vmatprep.subr.bf16.mxu0 %v21512_v3  ;;  %v21558_v1 = vld [vmem:[%s24596_s4 + $0xb0] ss:$40 sps:$4 sm:$0xff]   ;;  %v21563_v3 = vld [vmem:[%s24596_s4 + $0xfc] ss:$40 sps:$4 sm:$0xff]  }
 0x208   : > { %14269 = vmatpush1.bf16.msra.mxu1 %v21507_v53  ;;  %v21566_v53 = vld [vmem:[%s24596_s4 + $0x104] ss:$40 sps:$4 sm:$0xff]  }
 0x209   : > { %14556 = vmatpush1.bf16.msra.mxu0 %v21510_v2  ;;  %14270 = vmatprep.subr.bf16.mxu1 %v21515_v8  ;;  %v21561_v2 = vld [vmem:[%s24596_s4 + $0xf8] ss:$40 sps:$4 sm:$0xff]  }
 0x20a   : > { %14557 = vmatprep.subr.bf16.mxu0 %v21518_v9  ;;  %v21564_v8 = vld [vmem:[%s24596_s4 + $0x100] ss:$40 sps:$4 sm:$0xff]   ;;  %v21569_v9 = vld [vmem:[%s24596_s4 + $0x14c] ss:$40 sps:$4 sm:$0xff]  }
 0x20c   : > { %14271 = vmatpush1.bf16.msra.mxu1 %v21513_v10  ;;  %v21572_v10 = vld [vmem:[%s24596_s4 + $0x154] ss:$40 sps:$4 sm:$0xff]  }
 0x20d   : > { %14558 = vmatpush1.bf16.msra.mxu0 %v21516_v13  ;;  %14272 = vmatprep.subr.bf16.mxu1 %v21521_v14  ;;  %v21567_v13 = vld [vmem:[%s24596_s4 + $0x148] ss:$40 sps:$4 sm:$0xff]  }
 0x20e   : > { %14559 = vmatprep.subr.bf16.mxu0 %v21524_v18  ;;  %v21570_v14 = vld [vmem:[%s24596_s4 + $0x150] ss:$40 sps:$4 sm:$0xff]   ;;  %v21575_v18 = vld [vmem:[%s24596_s4 + $0x19c] ss:$40 sps:$4 sm:$0xff]  }
 0x210   : > { %14273 = vmatpush1.bf16.msra.mxu1 %v21519_v19  ;;  %v21578_v19 = vld [vmem:[%s24596_s4 + $0x1a4] ss:$40 sps:$4 sm:$0xff]  }
 0x211   : > { %14560 = vmatpush1.bf16.msra.mxu0 %v21522_v23  ;;  %14274 = vmatprep.subr.bf16.mxu1 %v21527_v24  ;;  %v21573_v23 = vld [vmem:[%s24596_s4 + $0x198] ss:$40 sps:$4 sm:$0xff]  }
 0x212   : > { %14561 = vmatprep.subr.bf16.mxu0 %v21530_v25  ;;  %v21576_v24 = vld [vmem:[%s24596_s4 + $0x1a0] ss:$40 sps:$4 sm:$0xff]   ;;  %v21581_v25 = vld [vmem:[%s24596_s4 + $0x1ec] ss:$40 sps:$4 sm:$0xff]  }
 0x214   : > { %14275 = vmatpush1.bf16.msra.mxu1 %v21525_v26  ;;  %v21584_v26 = vld [vmem:[%s24596_s4 + $0x1f4] ss:$40 sps:$4 sm:$0xff]  }
 0x215   : > { %14562 = vmatpush1.bf16.msra.mxu0 %v21528_v29  ;;  %14276 = vmatprep.subr.bf16.mxu1 %v21533_v30  ;;  %v21579_v29 = vld [vmem:[%s24596_s4 + $0x1e8] ss:$40 sps:$4 sm:$0xff]  }
 0x216   : > { %14563 = vmatprep.subr.bf16.mxu0 %v21536_v31  ;;  %v21582_v30 = vld [vmem:[%s24596_s4 + $0x1f0] ss:$40 sps:$4 sm:$0xff]   ;;  %v21587_v31 = vld [vmem:[%s24596_s4 + $0x23c] ss:$40 sps:$4 sm:$0xff]  }
 0x218   : > { %14277 = vmatpush1.bf16.msra.mxu1 %v21531_v32  ;;  %v21590_v32 = vld [vmem:[%s24596_s4 + $0x244] ss:$40 sps:$4 sm:$0xff]  }
 0x219   : > { %14564 = vmatpush1.bf16.msra.mxu0 %v21534_v33  ;;  %14278 = vmatprep.subr.bf16.mxu1 %v21539_v34  ;;  %v21585_v33 = vld [vmem:[%s24596_s4 + $0x238] ss:$40 sps:$4 sm:$0xff]  }
 0x21a   : > { %14565 = vmatprep.subr.bf16.mxu0 %v21542_v37  ;;  %v21588_v34 = vld [vmem:[%s24596_s4 + $0x240] ss:$40 sps:$4 sm:$0xff]   ;;  %v21593_v37 = vld [vmem:[%s24596_s4 + $0x28c] ss:$40 sps:$4 sm:$0xff]  }
 0x21c   : > { %14279 = vmatpush1.bf16.msra.mxu1 %v21537_v38  ;;  %v21596_v38 = vld [vmem:[%s24596_s4 + $0x294] ss:$40 sps:$4 sm:$0xff]  }
 0x21d   : > { %14566 = vmatpush1.bf16.msra.mxu0 %v21540_v39  ;;  %14576 = vmatprep.subr.bf16.mxu1 %v21545_v62  ;;  %v21591_v39 = vld [vmem:[%s24596_s4 + $0x288] ss:$40 sps:$4 sm:$0xff]  }
 0x21e   : > { %15150 = vmatprep.subr.bf16.mxu0 %v21548_v44  ;;  %v21594_v62 = vld [vmem:[%s24596_s4 + $0x290] ss:$40 sps:$4 sm:$0xff]   ;;  %v21599_v44 = vld [vmem:[%s24596_s4 + $0x2dc] ss:$40 sps:$4 sm:$0xff]  }
 0x21f   : > { %14281 = vmatmul.mubr.bf16.vlgmr.msra.gmra.mrb[0].mxu1 %v24720_v16 }
 0x220   : > { %14568 = vmatmul.mubr.bf16.vlgmr.msra.gmra.mrb[0].mxu0 %v25255_v45  ;;  %14577 = vmatpush1.bf16.msra.mxu1 %v21543_v49  ;;  %v21602_v49 = vld [vmem:[%s24596_s4 + $0x2e4] ss:$40 sps:$4 sm:$0xff]  }
 0x221   : > { %15151 = vmatpush1.bf16.msra.mxu0 %v21546_v51  ;;  %14578 = vmatprep.subr.bf16.mxu1 %v21551_v52  ;;  %v21597_v51 = vld [vmem:[%s24596_s4 + $0x2d8] ss:$40 sps:$4 sm:$0xff]  }
 0x222   : > { %15152 = vmatprep.subr.bf16.mxu0 %v21554_v55  ;;  %14608 = vmatprep.mubr.bf16.mxu1 %v24695_v63  ;;  %v21600_v52 = vld [vmem:[%s24596_s4 + $0x2e0] ss:$40 sps:$4 sm:$0xff]   ;;  %v21605_v55 = vld [vmem:[%s24596_s4 + $0x32c] ss:$40 sps:$4 sm:$0xff]  }
 0x223   : > { %15182 = vmatprep.mubr.bf16.mxu0 %v24695_v63 }
 0x224   : > { %14579 = vmatpush1.bf16.msra.mxu1 %v21549_v56  ;;  %v21608_v56 = vld [vmem:[%s24596_s4 + $0x334] ss:$40 sps:$4 sm:$0xff]  }
 0x225   : > { %15153 = vmatpush1.bf16.msra.mxu0 %v21552_v57  ;;  %14580 = vmatprep.subr.bf16.mxu1 %v21557_v58  ;;  %v21603_v57 = vld [vmem:[%s24596_s4 + $0x328] ss:$40 sps:$4 sm:$0xff]  }
 0x226   : > { %15154 = vmatprep.subr.bf16.mxu0 %v21560_v0  ;;  %v21606_v58 = vld [vmem:[%s24596_s4 + $0x330] ss:$40 sps:$4 sm:$0xff]   ;;  %v21611_v0 = vld [vmem:[%s24596_s4 + $0x37c] ss:$40 sps:$4 sm:$0xff]  }
 0x228   : > { %14581 = vmatpush1.bf16.msra.mxu1 %v21555_v50  ;;  %v21614_v50 = vld [vmem:[%s24596_s4 + $0x384] ss:$40 sps:$4 sm:$0xff]  }
 0x229   : > { %15155 = vmatpush1.bf16.msra.mxu0 %v21558_v1  ;;  %14582 = vmatprep.subr.bf16.mxu1 %v21563_v3  ;;  %v21609_v1 = vld [vmem:[%s24596_s4 + $0x378] ss:$40 sps:$4 sm:$0xff]  }
 0x22a   : > { %15156 = vmatprep.subr.bf16.mxu0 %v21566_v53  ;;  %v21612_v3 = vld [vmem:[%s24596_s4 + $0x380] ss:$40 sps:$4 sm:$0xff]   ;;  %v21617_v53 = vld [vmem:[%s24596_s4 + $0x3cc] ss:$40 sps:$4 sm:$0xff]  }
 0x22c   : > { %14583 = vmatpush1.bf16.msra.mxu1 %v21561_v2  ;;  %v21620_v2 = vld [vmem:[%s24596_s4 + $0x3d4] ss:$40 sps:$4 sm:$0xff]  }
 0x22d   : > { %15157 = vmatpush1.bf16.msra.mxu0 %v21564_v8  ;;  %14584 = vmatprep.subr.bf16.mxu1 %v21569_v9  ;;  %v21615_v8 = vld [vmem:[%s24596_s4 + $0x3c8] ss:$40 sps:$4 sm:$0xff]  }
 0x22e   : > { %15158 = vmatprep.subr.bf16.mxu0 %v21572_v10  ;;  %v21618_v9 = vld [vmem:[%s24596_s4 + $0x3d0] ss:$40 sps:$4 sm:$0xff]   ;;  %v21623_v10 = vld [vmem:[%s24596_s4 + $0x41c] ss:$40 sps:$4 sm:$0xff]  }
 0x230   : > { %14585 = vmatpush1.bf16.msra.mxu1 %v21567_v13  ;;  %v21626_v13 = vld [vmem:[%s24596_s4 + $0x424] ss:$40 sps:$4 sm:$0xff]  }
 0x231   : > { %15159 = vmatpush1.bf16.msra.mxu0 %v21570_v14  ;;  %14586 = vmatprep.subr.bf16.mxu1 %v21575_v18  ;;  %v21621_v14 = vld [vmem:[%s24596_s4 + $0x418] ss:$40 sps:$4 sm:$0xff]  }
 0x232   : > { %15160 = vmatprep.subr.bf16.mxu0 %v21578_v19  ;;  %v21624_v18 = vld [vmem:[%s24596_s4 + $0x420] ss:$40 sps:$4 sm:$0xff]   ;;  %v21629_v19 = vld [vmem:[%s24596_s4 + $0x46c] ss:$40 sps:$4 sm:$0xff]  }
 0x234   : > { %14587 = vmatpush1.bf16.msra.mxu1 %v21573_v23  ;;  %v21632_v23 = vld [vmem:[%s24596_s4 + $0x474] ss:$40 sps:$4 sm:$0xff]  }
 0x235   : > { %15161 = vmatpush1.bf16.msra.mxu0 %v21576_v24  ;;  %14588 = vmatprep.subr.bf16.mxu1 %v21581_v25  ;;  %v21627_v24 = vld [vmem:[%s24596_s4 + $0x468] ss:$40 sps:$4 sm:$0xff]  }
 0x236   : > { %15162 = vmatprep.subr.bf16.mxu0 %v21584_v26  ;;  %v21630_v25 = vld [vmem:[%s24596_s4 + $0x470] ss:$40 sps:$4 sm:$0xff]   ;;  %v21635_v26 = vld [vmem:[%s24596_s4 + $0x4bc] ss:$40 sps:$4 sm:$0xff]  }
 0x238   : > { %14589 = vmatpush1.bf16.msra.mxu1 %v21579_v29  ;;  %v21638_v29 = vld [vmem:[%s24596_s4 + $0x4c4] ss:$40 sps:$4 sm:$0xff]  }
 0x239   : > { %15163 = vmatpush1.bf16.msra.mxu0 %v21582_v30  ;;  %14590 = vmatprep.subr.bf16.mxu1 %v21587_v31  ;;  %v21633_v30 = vld [vmem:[%s24596_s4 + $0x4b8] ss:$40 sps:$4 sm:$0xff]  }
 0x23a   : > { %15164 = vmatprep.subr.bf16.mxu0 %v21590_v32  ;;  %v21636_v31 = vld [vmem:[%s24596_s4 + $0x4c0] ss:$40 sps:$4 sm:$0xff]   ;;  %v21641_v32 = vld [vmem:[%s24596_s4 + $0x50c] ss:$40 sps:$4 sm:$0xff]  }
 0x23c   : > { %14591 = vmatpush1.bf16.msra.mxu1 %v21585_v33  ;;  %v21644_v33 = vld [vmem:[%s24596_s4 + $0x514] ss:$40 sps:$4 sm:$0xff]  }
 0x23d   : > { %15165 = vmatpush1.bf16.msra.mxu0 %v21588_v34  ;;  %14592 = vmatprep.subr.bf16.mxu1 %v21593_v37  ;;  %v21639_v34 = vld [vmem:[%s24596_s4 + $0x508] ss:$40 sps:$4 sm:$0xff]  }
 0x23e   : > { %15166 = vmatprep.subr.bf16.mxu0 %v21596_v38  ;;  %v21642_v37 = vld [vmem:[%s24596_s4 + $0x510] ss:$40 sps:$4 sm:$0xff]   ;;  %v21647_v38 = vld [vmem:[%s24596_s4 + $0x55c] ss:$40 sps:$4 sm:$0xff]  }
 0x240   : > { %14593 = vmatpush1.bf16.msra.mxu1 %v21591_v39  ;;  %v21650_v39 = vld [vmem:[%s24596_s4 + $0x564] ss:$40 sps:$4 sm:$0xff]  }
 0x241   : > { %15167 = vmatpush1.bf16.msra.mxu0 %v21594_v62  ;;  %14594 = vmatprep.subr.bf16.mxu1 %v21599_v44  ;;  %v21645_v62 = vld [vmem:[%s24596_s4 + $0x558] ss:$40 sps:$4 sm:$0xff]  }
 0x242   : > { %15168 = vmatprep.subr.bf16.mxu0 %v21602_v49  ;;  %v21648_v44 = vld [vmem:[%s24596_s4 + $0x560] ss:$40 sps:$4 sm:$0xff]   ;;  %v21653_v49 = vld [vmem:[%s24596_s4 + $0x5ac] ss:$40 sps:$4 sm:$0xff]  }
 0x244   : > { %14595 = vmatpush1.bf16.msra.mxu1 %v21597_v51  ;;  %v21656_v51 = vld [vmem:[%s24596_s4 + $0x5b4] ss:$40 sps:$4 sm:$0xff]  }
 0x245   : > { %15169 = vmatpush1.bf16.msra.mxu0 %v21600_v52  ;;  %14596 = vmatprep.subr.bf16.mxu1 %v21605_v55  ;;  %v21651_v52 = vld [vmem:[%s24596_s4 + $0x5a8] ss:$40 sps:$4 sm:$0xff]  }
 0x246   : > { %15170 = vmatprep.subr.bf16.mxu0 %v21608_v56  ;;  %v21654_v55 = vld [vmem:[%s24596_s4 + $0x5b0] ss:$40 sps:$4 sm:$0xff]   ;;  %v21659_v56 = vld [vmem:[%s24596_s4 + $0x5fc] ss:$40 sps:$4 sm:$0xff]  }
 0x248   : > { %14597 = vmatpush1.bf16.msra.mxu1 %v21603_v57  ;;  %v21662_v57 = vld [vmem:[%s24596_s4 + $0x604] ss:$40 sps:$4 sm:$0xff]  }
 0x249   : > { %15171 = vmatpush1.bf16.msra.mxu0 %v21606_v58  ;;  %14598 = vmatprep.subr.bf16.mxu1 %v21611_v0  ;;  %v21657_v58 = vld [vmem:[%s24596_s4 + $0x5f8] ss:$40 sps:$4 sm:$0xff]  }
 0x24a   : > { %15172 = vmatprep.subr.bf16.mxu0 %v21614_v50  ;;  %v21660_v0 = vld [vmem:[%s24596_s4 + $0x600] ss:$40 sps:$4 sm:$0xff]   ;;  %v21665_v50 = vld [vmem:[%s24596_s4 + $0x64c] ss:$40 sps:$4 sm:$0xff]  }
 0x24c   : > { %14599 = vmatpush1.bf16.msra.mxu1 %v21609_v1  ;;  %v21668_v1 = vld [vmem:[%s24596_s4 + $0x654] ss:$40 sps:$4 sm:$0xff]  }
 0x24d   : > { %15173 = vmatpush1.bf16.msra.mxu0 %v21612_v3  ;;  %14600 = vmatprep.subr.bf16.mxu1 %v21617_v53  ;;  %v21663_v3 = vld [vmem:[%s24596_s4 + $0x648] ss:$40 sps:$4 sm:$0xff]  }
 0x24e   : > { %15174 = vmatprep.subr.bf16.mxu0 %v21620_v2  ;;  %v21666_v53 = vld [vmem:[%s24596_s4 + $0x650] ss:$40 sps:$4 sm:$0xff]   ;;  %v21671_v2 = vld [vmem:[%s24596_s4 + $0x69c] ss:$40 sps:$4 sm:$0xff]  }
 0x250   : > { %14601 = vmatpush1.bf16.msra.mxu1 %v21615_v8  ;;  %v21674_v8 = vld [vmem:[%s24596_s4 + $0x6a4] ss:$40 sps:$4 sm:$0xff]  }
 0x251   : > { %15175 = vmatpush1.bf16.msra.mxu0 %v21618_v9  ;;  %14602 = vmatprep.subr.bf16.mxu1 %v21623_v10  ;;  %v21669_v9 = vld [vmem:[%s24596_s4 + $0x698] ss:$40 sps:$4 sm:$0xff]  }
 0x252   : > { %15176 = vmatprep.subr.bf16.mxu0 %v21626_v13  ;;  %v21672_v10 = vld [vmem:[%s24596_s4 + $0x6a0] ss:$40 sps:$4 sm:$0xff]   ;;  %v21677_v13 = vld [vmem:[%s24596_s4 + $0x6ec] ss:$40 sps:$4 sm:$0xff]  }
 0x254   : > { %14603 = vmatpush1.bf16.msra.mxu1 %v21621_v14  ;;  %v21680_v14 = vld [vmem:[%s24596_s4 + $0x6f4] ss:$40 sps:$4 sm:$0xff]  }
 0x255   : > { %15177 = vmatpush1.bf16.msra.mxu0 %v21624_v18  ;;  %14604 = vmatprep.subr.bf16.mxu1 %v21629_v19  ;;  %v21675_v18 = vld [vmem:[%s24596_s4 + $0x6e8] ss:$40 sps:$4 sm:$0xff]  }
 0x256   : > { %15178 = vmatprep.subr.bf16.mxu0 %v21632_v23  ;;  %v21678_v19 = vld [vmem:[%s24596_s4 + $0x6f0] ss:$40 sps:$4 sm:$0xff]   ;;  %v21683_v23 = vld [vmem:[%s24596_s4 + $0x73c] ss:$40 sps:$4 sm:$0xff]  }
 0x258   : > { %14605 = vmatpush1.bf16.msra.mxu1 %v21627_v24  ;;  %v21686_v24 = vld [vmem:[%s24596_s4 + $0x744] ss:$40 sps:$4 sm:$0xff]  }
 0x259   : > { %15179 = vmatpush1.bf16.msra.mxu0 %v21630_v25  ;;  %14606 = vmatprep.subr.bf16.mxu1 %v21635_v26  ;;  %v21681_v25 = vld [vmem:[%s24596_s4 + $0x738] ss:$40 sps:$4 sm:$0xff]  }
 0x25a   : > { %15180 = vmatprep.subr.bf16.mxu0 %v21638_v29  ;;  %v21684_v26 = vld [vmem:[%s24596_s4 + $0x740] ss:$40 sps:$4 sm:$0xff]   ;;  %v21689_v29 = vld [vmem:[%s24596_s4 + $0x78c] ss:$40 sps:$4 sm:$0xff]  }
 0x25c   : > { %14607 = vmatpush1.bf16.msra.mxu1 %v21633_v30  ;;  %v21692_v30 = vld [vmem:[%s24596_s4 + $0x794] ss:$40 sps:$4 sm:$0xff]  }
 0x25d   : > { %15181 = vmatpush1.bf16.msra.mxu0 %v21636_v31  ;;  %14617 = vmatprep.subr.bf16.mxu1 %v21641_v32  ;;  %v21687_v31 = vld [vmem:[%s24596_s4 + $0x788] ss:$40 sps:$4 sm:$0xff]  }
 0x25e   : > { %15191 = vmatprep.subr.bf16.mxu0 %v21644_v33  ;;  %v21690_v32 = vld [vmem:[%s24596_s4 + $0x790] ss:$40 sps:$4 sm:$0xff]   ;;  %v21695_v33 = vld [vmem:[%s24596_s4 + $0x7dc] ss:$40 sps:$4 sm:$0xff]  }
 0x25f   : > { %14609 = vmatmul.mubr.bf16.vlgmr.msra.gmra.mrb[4].mxu1 %v24727_v21 }
 0x260   : > { %15183 = vmatmul.mubr.bf16.vlgmr.msra.gmra.mrb[4].mxu0 %v24727_v21  ;;  %14618 = vmatpush1.bf16.msra.mxu1 %v21639_v34  ;;  %v21698_v34 = vld [vmem:[%s24596_s4 + $0x7e4] ss:$40 sps:$4 sm:$0xff]  }
 0x261   : > { %15192 = vmatpush1.bf16.msra.mxu0 %v21642_v37  ;;  %14619 = vmatprep.subr.bf16.mxu1 %v21647_v38  ;;  %v21693_v37 = vld [vmem:[%s24596_s4 + $0x7d8] ss:$40 sps:$4 sm:$0xff]  }
 0x262   : > { %15193 = vmatprep.subr.bf16.mxu0 %v21650_v39  ;;  %14649 = vmatprep.mubr.bf16.mxu1 %v24739_v27  ;;  %v21696_v38 = vld [vmem:[%s24596_s4 + $0x7e0] ss:$40 sps:$4 sm:$0xff]   ;;  %v21701_v39 = vld [vmem:[%s24596_s4 + $0x82c] ss:$40 sps:$4 sm:$0xff]  }
 0x263   : > { %15223 = vmatprep.mubr.bf16.mxu0 %v24739_v27 }
 0x264   : > { %14620 = vmatpush1.bf16.msra.mxu1 %v21645_v62  ;;  %v21704_v62 = vld [vmem:[%s24596_s4 + $0x834] ss:$40 sps:$4 sm:$0xff]  }
 0x265   : > { %15194 = vmatpush1.bf16.msra.mxu0 %v21648_v44  ;;  %14621 = vmatprep.subr.bf16.mxu1 %v21653_v49  ;;  %v21699_v44 = vld [vmem:[%s24596_s4 + $0x828] ss:$40 sps:$4 sm:$0xff]  }
 0x266   : > { %15195 = vmatprep.subr.bf16.mxu0 %v21656_v51  ;;  %v21702_v49 = vld [vmem:[%s24596_s4 + $0x830] ss:$40 sps:$4 sm:$0xff]   ;;  %v21707_v51 = vld [vmem:[%s24596_s4 + $0x87c] ss:$40 sps:$4 sm:$0xff]  }
 0x268   : > { %14622 = vmatpush1.bf16.msra.mxu1 %v21651_v52  ;;  %v21710_v52 = vld [vmem:[%s24596_s4 + $0x884] ss:$40 sps:$4 sm:$0xff]  }
 0x269   : > { %15196 = vmatpush1.bf16.msra.mxu0 %v21654_v55  ;;  %14623 = vmatprep.subr.bf16.mxu1 %v21659_v56  ;;  %v21705_v55 = vld [vmem:[%s24596_s4 + $0x878] ss:$40 sps:$4 sm:$0xff]  }
 0x26a   : > { %15197 = vmatprep.subr.bf16.mxu0 %v21662_v57  ;;  %v21708_v56 = vld [vmem:[%s24596_s4 + $0x880] ss:$40 sps:$4 sm:$0xff]   ;;  %v21713_v57 = vld [vmem:[%s24596_s4 + $0x8cc] ss:$40 sps:$4 sm:$0xff]  }
 0x26c   : > { %14624 = vmatpush1.bf16.msra.mxu1 %v21657_v58  ;;  %v21716_v58 = vld [vmem:[%s24596_s4 + $0x8d4] ss:$40 sps:$4 sm:$0xff]  }
 0x26d   : > { %15198 = vmatpush1.bf16.msra.mxu0 %v21660_v0  ;;  %14625 = vmatprep.subr.bf16.mxu1 %v21665_v50  ;;  %v21711_v0 = vld [vmem:[%s24596_s4 + $0x8c8] ss:$40 sps:$4 sm:$0xff]  }
 0x26e   : > { %15199 = vmatprep.subr.bf16.mxu0 %v21668_v1  ;;  %v21714_v50 = vld [vmem:[%s24596_s4 + $0x8d0] ss:$40 sps:$4 sm:$0xff]   ;;  %v21719_v1 = vld [vmem:[%s24596_s4 + $0x91c] ss:$40 sps:$4 sm:$0xff]  }
 0x270   : > { %14626 = vmatpush1.bf16.msra.mxu1 %v21663_v3  ;;  %v21722_v3 = vld [vmem:[%s24596_s4 + $0x924] ss:$40 sps:$4 sm:$0xff]  }
 0x271   : > { %15200 = vmatpush1.bf16.msra.mxu0 %v21666_v53  ;;  %14627 = vmatprep.subr.bf16.mxu1 %v21671_v2  ;;  %v21717_v53 = vld [vmem:[%s24596_s4 + $0x918] ss:$40 sps:$4 sm:$0xff]  }
 0x272   : > { %15201 = vmatprep.subr.bf16.mxu0 %v21674_v8  ;;  %v21720_v2 = vld [vmem:[%s24596_s4 + $0x920] ss:$40 sps:$4 sm:$0xff]   ;;  %v21725_v8 = vld [vmem:[%s24596_s4 + $0x96c] ss:$40 sps:$4 sm:$0xff]  }
 0x274   : > { %14628 = vmatpush1.bf16.msra.mxu1 %v21669_v9  ;;  %v21728_v9 = vld [vmem:[%s24596_s4 + $0x974] ss:$40 sps:$4 sm:$0xff]  }
 0x275   : > { %15202 = vmatpush1.bf16.msra.mxu0 %v21672_v10  ;;  %14629 = vmatprep.subr.bf16.mxu1 %v21677_v13  ;;  %v21723_v10 = vld [vmem:[%s24596_s4 + $0x968] ss:$40 sps:$4 sm:$0xff]  }
 0x276   : > { %15203 = vmatprep.subr.bf16.mxu0 %v21680_v14  ;;  %v21726_v13 = vld [vmem:[%s24596_s4 + $0x970] ss:$40 sps:$4 sm:$0xff]   ;;  %v21731_v14 = vld [vmem:[%s24596_s4 + $0x9bc] ss:$40 sps:$4 sm:$0xff]  }
 0x278   : > { %14630 = vmatpush1.bf16.msra.mxu1 %v21675_v18  ;;  %v21734_v18 = vld [vmem:[%s24596_s4 + $0x9c4] ss:$40 sps:$4 sm:$0xff]  }
 0x279   : > { %15204 = vmatpush1.bf16.msra.mxu0 %v21678_v19  ;;  %14631 = vmatprep.subr.bf16.mxu1 %v21683_v23  ;;  %v21729_v19 = vld [vmem:[%s24596_s4 + $0x9b8] ss:$40 sps:$4 sm:$0xff]  }
 0x27a   : > { %15205 = vmatprep.subr.bf16.mxu0 %v21686_v24  ;;  %v21732_v23 = vld [vmem:[%s24596_s4 + $0x9c0] ss:$40 sps:$4 sm:$0xff]   ;;  %v21737_v24 = vld [vmem:[%s24596_s4 + $0xa0c] ss:$40 sps:$4 sm:$0xff]  }
 0x27c   : > { %14632 = vmatpush1.bf16.msra.mxu1 %v21681_v25  ;;  %v21740_v25 = vld [vmem:[%s24596_s4 + $0xa14] ss:$40 sps:$4 sm:$0xff]  }
 0x27d   : > { %15206 = vmatpush1.bf16.msra.mxu0 %v21684_v26  ;;  %14633 = vmatprep.subr.bf16.mxu1 %v21689_v29  ;;  %v21735_v26 = vld [vmem:[%s24596_s4 + $0xa08] ss:$40 sps:$4 sm:$0xff]  }
 0x27e   : > { %15207 = vmatprep.subr.bf16.mxu0 %v21692_v30  ;;  %v21738_v29 = vld [vmem:[%s24596_s4 + $0xa10] ss:$40 sps:$4 sm:$0xff]   ;;  %v21743_v30 = vld [vmem:[%s24596_s4 + $0xa5c] ss:$40 sps:$4 sm:$0xff]  }
 0x280   : > { %14634 = vmatpush1.bf16.msra.mxu1 %v21687_v31  ;;  %v21746_v31 = vld [vmem:[%s24596_s4 + $0xa64] ss:$40 sps:$4 sm:$0xff]  }
 0x281   : > { %15208 = vmatpush1.bf16.msra.mxu0 %v21690_v32  ;;  %14635 = vmatprep.subr.bf16.mxu1 %v21695_v33  ;;  %v21741_v32 = vld [vmem:[%s24596_s4 + $0xa58] ss:$40 sps:$4 sm:$0xff]  }
 0x282   : > { %15209 = vmatprep.subr.bf16.mxu0 %v21698_v34  ;;  %v21744_v33 = vld [vmem:[%s24596_s4 + $0xa60] ss:$40 sps:$4 sm:$0xff]   ;;  %v21749_v34 = vld [vmem:[%s24596_s4 + $0xaac] ss:$40 sps:$4 sm:$0xff]  }
 0x284   : > { %14636 = vmatpush1.bf16.msra.mxu1 %v21693_v37  ;;  %v21752_v37 = vld [vmem:[%s24596_s4 + $0xab4] ss:$40 sps:$4 sm:$0xff]  }
 0x285   : > { %15210 = vmatpush1.bf16.msra.mxu0 %v21696_v38  ;;  %14637 = vmatprep.subr.bf16.mxu1 %v21701_v39  ;;  %v21747_v38 = vld [vmem:[%s24596_s4 + $0xaa8] ss:$40 sps:$4 sm:$0xff]  }
 0x286   : > { %15211 = vmatprep.subr.bf16.mxu0 %v21704_v62  ;;  %v21750_v39 = vld [vmem:[%s24596_s4 + $0xab0] ss:$40 sps:$4 sm:$0xff]   ;;  %v21755_v62 = vld [vmem:[%s24596_s4 + $0xafc] ss:$40 sps:$4 sm:$0xff]  }
 0x288   : > { %14638 = vmatpush1.bf16.msra.mxu1 %v21699_v44  ;;  %v21758_v44 = vld [vmem:[%s24596_s4 + $0xb04] ss:$40 sps:$4 sm:$0xff]  }
 0x289   : > { %15212 = vmatpush1.bf16.msra.mxu0 %v21702_v49  ;;  %14639 = vmatprep.subr.bf16.mxu1 %v21707_v51  ;;  %v21753_v49 = vld [vmem:[%s24596_s4 + $0xaf8] ss:$40 sps:$4 sm:$0xff]  }
 0x28a   : > { %15213 = vmatprep.subr.bf16.mxu0 %v21710_v52  ;;  %v21756_v51 = vld [vmem:[%s24596_s4 + $0xb00] ss:$40 sps:$4 sm:$0xff]   ;;  %v21761_v52 = vld [vmem:[%s24596_s4 + $0xb4c] ss:$40 sps:$4 sm:$0xff]  }
 0x28c   : > { %14640 = vmatpush1.bf16.msra.mxu1 %v21705_v55  ;;  %v21764_v55 = vld [vmem:[%s24596_s4 + $0xb54] ss:$40 sps:$4 sm:$0xff]  }
 0x28d   : > { %15214 = vmatpush1.bf16.msra.mxu0 %v21708_v56  ;;  %14641 = vmatprep.subr.bf16.mxu1 %v21713_v57  ;;  %v21759_v56 = vld [vmem:[%s24596_s4 + $0xb48] ss:$40 sps:$4 sm:$0xff]  }
 0x28e   : > { %15215 = vmatprep.subr.bf16.mxu0 %v21716_v58  ;;  %v21762_v57 = vld [vmem:[%s24596_s4 + $0xb50] ss:$40 sps:$4 sm:$0xff]   ;;  %v21767_v58 = vld [vmem:[%s24596_s4 + $0xb9c] ss:$40 sps:$4 sm:$0xff]  }
 0x290   : > { %14642 = vmatpush1.bf16.msra.mxu1 %v21711_v0  ;;  %v21770_v0 = vld [vmem:[%s24596_s4 + $0xba4] ss:$40 sps:$4 sm:$0xff]  }
 0x291   : > { %15216 = vmatpush1.bf16.msra.mxu0 %v21714_v50  ;;  %14643 = vmatprep.subr.bf16.mxu1 %v21719_v1  ;;  %v21765_v50 = vld [vmem:[%s24596_s4 + $0xb98] ss:$40 sps:$4 sm:$0xff]  }
 0x292   : > { %15217 = vmatprep.subr.bf16.mxu0 %v21722_v3  ;;  %v21768_v1 = vld [vmem:[%s24596_s4 + $0xba0] ss:$40 sps:$4 sm:$0xff]   ;;  %v21773_v3 = vld [vmem:[%s24596_s4 + $0xbec] ss:$40 sps:$4 sm:$0xff]  }
 0x294   : > { %14644 = vmatpush1.bf16.msra.mxu1 %v21717_v53  ;;  %v21776_v53 = vld [vmem:[%s24596_s4 + $0xbf4] ss:$40 sps:$4 sm:$0xff]  }
 0x295   : > { %15218 = vmatpush1.bf16.msra.mxu0 %v21720_v2  ;;  %14645 = vmatprep.subr.bf16.mxu1 %v21725_v8  ;;  %v21771_v2 = vld [vmem:[%s24596_s4 + $0xbe8] ss:$40 sps:$4 sm:$0xff]  }
 0x296   : > { %15219 = vmatprep.subr.bf16.mxu0 %v21728_v9  ;;  %v21774_v8 = vld [vmem:[%s24596_s4 + $0xbf0] ss:$40 sps:$4 sm:$0xff]   ;;  %v21779_v9 = vld [vmem:[%s24596_s4 + $0xc3c] ss:$40 sps:$4 sm:$0xff]  }
 0x298   : > { %14646 = vmatpush1.bf16.msra.mxu1 %v21723_v10  ;;  %v21782_v10 = vld [vmem:[%s24596_s4 + $0xc44] ss:$40 sps:$4 sm:$0xff]  }
 0x299   : > { %15220 = vmatpush1.bf16.msra.mxu0 %v21726_v13  ;;  %14647 = vmatprep.subr.bf16.mxu1 %v21731_v14  ;;  %v21777_v13 = vld [vmem:[%s24596_s4 + $0xc38] ss:$40 sps:$4 sm:$0xff]  }
 0x29a   : > { %15221 = vmatprep.subr.bf16.mxu0 %v21734_v18  ;;  %v21780_v14 = vld [vmem:[%s24596_s4 + $0xc40] ss:$40 sps:$4 sm:$0xff]   ;;  %v21785_v18 = vld [vmem:[%s24596_s4 + $0xc8c] ss:$40 sps:$4 sm:$0xff]  }
 0x29c   : > { %14648 = vmatpush1.bf16.msra.mxu1 %v21729_v19  ;;  %v21788_v19 = vld [vmem:[%s24596_s4 + $0xc94] ss:$40 sps:$4 sm:$0xff]  }
 0x29d   : > { %15222 = vmatpush1.bf16.msra.mxu0 %v21732_v23  ;;  %14658 = vmatprep.subr.bf16.mxu1 %v21737_v24  ;;  %v21783_v23 = vld [vmem:[%s24596_s4 + $0xc88] ss:$40 sps:$4 sm:$0xff]  }
 0x29e   : > { %15232 = vmatprep.subr.bf16.mxu0 %v21740_v25  ;;  %v21786_v24 = vld [vmem:[%s24596_s4 + $0xc90] ss:$40 sps:$4 sm:$0xff]   ;;  %v21791_v25 = vld [vmem:[%s24596_s4 + $0xcdc] ss:$40 sps:$4 sm:$0xff]  }
 0x29f   : > { %14650 = vmatmul.mubr.bf16.vlgmr.msra.gmra.mrb[4].mxu1 %v24827_v41 }
 0x2a0   : > { %15224 = vmatmul.mubr.bf16.vlgmr.msra.gmra.mrb[4].mxu0 %v24827_v41  ;;  %14659 = vmatpush1.bf16.msra.mxu1 %v21735_v26  ;;  %v21794_v26 = vld [vmem:[%s24596_s4 + $0xce4] ss:$40 sps:$4 sm:$0xff]  }
 0x2a1   : > { %15233 = vmatpush1.bf16.msra.mxu0 %v21738_v29  ;;  %14660 = vmatprep.subr.bf16.mxu1 %v21743_v30  ;;  %v21789_v29 = vld [vmem:[%s24596_s4 + $0xcd8] ss:$40 sps:$4 sm:$0xff]  }
 0x2a2   : > { %15234 = vmatprep.subr.bf16.mxu0 %v21746_v31  ;;  %14690 = vmatprep.mubr.bf16.mxu1 %v24837_v46  ;;  %v21792_v30 = vld [vmem:[%s24596_s4 + $0xce0] ss:$40 sps:$4 sm:$0xff]   ;;  %v21797_v31 = vld [vmem:[%s24596_s4 + $0xd2c] ss:$40 sps:$4 sm:$0xff]  }
 0x2a3   : > { %15264 = vmatprep.mubr.bf16.mxu0 %v24837_v46 }
 0x2a4   : > { %14661 = vmatpush1.bf16.msra.mxu1 %v21741_v32  ;;  %v21800_v32 = vld [vmem:[%s24596_s4 + $0xd34] ss:$40 sps:$4 sm:$0xff]  }
 0x2a5   : > { %15235 = vmatpush1.bf16.msra.mxu0 %v21744_v33  ;;  %14662 = vmatprep.subr.bf16.mxu1 %v21749_v34  ;;  %v21795_v33 = vld [vmem:[%s24596_s4 + $0xd28] ss:$40 sps:$4 sm:$0xff]  }
 0x2a6   : > { %15236 = vmatprep.subr.bf16.mxu0 %v21752_v37  ;;  %v21798_v34 = vld [vmem:[%s24596_s4 + $0xd30] ss:$40 sps:$4 sm:$0xff]   ;;  %v21803_v37 = vld [vmem:[%s24596_s4 + $0xd7c] ss:$40 sps:$4 sm:$0xff]  }
 0x2a8   : > { %14663 = vmatpush1.bf16.msra.mxu1 %v21747_v38  ;;  %v21806_v38 = vld [vmem:[%s24596_s4 + $0xd84] ss:$40 sps:$4 sm:$0xff]  }
 0x2a9   : > { %15237 = vmatpush1.bf16.msra.mxu0 %v21750_v39  ;;  %14664 = vmatprep.subr.bf16.mxu1 %v21755_v62  ;;  %v21801_v39 = vld [vmem:[%s24596_s4 + $0xd78] ss:$40 sps:$4 sm:$0xff]  }
 0x2aa   : > { %15238 = vmatprep.subr.bf16.mxu0 %v21758_v44  ;;  %v21804_v62 = vld [vmem:[%s24596_s4 + $0xd80] ss:$40 sps:$4 sm:$0xff]   ;;  %v21809_v44 = vld [vmem:[%s24596_s4 + $0xdcc] ss:$40 sps:$4 sm:$0xff]  }
 0x2ac   : > { %14665 = vmatpush1.bf16.msra.mxu1 %v21753_v49  ;;  %v21812_v49 = vld [vmem:[%s24596_s4 + $0xdd4] ss:$40 sps:$4 sm:$0xff]  }
 0x2ad   : > { %15239 = vmatpush1.bf16.msra.mxu0 %v21756_v51  ;;  %14666 = vmatprep.subr.bf16.mxu1 %v21761_v52  ;;  %v21807_v51 = vld [vmem:[%s24596_s4 + $0xdc8] ss:$40 sps:$4 sm:$0xff]  }
 0x2ae   : > { %15240 = vmatprep.subr.bf16.mxu0 %v21764_v55  ;;  %v21810_v52 = vld [vmem:[%s24596_s4 + $0xdd0] ss:$40 sps:$4 sm:$0xff]   ;;  %v21815_v55 = vld [vmem:[%s24596_s4 + $0xe1c] ss:$40 sps:$4 sm:$0xff]  }
 0x2b0   : > { %14667 = vmatpush1.bf16.msra.mxu1 %v21759_v56  ;;  %v21818_v56 = vld [vmem:[%s24596_s4 + $0xe24] ss:$40 sps:$4 sm:$0xff]  }
 0x2b1   : > { %15241 = vmatpush1.bf16.msra.mxu0 %v21762_v57  ;;  %14668 = vmatprep.subr.bf16.mxu1 %v21767_v58  ;;  %v21813_v57 = vld [vmem:[%s24596_s4 + $0xe18] ss:$40 sps:$4 sm:$0xff]  }
 0x2b2   : > { %15242 = vmatprep.subr.bf16.mxu0 %v21770_v0  ;;  %v21816_v58 = vld [vmem:[%s24596_s4 + $0xe20] ss:$40 sps:$4 sm:$0xff]   ;;  %v21821_v0 = vld [vmem:[%s24596_s4 + $0xe6c] ss:$40 sps:$4 sm:$0xff]  }
 0x2b4   : > { %14669 = vmatpush1.bf16.msra.mxu1 %v21765_v50  ;;  %v21824_v50 = vld [vmem:[%s24596_s4 + $0xe74] ss:$40 sps:$4 sm:$0xff]  }
 0x2b5   : > { %15243 = vmatpush1.bf16.msra.mxu0 %v21768_v1  ;;  %14670 = vmatprep.subr.bf16.mxu1 %v21773_v3  ;;  %v21819_v1 = vld [vmem:[%s24596_s4 + $0xe68] ss:$40 sps:$4 sm:$0xff]  }
 0x2b6   : > { %15244 = vmatprep.subr.bf16.mxu0 %v21776_v53  ;;  %v21822_v3 = vld [vmem:[%s24596_s4 + $0xe70] ss:$40 sps:$4 sm:$0xff]   ;;  %v21827_v53 = vld [vmem:[%s24596_s4 + $0xebc] ss:$40 sps:$4 sm:$0xff]  }
 0x2b8   : > { %14671 = vmatpush1.bf16.msra.mxu1 %v21771_v2  ;;  %v21830_v2 = vld [vmem:[%s24596_s4 + $0xec4] ss:$40 sps:$4 sm:$0xff]  }
 0x2b9   : > { %15245 = vmatpush1.bf16.msra.mxu0 %v21774_v8  ;;  %14672 = vmatprep.subr.bf16.mxu1 %v21779_v9  ;;  %v21825_v8 = vld [vmem:[%s24596_s4 + $0xeb8] ss:$40 sps:$4 sm:$0xff]  }
 0x2ba   : > { %15246 = vmatprep.subr.bf16.mxu0 %v21782_v10  ;;  %v21828_v9 = vld [vmem:[%s24596_s4 + $0xec0] ss:$40 sps:$4 sm:$0xff]   ;;  %v21833_v10 = vld [vmem:[%s24596_s4 + $0xf0c] ss:$40 sps:$4 sm:$0xff]  }
 0x2bc   : > { %14673 = vmatpush1.bf16.msra.mxu1 %v21777_v13  ;;  %v21836_v13 = vld [vmem:[%s24596_s4 + $0xf14] ss:$40 sps:$4 sm:$0xff]  }
 0x2bd   : > { %15247 = vmatpush1.bf16.msra.mxu0 %v21780_v14  ;;  %14674 = vmatprep.subr.bf16.mxu1 %v21785_v18  ;;  %v21831_v14 = vld [vmem:[%s24596_s4 + $0xf08] ss:$40 sps:$4 sm:$0xff]  }
 0x2be   : > { %15248 = vmatprep.subr.bf16.mxu0 %v21788_v19  ;;  %v21834_v18 = vld [vmem:[%s24596_s4 + $0xf10] ss:$40 sps:$4 sm:$0xff]   ;;  %v21839_v19 = vld [vmem:[%s24596_s4 + $0xf5c] ss:$40 sps:$4 sm:$0xff]  }
 0x2c0   : > { %14675 = vmatpush1.bf16.msra.mxu1 %v21783_v23  ;;  %v21842_v23 = vld [vmem:[%s24596_s4 + $0xf64] ss:$40 sps:$4 sm:$0xff]  }
 0x2c1   : > { %15249 = vmatpush1.bf16.msra.mxu0 %v21786_v24  ;;  %14676 = vmatprep.subr.bf16.mxu1 %v21791_v25  ;;  %v21837_v24 = vld [vmem:[%s24596_s4 + $0xf58] ss:$40 sps:$4 sm:$0xff]  }
 0x2c2   : > { %15250 = vmatprep.subr.bf16.mxu0 %v21794_v26  ;;  %v21840_v25 = vld [vmem:[%s24596_s4 + $0xf60] ss:$40 sps:$4 sm:$0xff]   ;;  %v21845_v26 = vld [vmem:[%s24596_s4 + $0xfac] ss:$40 sps:$4 sm:$0xff]  }
 0x2c4   : > { %14677 = vmatpush1.bf16.msra.mxu1 %v21789_v29  ;;  %v21848_v29 = vld [vmem:[%s24596_s4 + $0xfb4] ss:$40 sps:$4 sm:$0xff]  }
 0x2c5   : > { %15251 = vmatpush1.bf16.msra.mxu0 %v21792_v30  ;;  %14678 = vmatprep.subr.bf16.mxu1 %v21797_v31  ;;  %v21843_v30 = vld [vmem:[%s24596_s4 + $0xfa8] ss:$40 sps:$4 sm:$0xff]  }
 0x2c6   : > { %15252 = vmatprep.subr.bf16.mxu0 %v21800_v32  ;;  %v21846_v31 = vld [vmem:[%s24596_s4 + $0xfb0] ss:$40 sps:$4 sm:$0xff]   ;;  %v21851_v32 = vld [vmem:[%s24596_s4 + $0xffc] ss:$40 sps:$4 sm:$0xff]  }
 0x2c8   : > { %14679 = vmatpush1.bf16.msra.mxu1 %v21795_v33  ;;  %v21854_v33 = vld [vmem:[%s24596_s4 + $0x1004] ss:$40 sps:$4 sm:$0xff]  }
 0x2c9   : > { %15253 = vmatpush1.bf16.msra.mxu0 %v21798_v34  ;;  %14680 = vmatprep.subr.bf16.mxu1 %v21803_v37  ;;  %v21849_v34 = vld [vmem:[%s24596_s4 + $0xff8] ss:$40 sps:$4 sm:$0xff]  }
 0x2ca   : > { %15254 = vmatprep.subr.bf16.mxu0 %v21806_v38  ;;  %v21852_v37 = vld [vmem:[%s24596_s4 + $0x1000] ss:$40 sps:$4 sm:$0xff]   ;;  %v21857_v38 = vld [vmem:[%s24596_s4 + $0x104c] ss:$40 sps:$4 sm:$0xff]  }
 0x2cc   : > { %14681 = vmatpush1.bf16.msra.mxu1 %v21801_v39  ;;  %v21860_v39 = vld [vmem:[%s24596_s4 + $0x1054] ss:$40 sps:$4 sm:$0xff]  }
 0x2cd   : > { %15255 = vmatpush1.bf16.msra.mxu0 %v21804_v62  ;;  %14682 = vmatprep.subr.bf16.mxu1 %v21809_v44  ;;  %v21855_v62 = vld [vmem:[%s24596_s4 + $0x1048] ss:$40 sps:$4 sm:$0xff]  }
 0x2ce   : > { %15256 = vmatprep.subr.bf16.mxu0 %v21812_v49  ;;  %v21858_v44 = vld [vmem:[%s24596_s4 + $0x1050] ss:$40 sps:$4 sm:$0xff]   ;;  %v21863_v49 = vld [vmem:[%s24596_s4 + $0x109c] ss:$40 sps:$4 sm:$0xff]  }
 0x2d0   : > { %14683 = vmatpush1.bf16.msra.mxu1 %v21807_v51  ;;  %v21866_v51 = vld [vmem:[%s24596_s4 + $0x10a4] ss:$40 sps:$4 sm:$0xff]  }
 0x2d1   : > { %15257 = vmatpush1.bf16.msra.mxu0 %v21810_v52  ;;  %14684 = vmatprep.subr.bf16.mxu1 %v21815_v55  ;;  %v21861_v52 = vld [vmem:[%s24596_s4 + $0x1098] ss:$40 sps:$4 sm:$0xff]  }
 0x2d2   : > { %15258 = vmatprep.subr.bf16.mxu0 %v21818_v56  ;;  %v21864_v55 = vld [vmem:[%s24596_s4 + $0x10a0] ss:$40 sps:$4 sm:$0xff]   ;;  %v21869_v56 = vld [vmem:[%s24596_s4 + $0x10ec] ss:$40 sps:$4 sm:$0xff]  }
 0x2d4   : > { %14685 = vmatpush1.bf16.msra.mxu1 %v21813_v57  ;;  %v21872_v57 = vld [vmem:[%s24596_s4 + $0x10f4] ss:$40 sps:$4 sm:$0xff]  }
 0x2d5   : > { %15259 = vmatpush1.bf16.msra.mxu0 %v21816_v58  ;;  %14686 = vmatprep.subr.bf16.mxu1 %v21821_v0 }
 0x2d6   : > { %15260 = vmatprep.subr.bf16.mxu0 %v21824_v50 }
 0x2d8   : > { %14687 = vmatpush1.bf16.msra.mxu1 %v21819_v1 }
 0x2d9   : > { %15261 = vmatpush1.bf16.msra.mxu0 %v21822_v3  ;;  %14688 = vmatprep.subr.bf16.mxu1 %v21827_v53 }
 0x2da   : > { %15262 = vmatprep.subr.bf16.mxu0 %v21830_v2 }
 0x2dc   : > { %14689 = vmatpush1.bf16.msra.mxu1 %v21825_v8 }
 0x2dd   : > { %15263 = vmatpush1.bf16.msra.mxu0 %v21828_v9  ;;  %14699 = vmatprep.subr.bf16.mxu1 %v21833_v10  ;;  %v21867_v9 = vld [vmem:[%s24596_s4 + $0x10e8] ss:$40 sps:$4 sm:$0xff]  }
 0x2de   : > { %15273 = vmatprep.subr.bf16.mxu0 %v21836_v13  ;;  %v21870_v10 = vld [vmem:[%s24596_s4 + $0x10f0] ss:$40 sps:$4 sm:$0xff]  }
 0x2df   : > { %14691 = vmatmul.mubr.bf16.vlgmr.msra.gmra.mrb[4].mxu1 %v24917_v5 }
 0x2e0   : > { %15265 = vmatmul.mubr.bf16.vlgmr.msra.gmra.mrb[4].mxu0 %v24917_v5  ;;  %14700 = vmatpush1.bf16.msra.mxu1 %v21831_v14 }
 0x2e1   : > { %15274 = vmatpush1.bf16.msra.mxu0 %v21834_v18  ;;  %14701 = vmatprep.subr.bf16.mxu1 %v21839_v19  ;;  %v21875_v18 = vld [vmem:[%s24596_s4 + $0x113c] ss:$40 sps:$4 sm:$0xff]  }
 0x2e2   : > { %15275 = vmatprep.subr.bf16.mxu0 %v21842_v23  ;;  %14731 = vmatprep.mubr.bf16.mxu1 %v24928_v12  ;;  %v21878_v19 = vld [vmem:[%s24596_s4 + $0x1144] ss:$40 sps:$4 sm:$0xff]  }
 0x2e3   : > { %15305 = vmatprep.mubr.bf16.mxu0 %v24928_v12 }
 0x2e4   : > { %14702 = vmatpush1.bf16.msra.mxu1 %v21837_v24  ;;  %v21873_v24 = vld [vmem:[%s24596_s4 + $0x1138] ss:$40 sps:$4 sm:$0xff]  }
 0x2e5   : > { %15276 = vmatpush1.bf16.msra.mxu0 %v21840_v25  ;;  %14703 = vmatprep.subr.bf16.mxu1 %v21845_v26  ;;  %v21876_v25 = vld [vmem:[%s24596_s4 + $0x1140] ss:$40 sps:$4 sm:$0xff]   ;;  %v21881_v26 = vld [vmem:[%s24596_s4 + $0x118c] ss:$40 sps:$4 sm:$0xff]  }
 0x2e6   : > { %15277 = vmatprep.subr.bf16.mxu0 %v21848_v29  ;;  %v21884_v29 = vld [vmem:[%s24596_s4 + $0x1194] ss:$40 sps:$4 sm:$0xff]  }
 0x2e8   : > { %14704 = vmatpush1.bf16.msra.mxu1 %v21843_v30  ;;  %v21879_v30 = vld [vmem:[%s24596_s4 + $0x1188] ss:$40 sps:$4 sm:$0xff]  }
 0x2e9   : > { %15278 = vmatpush1.bf16.msra.mxu0 %v21846_v31  ;;  %14705 = vmatprep.subr.bf16.mxu1 %v21851_v32  ;;  %v21882_v31 = vld [vmem:[%s24596_s4 + $0x1190] ss:$40 sps:$4 sm:$0xff]   ;;  %v21887_v32 = vld [vmem:[%s24596_s4 + $0x11dc] ss:$40 sps:$4 sm:$0xff]  }
 0x2ea   : > { %15279 = vmatprep.subr.bf16.mxu0 %v21854_v33  ;;  %v21890_v33 = vld [vmem:[%s24596_s4 + $0x11e4] ss:$40 sps:$4 sm:$0xff]  }
 0x2ec   : > { %14706 = vmatpush1.bf16.msra.mxu1 %v21849_v34  ;;  %v21885_v34 = vld [vmem:[%s24596_s4 + $0x11d8] ss:$40 sps:$4 sm:$0xff]  }
 0x2ed   : > { %15280 = vmatpush1.bf16.msra.mxu0 %v21852_v37  ;;  %14707 = vmatprep.subr.bf16.mxu1 %v21857_v38  ;;  %v21888_v37 = vld [vmem:[%s24596_s4 + $0x11e0] ss:$40 sps:$4 sm:$0xff]   ;;  %v21893_v38 = vld [vmem:[%s24596_s4 + $0x122c] ss:$40 sps:$4 sm:$0xff]  }
 0x2ee   : > { %15281 = vmatprep.subr.bf16.mxu0 %v21860_v39  ;;  %v21896_v39 = vld [vmem:[%s24596_s4 + $0x1234] ss:$40 sps:$4 sm:$0xff]  }
 0x2f0   : > { %14708 = vmatpush1.bf16.msra.mxu1 %v21855_v62  ;;  %v21891_v62 = vld [vmem:[%s24596_s4 + $0x1228] ss:$40 sps:$4 sm:$0xff]  }
 0x2f1   : > { %15282 = vmatpush1.bf16.msra.mxu0 %v21858_v44  ;;  %14709 = vmatprep.subr.bf16.mxu1 %v21863_v49  ;;  %v21894_v44 = vld [vmem:[%s24596_s4 + $0x1230] ss:$40 sps:$4 sm:$0xff]   ;;  %v21899_v49 = vld [vmem:[%s24596_s4 + $0x127c] ss:$40 sps:$4 sm:$0xff]  }
 0x2f2   : > { %15283 = vmatprep.subr.bf16.mxu0 %v21866_v51  ;;  %v14282_v58 = vpop.f32.mrb[0].mxu1  ;;  %v21902_v51 = vld [vmem:[%s24596_s4 + $0x1284] ss:$40 sps:$4 sm:$0xff]  }
 0x2f3   : > { %v14569_v0 = vpop.f32.mrb[0].mxu0  ;;  %v14284_v1 = vpop.f32.mrb[1].mxu1 }
 0x2f4   : > { %v25489_v50 = vadd.f32 %v14569_v0, %v14282_v58  ;;  %v14571_v3 = vpop.f32.mrb[1].mxu0  ;;  %v14286_v2 = vpop.f32.mrb[2].mxu1  ;;  %14710 = vmatpush1.bf16.msra.mxu1 %v21861_v52  ;;  %v21897_v52 = vld [vmem:[%s24596_s4 + $0x1278] ss:$40 sps:$4 sm:$0xff]   ;;  %v21903_v58 = vld [vmem:[%s24596_s4 + $0x12c8] ss:$40 sps:$4 sm:$0xff]  }
 0x2f5   : > { %v25491_v53 = vadd.f32 %v14571_v3, %v14284_v1  ;;  %v14573_v8 = vpop.f32.mrb[2].mxu0  ;;  %15284 = vmatpush1.bf16.msra.mxu0 %v21864_v55  ;;  %v14287_v13 = vpop.f32.mrb[3].mxu1  ;;  %14711 = vmatprep.subr.bf16.mxu1 %v21869_v56  ;;  %v21900_v55 = vld [vmem:[%s24596_s4 + $0x1280] ss:$40 sps:$4 sm:$0xff]   ;;  %v21905_v56 = vld [vmem:[%s24596_s4 + $0x12cc] ss:$40 sps:$4 sm:$0xff]  }
 0x2f6   : > { %v14574_v14 = vpop.f32.mrb[3].mxu0  ;;  %15285 = vmatprep.subr.bf16.mxu0 %v21872_v57  ;;  %v21908_v57 = vld [vmem:[%s24596_s4 + $0x12d4] ss:$40 sps:$4 sm:$0xff]   ;;  %v21906_v0 = vld [vmem:[%s24596_s4 + $0x12d0] ss:$40 sps:$4 sm:$0xff]  }
 0x2f7   : > { %v16882_v23 = vcombine.low %v25489_v50, %v25491_v53  ;;  %v21911_v1 = vld [vmem:[%s24596_s4 + $0x131c] ss:$40 sps:$4 sm:$0xff]   ;;  %v21909_v2 = vld [vmem:[%s24596_s4 + $0x1318] ss:$40 sps:$4 sm:$0xff]   ;;  %v21915_v13 = vld [vmem:[%s24596_s4 + $0x1368] ss:$40 sps:$4 sm:$0xff]  }
 0x2f8   : > { %14712 = vmatpush1.bf16.msra.mxu1 %v21867_v9  ;;  %v21914_v3 = vld [vmem:[%s24596_s4 + $0x1324] ss:$40 sps:$4 sm:$0xff]   ;;  %v21912_v8 = vld [vmem:[%s24596_s4 + $0x1320] ss:$40 sps:$4 sm:$0xff]   ;;  %v21918_v14 = vld [vmem:[%s24596_s4 + $0x1370] ss:$40 sps:$4 sm:$0xff]  }
 0x2f9   : > { %15286 = vmatpush1.bf16.msra.mxu0 %v21870_v10  ;;  %14713 = vmatprep.subr.bf16.mxu1 %v21875_v18  ;;  %v21917_v9 = vld [vmem:[%s24596_s4 + $0x136c] ss:$40 sps:$4 sm:$0xff]   ;;  %v21923_v18 = vld [vmem:[%s24596_s4 + $0x13bc] ss:$40 sps:$4 sm:$0xff]   ;;  %v23223_v53 = vld [vmem:[%s24596_s4 + $0x1198] ss:$40 sps:$4 sm:$0xff]  }
 0x2fa   : > { %15287 = vmatprep.subr.bf16.mxu0 %v21878_v19  ;;  %v21920_v10 = vld [vmem:[%s24596_s4 + $0x1374] ss:$40 sps:$4 sm:$0xff]   ;;  %v21926_v19 = vld [vmem:[%s24596_s4 + $0x13c4] ss:$40 sps:$4 sm:$0xff]  }
 0x2fc   : > { %14714 = vmatpush1.bf16.msra.mxu1 %v21873_v24  ;;  %v21921_v24 = vld [vmem:[%s24596_s4 + $0x13b8] ss:$40 sps:$4 sm:$0xff]  }
 0x2fd   : > { %15288 = vmatpush1.bf16.msra.mxu0 %v21876_v25  ;;  %14715 = vmatprep.subr.bf16.mxu1 %v21881_v26  ;;  %v21924_v25 = vld [vmem:[%s24596_s4 + $0x13c0] ss:$40 sps:$4 sm:$0xff]   ;;  %v21929_v26 = vld [vmem:[%s24596_s4 + $0x140c] ss:$40 sps:$4 sm:$0xff]  }
 0x2fe   : > { %15289 = vmatprep.subr.bf16.mxu0 %v21884_v29  ;;  %v21932_v29 = vld [vmem:[%s24596_s4 + $0x1414] ss:$40 sps:$4 sm:$0xff]  }
 0x300   : > { %14716 = vmatpush1.bf16.msra.mxu1 %v21879_v30  ;;  %v21927_v30 = vld [vmem:[%s24596_s4 + $0x1408] ss:$40 sps:$4 sm:$0xff]  }
 0x301   : > { %15290 = vmatpush1.bf16.msra.mxu0 %v21882_v31  ;;  %14717 = vmatprep.subr.bf16.mxu1 %v21887_v32  ;;  %v21930_v31 = vld [vmem:[%s24596_s4 + $0x1410] ss:$40 sps:$4 sm:$0xff]   ;;  %v21935_v32 = vld [vmem:[%s24596_s4 + $0x145c] ss:$40 sps:$4 sm:$0xff]  }
 0x302   : > { %15291 = vmatprep.subr.bf16.mxu0 %v21890_v33  ;;  %v21938_v33 = vld [vmem:[%s24596_s4 + $0x1464] ss:$40 sps:$4 sm:$0xff]  }
 0x304   : > { %14718 = vmatpush1.bf16.msra.mxu1 %v21885_v34  ;;  %v21933_v34 = vld [vmem:[%s24596_s4 + $0x1458] ss:$40 sps:$4 sm:$0xff]  }
 0x305   : > { %15292 = vmatpush1.bf16.msra.mxu0 %v21888_v37  ;;  %14719 = vmatprep.subr.bf16.mxu1 %v21893_v38  ;;  %v21936_v37 = vld [vmem:[%s24596_s4 + $0x1460] ss:$40 sps:$4 sm:$0xff]   ;;  %v21941_v38 = vld [vmem:[%s24596_s4 + $0x14ac] ss:$40 sps:$4 sm:$0xff]  }
 0x306   : > { %15293 = vmatprep.subr.bf16.mxu0 %v21896_v39  ;;  %v21944_v39 = vld [vmem:[%s24596_s4 + $0x14b4] ss:$40 sps:$4 sm:$0xff]  }
 0x308   : > { %14720 = vmatpush1.bf16.msra.mxu1 %v21891_v62  ;;  %v21939_v62 = vld [vmem:[%s24596_s4 + $0x14a8] ss:$40 sps:$4 sm:$0xff]  }
 0x309   : > { %15294 = vmatpush1.bf16.msra.mxu0 %v21894_v44  ;;  %14721 = vmatprep.subr.bf16.mxu1 %v21899_v49  ;;  %v21942_v44 = vld [vmem:[%s24596_s4 + $0x14b0] ss:$40 sps:$4 sm:$0xff]   ;;  %v21947_v49 = vld [vmem:[%s24596_s4 + $0x14fc] ss:$40 sps:$4 sm:$0xff]  }
 0x30a   : > { %15295 = vmatprep.subr.bf16.mxu0 %v21902_v51  ;;  %v21950_v51 = vld [vmem:[%s24596_s4 + $0x1504] ss:$40 sps:$4 sm:$0xff]  }
 0x30c   : > { %14722 = vmatpush1.bf16.msra.mxu1 %v21897_v52  ;;  %v21945_v52 = vld [vmem:[%s24596_s4 + $0x14f8] ss:$40 sps:$4 sm:$0xff]  }
 0x30d   : > { %15296 = vmatpush1.bf16.msra.mxu0 %v21900_v55  ;;  %14723 = vmatprep.subr.bf16.mxu1 %v21905_v56  ;;  %v21948_v55 = vld [vmem:[%s24596_s4 + $0x1500] ss:$40 sps:$4 sm:$0xff]   ;;  %v21953_v56 = vld [vmem:[%s24596_s4 + $0x154c] ss:$40 sps:$4 sm:$0xff]  }
 0x30e   : > { %15297 = vmatprep.subr.bf16.mxu0 %v21908_v57  ;;  %v21956_v57 = vld [vmem:[%s24596_s4 + $0x1554] ss:$40 sps:$4 sm:$0xff]  }
 0x310   : > { %14724 = vmatpush1.bf16.msra.mxu1 %v21903_v58  ;;  %v21951_v58 = vld [vmem:[%s24596_s4 + $0x1548] ss:$40 sps:$4 sm:$0xff]  }
 0x311   : > { %15298 = vmatpush1.bf16.msra.mxu0 %v21906_v0  ;;  %14725 = vmatprep.subr.bf16.mxu1 %v21911_v1  ;;  %v21954_v0 = vld [vmem:[%s24596_s4 + $0x1550] ss:$40 sps:$4 sm:$0xff]   ;;  %v21959_v1 = vld [vmem:[%s24596_s4 + $0x159c] ss:$40 sps:$4 sm:$0xff]  }
 0x312   : > { %15299 = vmatprep.subr.bf16.mxu0 %v21914_v3  ;;  %v21962_v3 = vld [vmem:[%s24596_s4 + $0x15a4] ss:$40 sps:$4 sm:$0xff]  }
 0x314   : > { %14726 = vmatpush1.bf16.msra.mxu1 %v21909_v2  ;;  %v21957_v2 = vld [vmem:[%s24596_s4 + $0x1598] ss:$40 sps:$4 sm:$0xff]  }
 0x315   : > { %15300 = vmatpush1.bf16.msra.mxu0 %v21912_v8  ;;  %14727 = vmatprep.subr.bf16.mxu1 %v21917_v9  ;;  %v21960_v8 = vld [vmem:[%s24596_s4 + $0x15a0] ss:$40 sps:$4 sm:$0xff]   ;;  %v21965_v9 = vld [vmem:[%s24596_s4 + $0x15ec] ss:$40 sps:$4 sm:$0xff]  }
 0x316   : > { %15301 = vmatprep.subr.bf16.mxu0 %v21920_v10  ;;  %v21968_v10 = vld [vmem:[%s24596_s4 + $0x15f4] ss:$40 sps:$4 sm:$0xff]  }
 0x318   : > { %14728 = vmatpush1.bf16.msra.mxu1 %v21915_v13  ;;  %v21963_v13 = vld [vmem:[%s24596_s4 + $0x15e8] ss:$40 sps:$4 sm:$0xff]  }
 0x319   : > { %15302 = vmatpush1.bf16.msra.mxu0 %v21918_v14  ;;  %14729 = vmatprep.subr.bf16.mxu1 %v21923_v18  ;;  %v21966_v14 = vld [vmem:[%s24596_s4 + $0x15f0] ss:$40 sps:$4 sm:$0xff]   ;;  %v21971_v18 = vld [vmem:[%s24596_s4 + $0x163c] ss:$40 sps:$4 sm:$0xff]  }
 0x31a   : > { %15303 = vmatprep.subr.bf16.mxu0 %v21926_v19  ;;  %v21974_v19 = vld [vmem:[%s24596_s4 + $0x1644] ss:$40 sps:$4 sm:$0xff]  }
 0x31c   : > { %14730 = vmatpush1.bf16.msra.mxu1 %v21921_v24  ;;  %v21969_v24 = vld [vmem:[%s24596_s4 + $0x1638] ss:$40 sps:$4 sm:$0xff]  }
 0x31d   : > { %15304 = vmatpush1.bf16.msra.mxu0 %v21924_v25  ;;  %14740 = vmatprep.subr.bf16.mxu1 %v21929_v26  ;;  %v21972_v25 = vld [vmem:[%s24596_s4 + $0x1640] ss:$40 sps:$4 sm:$0xff]   ;;  %v21977_v26 = vld [vmem:[%s24596_s4 + $0x168c] ss:$40 sps:$4 sm:$0xff]  }
 0x31e   : > { %15314 = vmatprep.subr.bf16.mxu0 %v21932_v29  ;;  %v21980_v29 = vld [vmem:[%s24596_s4 + $0x1694] ss:$40 sps:$4 sm:$0xff]  }
 0x31f   : > { %14732 = vmatmul.mubr.bf16.vlgmr.msra.gmra.mrb[4].mxu1 %v25005_v36 }
 0x320   : > { %15306 = vmatmul.mubr.bf16.vlgmr.msra.gmra.mrb[4].mxu0 %v25005_v36  ;;  %14741 = vmatpush1.bf16.msra.mxu1 %v21927_v30  ;;  %v21975_v30 = vld [vmem:[%s24596_s4 + $0x1688] ss:$40 sps:$4 sm:$0xff]  }
 0x321   : > { %15315 = vmatpush1.bf16.msra.mxu0 %v21930_v31  ;;  %14742 = vmatprep.subr.bf16.mxu1 %v21935_v32  ;;  %v21978_v31 = vld [vmem:[%s24596_s4 + $0x1690] ss:$40 sps:$4 sm:$0xff]   ;;  %v21983_v32 = vld [vmem:[%s24596_s4 + $0x16dc] ss:$40 sps:$4 sm:$0xff]  }
 0x322   : > { %15316 = vmatprep.subr.bf16.mxu0 %v21938_v33  ;;  %14772 = vmatprep.mubr.bf16.mxu1 %v25015_v40  ;;  %v21986_v33 = vld [vmem:[%s24596_s4 + $0x16e4] ss:$40 sps:$4 sm:$0xff]  }
 0x323   : > { %15346 = vmatprep.mubr.bf16.mxu0 %v25015_v40 }
 0x324   : > { %14743 = vmatpush1.bf16.msra.mxu1 %v21933_v34  ;;  %v21981_v34 = vld [vmem:[%s24596_s4 + $0x16d8] ss:$40 sps:$4 sm:$0xff]  }
 0x325   : > { %15317 = vmatpush1.bf16.msra.mxu0 %v21936_v37  ;;  %14744 = vmatprep.subr.bf16.mxu1 %v21941_v38  ;;  %v21984_v37 = vld [vmem:[%s24596_s4 + $0x16e0] ss:$40 sps:$4 sm:$0xff]   ;;  %v21989_v38 = vld [vmem:[%s24596_s4 + $0x172c] ss:$40 sps:$4 sm:$0xff]  }
 0x326   : > { %15318 = vmatprep.subr.bf16.mxu0 %v21944_v39  ;;  %v21992_v39 = vld [vmem:[%s24596_s4 + $0x1734] ss:$40 sps:$4 sm:$0xff]  }
 0x328   : > { %14745 = vmatpush1.bf16.msra.mxu1 %v21939_v62  ;;  %v21987_v62 = vld [vmem:[%s24596_s4 + $0x1728] ss:$40 sps:$4 sm:$0xff]  }
 0x329   : > { %15319 = vmatpush1.bf16.msra.mxu0 %v21942_v44  ;;  %14746 = vmatprep.subr.bf16.mxu1 %v21947_v49  ;;  %v21990_v44 = vld [vmem:[%s24596_s4 + $0x1730] ss:$40 sps:$4 sm:$0xff]   ;;  %v21995_v49 = vld [vmem:[%s24596_s4 + $0x177c] ss:$40 sps:$4 sm:$0xff]  }
 0x32a   : > { %15320 = vmatprep.subr.bf16.mxu0 %v21950_v51  ;;  %v21998_v51 = vld [vmem:[%s24596_s4 + $0x1784] ss:$40 sps:$4 sm:$0xff]  }
 0x32c   : > { %14747 = vmatpush1.bf16.msra.mxu1 %v21945_v52  ;;  %v21993_v52 = vld [vmem:[%s24596_s4 + $0x1778] ss:$40 sps:$4 sm:$0xff]  }
 0x32d   : > { %15321 = vmatpush1.bf16.msra.mxu0 %v21948_v55  ;;  %14748 = vmatprep.subr.bf16.mxu1 %v21953_v56  ;;  %v21996_v55 = vld [vmem:[%s24596_s4 + $0x1780] ss:$40 sps:$4 sm:$0xff]   ;;  %v22001_v56 = vld [vmem:[%s24596_s4 + $0x17cc] ss:$40 sps:$4 sm:$0xff]  }
 0x32e   : > { %15322 = vmatprep.subr.bf16.mxu0 %v21956_v57  ;;  %v22004_v57 = vld [vmem:[%s24596_s4 + $0x17d4] ss:$40 sps:$4 sm:$0xff]  }
 0x330   : > { %14749 = vmatpush1.bf16.msra.mxu1 %v21951_v58  ;;  %v21999_v58 = vld [vmem:[%s24596_s4 + $0x17c8] ss:$40 sps:$4 sm:$0xff]  }
 0x331   : > { %15323 = vmatpush1.bf16.msra.mxu0 %v21954_v0  ;;  %14750 = vmatprep.subr.bf16.mxu1 %v21959_v1  ;;  %v22002_v0 = vld [vmem:[%s24596_s4 + $0x17d0] ss:$40 sps:$4 sm:$0xff]   ;;  %v22007_v1 = vld [vmem:[%s24596_s4 + $0x181c] ss:$40 sps:$4 sm:$0xff]  }
 0x332   : > { %15324 = vmatprep.subr.bf16.mxu0 %v21962_v3  ;;  %v22010_v3 = vld [vmem:[%s24596_s4 + $0x1824] ss:$40 sps:$4 sm:$0xff]  }
 0x334   : > { %14751 = vmatpush1.bf16.msra.mxu1 %v21957_v2  ;;  %v22005_v2 = vld [vmem:[%s24596_s4 + $0x1818] ss:$40 sps:$4 sm:$0xff]  }
 0x335   : > { %15325 = vmatpush1.bf16.msra.mxu0 %v21960_v8  ;;  %14752 = vmatprep.subr.bf16.mxu1 %v21965_v9  ;;  %v22008_v8 = vld [vmem:[%s24596_s4 + $0x1820] ss:$40 sps:$4 sm:$0xff]   ;;  %v22013_v9 = vld [vmem:[%s24596_s4 + $0x186c] ss:$40 sps:$4 sm:$0xff]  }
 0x336   : > { %15326 = vmatprep.subr.bf16.mxu0 %v21968_v10  ;;  %v22016_v10 = vld [vmem:[%s24596_s4 + $0x1874] ss:$40 sps:$4 sm:$0xff]  }
 0x338   : > { %14753 = vmatpush1.bf16.msra.mxu1 %v21963_v13  ;;  %v22011_v13 = vld [vmem:[%s24596_s4 + $0x1868] ss:$40 sps:$4 sm:$0xff]  }
 0x339   : > { %15327 = vmatpush1.bf16.msra.mxu0 %v21966_v14  ;;  %14754 = vmatprep.subr.bf16.mxu1 %v21971_v18  ;;  %v22014_v14 = vld [vmem:[%s24596_s4 + $0x1870] ss:$40 sps:$4 sm:$0xff]   ;;  %v22019_v18 = vld [vmem:[%s24596_s4 + $0x18bc] ss:$40 sps:$4 sm:$0xff]  }
 0x33a   : > { %15328 = vmatprep.subr.bf16.mxu0 %v21974_v19  ;;  %v22022_v19 = vld [vmem:[%s24596_s4 + $0x18c4] ss:$40 sps:$4 sm:$0xff]  }
 0x33c   : > { %14755 = vmatpush1.bf16.msra.mxu1 %v21969_v24  ;;  %v22017_v24 = vld [vmem:[%s24596_s4 + $0x18b8] ss:$40 sps:$4 sm:$0xff]  }
 0x33d   : > { %15329 = vmatpush1.bf16.msra.mxu0 %v21972_v25  ;;  %14756 = vmatprep.subr.bf16.mxu1 %v21977_v26  ;;  %v22020_v25 = vld [vmem:[%s24596_s4 + $0x18c0] ss:$40 sps:$4 sm:$0xff]   ;;  %v22025_v26 = vld [vmem:[%s24596_s4 + $0x190c] ss:$40 sps:$4 sm:$0xff]  }
 0x33e   : > { %15330 = vmatprep.subr.bf16.mxu0 %v21980_v29  ;;  %v22028_v29 = vld [vmem:[%s24596_s4 + $0x1914] ss:$40 sps:$4 sm:$0xff]  }
 0x340   : > { %14757 = vmatpush1.bf16.msra.mxu1 %v21975_v30  ;;  %v22023_v30 = vld [vmem:[%s24596_s4 + $0x1908] ss:$40 sps:$4 sm:$0xff]  }
 0x341   : > { %15331 = vmatpush1.bf16.msra.mxu0 %v21978_v31  ;;  %14758 = vmatprep.subr.bf16.mxu1 %v21983_v32  ;;  %v22026_v31 = vld [vmem:[%s24596_s4 + $0x1910] ss:$40 sps:$4 sm:$0xff]   ;;  %v22031_v32 = vld [vmem:[%s24596_s4 + $0x195c] ss:$40 sps:$4 sm:$0xff]  }
 0x342   : > { %15332 = vmatprep.subr.bf16.mxu0 %v21986_v33  ;;  %v22034_v33 = vld [vmem:[%s24596_s4 + $0x1964] ss:$40 sps:$4 sm:$0xff]  }
 0x344   : > { %14759 = vmatpush1.bf16.msra.mxu1 %v21981_v34  ;;  %v22029_v34 = vld [vmem:[%s24596_s4 + $0x1958] ss:$40 sps:$4 sm:$0xff]  }
 0x345   : > { %15333 = vmatpush1.bf16.msra.mxu0 %v21984_v37  ;;  %14760 = vmatprep.subr.bf16.mxu1 %v21989_v38  ;;  %v22032_v37 = vld [vmem:[%s24596_s4 + $0x1960] ss:$40 sps:$4 sm:$0xff]   ;;  %v22037_v38 = vld [vmem:[%s24596_s4 + $0x19ac] ss:$40 sps:$4 sm:$0xff]  }
 0x346   : > { %15334 = vmatprep.subr.bf16.mxu0 %v21992_v39  ;;  %v22040_v39 = vld [vmem:[%s24596_s4 + $0x19b4] ss:$40 sps:$4 sm:$0xff]  }
 0x348   : > { %14761 = vmatpush1.bf16.msra.mxu1 %v21987_v62  ;;  %v22035_v62 = vld [vmem:[%s24596_s4 + $0x19a8] ss:$40 sps:$4 sm:$0xff]  }
 0x349   : > { %15335 = vmatpush1.bf16.msra.mxu0 %v21990_v44  ;;  %14762 = vmatprep.subr.bf16.mxu1 %v21995_v49  ;;  %v22038_v44 = vld [vmem:[%s24596_s4 + $0x19b0] ss:$40 sps:$4 sm:$0xff]   ;;  %v22043_v49 = vld [vmem:[%s24596_s4 + $0x19fc] ss:$40 sps:$4 sm:$0xff]  }
 0x34a   : > { %15336 = vmatprep.subr.bf16.mxu0 %v21998_v51  ;;  %v22046_v51 = vld [vmem:[%s24596_s4 + $0x1a04] ss:$40 sps:$4 sm:$0xff]  }
 0x34c   : > { %14763 = vmatpush1.bf16.msra.mxu1 %v21993_v52  ;;  %v22041_v52 = vld [vmem:[%s24596_s4 + $0x19f8] ss:$40 sps:$4 sm:$0xff]  }
 0x34d   : > { %15337 = vmatpush1.bf16.msra.mxu0 %v21996_v55  ;;  %14764 = vmatprep.subr.bf16.mxu1 %v22001_v56  ;;  %v22044_v55 = vld [vmem:[%s24596_s4 + $0x1a00] ss:$40 sps:$4 sm:$0xff]   ;;  %v22049_v56 = vld [vmem:[%s24596_s4 + $0x1a4c] ss:$40 sps:$4 sm:$0xff]  }
 0x34e   : > { %15338 = vmatprep.subr.bf16.mxu0 %v22004_v57  ;;  %v22052_v57 = vld [vmem:[%s24596_s4 + $0x1a54] ss:$40 sps:$4 sm:$0xff]  }
 0x350   : > { %14765 = vmatpush1.bf16.msra.mxu1 %v21999_v58  ;;  %v22047_v58 = vld [vmem:[%s24596_s4 + $0x1a48] ss:$40 sps:$4 sm:$0xff]  }
 0x351   : > { %15339 = vmatpush1.bf16.msra.mxu0 %v22002_v0  ;;  %14766 = vmatprep.subr.bf16.mxu1 %v22007_v1  ;;  %v22050_v0 = vld [vmem:[%s24596_s4 + $0x1a50] ss:$40 sps:$4 sm:$0xff]   ;;  %v22055_v1 = vld [vmem:[%s24596_s4 + $0x1a9c] ss:$40 sps:$4 sm:$0xff]  }
 0x352   : > { %15340 = vmatprep.subr.bf16.mxu0 %v22010_v3  ;;  %v22058_v3 = vld [vmem:[%s24596_s4 + $0x1aa4] ss:$40 sps:$4 sm:$0xff]  }
 0x354   : > { %14767 = vmatpush1.bf16.msra.mxu1 %v22005_v2  ;;  %v22053_v2 = vld [vmem:[%s24596_s4 + $0x1a98] ss:$40 sps:$4 sm:$0xff]  }
 0x355   : > { %15341 = vmatpush1.bf16.msra.mxu0 %v22008_v8  ;;  %14768 = vmatprep.subr.bf16.mxu1 %v22013_v9  ;;  %v22056_v8 = vld [vmem:[%s24596_s4 + $0x1aa0] ss:$40 sps:$4 sm:$0xff]   ;;  %v22061_v9 = vld [vmem:[%s24596_s4 + $0x1aec] ss:$40 sps:$4 sm:$0xff]  }
 0x356   : > { %15342 = vmatprep.subr.bf16.mxu0 %v22016_v10  ;;  %v22064_v10 = vld [vmem:[%s24596_s4 + $0x1af4] ss:$40 sps:$4 sm:$0xff]  }
 0x358   : > { %14769 = vmatpush1.bf16.msra.mxu1 %v22011_v13  ;;  %v22059_v13 = vld [vmem:[%s24596_s4 + $0x1ae8] ss:$40 sps:$4 sm:$0xff]  }
 0x359   : > { %15343 = vmatpush1.bf16.msra.mxu0 %v22014_v14  ;;  %14770 = vmatprep.subr.bf16.mxu1 %v22019_v18  ;;  %v22062_v14 = vld [vmem:[%s24596_s4 + $0x1af0] ss:$40 sps:$4 sm:$0xff]   ;;  %v22067_v18 = vld [vmem:[%s24596_s4 + $0x1b3c] ss:$40 sps:$4 sm:$0xff]  }
 0x35a   : > { %15344 = vmatprep.subr.bf16.mxu0 %v22022_v19  ;;  %v22070_v19 = vld [vmem:[%s24596_s4 + $0x1b44] ss:$40 sps:$4 sm:$0xff]  }
 0x35c   : > { %14771 = vmatpush1.bf16.msra.mxu1 %v22017_v24  ;;  %v22065_v24 = vld [vmem:[%s24596_s4 + $0x1b38] ss:$40 sps:$4 sm:$0xff]  }
 0x35d   : > { %15345 = vmatpush1.bf16.msra.mxu0 %v22020_v25  ;;  %14781 = vmatprep.subr.bf16.mxu1 %v22025_v26  ;;  %v22068_v25 = vld [vmem:[%s24596_s4 + $0x1b40] ss:$40 sps:$4 sm:$0xff]   ;;  %v22073_v26 = vld [vmem:[%s24596_s4 + $0x1b8c] ss:$40 sps:$4 sm:$0xff]  }
 0x35e   : > { %15355 = vmatprep.subr.bf16.mxu0 %v22028_v29  ;;  %v22076_v29 = vld [vmem:[%s24596_s4 + $0x1b94] ss:$40 sps:$4 sm:$0xff]  }
 0x35f   : > { %14773 = vmatmul.mubr.bf16.vlgmr.msra.gmra.mrb[4].mxu1 %v25094_v15 }
 0x360   : > { %15347 = vmatmul.mubr.bf16.vlgmr.msra.gmra.mrb[4].mxu0 %v25094_v15  ;;  %14782 = vmatpush1.bf16.msra.mxu1 %v22023_v30  ;;  %v22071_v30 = vld [vmem:[%s24596_s4 + $0x1b88] ss:$40 sps:$4 sm:$0xff]  }
 0x361   : > { %15356 = vmatpush1.bf16.msra.mxu0 %v22026_v31  ;;  %14783 = vmatprep.subr.bf16.mxu1 %v22031_v32  ;;  %v22074_v31 = vld [vmem:[%s24596_s4 + $0x1b90] ss:$40 sps:$4 sm:$0xff]   ;;  %v22079_v32 = vld [vmem:[%s24596_s4 + $0x1bdc] ss:$40 sps:$4 sm:$0xff]  }
 0x362   : > { %15357 = vmatprep.subr.bf16.mxu0 %v22034_v33  ;;  %14813 = vmatprep.mubr.bf16.mxu1 %v25104_v20  ;;  %v22082_v33 = vld [vmem:[%s24596_s4 + $0x1be4] ss:$40 sps:$4 sm:$0xff]  }
 0x363   : > { %15387 = vmatprep.mubr.bf16.mxu0 %v25104_v20 }
 0x364   : > { %14784 = vmatpush1.bf16.msra.mxu1 %v22029_v34  ;;  %v22077_v34 = vld [vmem:[%s24596_s4 + $0x1bd8] ss:$40 sps:$4 sm:$0xff]  }
 0x365   : > { %15358 = vmatpush1.bf16.msra.mxu0 %v22032_v37  ;;  %14785 = vmatprep.subr.bf16.mxu1 %v22037_v38  ;;  %v22080_v37 = vld [vmem:[%s24596_s4 + $0x1be0] ss:$40 sps:$4 sm:$0xff]   ;;  %v22085_v38 = vld [vmem:[%s24596_s4 + $0x1c2c] ss:$40 sps:$4 sm:$0xff]  }
 0x366   : > { %15359 = vmatprep.subr.bf16.mxu0 %v22040_v39  ;;  %v22088_v39 = vld [vmem:[%s24596_s4 + $0x1c34] ss:$40 sps:$4 sm:$0xff]  }
 0x368   : > { %14786 = vmatpush1.bf16.msra.mxu1 %v22035_v62  ;;  %v22083_v62 = vld [vmem:[%s24596_s4 + $0x1c28] ss:$40 sps:$4 sm:$0xff]  }
 0x369   : > { %15360 = vmatpush1.bf16.msra.mxu0 %v22038_v44  ;;  %14787 = vmatprep.subr.bf16.mxu1 %v22043_v49  ;;  %v22086_v44 = vld [vmem:[%s24596_s4 + $0x1c30] ss:$40 sps:$4 sm:$0xff]   ;;  %v22091_v49 = vld [vmem:[%s24596_s4 + $0x1c7c] ss:$40 sps:$4 sm:$0xff]  }
 0x36a   : > { %15361 = vmatprep.subr.bf16.mxu0 %v22046_v51  ;;  %v22094_v51 = vld [vmem:[%s24596_s4 + $0x1c84] ss:$40 sps:$4 sm:$0xff]  }
 0x36c   : > { %14788 = vmatpush1.bf16.msra.mxu1 %v22041_v52  ;;  %v22089_v52 = vld [vmem:[%s24596_s4 + $0x1c78] ss:$40 sps:$4 sm:$0xff]  }
 0x36d   : > { %15362 = vmatpush1.bf16.msra.mxu0 %v22044_v55  ;;  %14789 = vmatprep.subr.bf16.mxu1 %v22049_v56  ;;  %v22092_v55 = vld [vmem:[%s24596_s4 + $0x1c80] ss:$40 sps:$4 sm:$0xff]   ;;  %v22097_v56 = vld [vmem:[%s24596_s4 + $0x1ccc] ss:$40 sps:$4 sm:$0xff]  }
 0x36e   : > { %15363 = vmatprep.subr.bf16.mxu0 %v22052_v57  ;;  %v22100_v57 = vld [vmem:[%s24596_s4 + $0x1cd4] ss:$40 sps:$4 sm:$0xff]  }
 0x370   : > { %14790 = vmatpush1.bf16.msra.mxu1 %v22047_v58  ;;  %v22095_v58 = vld [vmem:[%s24596_s4 + $0x1cc8] ss:$40 sps:$4 sm:$0xff]  }
 0x371   : > { %15364 = vmatpush1.bf16.msra.mxu0 %v22050_v0  ;;  %14791 = vmatprep.subr.bf16.mxu1 %v22055_v1  ;;  %v22098_v0 = vld [vmem:[%s24596_s4 + $0x1cd0] ss:$40 sps:$4 sm:$0xff]   ;;  %v22103_v1 = vld [vmem:[%s24596_s4 + $0x1d1c] ss:$40 sps:$4 sm:$0xff]  }
 0x372   : > { %15365 = vmatprep.subr.bf16.mxu0 %v22058_v3  ;;  %v22106_v3 = vld [vmem:[%s24596_s4 + $0x1d24] ss:$40 sps:$4 sm:$0xff]  }
 0x374   : > { %14792 = vmatpush1.bf16.msra.mxu1 %v22053_v2  ;;  %v22101_v2 = vld [vmem:[%s24596_s4 + $0x1d18] ss:$40 sps:$4 sm:$0xff]  }
 0x375   : > { %15366 = vmatpush1.bf16.msra.mxu0 %v22056_v8  ;;  %14793 = vmatprep.subr.bf16.mxu1 %v22061_v9  ;;  %v22104_v8 = vld [vmem:[%s24596_s4 + $0x1d20] ss:$40 sps:$4 sm:$0xff]   ;;  %v22109_v9 = vld [vmem:[%s24596_s4 + $0x1d6c] ss:$40 sps:$4 sm:$0xff]  }
 0x376   : > { %15367 = vmatprep.subr.bf16.mxu0 %v22064_v10  ;;  %v22112_v10 = vld [vmem:[%s24596_s4 + $0x1d74] ss:$40 sps:$4 sm:$0xff]  }
 0x378   : > { %14794 = vmatpush1.bf16.msra.mxu1 %v22059_v13  ;;  %v22107_v13 = vld [vmem:[%s24596_s4 + $0x1d68] ss:$40 sps:$4 sm:$0xff]  }
 0x379   : > { %15368 = vmatpush1.bf16.msra.mxu0 %v22062_v14  ;;  %14795 = vmatprep.subr.bf16.mxu1 %v22067_v18  ;;  %v22110_v14 = vld [vmem:[%s24596_s4 + $0x1d70] ss:$40 sps:$4 sm:$0xff]   ;;  %v22115_v18 = vld [vmem:[%s24596_s4 + $0x1dbc] ss:$40 sps:$4 sm:$0xff]  }
 0x37a   : > { %15369 = vmatprep.subr.bf16.mxu0 %v22070_v19  ;;  %v22118_v19 = vld [vmem:[%s24596_s4 + $0x1dc4] ss:$40 sps:$4 sm:$0xff]  }
 0x37c   : > { %14796 = vmatpush1.bf16.msra.mxu1 %v22065_v24  ;;  %v22113_v24 = vld [vmem:[%s24596_s4 + $0x1db8] ss:$40 sps:$4 sm:$0xff]  }
 0x37d   : > { %15370 = vmatpush1.bf16.msra.mxu0 %v22068_v25  ;;  %14797 = vmatprep.subr.bf16.mxu1 %v22073_v26  ;;  %v22116_v25 = vld [vmem:[%s24596_s4 + $0x1dc0] ss:$40 sps:$4 sm:$0xff]   ;;  %v22121_v26 = vld [vmem:[%s24596_s4 + $0x1e0c] ss:$40 sps:$4 sm:$0xff]  }
 0x37e   : > { %15371 = vmatprep.subr.bf16.mxu0 %v22076_v29  ;;  %v22124_v29 = vld [vmem:[%s24596_s4 + $0x1e14] ss:$40 sps:$4 sm:$0xff]  }
 0x380   : > { %14798 = vmatpush1.bf16.msra.mxu1 %v22071_v30  ;;  %v22119_v30 = vld [vmem:[%s24596_s4 + $0x1e08] ss:$40 sps:$4 sm:$0xff]  }
 0x381   : > { %15372 = vmatpush1.bf16.msra.mxu0 %v22074_v31  ;;  %14799 = vmatprep.subr.bf16.mxu1 %v22079_v32  ;;  %v22122_v31 = vld [vmem:[%s24596_s4 + $0x1e10] ss:$40 sps:$4 sm:$0xff]   ;;  %v22127_v32 = vld [vmem:[%s24596_s4 + $0x1e5c] ss:$40 sps:$4 sm:$0xff]  }
 0x382   : > { %15373 = vmatprep.subr.bf16.mxu0 %v22082_v33  ;;  %v22130_v33 = vld [vmem:[%s24596_s4 + $0x1e64] ss:$40 sps:$4 sm:$0xff]  }
 0x384   : > { %14800 = vmatpush1.bf16.msra.mxu1 %v22077_v34  ;;  %v22125_v34 = vld [vmem:[%s24596_s4 + $0x1e58] ss:$40 sps:$4 sm:$0xff]  }
 0x385   : > { %15374 = vmatpush1.bf16.msra.mxu0 %v22080_v37  ;;  %14801 = vmatprep.subr.bf16.mxu1 %v22085_v38  ;;  %v22128_v37 = vld [vmem:[%s24596_s4 + $0x1e60] ss:$40 sps:$4 sm:$0xff]   ;;  %v22133_v38 = vld [vmem:[%s24596_s4 + $0x1eac] ss:$40 sps:$4 sm:$0xff]  }
 0x386   : > { %15375 = vmatprep.subr.bf16.mxu0 %v22088_v39  ;;  %v22136_v39 = vld [vmem:[%s24596_s4 + $0x1eb4] ss:$40 sps:$4 sm:$0xff]  }
 0x388   : > { %14802 = vmatpush1.bf16.msra.mxu1 %v22083_v62  ;;  %v22131_v62 = vld [vmem:[%s24596_s4 + $0x1ea8] ss:$40 sps:$4 sm:$0xff]  }
 0x389   : > { %15376 = vmatpush1.bf16.msra.mxu0 %v22086_v44  ;;  %14803 = vmatprep.subr.bf16.mxu1 %v22091_v49  ;;  %v22134_v44 = vld [vmem:[%s24596_s4 + $0x1eb0] ss:$40 sps:$4 sm:$0xff]   ;;  %v22139_v49 = vld [vmem:[%s24596_s4 + $0x1efc] ss:$40 sps:$4 sm:$0xff]  }
 0x38a   : > { %15377 = vmatprep.subr.bf16.mxu0 %v22094_v51  ;;  %v22142_v51 = vld [vmem:[%s24596_s4 + $0x1f04] ss:$40 sps:$4 sm:$0xff]  }
 0x38c   : > { %14804 = vmatpush1.bf16.msra.mxu1 %v22089_v52  ;;  %v22137_v52 = vld [vmem:[%s24596_s4 + $0x1ef8] ss:$40 sps:$4 sm:$0xff]  }
 0x38d   : > { %15378 = vmatpush1.bf16.msra.mxu0 %v22092_v55  ;;  %14805 = vmatprep.subr.bf16.mxu1 %v22097_v56  ;;  %v22140_v55 = vld [vmem:[%s24596_s4 + $0x1f00] ss:$40 sps:$4 sm:$0xff]   ;;  %v22145_v56 = vld [vmem:[%s24596_s4 + $0x1f4c] ss:$40 sps:$4 sm:$0xff]  }
 0x38e   : > { %15379 = vmatprep.subr.bf16.mxu0 %v22100_v57  ;;  %v22148_v57 = vld [vmem:[%s24596_s4 + $0x1f54] ss:$40 sps:$4 sm:$0xff]  }
 0x390   : > { %14806 = vmatpush1.bf16.msra.mxu1 %v22095_v58  ;;  %v22143_v58 = vld [vmem:[%s24596_s4 + $0x1f48] ss:$40 sps:$4 sm:$0xff]  }
 0x391   : > { %15380 = vmatpush1.bf16.msra.mxu0 %v22098_v0  ;;  %14807 = vmatprep.subr.bf16.mxu1 %v22103_v1  ;;  %v22146_v0 = vld [vmem:[%s24596_s4 + $0x1f50] ss:$40 sps:$4 sm:$0xff]   ;;  %v22151_v1 = vld [vmem:[%s24596_s4 + $0x1f9c] ss:$40 sps:$4 sm:$0xff]  }
 0x392   : > { %15381 = vmatprep.subr.bf16.mxu0 %v22106_v3  ;;  %v22154_v3 = vld [vmem:[%s24596_s4 + $0x1fa4] ss:$40 sps:$4 sm:$0xff]  }
 0x394   : > { %14808 = vmatpush1.bf16.msra.mxu1 %v22101_v2  ;;  %v22149_v2 = vld [vmem:[%s24596_s4 + $0x1f98] ss:$40 sps:$4 sm:$0xff]  }
 0x395   : > { %15382 = vmatpush1.bf16.msra.mxu0 %v22104_v8  ;;  %14809 = vmatprep.subr.bf16.mxu1 %v22109_v9  ;;  %v22152_v8 = vld [vmem:[%s24596_s4 + $0x1fa0] ss:$40 sps:$4 sm:$0xff]   ;;  %v22157_v9 = vld [vmem:[%s24596_s4 + $0x1fec] ss:$40 sps:$4 sm:$0xff]  }
 0x396   : > { %15383 = vmatprep.subr.bf16.mxu0 %v22112_v10  ;;  %v22160_v10 = vld [vmem:[%s24596_s4 + $0x1ff4] ss:$40 sps:$4 sm:$0xff]  }
 0x398   : > { %14810 = vmatpush1.bf16.msra.mxu1 %v22107_v13  ;;  %v22155_v13 = vld [vmem:[%s24596_s4 + $0x1fe8] ss:$40 sps:$4 sm:$0xff]  }
 0x399   : > { %15384 = vmatpush1.bf16.msra.mxu0 %v22110_v14  ;;  %14811 = vmatprep.subr.bf16.mxu1 %v22115_v18  ;;  %v22158_v14 = vld [vmem:[%s24596_s4 + $0x1ff0] ss:$40 sps:$4 sm:$0xff]   ;;  %v22163_v18 = vld [vmem:[%s24596_s4 + $0x203c] ss:$40 sps:$4 sm:$0xff]  }
 0x39a   : > { %15385 = vmatprep.subr.bf16.mxu0 %v22118_v19  ;;  %v22166_v19 = vld [vmem:[%s24596_s4 + $0x2044] ss:$40 sps:$4 sm:$0xff]  }
 0x39c   : > { %14812 = vmatpush1.bf16.msra.mxu1 %v22113_v24  ;;  %v22161_v24 = vld [vmem:[%s24596_s4 + $0x2038] ss:$40 sps:$4 sm:$0xff]  }
 0x39d   : > { %15386 = vmatpush1.bf16.msra.mxu0 %v22116_v25  ;;  %14822 = vmatprep.subr.bf16.mxu1 %v22121_v26  ;;  %v22164_v25 = vld [vmem:[%s24596_s4 + $0x2040] ss:$40 sps:$4 sm:$0xff]   ;;  %v22169_v26 = vld [vmem:[%s24596_s4 + $0x208c] ss:$40 sps:$4 sm:$0xff]  }
 0x39e   : > { %15396 = vmatprep.subr.bf16.mxu0 %v22124_v29  ;;  %v22172_v29 = vld [vmem:[%s24596_s4 + $0x2094] ss:$40 sps:$4 sm:$0xff]  }
 0x39f   : > { %14814 = vmatmul.mubr.bf16.vlgmr.msra.gmra.mrb[4].mxu1 %v25175_v59 }
 0x3a0   : > { %15388 = vmatmul.mubr.bf16.vlgmr.msra.gmra.mrb[4].mxu0 %v25175_v59  ;;  %14823 = vmatpush1.bf16.msra.mxu1 %v22119_v30  ;;  %v22167_v30 = vld [vmem:[%s24596_s4 + $0x2088] ss:$40 sps:$4 sm:$0xff]  }
 0x3a1   : > { %15397 = vmatpush1.bf16.msra.mxu0 %v22122_v31  ;;  %14824 = vmatprep.subr.bf16.mxu1 %v22127_v32  ;;  %v22170_v31 = vld [vmem:[%s24596_s4 + $0x2090] ss:$40 sps:$4 sm:$0xff]   ;;  %v22175_v32 = vld [vmem:[%s24596_s4 + $0x20dc] ss:$40 sps:$4 sm:$0xff]  }
 0x3a2   : > { %15398 = vmatprep.subr.bf16.mxu0 %v22130_v33  ;;  %14854 = vmatprep.mubr.bf16.mxu1 %v24704_v6  ;;  %v22178_v33 = vld [vmem:[%s24596_s4 + $0x20e4] ss:$40 sps:$4 sm:$0xff]  }
 0x3a3   : > { %15428 = vmatprep.mubr.bf16.mxu0 %v24704_v6 }
 0x3a4   : > { %14825 = vmatpush1.bf16.msra.mxu1 %v22125_v34  ;;  %v22173_v34 = vld [vmem:[%s24596_s4 + $0x20d8] ss:$40 sps:$4 sm:$0xff]  }
 0x3a5   : > { %15399 = vmatpush1.bf16.msra.mxu0 %v22128_v37  ;;  %14826 = vmatprep.subr.bf16.mxu1 %v22133_v38  ;;  %v22176_v37 = vld [vmem:[%s24596_s4 + $0x20e0] ss:$40 sps:$4 sm:$0xff]   ;;  %v22181_v38 = vld [vmem:[%s24596_s4 + $0x212c] ss:$40 sps:$4 sm:$0xff]  }
 0x3a6   : > { %15400 = vmatprep.subr.bf16.mxu0 %v22136_v39  ;;  %v22184_v39 = vld [vmem:[%s24596_s4 + $0x2134] ss:$40 sps:$4 sm:$0xff]  }
 0x3a8   : > { %14827 = vmatpush1.bf16.msra.mxu1 %v22131_v62  ;;  %v22179_v62 = vld [vmem:[%s24596_s4 + $0x2128] ss:$40 sps:$4 sm:$0xff]  }
 0x3a9   : > { %15401 = vmatpush1.bf16.msra.mxu0 %v22134_v44  ;;  %14828 = vmatprep.subr.bf16.mxu1 %v22139_v49  ;;  %v22182_v44 = vld [vmem:[%s24596_s4 + $0x2130] ss:$40 sps:$4 sm:$0xff]   ;;  %v22187_v49 = vld [vmem:[%s24596_s4 + $0x217c] ss:$40 sps:$4 sm:$0xff]  }
 0x3aa   : > { %15402 = vmatprep.subr.bf16.mxu0 %v22142_v51  ;;  %v22190_v51 = vld [vmem:[%s24596_s4 + $0x2184] ss:$40 sps:$4 sm:$0xff]  }
 0x3ac   : > { %14829 = vmatpush1.bf16.msra.mxu1 %v22137_v52  ;;  %v22185_v52 = vld [vmem:[%s24596_s4 + $0x2178] ss:$40 sps:$4 sm:$0xff]  }
 0x3ad   : > { %15403 = vmatpush1.bf16.msra.mxu0 %v22140_v55  ;;  %14830 = vmatprep.subr.bf16.mxu1 %v22145_v56  ;;  %v22188_v55 = vld [vmem:[%s24596_s4 + $0x2180] ss:$40 sps:$4 sm:$0xff]   ;;  %v22193_v56 = vld [vmem:[%s24596_s4 + $0x21cc] ss:$40 sps:$4 sm:$0xff]  }
 0x3ae   : > { %15404 = vmatprep.subr.bf16.mxu0 %v22148_v57  ;;  %v22196_v57 = vld [vmem:[%s24596_s4 + $0x21d4] ss:$40 sps:$4 sm:$0xff]  }
 0x3b0   : > { %14831 = vmatpush1.bf16.msra.mxu1 %v22143_v58  ;;  %v22191_v58 = vld [vmem:[%s24596_s4 + $0x21c8] ss:$40 sps:$4 sm:$0xff]  }
 0x3b1   : > { %15405 = vmatpush1.bf16.msra.mxu0 %v22146_v0  ;;  %14832 = vmatprep.subr.bf16.mxu1 %v22151_v1  ;;  %v22194_v0 = vld [vmem:[%s24596_s4 + $0x21d0] ss:$40 sps:$4 sm:$0xff]   ;;  %v22199_v1 = vld [vmem:[%s24596_s4 + $0x221c] ss:$40 sps:$4 sm:$0xff]  }
 0x3b2   : > { %15406 = vmatprep.subr.bf16.mxu0 %v22154_v3  ;;  %v22202_v3 = vld [vmem:[%s24596_s4 + $0x2224] ss:$40 sps:$4 sm:$0xff]  }
 0x3b4   : > { %14833 = vmatpush1.bf16.msra.mxu1 %v22149_v2  ;;  %v22197_v2 = vld [vmem:[%s24596_s4 + $0x2218] ss:$40 sps:$4 sm:$0xff]  }
 0x3b5   : > { %15407 = vmatpush1.bf16.msra.mxu0 %v22152_v8  ;;  %14834 = vmatprep.subr.bf16.mxu1 %v22157_v9  ;;  %v22200_v8 = vld [vmem:[%s24596_s4 + $0x2220] ss:$40 sps:$4 sm:$0xff]   ;;  %v22205_v9 = vld [vmem:[%s24596_s4 + $0x226c] ss:$40 sps:$4 sm:$0xff]  }
 0x3b6   : > { %15408 = vmatprep.subr.bf16.mxu0 %v22160_v10  ;;  %v22208_v10 = vld [vmem:[%s24596_s4 + $0x2274] ss:$40 sps:$4 sm:$0xff]  }
 0x3b8   : > { %14835 = vmatpush1.bf16.msra.mxu1 %v22155_v13  ;;  %v22203_v13 = vld [vmem:[%s24596_s4 + $0x2268] ss:$40 sps:$4 sm:$0xff]  }
 0x3b9   : > { %15409 = vmatpush1.bf16.msra.mxu0 %v22158_v14  ;;  %14836 = vmatprep.subr.bf16.mxu1 %v22163_v18  ;;  %v22206_v14 = vld [vmem:[%s24596_s4 + $0x2270] ss:$40 sps:$4 sm:$0xff]   ;;  %v22211_v18 = vld [vmem:[%s24596_s4 + $0x22bc] ss:$40 sps:$4 sm:$0xff]  }
 0x3ba   : > { %15410 = vmatprep.subr.bf16.mxu0 %v22166_v19  ;;  %v22214_v19 = vld [vmem:[%s24596_s4 + $0x22c4] ss:$40 sps:$4 sm:$0xff]  }
 0x3bc   : > { %14837 = vmatpush1.bf16.msra.mxu1 %v22161_v24  ;;  %v22209_v24 = vld [vmem:[%s24596_s4 + $0x22b8] ss:$40 sps:$4 sm:$0xff]  }
 0x3bd   : > { %15411 = vmatpush1.bf16.msra.mxu0 %v22164_v25  ;;  %14838 = vmatprep.subr.bf16.mxu1 %v22169_v26  ;;  %v22212_v25 = vld [vmem:[%s24596_s4 + $0x22c0] ss:$40 sps:$4 sm:$0xff]   ;;  %v22217_v26 = vld [vmem:[%s24596_s4 + $0x230c] ss:$40 sps:$4 sm:$0xff]  }
 0x3be   : > { %15412 = vmatprep.subr.bf16.mxu0 %v22172_v29  ;;  %v22220_v29 = vld [vmem:[%s24596_s4 + $0x2314] ss:$40 sps:$4 sm:$0xff]  }
 0x3c0   : > { %14839 = vmatpush1.bf16.msra.mxu1 %v22167_v30  ;;  %v22215_v30 = vld [vmem:[%s24596_s4 + $0x2308] ss:$40 sps:$4 sm:$0xff]  }
 0x3c1   : > { %15413 = vmatpush1.bf16.msra.mxu0 %v22170_v31  ;;  %14840 = vmatprep.subr.bf16.mxu1 %v22175_v32  ;;  %v22218_v31 = vld [vmem:[%s24596_s4 + $0x2310] ss:$40 sps:$4 sm:$0xff]   ;;  %v22223_v32 = vld [vmem:[%s24596_s4 + $0x235c] ss:$40 sps:$4 sm:$0xff]  }
 0x3c2   : > { %15414 = vmatprep.subr.bf16.mxu0 %v22178_v33  ;;  %v22226_v33 = vld [vmem:[%s24596_s4 + $0x2364] ss:$40 sps:$4 sm:$0xff]  }
 0x3c4   : > { %14841 = vmatpush1.bf16.msra.mxu1 %v22173_v34  ;;  %v22221_v34 = vld [vmem:[%s24596_s4 + $0x2358] ss:$40 sps:$4 sm:$0xff]  }
 0x3c5   : > { %15415 = vmatpush1.bf16.msra.mxu0 %v22176_v37  ;;  %14842 = vmatprep.subr.bf16.mxu1 %v22181_v38  ;;  %v22224_v37 = vld [vmem:[%s24596_s4 + $0x2360] ss:$40 sps:$4 sm:$0xff]   ;;  %v22229_v38 = vld [vmem:[%s24596_s4 + $0x23ac] ss:$40 sps:$4 sm:$0xff]  }
 0x3c6   : > { %15416 = vmatprep.subr.bf16.mxu0 %v22184_v39  ;;  %v22232_v39 = vld [vmem:[%s24596_s4 + $0x23b4] ss:$40 sps:$4 sm:$0xff]  }
 0x3c8   : > { %14843 = vmatpush1.bf16.msra.mxu1 %v22179_v62  ;;  %v22227_v62 = vld [vmem:[%s24596_s4 + $0x23a8] ss:$40 sps:$4 sm:$0xff]  }
 0x3c9   : > { %15417 = vmatpush1.bf16.msra.mxu0 %v22182_v44  ;;  %14844 = vmatprep.subr.bf16.mxu1 %v22187_v49  ;;  %v22230_v44 = vld [vmem:[%s24596_s4 + $0x23b0] ss:$40 sps:$4 sm:$0xff]   ;;  %v22235_v49 = vld [vmem:[%s24596_s4 + $0x23fc] ss:$40 sps:$4 sm:$0xff]  }
 0x3ca   : > { %15418 = vmatprep.subr.bf16.mxu0 %v22190_v51  ;;  %v22238_v51 = vld [vmem:[%s24596_s4 + $0x2404] ss:$40 sps:$4 sm:$0xff]  }
 0x3cc   : > { %14845 = vmatpush1.bf16.msra.mxu1 %v22185_v52  ;;  %v22233_v52 = vld [vmem:[%s24596_s4 + $0x23f8] ss:$40 sps:$4 sm:$0xff]  }
 0x3cd   : > { %15419 = vmatpush1.bf16.msra.mxu0 %v22188_v55  ;;  %14846 = vmatprep.subr.bf16.mxu1 %v22193_v56  ;;  %v22236_v55 = vld [vmem:[%s24596_s4 + $0x2400] ss:$40 sps:$4 sm:$0xff]   ;;  %v22241_v56 = vld [vmem:[%s24596_s4 + $0x244c] ss:$40 sps:$4 sm:$0xff]  }
 0x3ce   : > { %15420 = vmatprep.subr.bf16.mxu0 %v22196_v57  ;;  %v22244_v57 = vld [vmem:[%s24596_s4 + $0x2454] ss:$40 sps:$4 sm:$0xff]  }
 0x3d0   : > { %14847 = vmatpush1.bf16.msra.mxu1 %v22191_v58  ;;  %v22239_v58 = vld [vmem:[%s24596_s4 + $0x2448] ss:$40 sps:$4 sm:$0xff]  }
 0x3d1   : > { %15421 = vmatpush1.bf16.msra.mxu0 %v22194_v0  ;;  %14848 = vmatprep.subr.bf16.mxu1 %v22199_v1  ;;  %v22242_v0 = vld [vmem:[%s24596_s4 + $0x2450] ss:$40 sps:$4 sm:$0xff]   ;;  %v22247_v1 = vld [vmem:[%s24596_s4 + $0x249c] ss:$40 sps:$4 sm:$0xff]  }
 0x3d2   : > { %15422 = vmatprep.subr.bf16.mxu0 %v22202_v3  ;;  %v22250_v3 = vld [vmem:[%s24596_s4 + $0x24a4] ss:$40 sps:$4 sm:$0xff]  }
 0x3d4   : > { %14849 = vmatpush1.bf16.msra.mxu1 %v22197_v2  ;;  %v22245_v2 = vld [vmem:[%s24596_s4 + $0x2498] ss:$40 sps:$4 sm:$0xff]  }
 0x3d5   : > { %15423 = vmatpush1.bf16.msra.mxu0 %v22200_v8  ;;  %14850 = vmatprep.subr.bf16.mxu1 %v22205_v9  ;;  %v22248_v8 = vld [vmem:[%s24596_s4 + $0x24a0] ss:$40 sps:$4 sm:$0xff]   ;;  %v22253_v9 = vld [vmem:[%s24596_s4 + $0x24ec] ss:$40 sps:$4 sm:$0xff]  }
 0x3d6   : > { %15424 = vmatprep.subr.bf16.mxu0 %v22208_v10  ;;  %v22256_v10 = vld [vmem:[%s24596_s4 + $0x24f4] ss:$40 sps:$4 sm:$0xff]  }
 0x3d8   : > { %14851 = vmatpush1.bf16.msra.mxu1 %v22203_v13  ;;  %v22251_v13 = vld [vmem:[%s24596_s4 + $0x24e8] ss:$40 sps:$4 sm:$0xff]  }
 0x3d9   : > { %15425 = vmatpush1.bf16.msra.mxu0 %v22206_v14  ;;  %14852 = vmatprep.subr.bf16.mxu1 %v22211_v18  ;;  %v22254_v14 = vld [vmem:[%s24596_s4 + $0x24f0] ss:$40 sps:$4 sm:$0xff]   ;;  %v22259_v18 = vld [vmem:[%s24596_s4 + $0x253c] ss:$40 sps:$4 sm:$0xff]  }
 0x3da   : > { %15426 = vmatprep.subr.bf16.mxu0 %v22214_v19  ;;  %v22262_v19 = vld [vmem:[%s24596_s4 + $0x2544] ss:$40 sps:$4 sm:$0xff]  }
 0x3dc   : > { %14853 = vmatpush1.bf16.msra.mxu1 %v22209_v24  ;;  %v22257_v24 = vld [vmem:[%s24596_s4 + $0x2538] ss:$40 sps:$4 sm:$0xff]  }
 0x3dd   : > { %15427 = vmatpush1.bf16.msra.mxu0 %v22212_v25  ;;  %14863 = vmatprep.subr.bf16.mxu1 %v22217_v26  ;;  %v22260_v25 = vld [vmem:[%s24596_s4 + $0x2540] ss:$40 sps:$4 sm:$0xff]   ;;  %v22265_v26 = vld [vmem:[%s24596_s4 + $0x258c] ss:$40 sps:$4 sm:$0xff]  }
 0x3de   : > { %15437 = vmatprep.subr.bf16.mxu0 %v22220_v29  ;;  %v22268_v29 = vld [vmem:[%s24596_s4 + $0x2594] ss:$40 sps:$4 sm:$0xff]  }
 0x3df   : > { %14855 = vmatmul.mubr.bf16.vlgmr.msra.gmra.mrb[4].mxu1 %v24720_v16 }
 0x3e0   : > { %15429 = vmatmul.mubr.bf16.vlgmr.msra.gmra.mrb[4].mxu0 %v24720_v16  ;;  %14864 = vmatpush1.bf16.msra.mxu1 %v22215_v30  ;;  %v22263_v30 = vld [vmem:[%s24596_s4 + $0x2588] ss:$40 sps:$4 sm:$0xff]  }
 0x3e1   : > { %15438 = vmatpush1.bf16.msra.mxu0 %v22218_v31  ;;  %14865 = vmatprep.subr.bf16.mxu1 %v22223_v32  ;;  %v22266_v31 = vld [vmem:[%s24596_s4 + $0x2590] ss:$40 sps:$4 sm:$0xff]   ;;  %v22271_v32 = vld [vmem:[%s24596_s4 + $0x25dc] ss:$40 sps:$4 sm:$0xff]  }
 0x3e2   : > { %15439 = vmatprep.subr.bf16.mxu0 %v22226_v33  ;;  %14895 = vmatprep.mubr.bf16.mxu1 %v24712_v11  ;;  %v22274_v33 = vld [vmem:[%s24596_s4 + $0x25e4] ss:$40 sps:$4 sm:$0xff]  }
 0x3e3   : > { %15469 = vmatprep.mubr.bf16.mxu0 %v24712_v11 }
 0x3e4   : > { %14866 = vmatpush1.bf16.msra.mxu1 %v22221_v34  ;;  %v22269_v34 = vld [vmem:[%s24596_s4 + $0x25d8] ss:$40 sps:$4 sm:$0xff]  }
 0x3e5   : > { %15440 = vmatpush1.bf16.msra.mxu0 %v22224_v37  ;;  %14867 = vmatprep.subr.bf16.mxu1 %v22229_v38  ;;  %v22272_v37 = vld [vmem:[%s24596_s4 + $0x25e0] ss:$40 sps:$4 sm:$0xff]   ;;  %v22277_v38 = vld [vmem:[%s24596_s4 + $0x262c] ss:$40 sps:$4 sm:$0xff]  }
 0x3e6   : > { %15441 = vmatprep.subr.bf16.mxu0 %v22232_v39  ;;  %v22280_v39 = vld [vmem:[%s24596_s4 + $0x2634] ss:$40 sps:$4 sm:$0xff]  }
 0x3e8   : > { %14868 = vmatpush1.bf16.msra.mxu1 %v22227_v62  ;;  %v22275_v62 = vld [vmem:[%s24596_s4 + $0x2628] ss:$40 sps:$4 sm:$0xff]  }
 0x3e9   : > { %15442 = vmatpush1.bf16.msra.mxu0 %v22230_v44  ;;  %14869 = vmatprep.subr.bf16.mxu1 %v22235_v49  ;;  %v22278_v44 = vld [vmem:[%s24596_s4 + $0x2630] ss:$40 sps:$4 sm:$0xff]   ;;  %v22283_v49 = vld [vmem:[%s24596_s4 + $0x267c] ss:$40 sps:$4 sm:$0xff]  }
 0x3ea   : > { %15443 = vmatprep.subr.bf16.mxu0 %v22238_v51  ;;  %v22286_v51 = vld [vmem:[%s24596_s4 + $0x2684] ss:$40 sps:$4 sm:$0xff]  }
 0x3ec   : > { %14870 = vmatpush1.bf16.msra.mxu1 %v22233_v52  ;;  %v22281_v52 = vld [vmem:[%s24596_s4 + $0x2678] ss:$40 sps:$4 sm:$0xff]  }
 0x3ed   : > { %15444 = vmatpush1.bf16.msra.mxu0 %v22236_v55  ;;  %14871 = vmatprep.subr.bf16.mxu1 %v22241_v56  ;;  %v22284_v55 = vld [vmem:[%s24596_s4 + $0x2680] ss:$40 sps:$4 sm:$0xff]   ;;  %v22289_v56 = vld [vmem:[%s24596_s4 + $0x26cc] ss:$40 sps:$4 sm:$0xff]  }
 0x3ee   : > { %15445 = vmatprep.subr.bf16.mxu0 %v22244_v57  ;;  %v22292_v57 = vld [vmem:[%s24596_s4 + $0x26d4] ss:$40 sps:$4 sm:$0xff]  }
 0x3f0   : > { %14872 = vmatpush1.bf16.msra.mxu1 %v22239_v58  ;;  %v22287_v58 = vld [vmem:[%s24596_s4 + $0x26c8] ss:$40 sps:$4 sm:$0xff]  }
 0x3f1   : > { %15446 = vmatpush1.bf16.msra.mxu0 %v22242_v0  ;;  %14873 = vmatprep.subr.bf16.mxu1 %v22247_v1  ;;  %v22290_v0 = vld [vmem:[%s24596_s4 + $0x26d0] ss:$40 sps:$4 sm:$0xff]   ;;  %v22295_v1 = vld [vmem:[%s24596_s4 + $0x271c] ss:$40 sps:$4 sm:$0xff]  }
 0x3f2   : > { %15447 = vmatprep.subr.bf16.mxu0 %v22250_v3  ;;  %v22298_v3 = vld [vmem:[%s24596_s4 + $0x2724] ss:$40 sps:$4 sm:$0xff]  }
 0x3f4   : > { %14874 = vmatpush1.bf16.msra.mxu1 %v22245_v2  ;;  %v22293_v2 = vld [vmem:[%s24596_s4 + $0x2718] ss:$40 sps:$4 sm:$0xff]  }
 0x3f5   : > { %15448 = vmatpush1.bf16.msra.mxu0 %v22248_v8  ;;  %14875 = vmatprep.subr.bf16.mxu1 %v22253_v9  ;;  %v22296_v8 = vld [vmem:[%s24596_s4 + $0x2720] ss:$40 sps:$4 sm:$0xff]   ;;  %v22301_v9 = vld [vmem:[%s24596_s4 + $0x276c] ss:$40 sps:$4 sm:$0xff]  }
 0x3f6   : > { %15449 = vmatprep.subr.bf16.mxu0 %v22256_v10  ;;  %v22304_v10 = vld [vmem:[%s24596_s4 + $0x2774] ss:$40 sps:$4 sm:$0xff]  }
 0x3f8   : > { %14876 = vmatpush1.bf16.msra.mxu1 %v22251_v13  ;;  %v22299_v13 = vld [vmem:[%s24596_s4 + $0x2768] ss:$40 sps:$4 sm:$0xff]  }
 0x3f9   : > { %15450 = vmatpush1.bf16.msra.mxu0 %v22254_v14  ;;  %14877 = vmatprep.subr.bf16.mxu1 %v22259_v18  ;;  %v22302_v14 = vld [vmem:[%s24596_s4 + $0x2770] ss:$40 sps:$4 sm:$0xff]   ;;  %v22307_v18 = vld [vmem:[%s24596_s4 + $0x27bc] ss:$40 sps:$4 sm:$0xff]  }
 0x3fa   : > { %15451 = vmatprep.subr.bf16.mxu0 %v22262_v19  ;;  %v22310_v19 = vld [vmem:[%s24596_s4 + $0x27c4] ss:$40 sps:$4 sm:$0xff]  }
 0x3fc   : > { %14878 = vmatpush1.bf16.msra.mxu1 %v22257_v24  ;;  %v22305_v24 = vld [vmem:[%s24596_s4 + $0x27b8] ss:$40 sps:$4 sm:$0xff]  }
 0x3fd   : > { %15452 = vmatpush1.bf16.msra.mxu0 %v22260_v25  ;;  %14879 = vmatprep.subr.bf16.mxu1 %v22265_v26  ;;  %v22308_v25 = vld [vmem:[%s24596_s4 + $0x27c0] ss:$40 sps:$4 sm:$0xff]   ;;  %v22313_v26 = vld [vmem:[%s24596_s4 + $0x280c] ss:$40 sps:$4 sm:$0xff]  }
 0x3fe   : > { %15453 = vmatprep.subr.bf16.mxu0 %v22268_v29  ;;  %v22316_v29 = vld [vmem:[%s24596_s4 + $0x2814] ss:$40 sps:$4 sm:$0xff]  }
 0x400   : > { %14880 = vmatpush1.bf16.msra.mxu1 %v22263_v30  ;;  %v22311_v30 = vld [vmem:[%s24596_s4 + $0x2808] ss:$40 sps:$4 sm:$0xff]  }
 0x401   : > { %15454 = vmatpush1.bf16.msra.mxu0 %v22266_v31  ;;  %14881 = vmatprep.subr.bf16.mxu1 %v22271_v32  ;;  %v22314_v31 = vld [vmem:[%s24596_s4 + $0x2810] ss:$40 sps:$4 sm:$0xff]   ;;  %v22319_v32 = vld [vmem:[%s24596_s4 + $0x285c] ss:$40 sps:$4 sm:$0xff]  }
 0x402   : > { %15455 = vmatprep.subr.bf16.mxu0 %v22274_v33  ;;  %v22322_v33 = vld [vmem:[%s24596_s4 + $0x2864] ss:$40 sps:$4 sm:$0xff]  }
 0x404   : > { %14882 = vmatpush1.bf16.msra.mxu1 %v22269_v34  ;;  %v22317_v34 = vld [vmem:[%s24596_s4 + $0x2858] ss:$40 sps:$4 sm:$0xff]  }
 0x405   : > { %15456 = vmatpush1.bf16.msra.mxu0 %v22272_v37  ;;  %14883 = vmatprep.subr.bf16.mxu1 %v22277_v38  ;;  %v22320_v37 = vld [vmem:[%s24596_s4 + $0x2860] ss:$40 sps:$4 sm:$0xff]   ;;  %v22325_v38 = vld [vmem:[%s24596_s4 + $0x28ac] ss:$40 sps:$4 sm:$0xff]  }
 0x406   : > { %15457 = vmatprep.subr.bf16.mxu0 %v22280_v39  ;;  %v22328_v39 = vld [vmem:[%s24596_s4 + $0x28b4] ss:$40 sps:$4 sm:$0xff]  }
 0x408   : > { %14884 = vmatpush1.bf16.msra.mxu1 %v22275_v62  ;;  %v22323_v62 = vld [vmem:[%s24596_s4 + $0x28a8] ss:$40 sps:$4 sm:$0xff]  }
 0x409   : > { %15458 = vmatpush1.bf16.msra.mxu0 %v22278_v44  ;;  %14885 = vmatprep.subr.bf16.mxu1 %v22283_v49  ;;  %v22326_v44 = vld [vmem:[%s24596_s4 + $0x28b0] ss:$40 sps:$4 sm:$0xff]   ;;  %v22331_v49 = vld [vmem:[%s24596_s4 + $0x28fc] ss:$40 sps:$4 sm:$0xff]  }
 0x40a   : > { %15459 = vmatprep.subr.bf16.mxu0 %v22286_v51  ;;  %v22334_v51 = vld [vmem:[%s24596_s4 + $0x2904] ss:$40 sps:$4 sm:$0xff]  }
 0x40c   : > { %14886 = vmatpush1.bf16.msra.mxu1 %v22281_v52  ;;  %v22329_v52 = vld [vmem:[%s24596_s4 + $0x28f8] ss:$40 sps:$4 sm:$0xff]  }
 0x40d   : > { %15460 = vmatpush1.bf16.msra.mxu0 %v22284_v55  ;;  %14887 = vmatprep.subr.bf16.mxu1 %v22289_v56  ;;  %v22332_v55 = vld [vmem:[%s24596_s4 + $0x2900] ss:$40 sps:$4 sm:$0xff]   ;;  %v22337_v56 = vld [vmem:[%s24596_s4 + $0x294c] ss:$40 sps:$4 sm:$0xff]  }
 0x40e   : > { %15461 = vmatprep.subr.bf16.mxu0 %v22292_v57  ;;  %v22340_v57 = vld [vmem:[%s24596_s4 + $0x2954] ss:$40 sps:$4 sm:$0xff]  }
 0x410   : > { %14888 = vmatpush1.bf16.msra.mxu1 %v22287_v58  ;;  %v22335_v58 = vld [vmem:[%s24596_s4 + $0x2948] ss:$40 sps:$4 sm:$0xff]  }
 0x411   : > { %15462 = vmatpush1.bf16.msra.mxu0 %v22290_v0  ;;  %14889 = vmatprep.subr.bf16.mxu1 %v22295_v1  ;;  %v22338_v0 = vld [vmem:[%s24596_s4 + $0x2950] ss:$40 sps:$4 sm:$0xff]   ;;  %v22343_v1 = vld [vmem:[%s24596_s4 + $0x299c] ss:$40 sps:$4 sm:$0xff]  }
 0x412   : > { %15463 = vmatprep.subr.bf16.mxu0 %v22298_v3  ;;  %v22346_v3 = vld [vmem:[%s24596_s4 + $0x29a4] ss:$40 sps:$4 sm:$0xff]  }
 0x414   : > { %14890 = vmatpush1.bf16.msra.mxu1 %v22293_v2  ;;  %v22341_v2 = vld [vmem:[%s24596_s4 + $0x2998] ss:$40 sps:$4 sm:$0xff]  }
 0x415   : > { %15464 = vmatpush1.bf16.msra.mxu0 %v22296_v8  ;;  %14891 = vmatprep.subr.bf16.mxu1 %v22301_v9  ;;  %v22344_v8 = vld [vmem:[%s24596_s4 + $0x29a0] ss:$40 sps:$4 sm:$0xff]   ;;  %v22349_v9 = vld [vmem:[%s24596_s4 + $0x29ec] ss:$40 sps:$4 sm:$0xff]  }
 0x416   : > { %15465 = vmatprep.subr.bf16.mxu0 %v22304_v10  ;;  %v22352_v10 = vld [vmem:[%s24596_s4 + $0x29f4] ss:$40 sps:$4 sm:$0xff]  }
 0x418   : > { %14892 = vmatpush1.bf16.msra.mxu1 %v22299_v13  ;;  %v22347_v13 = vld [vmem:[%s24596_s4 + $0x29e8] ss:$40 sps:$4 sm:$0xff]  }
 0x419   : > { %15466 = vmatpush1.bf16.msra.mxu0 %v22302_v14  ;;  %14893 = vmatprep.subr.bf16.mxu1 %v22307_v18  ;;  %v22350_v14 = vld [vmem:[%s24596_s4 + $0x29f0] ss:$40 sps:$4 sm:$0xff]   ;;  %v22355_v18 = vld [vmem:[%s24596_s4 + $0x2a3c] ss:$40 sps:$4 sm:$0xff]  }
 0x41a   : > { %15467 = vmatprep.subr.bf16.mxu0 %v22310_v19  ;;  %v22358_v19 = vld [vmem:[%s24596_s4 + $0x2a44] ss:$40 sps:$4 sm:$0xff]  }
 0x41c   : > { %14894 = vmatpush1.bf16.msra.mxu1 %v22305_v24  ;;  %v22353_v24 = vld [vmem:[%s24596_s4 + $0x2a38] ss:$40 sps:$4 sm:$0xff]  }
 0x41d   : > { %15468 = vmatpush1.bf16.msra.mxu0 %v22308_v25  ;;  %14904 = vmatprep.subr.bf16.mxu1 %v22313_v26  ;;  %v22356_v25 = vld [vmem:[%s24596_s4 + $0x2a40] ss:$40 sps:$4 sm:$0xff]   ;;  %v22361_v26 = vld [vmem:[%s24596_s4 + $0x2a8c] ss:$40 sps:$4 sm:$0xff]  }
 0x41e   : > { %15478 = vmatprep.subr.bf16.mxu0 %v22316_v29  ;;  %v22364_v29 = vld [vmem:[%s24596_s4 + $0x2a94] ss:$40 sps:$4 sm:$0xff]  }
 0x41f   : > { %14896 = vmatmul.mubr.bf16.vlgmr.msra.gmra.mrb[4].mxu1 %v24731_v22 }
 0x420   : > { %15470 = vmatmul.mubr.bf16.vlgmr.msra.gmra.mrb[4].mxu0 %v24731_v22  ;;  %14905 = vmatpush1.bf16.msra.mxu1 %v22311_v30  ;;  %v22359_v30 = vld [vmem:[%s24596_s4 + $0x2a88] ss:$40 sps:$4 sm:$0xff]  }
 0x421   : > { %15479 = vmatpush1.bf16.msra.mxu0 %v22314_v31  ;;  %14906 = vmatprep.subr.bf16.mxu1 %v22319_v32  ;;  %v22362_v31 = vld [vmem:[%s24596_s4 + $0x2a90] ss:$40 sps:$4 sm:$0xff]   ;;  %v22367_v32 = vld [vmem:[%s24596_s4 + $0x2adc] ss:$40 sps:$4 sm:$0xff]  }
 0x422   : > { %15480 = vmatprep.subr.bf16.mxu0 %v22322_v33  ;;  %14936 = vmatprep.mubr.bf16.mxu1 %v24781_v61  ;;  %v22370_v33 = vld [vmem:[%s24596_s4 + $0x2ae4] ss:$40 sps:$4 sm:$0xff]  }
 0x423   : > { %15510 = vmatprep.mubr.bf16.mxu0 %v24781_v61 }
 0x424   : > { %14907 = vmatpush1.bf16.msra.mxu1 %v22317_v34  ;;  %v22365_v34 = vld [vmem:[%s24596_s4 + $0x2ad8] ss:$40 sps:$4 sm:$0xff]  }
 0x425   : > { %15481 = vmatpush1.bf16.msra.mxu0 %v22320_v37  ;;  %14908 = vmatprep.subr.bf16.mxu1 %v22325_v38  ;;  %v22368_v37 = vld [vmem:[%s24596_s4 + $0x2ae0] ss:$40 sps:$4 sm:$0xff]   ;;  %v22373_v38 = vld [vmem:[%s24596_s4 + $0x2b2c] ss:$40 sps:$4 sm:$0xff]  }
 0x426   : > { %15482 = vmatprep.subr.bf16.mxu0 %v22328_v39  ;;  %v22376_v39 = vld [vmem:[%s24596_s4 + $0x2b34] ss:$40 sps:$4 sm:$0xff]  }
 0x428   : > { %14909 = vmatpush1.bf16.msra.mxu1 %v22323_v62  ;;  %v22371_v62 = vld [vmem:[%s24596_s4 + $0x2b28] ss:$40 sps:$4 sm:$0xff]  }
 0x429   : > { %15483 = vmatpush1.bf16.msra.mxu0 %v22326_v44  ;;  %14910 = vmatprep.subr.bf16.mxu1 %v22331_v49  ;;  %v22374_v44 = vld [vmem:[%s24596_s4 + $0x2b30] ss:$40 sps:$4 sm:$0xff]   ;;  %v22379_v49 = vld [vmem:[%s24596_s4 + $0x2b7c] ss:$40 sps:$4 sm:$0xff]  }
 0x42a   : > { %15484 = vmatprep.subr.bf16.mxu0 %v22334_v51  ;;  %v22382_v51 = vld [vmem:[%s24596_s4 + $0x2b84] ss:$40 sps:$4 sm:$0xff]  }
 0x42c   : > { %14911 = vmatpush1.bf16.msra.mxu1 %v22329_v52  ;;  %v22377_v52 = vld [vmem:[%s24596_s4 + $0x2b78] ss:$40 sps:$4 sm:$0xff]  }
 0x42d   : > { %15485 = vmatpush1.bf16.msra.mxu0 %v22332_v55  ;;  %14912 = vmatprep.subr.bf16.mxu1 %v22337_v56  ;;  %v22380_v55 = vld [vmem:[%s24596_s4 + $0x2b80] ss:$40 sps:$4 sm:$0xff]   ;;  %v22385_v56 = vld [vmem:[%s24596_s4 + $0x2bcc] ss:$40 sps:$4 sm:$0xff]  }
 0x42e   : > { %15486 = vmatprep.subr.bf16.mxu0 %v22340_v57  ;;  %v22388_v57 = vld [vmem:[%s24596_s4 + $0x2bd4] ss:$40 sps:$4 sm:$0xff]  }
 0x430   : > { %14913 = vmatpush1.bf16.msra.mxu1 %v22335_v58  ;;  %v22383_v58 = vld [vmem:[%s24596_s4 + $0x2bc8] ss:$40 sps:$4 sm:$0xff]  }
 0x431   : > { %15487 = vmatpush1.bf16.msra.mxu0 %v22338_v0  ;;  %14914 = vmatprep.subr.bf16.mxu1 %v22343_v1  ;;  %v22386_v0 = vld [vmem:[%s24596_s4 + $0x2bd0] ss:$40 sps:$4 sm:$0xff]   ;;  %v22391_v1 = vld [vmem:[%s24596_s4 + $0x2c1c] ss:$40 sps:$4 sm:$0xff]  }
 0x432   : > { %15488 = vmatprep.subr.bf16.mxu0 %v22346_v3  ;;  %v22394_v3 = vld [vmem:[%s24596_s4 + $0x2c24] ss:$40 sps:$4 sm:$0xff]  }
 0x434   : > { %14915 = vmatpush1.bf16.msra.mxu1 %v22341_v2  ;;  %v22389_v2 = vld [vmem:[%s24596_s4 + $0x2c18] ss:$40 sps:$4 sm:$0xff]  }
 0x435   : > { %15489 = vmatpush1.bf16.msra.mxu0 %v22344_v8  ;;  %14916 = vmatprep.subr.bf16.mxu1 %v22349_v9  ;;  %v22392_v8 = vld [vmem:[%s24596_s4 + $0x2c20] ss:$40 sps:$4 sm:$0xff]   ;;  %v22397_v9 = vld [vmem:[%s24596_s4 + $0x2c6c] ss:$40 sps:$4 sm:$0xff]  }
 0x436   : > { %15490 = vmatprep.subr.bf16.mxu0 %v22352_v10  ;;  %v22400_v10 = vld [vmem:[%s24596_s4 + $0x2c74] ss:$40 sps:$4 sm:$0xff]  }
 0x438   : > { %14917 = vmatpush1.bf16.msra.mxu1 %v22347_v13  ;;  %v22395_v13 = vld [vmem:[%s24596_s4 + $0x2c68] ss:$40 sps:$4 sm:$0xff]  }
 0x439   : > { %15491 = vmatpush1.bf16.msra.mxu0 %v22350_v14  ;;  %14918 = vmatprep.subr.bf16.mxu1 %v22355_v18  ;;  %v22398_v14 = vld [vmem:[%s24596_s4 + $0x2c70] ss:$40 sps:$4 sm:$0xff]   ;;  %v22403_v18 = vld [vmem:[%s24596_s4 + $0x2cbc] ss:$40 sps:$4 sm:$0xff]  }
 0x43a   : > { %15492 = vmatprep.subr.bf16.mxu0 %v22358_v19  ;;  %v22406_v19 = vld [vmem:[%s24596_s4 + $0x2cc4] ss:$40 sps:$4 sm:$0xff]  }
 0x43c   : > { %14919 = vmatpush1.bf16.msra.mxu1 %v22353_v24  ;;  %v22401_v24 = vld [vmem:[%s24596_s4 + $0x2cb8] ss:$40 sps:$4 sm:$0xff]  }
 0x43d   : > { %15493 = vmatpush1.bf16.msra.mxu0 %v22356_v25  ;;  %14920 = vmatprep.subr.bf16.mxu1 %v22361_v26  ;;  %v22404_v25 = vld [vmem:[%s24596_s4 + $0x2cc0] ss:$40 sps:$4 sm:$0xff]   ;;  %v22409_v26 = vld [vmem:[%s24596_s4 + $0x2d0c] ss:$40 sps:$4 sm:$0xff]  }
 0x43e   : > { %15494 = vmatprep.subr.bf16.mxu0 %v22364_v29  ;;  %v22412_v29 = vld [vmem:[%s24596_s4 + $0x2d14] ss:$40 sps:$4 sm:$0xff]  }
 0x440   : > { %14921 = vmatpush1.bf16.msra.mxu1 %v22359_v30  ;;  %v22407_v30 = vld [vmem:[%s24596_s4 + $0x2d08] ss:$40 sps:$4 sm:$0xff]  }
 0x441   : > { %15495 = vmatpush1.bf16.msra.mxu0 %v22362_v31  ;;  %14922 = vmatprep.subr.bf16.mxu1 %v22367_v32  ;;  %v22410_v31 = vld [vmem:[%s24596_s4 + $0x2d10] ss:$40 sps:$4 sm:$0xff]   ;;  %v22415_v32 = vld [vmem:[%s24596_s4 + $0x2d5c] ss:$40 sps:$4 sm:$0xff]  }
 0x442   : > { %15496 = vmatprep.subr.bf16.mxu0 %v22370_v33  ;;  %v22418_v33 = vld [vmem:[%s24596_s4 + $0x2d64] ss:$40 sps:$4 sm:$0xff]  }
 0x444   : > { %14923 = vmatpush1.bf16.msra.mxu1 %v22365_v34  ;;  %v22413_v34 = vld [vmem:[%s24596_s4 + $0x2d58] ss:$40 sps:$4 sm:$0xff]  }
 0x445   : > { %15497 = vmatpush1.bf16.msra.mxu0 %v22368_v37  ;;  %14924 = vmatprep.subr.bf16.mxu1 %v22373_v38  ;;  %v22416_v37 = vld [vmem:[%s24596_s4 + $0x2d60] ss:$40 sps:$4 sm:$0xff]   ;;  %v22421_v38 = vld [vmem:[%s24596_s4 + $0x2dac] ss:$40 sps:$4 sm:$0xff]  }
 0x446   : > { %15498 = vmatprep.subr.bf16.mxu0 %v22376_v39  ;;  %v22424_v39 = vld [vmem:[%s24596_s4 + $0x2db4] ss:$40 sps:$4 sm:$0xff]  }
 0x448   : > { %14925 = vmatpush1.bf16.msra.mxu1 %v22371_v62  ;;  %v22419_v62 = vld [vmem:[%s24596_s4 + $0x2da8] ss:$40 sps:$4 sm:$0xff]  }
 0x449   : > { %15499 = vmatpush1.bf16.msra.mxu0 %v22374_v44  ;;  %14926 = vmatprep.subr.bf16.mxu1 %v22379_v49  ;;  %v22422_v44 = vld [vmem:[%s24596_s4 + $0x2db0] ss:$40 sps:$4 sm:$0xff]   ;;  %v22427_v49 = vld [vmem:[%s24596_s4 + $0x2dfc] ss:$40 sps:$4 sm:$0xff]  }
 0x44a   : > { %15500 = vmatprep.subr.bf16.mxu0 %v22382_v51  ;;  %v22430_v51 = vld [vmem:[%s24596_s4 + $0x2e04] ss:$40 sps:$4 sm:$0xff]  }
 0x44c   : > { %14927 = vmatpush1.bf16.msra.mxu1 %v22377_v52  ;;  %v22425_v52 = vld [vmem:[%s24596_s4 + $0x2df8] ss:$40 sps:$4 sm:$0xff]  }
 0x44d   : > { %15501 = vmatpush1.bf16.msra.mxu0 %v22380_v55  ;;  %14928 = vmatprep.subr.bf16.mxu1 %v22385_v56  ;;  %v22428_v55 = vld [vmem:[%s24596_s4 + $0x2e00] ss:$40 sps:$4 sm:$0xff]   ;;  %v22433_v56 = vld [vmem:[%s24596_s4 + $0x2e4c] ss:$40 sps:$4 sm:$0xff]  }
 0x44e   : > { %15502 = vmatprep.subr.bf16.mxu0 %v22388_v57  ;;  %v22436_v57 = vld [vmem:[%s24596_s4 + $0x2e54] ss:$40 sps:$4 sm:$0xff]  }
 0x450   : > { %14929 = vmatpush1.bf16.msra.mxu1 %v22383_v58  ;;  %v22431_v58 = vld [vmem:[%s24596_s4 + $0x2e48] ss:$40 sps:$4 sm:$0xff]  }
 0x451   : > { %15503 = vmatpush1.bf16.msra.mxu0 %v22386_v0  ;;  %14930 = vmatprep.subr.bf16.mxu1 %v22391_v1  ;;  %v22434_v0 = vld [vmem:[%s24596_s4 + $0x2e50] ss:$40 sps:$4 sm:$0xff]   ;;  %v22439_v1 = vld [vmem:[%s24596_s4 + $0x2e9c] ss:$40 sps:$4 sm:$0xff]  }
 0x452   : > { %15504 = vmatprep.subr.bf16.mxu0 %v22394_v3  ;;  %v22442_v3 = vld [vmem:[%s24596_s4 + $0x2ea4] ss:$40 sps:$4 sm:$0xff]  }
 0x454   : > { %14931 = vmatpush1.bf16.msra.mxu1 %v22389_v2  ;;  %v22437_v2 = vld [vmem:[%s24596_s4 + $0x2e98] ss:$40 sps:$4 sm:$0xff]  }
 0x455   : > { %15505 = vmatpush1.bf16.msra.mxu0 %v22392_v8  ;;  %14932 = vmatprep.subr.bf16.mxu1 %v22397_v9  ;;  %v22440_v8 = vld [vmem:[%s24596_s4 + $0x2ea0] ss:$40 sps:$4 sm:$0xff]   ;;  %v22445_v9 = vld [vmem:[%s24596_s4 + $0x2eec] ss:$40 sps:$4 sm:$0xff]  }
 0x456   : > { %15506 = vmatprep.subr.bf16.mxu0 %v22400_v10  ;;  %v22448_v10 = vld [vmem:[%s24596_s4 + $0x2ef4] ss:$40 sps:$4 sm:$0xff]  }
 0x458   : > { %14933 = vmatpush1.bf16.msra.mxu1 %v22395_v13  ;;  %v22443_v13 = vld [vmem:[%s24596_s4 + $0x2ee8] ss:$40 sps:$4 sm:$0xff]  }
 0x459   : > { %15507 = vmatpush1.bf16.msra.mxu0 %v22398_v14  ;;  %14934 = vmatprep.subr.bf16.mxu1 %v22403_v18  ;;  %v22446_v14 = vld [vmem:[%s24596_s4 + $0x2ef0] ss:$40 sps:$4 sm:$0xff]   ;;  %v22451_v18 = vld [vmem:[%s24596_s4 + $0x2f3c] ss:$40 sps:$4 sm:$0xff]  }
 0x45a   : > { %15508 = vmatprep.subr.bf16.mxu0 %v22406_v19  ;;  %v22454_v19 = vld [vmem:[%s24596_s4 + $0x2f44] ss:$40 sps:$4 sm:$0xff]  }
 0x45c   : > { %14935 = vmatpush1.bf16.msra.mxu1 %v22401_v24  ;;  %v22449_v24 = vld [vmem:[%s24596_s4 + $0x2f38] ss:$40 sps:$4 sm:$0xff]  }
 0x45d   : > { %15509 = vmatpush1.bf16.msra.mxu0 %v22404_v25  ;;  %14945 = vmatprep.subr.bf16.mxu1 %v22409_v26  ;;  %v22452_v25 = vld [vmem:[%s24596_s4 + $0x2f40] ss:$40 sps:$4 sm:$0xff]   ;;  %v22457_v26 = vld [vmem:[%s24596_s4 + $0x2f8c] ss:$40 sps:$4 sm:$0xff]  }
 0x45e   : > { %15519 = vmatprep.subr.bf16.mxu0 %v22412_v29  ;;  %v22460_v29 = vld [vmem:[%s24596_s4 + $0x2f94] ss:$40 sps:$4 sm:$0xff]  }
 0x45f   : > { %14937 = vmatmul.mubr.bf16.vlgmr.msra.gmra.mrb[4].mxu1 %v24831_v42 }
 0x460   : > { %15511 = vmatmul.mubr.bf16.vlgmr.msra.gmra.mrb[4].mxu0 %v24831_v42  ;;  %14946 = vmatpush1.bf16.msra.mxu1 %v22407_v30  ;;  %v22455_v30 = vld [vmem:[%s24596_s4 + $0x2f88] ss:$40 sps:$4 sm:$0xff]  }
 0x461   : > { %15520 = vmatpush1.bf16.msra.mxu0 %v22410_v31  ;;  %14947 = vmatprep.subr.bf16.mxu1 %v22415_v32  ;;  %v22458_v31 = vld [vmem:[%s24596_s4 + $0x2f90] ss:$40 sps:$4 sm:$0xff]   ;;  %v22463_v32 = vld [vmem:[%s24596_s4 + $0x2fdc] ss:$40 sps:$4 sm:$0xff]  }
 0x462   : > { %15521 = vmatprep.subr.bf16.mxu0 %v22418_v33  ;;  %14977 = vmatprep.mubr.bf16.mxu1 %v24841_v47  ;;  %v22466_v33 = vld [vmem:[%s24596_s4 + $0x2fe4] ss:$40 sps:$4 sm:$0xff]  }
 0x463   : > { %15551 = vmatprep.mubr.bf16.mxu0 %v24841_v47 }
 0x464   : > { %14948 = vmatpush1.bf16.msra.mxu1 %v22413_v34  ;;  %v22461_v34 = vld [vmem:[%s24596_s4 + $0x2fd8] ss:$40 sps:$4 sm:$0xff]  }
 0x465   : > { %15522 = vmatpush1.bf16.msra.mxu0 %v22416_v37  ;;  %14949 = vmatprep.subr.bf16.mxu1 %v22421_v38  ;;  %v22464_v37 = vld [vmem:[%s24596_s4 + $0x2fe0] ss:$40 sps:$4 sm:$0xff]   ;;  %v22469_v38 = vld [vmem:[%s24596_s4 + $0x302c] ss:$40 sps:$4 sm:$0xff]  }
 0x466   : > { %15523 = vmatprep.subr.bf16.mxu0 %v22424_v39  ;;  %v22472_v39 = vld [vmem:[%s24596_s4 + $0x3034] ss:$40 sps:$4 sm:$0xff]  }
 0x468   : > { %14950 = vmatpush1.bf16.msra.mxu1 %v22419_v62  ;;  %v22467_v62 = vld [vmem:[%s24596_s4 + $0x3028] ss:$40 sps:$4 sm:$0xff]  }
 0x469   : > { %15524 = vmatpush1.bf16.msra.mxu0 %v22422_v44  ;;  %14951 = vmatprep.subr.bf16.mxu1 %v22427_v49  ;;  %v22470_v44 = vld [vmem:[%s24596_s4 + $0x3030] ss:$40 sps:$4 sm:$0xff]   ;;  %v22475_v49 = vld [vmem:[%s24596_s4 + $0x307c] ss:$40 sps:$4 sm:$0xff]  }
 0x46a   : > { %15525 = vmatprep.subr.bf16.mxu0 %v22430_v51  ;;  %v22478_v51 = vld [vmem:[%s24596_s4 + $0x3084] ss:$40 sps:$4 sm:$0xff]  }
 0x46c   : > { %14952 = vmatpush1.bf16.msra.mxu1 %v22425_v52  ;;  %v22473_v52 = vld [vmem:[%s24596_s4 + $0x3078] ss:$40 sps:$4 sm:$0xff]  }
 0x46d   : > { %15526 = vmatpush1.bf16.msra.mxu0 %v22428_v55  ;;  %14953 = vmatprep.subr.bf16.mxu1 %v22433_v56  ;;  %v22476_v55 = vld [vmem:[%s24596_s4 + $0x3080] ss:$40 sps:$4 sm:$0xff]   ;;  %v22481_v56 = vld [vmem:[%s24596_s4 + $0x30cc] ss:$40 sps:$4 sm:$0xff]  }
 0x46e   : > { %15527 = vmatprep.subr.bf16.mxu0 %v22436_v57  ;;  %v22484_v57 = vld [vmem:[%s24596_s4 + $0x30d4] ss:$40 sps:$4 sm:$0xff]  }
 0x470   : > { %14954 = vmatpush1.bf16.msra.mxu1 %v22431_v58  ;;  %v22479_v58 = vld [vmem:[%s24596_s4 + $0x30c8] ss:$40 sps:$4 sm:$0xff]  }
 0x471   : > { %15528 = vmatpush1.bf16.msra.mxu0 %v22434_v0  ;;  %14955 = vmatprep.subr.bf16.mxu1 %v22439_v1  ;;  %v22482_v0 = vld [vmem:[%s24596_s4 + $0x30d0] ss:$40 sps:$4 sm:$0xff]   ;;  %v22487_v1 = vld [vmem:[%s24596_s4 + $0x311c] ss:$40 sps:$4 sm:$0xff]  }
 0x472   : > { %15529 = vmatprep.subr.bf16.mxu0 %v22442_v3  ;;  %v22490_v3 = vld [vmem:[%s24596_s4 + $0x3124] ss:$40 sps:$4 sm:$0xff]  }
 0x474   : > { %14956 = vmatpush1.bf16.msra.mxu1 %v22437_v2  ;;  %v22485_v2 = vld [vmem:[%s24596_s4 + $0x3118] ss:$40 sps:$4 sm:$0xff]  }
 0x475   : > { %15530 = vmatpush1.bf16.msra.mxu0 %v22440_v8  ;;  %14957 = vmatprep.subr.bf16.mxu1 %v22445_v9  ;;  %v22488_v8 = vld [vmem:[%s24596_s4 + $0x3120] ss:$40 sps:$4 sm:$0xff]   ;;  %v22493_v9 = vld [vmem:[%s24596_s4 + $0x316c] ss:$40 sps:$4 sm:$0xff]  }
 0x476   : > { %15531 = vmatprep.subr.bf16.mxu0 %v22448_v10  ;;  %v22496_v10 = vld [vmem:[%s24596_s4 + $0x3174] ss:$40 sps:$4 sm:$0xff]  }
 0x478   : > { %14958 = vmatpush1.bf16.msra.mxu1 %v22443_v13  ;;  %v22491_v13 = vld [vmem:[%s24596_s4 + $0x3168] ss:$40 sps:$4 sm:$0xff]  }
 0x479   : > { %15532 = vmatpush1.bf16.msra.mxu0 %v22446_v14  ;;  %14959 = vmatprep.subr.bf16.mxu1 %v22451_v18  ;;  %v22494_v14 = vld [vmem:[%s24596_s4 + $0x3170] ss:$40 sps:$4 sm:$0xff]   ;;  %v22499_v18 = vld [vmem:[%s24596_s4 + $0x31bc] ss:$40 sps:$4 sm:$0xff]  }
 0x47a   : > { %15533 = vmatprep.subr.bf16.mxu0 %v22454_v19  ;;  %v22502_v19 = vld [vmem:[%s24596_s4 + $0x31c4] ss:$40 sps:$4 sm:$0xff]  }
 0x47c   : > { %14960 = vmatpush1.bf16.msra.mxu1 %v22449_v24  ;;  %v22497_v24 = vld [vmem:[%s24596_s4 + $0x31b8] ss:$40 sps:$4 sm:$0xff]  }
 0x47d   : > { %15534 = vmatpush1.bf16.msra.mxu0 %v22452_v25  ;;  %14961 = vmatprep.subr.bf16.mxu1 %v22457_v26  ;;  %v22500_v25 = vld [vmem:[%s24596_s4 + $0x31c0] ss:$40 sps:$4 sm:$0xff]   ;;  %v22505_v26 = vld [vmem:[%s24596_s4 + $0x320c] ss:$40 sps:$4 sm:$0xff]  }
 0x47e   : > { %15535 = vmatprep.subr.bf16.mxu0 %v22460_v29  ;;  %v22508_v29 = vld [vmem:[%s24596_s4 + $0x3214] ss:$40 sps:$4 sm:$0xff]  }
 0x480   : > { %14962 = vmatpush1.bf16.msra.mxu1 %v22455_v30  ;;  %v22503_v30 = vld [vmem:[%s24596_s4 + $0x3208] ss:$40 sps:$4 sm:$0xff]  }
 0x481   : > { %15536 = vmatpush1.bf16.msra.mxu0 %v22458_v31  ;;  %14963 = vmatprep.subr.bf16.mxu1 %v22463_v32  ;;  %v22506_v31 = vld [vmem:[%s24596_s4 + $0x3210] ss:$40 sps:$4 sm:$0xff]   ;;  %v22511_v32 = vld [vmem:[%s24596_s4 + $0x325c] ss:$40 sps:$4 sm:$0xff]  }
 0x482   : > { %15537 = vmatprep.subr.bf16.mxu0 %v22466_v33  ;;  %v22514_v33 = vld [vmem:[%s24596_s4 + $0x3264] ss:$40 sps:$4 sm:$0xff]  }
 0x484   : > { %14964 = vmatpush1.bf16.msra.mxu1 %v22461_v34  ;;  %v22509_v34 = vld [vmem:[%s24596_s4 + $0x3258] ss:$40 sps:$4 sm:$0xff]  }
 0x485   : > { %15538 = vmatpush1.bf16.msra.mxu0 %v22464_v37  ;;  %14965 = vmatprep.subr.bf16.mxu1 %v22469_v38  ;;  %v22512_v37 = vld [vmem:[%s24596_s4 + $0x3260] ss:$40 sps:$4 sm:$0xff]   ;;  %v22517_v38 = vld [vmem:[%s24596_s4 + $0x32ac] ss:$40 sps:$4 sm:$0xff]  }
 0x486   : > { %15539 = vmatprep.subr.bf16.mxu0 %v22472_v39  ;;  %v22520_v39 = vld [vmem:[%s24596_s4 + $0x32b4] ss:$40 sps:$4 sm:$0xff]  }
 0x488   : > { %14966 = vmatpush1.bf16.msra.mxu1 %v22467_v62  ;;  %v22515_v62 = vld [vmem:[%s24596_s4 + $0x32a8] ss:$40 sps:$4 sm:$0xff]  }
 0x489   : > { %15540 = vmatpush1.bf16.msra.mxu0 %v22470_v44  ;;  %14967 = vmatprep.subr.bf16.mxu1 %v22475_v49  ;;  %v22518_v44 = vld [vmem:[%s24596_s4 + $0x32b0] ss:$40 sps:$4 sm:$0xff]   ;;  %v22523_v49 = vld [vmem:[%s24596_s4 + $0x32fc] ss:$40 sps:$4 sm:$0xff]  }
 0x48a   : > { %15541 = vmatprep.subr.bf16.mxu0 %v22478_v51  ;;  %v22526_v51 = vld [vmem:[%s24596_s4 + $0x3304] ss:$40 sps:$4 sm:$0xff]  }
 0x48c   : > { %14968 = vmatpush1.bf16.msra.mxu1 %v22473_v52  ;;  %v22521_v52 = vld [vmem:[%s24596_s4 + $0x32f8] ss:$40 sps:$4 sm:$0xff]  }
 0x48d   : > { %15542 = vmatpush1.bf16.msra.mxu0 %v22476_v55  ;;  %14969 = vmatprep.subr.bf16.mxu1 %v22481_v56  ;;  %v22524_v55 = vld [vmem:[%s24596_s4 + $0x3300] ss:$40 sps:$4 sm:$0xff]   ;;  %v22529_v56 = vld [vmem:[%s24596_s4 + $0x334c] ss:$40 sps:$4 sm:$0xff]  }
 0x48e   : > { %15543 = vmatprep.subr.bf16.mxu0 %v22484_v57  ;;  %v22532_v57 = vld [vmem:[%s24596_s4 + $0x3354] ss:$40 sps:$4 sm:$0xff]  }
 0x490   : > { %14970 = vmatpush1.bf16.msra.mxu1 %v22479_v58  ;;  %v22527_v58 = vld [vmem:[%s24596_s4 + $0x3348] ss:$40 sps:$4 sm:$0xff]  }
 0x491   : > { %15544 = vmatpush1.bf16.msra.mxu0 %v22482_v0  ;;  %14971 = vmatprep.subr.bf16.mxu1 %v22487_v1  ;;  %v22530_v0 = vld [vmem:[%s24596_s4 + $0x3350] ss:$40 sps:$4 sm:$0xff]   ;;  %v22535_v1 = vld [vmem:[%s24596_s4 + $0x339c] ss:$40 sps:$4 sm:$0xff]  }
 0x492   : > { %15545 = vmatprep.subr.bf16.mxu0 %v22490_v3  ;;  %v22538_v3 = vld [vmem:[%s24596_s4 + $0x33a4] ss:$40 sps:$4 sm:$0xff]  }
 0x494   : > { %14972 = vmatpush1.bf16.msra.mxu1 %v22485_v2  ;;  %v22533_v2 = vld [vmem:[%s24596_s4 + $0x3398] ss:$40 sps:$4 sm:$0xff]  }
 0x495   : > { %15546 = vmatpush1.bf16.msra.mxu0 %v22488_v8  ;;  %14973 = vmatprep.subr.bf16.mxu1 %v22493_v9  ;;  %v22536_v8 = vld [vmem:[%s24596_s4 + $0x33a0] ss:$40 sps:$4 sm:$0xff]   ;;  %v22541_v9 = vld [vmem:[%s24596_s4 + $0x33ec] ss:$40 sps:$4 sm:$0xff]  }
 0x496   : > { %15547 = vmatprep.subr.bf16.mxu0 %v22496_v10  ;;  %v22544_v10 = vld [vmem:[%s24596_s4 + $0x33f4] ss:$40 sps:$4 sm:$0xff]  }
 0x498   : > { %14974 = vmatpush1.bf16.msra.mxu1 %v22491_v13  ;;  %v22539_v13 = vld [vmem:[%s24596_s4 + $0x33e8] ss:$40 sps:$4 sm:$0xff]  }
 0x499   : > { %15548 = vmatpush1.bf16.msra.mxu0 %v22494_v14  ;;  %14975 = vmatprep.subr.bf16.mxu1 %v22499_v18  ;;  %v22542_v14 = vld [vmem:[%s24596_s4 + $0x33f0] ss:$40 sps:$4 sm:$0xff]   ;;  %v22547_v18 = vld [vmem:[%s24596_s4 + $0x343c] ss:$40 sps:$4 sm:$0xff]  }
 0x49a   : > { %15549 = vmatprep.subr.bf16.mxu0 %v22502_v19  ;;  %v22550_v19 = vld [vmem:[%s24596_s4 + $0x3444] ss:$40 sps:$4 sm:$0xff]  }
 0x49c   : > { %14976 = vmatpush1.bf16.msra.mxu1 %v22497_v24  ;;  %v22545_v24 = vld [vmem:[%s24596_s4 + $0x3438] ss:$40 sps:$4 sm:$0xff]  }
 0x49d   : > { %15550 = vmatpush1.bf16.msra.mxu0 %v22500_v25  ;;  %14986 = vmatprep.subr.bf16.mxu1 %v22505_v26  ;;  %v22548_v25 = vld [vmem:[%s24596_s4 + $0x3440] ss:$40 sps:$4 sm:$0xff]   ;;  %v22553_v26 = vld [vmem:[%s24596_s4 + $0x348c] ss:$40 sps:$4 sm:$0xff]  }
 0x49e   : > { %15560 = vmatprep.subr.bf16.mxu0 %v22508_v29  ;;  %v22556_v29 = vld [vmem:[%s24596_s4 + $0x3494] ss:$40 sps:$4 sm:$0xff]  }
 0x49f   : > { %14978 = vmatmul.mubr.bf16.vlgmr.msra.gmra.mrb[4].mxu1 %v24921_v7 }
 0x4a0   : > { %15552 = vmatmul.mubr.bf16.vlgmr.msra.gmra.mrb[4].mxu0 %v24921_v7  ;;  %14987 = vmatpush1.bf16.msra.mxu1 %v22503_v30  ;;  %v22551_v30 = vld [vmem:[%s24596_s4 + $0x3488] ss:$40 sps:$4 sm:$0xff]  }
 0x4a1   : > { %15561 = vmatpush1.bf16.msra.mxu0 %v22506_v31  ;;  %14988 = vmatprep.subr.bf16.mxu1 %v22511_v32  ;;  %v22554_v31 = vld [vmem:[%s24596_s4 + $0x3490] ss:$40 sps:$4 sm:$0xff]   ;;  %v22559_v32 = vld [vmem:[%s24596_s4 + $0x34dc] ss:$40 sps:$4 sm:$0xff]  }
 0x4a2   : > { %15562 = vmatprep.subr.bf16.mxu0 %v22514_v33  ;;  %15018 = vmatprep.mubr.bf16.mxu1 %v24931_v35  ;;  %v22562_v33 = vld [vmem:[%s24596_s4 + $0x34e4] ss:$40 sps:$4 sm:$0xff]  }
 0x4a3   : > { %15592 = vmatprep.mubr.bf16.mxu0 %v24931_v35 }
 0x4a4   : > { %14989 = vmatpush1.bf16.msra.mxu1 %v22509_v34  ;;  %v22557_v34 = vld [vmem:[%s24596_s4 + $0x34d8] ss:$40 sps:$4 sm:$0xff]  }
 0x4a5   : > { %15563 = vmatpush1.bf16.msra.mxu0 %v22512_v37  ;;  %14990 = vmatprep.subr.bf16.mxu1 %v22517_v38  ;;  %v22560_v37 = vld [vmem:[%s24596_s4 + $0x34e0] ss:$40 sps:$4 sm:$0xff]   ;;  %v22565_v38 = vld [vmem:[%s24596_s4 + $0x352c] ss:$40 sps:$4 sm:$0xff]  }
 0x4a6   : > { %15564 = vmatprep.subr.bf16.mxu0 %v22520_v39  ;;  %v22568_v39 = vld [vmem:[%s24596_s4 + $0x3534] ss:$40 sps:$4 sm:$0xff]  }
 0x4a8   : > { %14991 = vmatpush1.bf16.msra.mxu1 %v22515_v62  ;;  %v22563_v62 = vld [vmem:[%s24596_s4 + $0x3528] ss:$40 sps:$4 sm:$0xff]  }
 0x4a9   : > { %15565 = vmatpush1.bf16.msra.mxu0 %v22518_v44  ;;  %14992 = vmatprep.subr.bf16.mxu1 %v22523_v49  ;;  %v22566_v44 = vld [vmem:[%s24596_s4 + $0x3530] ss:$40 sps:$4 sm:$0xff]   ;;  %v22571_v49 = vld [vmem:[%s24596_s4 + $0x357c] ss:$40 sps:$4 sm:$0xff]  }
 0x4aa   : > { %15566 = vmatprep.subr.bf16.mxu0 %v22526_v51  ;;  %v22574_v51 = vld [vmem:[%s24596_s4 + $0x3584] ss:$40 sps:$4 sm:$0xff]  }
 0x4ac   : > { %14993 = vmatpush1.bf16.msra.mxu1 %v22521_v52  ;;  %v22569_v52 = vld [vmem:[%s24596_s4 + $0x3578] ss:$40 sps:$4 sm:$0xff]  }
 0x4ad   : > { %15567 = vmatpush1.bf16.msra.mxu0 %v22524_v55  ;;  %14994 = vmatprep.subr.bf16.mxu1 %v22529_v56  ;;  %v22572_v55 = vld [vmem:[%s24596_s4 + $0x3580] ss:$40 sps:$4 sm:$0xff]   ;;  %v22577_v56 = vld [vmem:[%s24596_s4 + $0x35cc] ss:$40 sps:$4 sm:$0xff]  }
 0x4ae   : > { %15568 = vmatprep.subr.bf16.mxu0 %v22532_v57  ;;  %v22580_v57 = vld [vmem:[%s24596_s4 + $0x35d4] ss:$40 sps:$4 sm:$0xff]  }
 0x4b0   : > { %14995 = vmatpush1.bf16.msra.mxu1 %v22527_v58  ;;  %v22575_v58 = vld [vmem:[%s24596_s4 + $0x35c8] ss:$40 sps:$4 sm:$0xff]  }
 0x4b1   : > { %15569 = vmatpush1.bf16.msra.mxu0 %v22530_v0  ;;  %14996 = vmatprep.subr.bf16.mxu1 %v22535_v1  ;;  %v22578_v0 = vld [vmem:[%s24596_s4 + $0x35d0] ss:$40 sps:$4 sm:$0xff]   ;;  %v22583_v1 = vld [vmem:[%s24596_s4 + $0x361c] ss:$40 sps:$4 sm:$0xff]  }
 0x4b2   : > { %15570 = vmatprep.subr.bf16.mxu0 %v22538_v3  ;;  %v22586_v3 = vld [vmem:[%s24596_s4 + $0x3624] ss:$40 sps:$4 sm:$0xff]  }
 0x4b4   : > { %14997 = vmatpush1.bf16.msra.mxu1 %v22533_v2  ;;  %v22581_v2 = vld [vmem:[%s24596_s4 + $0x3618] ss:$40 sps:$4 sm:$0xff]  }
 0x4b5   : > { %15571 = vmatpush1.bf16.msra.mxu0 %v22536_v8  ;;  %14998 = vmatprep.subr.bf16.mxu1 %v22541_v9  ;;  %v22584_v8 = vld [vmem:[%s24596_s4 + $0x3620] ss:$40 sps:$4 sm:$0xff]   ;;  %v22589_v9 = vld [vmem:[%s24596_s4 + $0x366c] ss:$40 sps:$4 sm:$0xff]  }
 0x4b6   : > { %15572 = vmatprep.subr.bf16.mxu0 %v22544_v10  ;;  %v22592_v10 = vld [vmem:[%s24596_s4 + $0x3674] ss:$40 sps:$4 sm:$0xff]  }
 0x4b8   : > { %14999 = vmatpush1.bf16.msra.mxu1 %v22539_v13  ;;  %v22587_v13 = vld [vmem:[%s24596_s4 + $0x3668] ss:$40 sps:$4 sm:$0xff]  }
 0x4b9   : > { %15573 = vmatpush1.bf16.msra.mxu0 %v22542_v14  ;;  %15000 = vmatprep.subr.bf16.mxu1 %v22547_v18  ;;  %v22590_v14 = vld [vmem:[%s24596_s4 + $0x3670] ss:$40 sps:$4 sm:$0xff]   ;;  %v22595_v18 = vld [vmem:[%s24596_s4 + $0x36bc] ss:$40 sps:$4 sm:$0xff]  }
 0x4ba   : > { %15574 = vmatprep.subr.bf16.mxu0 %v22550_v19  ;;  %v22598_v19 = vld [vmem:[%s24596_s4 + $0x36c4] ss:$40 sps:$4 sm:$0xff]  }
 0x4bc   : > { %15001 = vmatpush1.bf16.msra.mxu1 %v22545_v24  ;;  %v22593_v24 = vld [vmem:[%s24596_s4 + $0x36b8] ss:$40 sps:$4 sm:$0xff]  }
 0x4bd   : > { %15575 = vmatpush1.bf16.msra.mxu0 %v22548_v25  ;;  %15002 = vmatprep.subr.bf16.mxu1 %v22553_v26  ;;  %v22596_v25 = vld [vmem:[%s24596_s4 + $0x36c0] ss:$40 sps:$4 sm:$0xff]   ;;  %v22601_v26 = vld [vmem:[%s24596_s4 + $0x370c] ss:$40 sps:$4 sm:$0xff]  }
 0x4be   : > { %15576 = vmatprep.subr.bf16.mxu0 %v22556_v29  ;;  %v22604_v29 = vld [vmem:[%s24596_s4 + $0x3714] ss:$40 sps:$4 sm:$0xff]  }
 0x4c0   : > { %15003 = vmatpush1.bf16.msra.mxu1 %v22551_v30  ;;  %v22599_v30 = vld [vmem:[%s24596_s4 + $0x3708] ss:$40 sps:$4 sm:$0xff]  }
 0x4c1   : > { %15577 = vmatpush1.bf16.msra.mxu0 %v22554_v31  ;;  %15004 = vmatprep.subr.bf16.mxu1 %v22559_v32  ;;  %v22602_v31 = vld [vmem:[%s24596_s4 + $0x3710] ss:$40 sps:$4 sm:$0xff]   ;;  %v22607_v32 = vld [vmem:[%s24596_s4 + $0x375c] ss:$40 sps:$4 sm:$0xff]  }
 0x4c2   : > { %15578 = vmatprep.subr.bf16.mxu0 %v22562_v33  ;;  %v22610_v33 = vld [vmem:[%s24596_s4 + $0x3764] ss:$40 sps:$4 sm:$0xff]  }
 0x4c4   : > { %15005 = vmatpush1.bf16.msra.mxu1 %v22557_v34  ;;  %v22605_v34 = vld [vmem:[%s24596_s4 + $0x3758] ss:$40 sps:$4 sm:$0xff]  }
 0x4c5   : > { %15579 = vmatpush1.bf16.msra.mxu0 %v22560_v37  ;;  %15006 = vmatprep.subr.bf16.mxu1 %v22565_v38  ;;  %v22608_v37 = vld [vmem:[%s24596_s4 + $0x3760] ss:$40 sps:$4 sm:$0xff]   ;;  %v22613_v38 = vld [vmem:[%s24596_s4 + $0x37ac] ss:$40 sps:$4 sm:$0xff]  }
 0x4c6   : > { %15580 = vmatprep.subr.bf16.mxu0 %v22568_v39  ;;  %v22616_v39 = vld [vmem:[%s24596_s4 + $0x37b4] ss:$40 sps:$4 sm:$0xff]  }
 0x4c8   : > { %15007 = vmatpush1.bf16.msra.mxu1 %v22563_v62  ;;  %v22611_v62 = vld [vmem:[%s24596_s4 + $0x37a8] ss:$40 sps:$4 sm:$0xff]  }
 0x4c9   : > { %15581 = vmatpush1.bf16.msra.mxu0 %v22566_v44  ;;  %15008 = vmatprep.subr.bf16.mxu1 %v22571_v49  ;;  %v22614_v44 = vld [vmem:[%s24596_s4 + $0x37b0] ss:$40 sps:$4 sm:$0xff]   ;;  %v22619_v49 = vld [vmem:[%s24596_s4 + $0x37fc] ss:$40 sps:$4 sm:$0xff]  }
 0x4ca   : > { %15582 = vmatprep.subr.bf16.mxu0 %v22574_v51  ;;  %v22622_v51 = vld [vmem:[%s24596_s4 + $0x3804] ss:$40 sps:$4 sm:$0xff]  }
 0x4cc   : > { %15009 = vmatpush1.bf16.msra.mxu1 %v22569_v52  ;;  %v22617_v52 = vld [vmem:[%s24596_s4 + $0x37f8] ss:$40 sps:$4 sm:$0xff]  }
 0x4cd   : > { %15583 = vmatpush1.bf16.msra.mxu0 %v22572_v55  ;;  %15010 = vmatprep.subr.bf16.mxu1 %v22577_v56  ;;  %v22620_v55 = vld [vmem:[%s24596_s4 + $0x3800] ss:$40 sps:$4 sm:$0xff]   ;;  %v22625_v56 = vld [vmem:[%s24596_s4 + $0x384c] ss:$40 sps:$4 sm:$0xff]  }
 0x4ce   : > { %15584 = vmatprep.subr.bf16.mxu0 %v22580_v57  ;;  %v22628_v57 = vld [vmem:[%s24596_s4 + $0x3854] ss:$40 sps:$4 sm:$0xff]  }
 0x4d0   : > { %15011 = vmatpush1.bf16.msra.mxu1 %v22575_v58  ;;  %v22623_v58 = vld [vmem:[%s24596_s4 + $0x3848] ss:$40 sps:$4 sm:$0xff]  }
 0x4d1   : > { %15585 = vmatpush1.bf16.msra.mxu0 %v22578_v0  ;;  %15012 = vmatprep.subr.bf16.mxu1 %v22583_v1  ;;  %v22626_v0 = vld [vmem:[%s24596_s4 + $0x3850] ss:$40 sps:$4 sm:$0xff]   ;;  %v22631_v1 = vld [vmem:[%s24596_s4 + $0x389c] ss:$40 sps:$4 sm:$0xff]  }
 0x4d2   : > { %15586 = vmatprep.subr.bf16.mxu0 %v22586_v3  ;;  %v22634_v3 = vld [vmem:[%s24596_s4 + $0x38a4] ss:$40 sps:$4 sm:$0xff]  }
 0x4d4   : > { %15013 = vmatpush1.bf16.msra.mxu1 %v22581_v2  ;;  %v22629_v2 = vld [vmem:[%s24596_s4 + $0x3898] ss:$40 sps:$4 sm:$0xff]  }
 0x4d5   : > { %15587 = vmatpush1.bf16.msra.mxu0 %v22584_v8  ;;  %15014 = vmatprep.subr.bf16.mxu1 %v22589_v9  ;;  %v22632_v8 = vld [vmem:[%s24596_s4 + $0x38a0] ss:$40 sps:$4 sm:$0xff]   ;;  %v22637_v9 = vld [vmem:[%s24596_s4 + $0x38ec] ss:$40 sps:$4 sm:$0xff]  }
 0x4d6   : > { %15588 = vmatprep.subr.bf16.mxu0 %v22592_v10  ;;  %v22640_v10 = vld [vmem:[%s24596_s4 + $0x38f4] ss:$40 sps:$4 sm:$0xff]  }
 0x4d8   : > { %15015 = vmatpush1.bf16.msra.mxu1 %v22587_v13  ;;  %v22635_v13 = vld [vmem:[%s24596_s4 + $0x38e8] ss:$40 sps:$4 sm:$0xff]  }
 0x4d9   : > { %15589 = vmatpush1.bf16.msra.mxu0 %v22590_v14  ;;  %15016 = vmatprep.subr.bf16.mxu1 %v22595_v18  ;;  %v22638_v14 = vld [vmem:[%s24596_s4 + $0x38f0] ss:$40 sps:$4 sm:$0xff]   ;;  %v22643_v18 = vld [vmem:[%s24596_s4 + $0x393c] ss:$40 sps:$4 sm:$0xff]  }
 0x4da   : > { %15590 = vmatprep.subr.bf16.mxu0 %v22598_v19  ;;  %v22646_v19 = vld [vmem:[%s24596_s4 + $0x3944] ss:$40 sps:$4 sm:$0xff]  }
 0x4dc   : > { %15017 = vmatpush1.bf16.msra.mxu1 %v22593_v24  ;;  %v22641_v24 = vld [vmem:[%s24596_s4 + $0x3938] ss:$40 sps:$4 sm:$0xff]  }
 0x4dd   : > { %15591 = vmatpush1.bf16.msra.mxu0 %v22596_v25  ;;  %15027 = vmatprep.subr.bf16.mxu1 %v22601_v26  ;;  %v22644_v25 = vld [vmem:[%s24596_s4 + $0x3940] ss:$40 sps:$4 sm:$0xff]   ;;  %v22649_v26 = vld [vmem:[%s24596_s4 + $0x398c] ss:$40 sps:$4 sm:$0xff]  }
 0x4de   : > { %15601 = vmatprep.subr.bf16.mxu0 %v22604_v29  ;;  %v22652_v29 = vld [vmem:[%s24596_s4 + $0x3994] ss:$40 sps:$4 sm:$0xff]  }
 0x4df   : > { %15019 = vmatmul.mubr.bf16.vlgmr.msra.gmra.mrb[4].mxu1 %v25009_v54 }
 0x4e0   : > { %15593 = vmatmul.mubr.bf16.vlgmr.msra.gmra.mrb[4].mxu0 %v25009_v54  ;;  %15028 = vmatpush1.bf16.msra.mxu1 %v22599_v30  ;;  %v22647_v30 = vld [vmem:[%s24596_s4 + $0x3988] ss:$40 sps:$4 sm:$0xff]  }
 0x4e1   : > { %15602 = vmatpush1.bf16.msra.mxu0 %v22602_v31  ;;  %15029 = vmatprep.subr.bf16.mxu1 %v22607_v32  ;;  %v22650_v31 = vld [vmem:[%s24596_s4 + $0x3990] ss:$40 sps:$4 sm:$0xff]   ;;  %v22655_v32 = vld [vmem:[%s24596_s4 + $0x39dc] ss:$40 sps:$4 sm:$0xff]  }
 0x4e2   : > { %15603 = vmatprep.subr.bf16.mxu0 %v22610_v33  ;;  %15059 = vmatprep.mubr.bf16.mxu1 %v25019_v43  ;;  %v22658_v33 = vld [vmem:[%s24596_s4 + $0x39e4] ss:$40 sps:$4 sm:$0xff]  }
 0x4e3   : > { %15633 = vmatprep.mubr.bf16.mxu0 %v25019_v43 }
 0x4e4   : > { %15030 = vmatpush1.bf16.msra.mxu1 %v22605_v34  ;;  %v22653_v34 = vld [vmem:[%s24596_s4 + $0x39d8] ss:$40 sps:$4 sm:$0xff]  }
 0x4e5   : > { %15604 = vmatpush1.bf16.msra.mxu0 %v22608_v37  ;;  %15031 = vmatprep.subr.bf16.mxu1 %v22613_v38  ;;  %v22656_v37 = vld [vmem:[%s24596_s4 + $0x39e0] ss:$40 sps:$4 sm:$0xff]   ;;  %v22661_v38 = vld [vmem:[%s24596_s4 + $0x3a2c] ss:$40 sps:$4 sm:$0xff]  }
 0x4e6   : > { %15605 = vmatprep.subr.bf16.mxu0 %v22616_v39  ;;  %v22664_v39 = vld [vmem:[%s24596_s4 + $0x3a34] ss:$40 sps:$4 sm:$0xff]  }
 0x4e8   : > { %15032 = vmatpush1.bf16.msra.mxu1 %v22611_v62  ;;  %v22659_v62 = vld [vmem:[%s24596_s4 + $0x3a28] ss:$40 sps:$4 sm:$0xff]  }
 0x4e9   : > { %15606 = vmatpush1.bf16.msra.mxu0 %v22614_v44  ;;  %15033 = vmatprep.subr.bf16.mxu1 %v22619_v49  ;;  %v22662_v44 = vld [vmem:[%s24596_s4 + $0x3a30] ss:$40 sps:$4 sm:$0xff]   ;;  %v22667_v49 = vld [vmem:[%s24596_s4 + $0x3a7c] ss:$40 sps:$4 sm:$0xff]  }
 0x4ea   : > { %15607 = vmatprep.subr.bf16.mxu0 %v22622_v51  ;;  %v22670_v51 = vld [vmem:[%s24596_s4 + $0x3a84] ss:$40 sps:$4 sm:$0xff]  }
 0x4ec   : > { %15034 = vmatpush1.bf16.msra.mxu1 %v22617_v52  ;;  %v22665_v52 = vld [vmem:[%s24596_s4 + $0x3a78] ss:$40 sps:$4 sm:$0xff]  }
 0x4ed   : > { %15608 = vmatpush1.bf16.msra.mxu0 %v22620_v55  ;;  %15035 = vmatprep.subr.bf16.mxu1 %v22625_v56  ;;  %v22668_v55 = vld [vmem:[%s24596_s4 + $0x3a80] ss:$40 sps:$4 sm:$0xff]   ;;  %v22673_v56 = vld [vmem:[%s24596_s4 + $0x3acc] ss:$40 sps:$4 sm:$0xff]  }
 0x4ee   : > { %15609 = vmatprep.subr.bf16.mxu0 %v22628_v57  ;;  %v22676_v57 = vld [vmem:[%s24596_s4 + $0x3ad4] ss:$40 sps:$4 sm:$0xff]  }
 0x4f0   : > { %15036 = vmatpush1.bf16.msra.mxu1 %v22623_v58  ;;  %v22671_v58 = vld [vmem:[%s24596_s4 + $0x3ac8] ss:$40 sps:$4 sm:$0xff]  }
 0x4f1   : > { %15610 = vmatpush1.bf16.msra.mxu0 %v22626_v0  ;;  %15037 = vmatprep.subr.bf16.mxu1 %v22631_v1  ;;  %v22674_v0 = vld [vmem:[%s24596_s4 + $0x3ad0] ss:$40 sps:$4 sm:$0xff]   ;;  %v22679_v1 = vld [vmem:[%s24596_s4 + $0x3b1c] ss:$40 sps:$4 sm:$0xff]  }
 0x4f2   : > { %15611 = vmatprep.subr.bf16.mxu0 %v22634_v3  ;;  %v22682_v3 = vld [vmem:[%s24596_s4 + $0x3b24] ss:$40 sps:$4 sm:$0xff]  }
 0x4f4   : > { %15038 = vmatpush1.bf16.msra.mxu1 %v22629_v2  ;;  %v22677_v2 = vld [vmem:[%s24596_s4 + $0x3b18] ss:$40 sps:$4 sm:$0xff]  }
 0x4f5   : > { %15612 = vmatpush1.bf16.msra.mxu0 %v22632_v8  ;;  %15039 = vmatprep.subr.bf16.mxu1 %v22637_v9  ;;  %v22680_v8 = vld [vmem:[%s24596_s4 + $0x3b20] ss:$40 sps:$4 sm:$0xff]   ;;  %v22685_v9 = vld [vmem:[%s24596_s4 + $0x3b6c] ss:$40 sps:$4 sm:$0xff]  }
 0x4f6   : > { %15613 = vmatprep.subr.bf16.mxu0 %v22640_v10  ;;  %v22688_v10 = vld [vmem:[%s24596_s4 + $0x3b74] ss:$40 sps:$4 sm:$0xff]  }
 0x4f8   : > { %15040 = vmatpush1.bf16.msra.mxu1 %v22635_v13  ;;  %v22683_v13 = vld [vmem:[%s24596_s4 + $0x3b68] ss:$40 sps:$4 sm:$0xff]  }
 0x4f9   : > { %15614 = vmatpush1.bf16.msra.mxu0 %v22638_v14  ;;  %15041 = vmatprep.subr.bf16.mxu1 %v22643_v18  ;;  %v22686_v14 = vld [vmem:[%s24596_s4 + $0x3b70] ss:$40 sps:$4 sm:$0xff]   ;;  %v22691_v18 = vld [vmem:[%s24596_s4 + $0x3bbc] ss:$40 sps:$4 sm:$0xff]  }
 0x4fa   : > { %15615 = vmatprep.subr.bf16.mxu0 %v22646_v19  ;;  %v22694_v19 = vld [vmem:[%s24596_s4 + $0x3bc4] ss:$40 sps:$4 sm:$0xff]  }
 0x4fc   : > { %15042 = vmatpush1.bf16.msra.mxu1 %v22641_v24  ;;  %v22689_v24 = vld [vmem:[%s24596_s4 + $0x3bb8] ss:$40 sps:$4 sm:$0xff]  }
 0x4fd   : > { %15616 = vmatpush1.bf16.msra.mxu0 %v22644_v25  ;;  %15043 = vmatprep.subr.bf16.mxu1 %v22649_v26  ;;  %v22692_v25 = vld [vmem:[%s24596_s4 + $0x3bc0] ss:$40 sps:$4 sm:$0xff]   ;;  %v22697_v26 = vld [vmem:[%s24596_s4 + $0x3c0c] ss:$40 sps:$4 sm:$0xff]  }
 0x4fe   : > { %15617 = vmatprep.subr.bf16.mxu0 %v22652_v29  ;;  %v22700_v29 = vld [vmem:[%s24596_s4 + $0x3c14] ss:$40 sps:$4 sm:$0xff]  }
 0x500   : > { %15044 = vmatpush1.bf16.msra.mxu1 %v22647_v30  ;;  %v22695_v30 = vld [vmem:[%s24596_s4 + $0x3c08] ss:$40 sps:$4 sm:$0xff]  }
 0x501   : > { %15618 = vmatpush1.bf16.msra.mxu0 %v22650_v31  ;;  %15045 = vmatprep.subr.bf16.mxu1 %v22655_v32  ;;  %v22698_v31 = vld [vmem:[%s24596_s4 + $0x3c10] ss:$40 sps:$4 sm:$0xff]   ;;  %v22703_v32 = vld [vmem:[%s24596_s4 + $0x3c5c] ss:$40 sps:$4 sm:$0xff]  }
 0x502   : > { %15619 = vmatprep.subr.bf16.mxu0 %v22658_v33  ;;  %v22706_v33 = vld [vmem:[%s24596_s4 + $0x3c64] ss:$40 sps:$4 sm:$0xff]  }
 0x504   : > { %15046 = vmatpush1.bf16.msra.mxu1 %v22653_v34  ;;  %v22701_v34 = vld [vmem:[%s24596_s4 + $0x3c58] ss:$40 sps:$4 sm:$0xff]  }
 0x505   : > { %15620 = vmatpush1.bf16.msra.mxu0 %v22656_v37  ;;  %15047 = vmatprep.subr.bf16.mxu1 %v22661_v38  ;;  %v22704_v37 = vld [vmem:[%s24596_s4 + $0x3c60] ss:$40 sps:$4 sm:$0xff]   ;;  %v22709_v38 = vld [vmem:[%s24596_s4 + $0x3cac] ss:$40 sps:$4 sm:$0xff]  }
 0x506   : > { %15621 = vmatprep.subr.bf16.mxu0 %v22664_v39  ;;  %v22712_v39 = vld [vmem:[%s24596_s4 + $0x3cb4] ss:$40 sps:$4 sm:$0xff]  }
 0x508   : > { %15048 = vmatpush1.bf16.msra.mxu1 %v22659_v62  ;;  %v22707_v62 = vld [vmem:[%s24596_s4 + $0x3ca8] ss:$40 sps:$4 sm:$0xff]  }
 0x509   : > { %15622 = vmatpush1.bf16.msra.mxu0 %v22662_v44  ;;  %15049 = vmatprep.subr.bf16.mxu1 %v22667_v49  ;;  %v22710_v44 = vld [vmem:[%s24596_s4 + $0x3cb0] ss:$40 sps:$4 sm:$0xff]   ;;  %v22715_v49 = vld [vmem:[%s24596_s4 + $0x3cfc] ss:$40 sps:$4 sm:$0xff]  }
 0x50a   : > { %15623 = vmatprep.subr.bf16.mxu0 %v22670_v51  ;;  %v22718_v51 = vld [vmem:[%s24596_s4 + $0x3d04] ss:$40 sps:$4 sm:$0xff]  }
 0x50c   : > { %15050 = vmatpush1.bf16.msra.mxu1 %v22665_v52  ;;  %v22713_v52 = vld [vmem:[%s24596_s4 + $0x3cf8] ss:$40 sps:$4 sm:$0xff]  }
 0x50d   : > { %15624 = vmatpush1.bf16.msra.mxu0 %v22668_v55  ;;  %15051 = vmatprep.subr.bf16.mxu1 %v22673_v56  ;;  %v22716_v55 = vld [vmem:[%s24596_s4 + $0x3d00] ss:$40 sps:$4 sm:$0xff]   ;;  %v22721_v56 = vld [vmem:[%s24596_s4 + $0x3d4c] ss:$40 sps:$4 sm:$0xff]  }
 0x50e   : > { %15625 = vmatprep.subr.bf16.mxu0 %v22676_v57  ;;  %v22724_v57 = vld [vmem:[%s24596_s4 + $0x3d54] ss:$40 sps:$4 sm:$0xff]  }
 0x510   : > { %15052 = vmatpush1.bf16.msra.mxu1 %v22671_v58  ;;  %v22719_v58 = vld [vmem:[%s24596_s4 + $0x3d48] ss:$40 sps:$4 sm:$0xff]  }
 0x511   : > { %15626 = vmatpush1.bf16.msra.mxu0 %v22674_v0  ;;  %15053 = vmatprep.subr.bf16.mxu1 %v22679_v1  ;;  %v22722_v0 = vld [vmem:[%s24596_s4 + $0x3d50] ss:$40 sps:$4 sm:$0xff]   ;;  %v22727_v1 = vld [vmem:[%s24596_s4 + $0x3d9c] ss:$40 sps:$4 sm:$0xff]  }
 0x512   : > { %15627 = vmatprep.subr.bf16.mxu0 %v22682_v3  ;;  %v22730_v3 = vld [vmem:[%s24596_s4 + $0x3da4] ss:$40 sps:$4 sm:$0xff]  }
 0x514   : > { %15054 = vmatpush1.bf16.msra.mxu1 %v22677_v2  ;;  %v22725_v2 = vld [vmem:[%s24596_s4 + $0x3d98] ss:$40 sps:$4 sm:$0xff]  }
 0x515   : > { %15628 = vmatpush1.bf16.msra.mxu0 %v22680_v8  ;;  %15055 = vmatprep.subr.bf16.mxu1 %v22685_v9  ;;  %v22728_v8 = vld [vmem:[%s24596_s4 + $0x3da0] ss:$40 sps:$4 sm:$0xff]   ;;  %v22733_v9 = vld [vmem:[%s24596_s4 + $0x3dec] ss:$40 sps:$4 sm:$0xff]  }
 0x516   : > { %15629 = vmatprep.subr.bf16.mxu0 %v22688_v10  ;;  %v22736_v10 = vld [vmem:[%s24596_s4 + $0x3df4] ss:$40 sps:$4 sm:$0xff]  }
 0x518   : > { %15056 = vmatpush1.bf16.msra.mxu1 %v22683_v13  ;;  %v22731_v13 = vld [vmem:[%s24596_s4 + $0x3de8] ss:$40 sps:$4 sm:$0xff]  }
 0x519   : > { %15630 = vmatpush1.bf16.msra.mxu0 %v22686_v14  ;;  %15057 = vmatprep.subr.bf16.mxu1 %v22691_v18  ;;  %v22734_v14 = vld [vmem:[%s24596_s4 + $0x3df0] ss:$40 sps:$4 sm:$0xff]   ;;  %v22739_v18 = vld [vmem:[%s24596_s4 + $0x3e3c] ss:$40 sps:$4 sm:$0xff]  }
 0x51a   : > { %15631 = vmatprep.subr.bf16.mxu0 %v22694_v19  ;;  %v22742_v19 = vld [vmem:[%s24596_s4 + $0x3e44] ss:$40 sps:$4 sm:$0xff]  }
 0x51c   : > { %15058 = vmatpush1.bf16.msra.mxu1 %v22689_v24  ;;  %v22737_v24 = vld [vmem:[%s24596_s4 + $0x3e38] ss:$40 sps:$4 sm:$0xff]  }
 0x51d   : > { %15632 = vmatpush1.bf16.msra.mxu0 %v22692_v25  ;;  %15068 = vmatprep.subr.bf16.mxu1 %v22697_v26  ;;  %v22740_v25 = vld [vmem:[%s24596_s4 + $0x3e40] ss:$40 sps:$4 sm:$0xff]   ;;  %v22745_v26 = vld [vmem:[%s24596_s4 + $0x3e8c] ss:$40 sps:$4 sm:$0xff]  }
 0x51e   : > { %15642 = vmatprep.subr.bf16.mxu0 %v22700_v29  ;;  %v22748_v29 = vld [vmem:[%s24596_s4 + $0x3e94] ss:$40 sps:$4 sm:$0xff]  }
 0x51f   : > { %15060 = vmatmul.mubr.bf16.vlgmr.msra.gmra.mrb[4].mxu1 %v25098_v17 }
 0x520   : > { %15634 = vmatmul.mubr.bf16.vlgmr.msra.gmra.mrb[4].mxu0 %v25098_v17  ;;  %15069 = vmatpush1.bf16.msra.mxu1 %v22695_v30  ;;  %v22743_v30 = vld [vmem:[%s24596_s4 + $0x3e88] ss:$40 sps:$4 sm:$0xff]  }
 0x521   : > { %15643 = vmatpush1.bf16.msra.mxu0 %v22698_v31  ;;  %15070 = vmatprep.subr.bf16.mxu1 %v22703_v32  ;;  %v22746_v31 = vld [vmem:[%s24596_s4 + $0x3e90] ss:$40 sps:$4 sm:$0xff]   ;;  %v22751_v32 = vld [vmem:[%s24596_s4 + $0x3edc] ss:$40 sps:$4 sm:$0xff]  }
 0x522   : > { %15644 = vmatprep.subr.bf16.mxu0 %v22706_v33  ;;  %15100 = vmatprep.mubr.bf16.mxu1 %v25107_v28  ;;  %v22754_v33 = vld [vmem:[%s24596_s4 + $0x3ee4] ss:$40 sps:$4 sm:$0xff]  }
 0x523   : > { %15674 = vmatprep.mubr.bf16.mxu0 %v25107_v28 }
 0x524   : > { %15071 = vmatpush1.bf16.msra.mxu1 %v22701_v34  ;;  %v22749_v34 = vld [vmem:[%s24596_s4 + $0x3ed8] ss:$40 sps:$4 sm:$0xff]  }
 0x525   : > { %15645 = vmatpush1.bf16.msra.mxu0 %v22704_v37  ;;  %15072 = vmatprep.subr.bf16.mxu1 %v22709_v38  ;;  %v22752_v37 = vld [vmem:[%s24596_s4 + $0x3ee0] ss:$40 sps:$4 sm:$0xff]   ;;  %v22757_v38 = vld [vmem:[%s24596_s4 + $0x3f2c] ss:$40 sps:$4 sm:$0xff]  }
 0x526   : > { %15646 = vmatprep.subr.bf16.mxu0 %v22712_v39  ;;  %v22760_v39 = vld [vmem:[%s24596_s4 + $0x3f34] ss:$40 sps:$4 sm:$0xff]  }
 0x528   : > { %15073 = vmatpush1.bf16.msra.mxu1 %v22707_v62  ;;  %v22755_v62 = vld [vmem:[%s24596_s4 + $0x3f28] ss:$40 sps:$4 sm:$0xff]  }
 0x529   : > { %15647 = vmatpush1.bf16.msra.mxu0 %v22710_v44  ;;  %15074 = vmatprep.subr.bf16.mxu1 %v22715_v49  ;;  %v22758_v44 = vld [vmem:[%s24596_s4 + $0x3f30] ss:$40 sps:$4 sm:$0xff]   ;;  %v22763_v49 = vld [vmem:[%s24596_s4 + $0x3f7c] ss:$40 sps:$4 sm:$0xff]  }
 0x52a   : > { %15648 = vmatprep.subr.bf16.mxu0 %v22718_v51  ;;  %v22766_v51 = vld [vmem:[%s24596_s4 + $0x3f84] ss:$40 sps:$4 sm:$0xff]  }
 0x52c   : > { %15075 = vmatpush1.bf16.msra.mxu1 %v22713_v52  ;;  %v22761_v52 = vld [vmem:[%s24596_s4 + $0x3f78] ss:$40 sps:$4 sm:$0xff]  }
 0x52d   : > { %15649 = vmatpush1.bf16.msra.mxu0 %v22716_v55  ;;  %15076 = vmatprep.subr.bf16.mxu1 %v22721_v56  ;;  %v22764_v55 = vld [vmem:[%s24596_s4 + $0x3f80] ss:$40 sps:$4 sm:$0xff]   ;;  %v22769_v56 = vld [vmem:[%s24596_s4 + $0x3fcc] ss:$40 sps:$4 sm:$0xff]  }
 0x52e   : > { %15650 = vmatprep.subr.bf16.mxu0 %v22724_v57  ;;  %v22772_v57 = vld [vmem:[%s24596_s4 + $0x3fd4] ss:$40 sps:$4 sm:$0xff]  }
 0x530   : > { %15077 = vmatpush1.bf16.msra.mxu1 %v22719_v58  ;;  %v22767_v58 = vld [vmem:[%s24596_s4 + $0x3fc8] ss:$40 sps:$4 sm:$0xff]  }
 0x531   : > { %15651 = vmatpush1.bf16.msra.mxu0 %v22722_v0  ;;  %15078 = vmatprep.subr.bf16.mxu1 %v22727_v1  ;;  %v22770_v0 = vld [vmem:[%s24596_s4 + $0x3fd0] ss:$40 sps:$4 sm:$0xff]   ;;  %v22775_v1 = vld [vmem:[%s24596_s4 + $0x401c] ss:$40 sps:$4 sm:$0xff]  }
 0x532   : > { %15652 = vmatprep.subr.bf16.mxu0 %v22730_v3  ;;  %v22778_v3 = vld [vmem:[%s24596_s4 + $0x4024] ss:$40 sps:$4 sm:$0xff]  }
 0x534   : > { %15079 = vmatpush1.bf16.msra.mxu1 %v22725_v2  ;;  %v22773_v2 = vld [vmem:[%s24596_s4 + $0x4018] ss:$40 sps:$4 sm:$0xff]  }
 0x535   : > { %15653 = vmatpush1.bf16.msra.mxu0 %v22728_v8  ;;  %15080 = vmatprep.subr.bf16.mxu1 %v22733_v9  ;;  %v22776_v8 = vld [vmem:[%s24596_s4 + $0x4020] ss:$40 sps:$4 sm:$0xff]   ;;  %v22781_v9 = vld [vmem:[%s24596_s4 + $0x406c] ss:$40 sps:$4 sm:$0xff]  }
 0x536   : > { %15654 = vmatprep.subr.bf16.mxu0 %v22736_v10  ;;  %v22784_v10 = vld [vmem:[%s24596_s4 + $0x4074] ss:$40 sps:$4 sm:$0xff]  }
 0x538   : > { %15081 = vmatpush1.bf16.msra.mxu1 %v22731_v13  ;;  %v22779_v13 = vld [vmem:[%s24596_s4 + $0x4068] ss:$40 sps:$4 sm:$0xff]  }
 0x539   : > { %15655 = vmatpush1.bf16.msra.mxu0 %v22734_v14  ;;  %15082 = vmatprep.subr.bf16.mxu1 %v22739_v18  ;;  %v22782_v14 = vld [vmem:[%s24596_s4 + $0x4070] ss:$40 sps:$4 sm:$0xff]   ;;  %v22787_v18 = vld [vmem:[%s24596_s4 + $0x40bc] ss:$40 sps:$4 sm:$0xff]  }
 0x53a   : > { %15656 = vmatprep.subr.bf16.mxu0 %v22742_v19  ;;  %v22790_v19 = vld [vmem:[%s24596_s4 + $0x40c4] ss:$40 sps:$4 sm:$0xff]  }
 0x53c   : > { %15083 = vmatpush1.bf16.msra.mxu1 %v22737_v24  ;;  %v22785_v24 = vld [vmem:[%s24596_s4 + $0x40b8] ss:$40 sps:$4 sm:$0xff]  }
 0x53d   : > { %15657 = vmatpush1.bf16.msra.mxu0 %v22740_v25  ;;  %15084 = vmatprep.subr.bf16.mxu1 %v22745_v26  ;;  %v22788_v25 = vld [vmem:[%s24596_s4 + $0x40c0] ss:$40 sps:$4 sm:$0xff]   ;;  %v22793_v26 = vld [vmem:[%s24596_s4 + $0x410c] ss:$40 sps:$4 sm:$0xff]  }
 0x53e   : > { %15658 = vmatprep.subr.bf16.mxu0 %v22748_v29  ;;  %v22796_v29 = vld [vmem:[%s24596_s4 + $0x4114] ss:$40 sps:$4 sm:$0xff]  }
 0x540   : > { %15085 = vmatpush1.bf16.msra.mxu1 %v22743_v30  ;;  %v22791_v30 = vld [vmem:[%s24596_s4 + $0x4108] ss:$40 sps:$4 sm:$0xff]  }
 0x541   : > { %15659 = vmatpush1.bf16.msra.mxu0 %v22746_v31  ;;  %15086 = vmatprep.subr.bf16.mxu1 %v22751_v32  ;;  %v22794_v31 = vld [vmem:[%s24596_s4 + $0x4110] ss:$40 sps:$4 sm:$0xff]   ;;  %v22799_v32 = vld [vmem:[%s24596_s4 + $0x415c] ss:$40 sps:$4 sm:$0xff]  }
 0x542   : > { %15660 = vmatprep.subr.bf16.mxu0 %v22754_v33  ;;  %v22802_v33 = vld [vmem:[%s24596_s4 + $0x4164] ss:$40 sps:$4 sm:$0xff]  }
 0x544   : > { %15087 = vmatpush1.bf16.msra.mxu1 %v22749_v34  ;;  %v22797_v34 = vld [vmem:[%s24596_s4 + $0x4158] ss:$40 sps:$4 sm:$0xff]  }
 0x545   : > { %15661 = vmatpush1.bf16.msra.mxu0 %v22752_v37  ;;  %15088 = vmatprep.subr.bf16.mxu1 %v22757_v38  ;;  %v22800_v37 = vld [vmem:[%s24596_s4 + $0x4160] ss:$40 sps:$4 sm:$0xff]   ;;  %v22805_v38 = vld [vmem:[%s24596_s4 + $0x41ac] ss:$40 sps:$4 sm:$0xff]  }
 0x546   : > { %15662 = vmatprep.subr.bf16.mxu0 %v22760_v39  ;;  %v22808_v39 = vld [vmem:[%s24596_s4 + $0x41b4] ss:$40 sps:$4 sm:$0xff]  }
 0x548   : > { %15089 = vmatpush1.bf16.msra.mxu1 %v22755_v62  ;;  %v22803_v62 = vld [vmem:[%s24596_s4 + $0x41a8] ss:$40 sps:$4 sm:$0xff]  }
 0x549   : > { %15663 = vmatpush1.bf16.msra.mxu0 %v22758_v44  ;;  %15090 = vmatprep.subr.bf16.mxu1 %v22763_v49  ;;  %v22806_v44 = vld [vmem:[%s24596_s4 + $0x41b0] ss:$40 sps:$4 sm:$0xff]   ;;  %v22811_v49 = vld [vmem:[%s24596_s4 + $0x41fc] ss:$40 sps:$4 sm:$0xff]  }
 0x54a   : > { %15664 = vmatprep.subr.bf16.mxu0 %v22766_v51  ;;  %v22814_v51 = vld [vmem:[%s24596_s4 + $0x4204] ss:$40 sps:$4 sm:$0xff]  }
 0x54c   : > { %15091 = vmatpush1.bf16.msra.mxu1 %v22761_v52  ;;  %v22809_v52 = vld [vmem:[%s24596_s4 + $0x41f8] ss:$40 sps:$4 sm:$0xff]  }
 0x54d   : > { %15665 = vmatpush1.bf16.msra.mxu0 %v22764_v55  ;;  %15092 = vmatprep.subr.bf16.mxu1 %v22769_v56  ;;  %v22812_v55 = vld [vmem:[%s24596_s4 + $0x4200] ss:$40 sps:$4 sm:$0xff]   ;;  %v22817_v56 = vld [vmem:[%s24596_s4 + $0x424c] ss:$40 sps:$4 sm:$0xff]  }
 0x54e   : > { %15666 = vmatprep.subr.bf16.mxu0 %v22772_v57  ;;  %v22820_v57 = vld [vmem:[%s24596_s4 + $0x4254] ss:$40 sps:$4 sm:$0xff]  }
 0x550   : > { %15093 = vmatpush1.bf16.msra.mxu1 %v22767_v58  ;;  %v22815_v58 = vld [vmem:[%s24596_s4 + $0x4248] ss:$40 sps:$4 sm:$0xff]  }
 0x551   : > { %15667 = vmatpush1.bf16.msra.mxu0 %v22770_v0  ;;  %15094 = vmatprep.subr.bf16.mxu1 %v22775_v1  ;;  %v22818_v0 = vld [vmem:[%s24596_s4 + $0x4250] ss:$40 sps:$4 sm:$0xff]   ;;  %v22823_v1 = vld [vmem:[%s24596_s4 + $0x429c] ss:$40 sps:$4 sm:$0xff]  }
 0x552   : > { %15668 = vmatprep.subr.bf16.mxu0 %v22778_v3  ;;  %v22826_v3 = vld [vmem:[%s24596_s4 + $0x42a4] ss:$40 sps:$4 sm:$0xff]  }
 0x554   : > { %15095 = vmatpush1.bf16.msra.mxu1 %v22773_v2  ;;  %v22821_v2 = vld [vmem:[%s24596_s4 + $0x4298] ss:$40 sps:$4 sm:$0xff]  }
 0x555   : > { %15669 = vmatpush1.bf16.msra.mxu0 %v22776_v8  ;;  %15096 = vmatprep.subr.bf16.mxu1 %v22781_v9  ;;  %v22824_v8 = vld [vmem:[%s24596_s4 + $0x42a0] ss:$40 sps:$4 sm:$0xff]   ;;  %v22829_v9 = vld [vmem:[%s24596_s4 + $0x42ec] ss:$40 sps:$4 sm:$0xff]  }
 0x556   : > { %15670 = vmatprep.subr.bf16.mxu0 %v22784_v10  ;;  %v22832_v10 = vld [vmem:[%s24596_s4 + $0x42f4] ss:$40 sps:$4 sm:$0xff]  }
 0x558   : > { %15097 = vmatpush1.bf16.msra.mxu1 %v22779_v13  ;;  %v22827_v13 = vld [vmem:[%s24596_s4 + $0x42e8] ss:$40 sps:$4 sm:$0xff]  }
 0x559   : > { %15671 = vmatpush1.bf16.msra.mxu0 %v22782_v14  ;;  %15098 = vmatprep.subr.bf16.mxu1 %v22787_v18  ;;  %v22830_v14 = vld [vmem:[%s24596_s4 + $0x42f0] ss:$40 sps:$4 sm:$0xff]   ;;  %v22835_v18 = vld [vmem:[%s24596_s4 + $0x433c] ss:$40 sps:$4 sm:$0xff]  }
 0x55a   : > { %15672 = vmatprep.subr.bf16.mxu0 %v22790_v19  ;;  %v22838_v19 = vld [vmem:[%s24596_s4 + $0x4344] ss:$40 sps:$4 sm:$0xff]  }
 0x55c   : > { %15099 = vmatpush1.bf16.msra.mxu1 %v22785_v24  ;;  %v22833_v24 = vld [vmem:[%s24596_s4 + $0x4338] ss:$40 sps:$4 sm:$0xff]  }
 0x55d   : > { %15673 = vmatpush1.bf16.msra.mxu0 %v22788_v25  ;;  %15109 = vmatprep.subr.bf16.mxu1 %v22793_v26  ;;  %v22836_v25 = vld [vmem:[%s24596_s4 + $0x4340] ss:$40 sps:$4 sm:$0xff]   ;;  %v22841_v26 = vld [vmem:[%s24596_s4 + $0x438c] ss:$40 sps:$4 sm:$0xff]  }
 0x55e   : > { %15683 = vmatprep.subr.bf16.mxu0 %v22796_v29  ;;  %v22844_v29 = vld [vmem:[%s24596_s4 + $0x4394] ss:$40 sps:$4 sm:$0xff]  }
 0x55f   : > { %15101 = vmatmul.mubr.bf16.vlgmr.msra.gmra.mrb[4].mxu1 %v25179_v60 }
 0x560   : > { %15675 = vmatmul.mubr.bf16.vlgmr.msra.gmra.mrb[4].mxu0 %v25179_v60  ;;  %15110 = vmatpush1.bf16.msra.mxu1 %v22791_v30  ;;  %v22839_v30 = vld [vmem:[%s24596_s4 + $0x4388] ss:$40 sps:$4 sm:$0xff]  }
 0x561   : > { %15684 = vmatpush1.bf16.msra.mxu0 %v22794_v31  ;;  %15111 = vmatprep.subr.bf16.mxu1 %v22799_v32  ;;  %v22842_v31 = vld [vmem:[%s24596_s4 + $0x4390] ss:$40 sps:$4 sm:$0xff]   ;;  %v22847_v32 = vld [vmem:[%s24596_s4 + $0x43dc] ss:$40 sps:$4 sm:$0xff]  }
 0x562   : > { %15685 = vmatprep.subr.bf16.mxu0 %v22802_v33  ;;  %15141 = vmatprep.mubr.bf16.mxu1 %v25187_v4  ;;  %v22850_v33 = vld [vmem:[%s24596_s4 + $0x43e4] ss:$40 sps:$4 sm:$0xff]  }
 0x563   : > { %15715 = vmatprep.mubr.bf16.mxu0 %v25187_v4 }
 0x564   : > { %15112 = vmatpush1.bf16.msra.mxu1 %v22797_v34  ;;  %v22845_v34 = vld [vmem:[%s24596_s4 + $0x43d8] ss:$40 sps:$4 sm:$0xff]  }
 0x565   : > { %15686 = vmatpush1.bf16.msra.mxu0 %v22800_v37  ;;  %15113 = vmatprep.subr.bf16.mxu1 %v22805_v38  ;;  %v22848_v37 = vld [vmem:[%s24596_s4 + $0x43e0] ss:$40 sps:$4 sm:$0xff]   ;;  %v22853_v38 = vld [vmem:[%s24596_s4 + $0x442c] ss:$40 sps:$4 sm:$0xff]  }
 0x566   : > { %15687 = vmatprep.subr.bf16.mxu0 %v22808_v39  ;;  %v22856_v39 = vld [vmem:[%s24596_s4 + $0x4434] ss:$40 sps:$4 sm:$0xff]  }
 0x568   : > { %15114 = vmatpush1.bf16.msra.mxu1 %v22803_v62  ;;  %v22851_v62 = vld [vmem:[%s24596_s4 + $0x4428] ss:$40 sps:$4 sm:$0xff]  }
 0x569   : > { %15688 = vmatpush1.bf16.msra.mxu0 %v22806_v44  ;;  %15115 = vmatprep.subr.bf16.mxu1 %v22811_v49  ;;  %v22854_v44 = vld [vmem:[%s24596_s4 + $0x4430] ss:$40 sps:$4 sm:$0xff]   ;;  %v22859_v49 = vld [vmem:[%s24596_s4 + $0x447c] ss:$40 sps:$4 sm:$0xff]  }
 0x56a   : > { %15689 = vmatprep.subr.bf16.mxu0 %v22814_v51  ;;  %v22862_v51 = vld [vmem:[%s24596_s4 + $0x4484] ss:$40 sps:$4 sm:$0xff]  }
 0x56c   : > { %15116 = vmatpush1.bf16.msra.mxu1 %v22809_v52  ;;  %v22857_v52 = vld [vmem:[%s24596_s4 + $0x4478] ss:$40 sps:$4 sm:$0xff]  }
 0x56d   : > { %15690 = vmatpush1.bf16.msra.mxu0 %v22812_v55  ;;  %15117 = vmatprep.subr.bf16.mxu1 %v22817_v56  ;;  %v22860_v55 = vld [vmem:[%s24596_s4 + $0x4480] ss:$40 sps:$4 sm:$0xff]   ;;  %v22865_v56 = vld [vmem:[%s24596_s4 + $0x44cc] ss:$40 sps:$4 sm:$0xff]  }
 0x56e   : > { %15691 = vmatprep.subr.bf16.mxu0 %v22820_v57  ;;  %v22868_v57 = vld [vmem:[%s24596_s4 + $0x44d4] ss:$40 sps:$4 sm:$0xff]  }
 0x570   : > { %15118 = vmatpush1.bf16.msra.mxu1 %v22815_v58  ;;  %v22863_v58 = vld [vmem:[%s24596_s4 + $0x44c8] ss:$40 sps:$4 sm:$0xff]  }
 0x571   : > { %15692 = vmatpush1.bf16.msra.mxu0 %v22818_v0  ;;  %15119 = vmatprep.subr.bf16.mxu1 %v22823_v1  ;;  %v22866_v0 = vld [vmem:[%s24596_s4 + $0x44d0] ss:$40 sps:$4 sm:$0xff]   ;;  %v22871_v1 = vld [vmem:[%s24596_s4 + $0x451c] ss:$40 sps:$4 sm:$0xff]  }
 0x572   : > { %15693 = vmatprep.subr.bf16.mxu0 %v22826_v3  ;;  %v22874_v3 = vld [vmem:[%s24596_s4 + $0x4524] ss:$40 sps:$4 sm:$0xff]  }
 0x574   : > { %15120 = vmatpush1.bf16.msra.mxu1 %v22821_v2  ;;  %v22869_v2 = vld [vmem:[%s24596_s4 + $0x4518] ss:$40 sps:$4 sm:$0xff]  }
 0x575   : > { %15694 = vmatpush1.bf16.msra.mxu0 %v22824_v8  ;;  %15121 = vmatprep.subr.bf16.mxu1 %v22829_v9  ;;  %v22872_v8 = vld [vmem:[%s24596_s4 + $0x4520] ss:$40 sps:$4 sm:$0xff]   ;;  %v22877_v9 = vld [vmem:[%s24596_s4 + $0x456c] ss:$40 sps:$4 sm:$0xff]  }
 0x576   : > { %15695 = vmatprep.subr.bf16.mxu0 %v22832_v10  ;;  %v22880_v10 = vld [vmem:[%s24596_s4 + $0x4574] ss:$40 sps:$4 sm:$0xff]  }
 0x578   : > { %15122 = vmatpush1.bf16.msra.mxu1 %v22827_v13  ;;  %v22875_v13 = vld [vmem:[%s24596_s4 + $0x4568] ss:$40 sps:$4 sm:$0xff]  }
 0x579   : > { %15696 = vmatpush1.bf16.msra.mxu0 %v22830_v14  ;;  %15123 = vmatprep.subr.bf16.mxu1 %v22835_v18  ;;  %v22878_v14 = vld [vmem:[%s24596_s4 + $0x4570] ss:$40 sps:$4 sm:$0xff]   ;;  %v22883_v18 = vld [vmem:[%s24596_s4 + $0x45bc] ss:$40 sps:$4 sm:$0xff]  }
 0x57a   : > { %15697 = vmatprep.subr.bf16.mxu0 %v22838_v19  ;;  %v22886_v19 = vld [vmem:[%s24596_s4 + $0x45c4] ss:$40 sps:$4 sm:$0xff]  }
 0x57c   : > { %15124 = vmatpush1.bf16.msra.mxu1 %v22833_v24  ;;  %v22881_v24 = vld [vmem:[%s24596_s4 + $0x45b8] ss:$40 sps:$4 sm:$0xff]  }
 0x57d   : > { %15698 = vmatpush1.bf16.msra.mxu0 %v22836_v25  ;;  %15125 = vmatprep.subr.bf16.mxu1 %v22841_v26  ;;  %v22884_v25 = vld [vmem:[%s24596_s4 + $0x45c0] ss:$40 sps:$4 sm:$0xff]   ;;  %v22889_v26 = vld [vmem:[%s24596_s4 + $0x1c] ss:$40 sps:$4 sm:$0xff]  }
 0x57e   : > { %15699 = vmatprep.subr.bf16.mxu0 %v22844_v29  ;;  %v22892_v29 = vld [vmem:[%s24596_s4 + $0x24] ss:$40 sps:$4 sm:$0xff]  }
 0x580   : > { %15126 = vmatpush1.bf16.msra.mxu1 %v22839_v30  ;;  %v22887_v30 = vld [vmem:[%s24596_s4 + $0x18] ss:$40 sps:$4 sm:$0xff]  }
 0x581   : > { %15700 = vmatpush1.bf16.msra.mxu0 %v22842_v31  ;;  %15127 = vmatprep.subr.bf16.mxu1 %v22847_v32  ;;  %v22890_v31 = vld [vmem:[%s24596_s4 + $0x20] ss:$40 sps:$4 sm:$0xff]   ;;  %v22895_v32 = vld [vmem:[%s24596_s4 + $0x6c] ss:$40 sps:$4 sm:$0xff]  }
 0x582   : > { %15701 = vmatprep.subr.bf16.mxu0 %v22850_v33  ;;  %v22898_v33 = vld [vmem:[%s24596_s4 + $0x74] ss:$40 sps:$4 sm:$0xff]  }
 0x584   : > { %15128 = vmatpush1.bf16.msra.mxu1 %v22845_v34  ;;  %v22893_v34 = vld [vmem:[%s24596_s4 + $0x68] ss:$40 sps:$4 sm:$0xff]  }
 0x585   : > { %15702 = vmatpush1.bf16.msra.mxu0 %v22848_v37  ;;  %15129 = vmatprep.subr.bf16.mxu1 %v22853_v38  ;;  %v22896_v37 = vld [vmem:[%s24596_s4 + $0x70] ss:$40 sps:$4 sm:$0xff]   ;;  %v22901_v38 = vld [vmem:[%s24596_s4 + $0xbc] ss:$40 sps:$4 sm:$0xff]  }
 0x586   : > { %15703 = vmatprep.subr.bf16.mxu0 %v22856_v39  ;;  %v22904_v39 = vld [vmem:[%s24596_s4 + $0xc4] ss:$40 sps:$4 sm:$0xff]  }
 0x588   : > { %15130 = vmatpush1.bf16.msra.mxu1 %v22851_v62  ;;  %v22899_v62 = vld [vmem:[%s24596_s4 + $0xb8] ss:$40 sps:$4 sm:$0xff]  }
 0x589   : > { %15704 = vmatpush1.bf16.msra.mxu0 %v22854_v44  ;;  %15131 = vmatprep.subr.bf16.mxu1 %v22859_v49  ;;  %v22902_v44 = vld [vmem:[%s24596_s4 + $0xc0] ss:$40 sps:$4 sm:$0xff]   ;;  %v22907_v49 = vld [vmem:[%s24596_s4 + $0x10c] ss:$40 sps:$4 sm:$0xff]  }
 0x58a   : > { %15705 = vmatprep.subr.bf16.mxu0 %v22862_v51  ;;  %v22910_v51 = vld [vmem:[%s24596_s4 + $0x114] ss:$40 sps:$4 sm:$0xff]  }
 0x58c   : > { %15132 = vmatpush1.bf16.msra.mxu1 %v22857_v52  ;;  %v22905_v52 = vld [vmem:[%s24596_s4 + $0x108] ss:$40 sps:$4 sm:$0xff]  }
 0x58d   : > { %15706 = vmatpush1.bf16.msra.mxu0 %v22860_v55  ;;  %15133 = vmatprep.subr.bf16.mxu1 %v22865_v56  ;;  %v22908_v55 = vld [vmem:[%s24596_s4 + $0x110] ss:$40 sps:$4 sm:$0xff]   ;;  %v22916_v56 = vld [vmem:[%s24596_s4 + $0x164] ss:$40 sps:$4 sm:$0xff]  }
 0x58e   : > { %15707 = vmatprep.subr.bf16.mxu0 %v22868_v57  ;;  %v22911_v57 = vld [vmem:[%s24596_s4 + $0x158] ss:$40 sps:$4 sm:$0xff]  }
 0x590   : > { %15134 = vmatpush1.bf16.msra.mxu1 %v22863_v58  ;;  %v22914_v58 = vld [vmem:[%s24596_s4 + $0x160] ss:$40 sps:$4 sm:$0xff]  }
 0x591   : > { %15708 = vmatpush1.bf16.msra.mxu0 %v22866_v0  ;;  %15135 = vmatprep.subr.bf16.mxu1 %v22871_v1  ;;  %v22919_v0 = vld [vmem:[%s24596_s4 + $0x1ac] ss:$40 sps:$4 sm:$0xff]  }
 0x592   : > { %15709 = vmatprep.subr.bf16.mxu0 %v22874_v3  ;;  %v22922_v1 = vld [vmem:[%s24596_s4 + $0x1b4] ss:$40 sps:$4 sm:$0xff]   ;;  %v22917_v3 = vld [vmem:[%s24596_s4 + $0x1a8] ss:$40 sps:$4 sm:$0xff]  }
 0x594   : > { %15136 = vmatpush1.bf16.msra.mxu1 %v22869_v2  ;;  %v22920_v2 = vld [vmem:[%s24596_s4 + $0x1b0] ss:$40 sps:$4 sm:$0xff]  }
 0x595   : > { %15710 = vmatpush1.bf16.msra.mxu0 %v22872_v8  ;;  %15137 = vmatprep.subr.bf16.mxu1 %v22877_v9  ;;  %v22925_v8 = vld [vmem:[%s24596_s4 + $0x1fc] ss:$40 sps:$4 sm:$0xff]  }
 0x596   : > { %15711 = vmatprep.subr.bf16.mxu0 %v22880_v10  ;;  %v22928_v9 = vld [vmem:[%s24596_s4 + $0x204] ss:$40 sps:$4 sm:$0xff]   ;;  %v22923_v10 = vld [vmem:[%s24596_s4 + $0x1f8] ss:$40 sps:$4 sm:$0xff]  }
 0x598   : > { %15138 = vmatpush1.bf16.msra.mxu1 %v22875_v13  ;;  %v22926_v13 = vld [vmem:[%s24596_s4 + $0x200] ss:$40 sps:$4 sm:$0xff]  }
 0x599   : > { %15712 = vmatpush1.bf16.msra.mxu0 %v22878_v14  ;;  %15139 = vmatprep.subr.bf16.mxu1 %v22883_v18  ;;  %v22931_v14 = vld [vmem:[%s24596_s4 + $0x24c] ss:$40 sps:$4 sm:$0xff]  }
 0x59a   : > { %15713 = vmatprep.subr.bf16.mxu0 %v22886_v19  ;;  %v22934_v18 = vld [vmem:[%s24596_s4 + $0x254] ss:$40 sps:$4 sm:$0xff]   ;;  %v22929_v19 = vld [vmem:[%s24596_s4 + $0x248] ss:$40 sps:$4 sm:$0xff]  }
 0x59c   : > { %15140 = vmatpush1.bf16.msra.mxu1 %v22881_v24  ;;  %v22932_v24 = vld [vmem:[%s24596_s4 + $0x250] ss:$40 sps:$4 sm:$0xff]  }
 0x59d   : > { %15714 = vmatpush1.bf16.msra.mxu0 %v22884_v25  ;;  %15724 = vmatprep.subr.bf16.mxu1 %v22889_v26  ;;  %v22937_v25 = vld [vmem:[%s24596_s4 + $0x29c] ss:$40 sps:$4 sm:$0xff]  }
 0x59e   : > { %16298 = vmatprep.subr.bf16.mxu0 %v22892_v29  ;;  %v22940_v26 = vld [vmem:[%s24596_s4 + $0x2a4] ss:$40 sps:$4 sm:$0xff]   ;;  %v22935_v29 = vld [vmem:[%s24596_s4 + $0x298] ss:$40 sps:$4 sm:$0xff]  }
 0x59f   : > { %15142 = vmatmul.mubr.bf16.vlgmr.msra.gmra.mrb[4].mxu1 %v25255_v45 }
 0x5a0   : > { %15716 = vmatmul.mubr.bf16.vlgmr.msra.gmra.mrb[4].mxu0 %v25255_v45  ;;  %15725 = vmatpush1.bf16.msra.mxu1 %v22887_v30  ;;  %v22938_v30 = vld [vmem:[%s24596_s4 + $0x2a0] ss:$40 sps:$4 sm:$0xff]  }
 0x5a1   : > { %16299 = vmatpush1.bf16.msra.mxu0 %v22890_v31  ;;  %15726 = vmatprep.subr.bf16.mxu1 %v22895_v32  ;;  %v22943_v31 = vld [vmem:[%s24596_s4 + $0x2ec] ss:$40 sps:$4 sm:$0xff]  }
 0x5a2   : > { %16300 = vmatprep.subr.bf16.mxu0 %v22898_v33  ;;  %15756 = vmatprep.mubr.bf16.mxu1 %v24695_v63  ;;  %v22946_v32 = vld [vmem:[%s24596_s4 + $0x2f4] ss:$40 sps:$4 sm:$0xff]   ;;  %v22941_v33 = vld [vmem:[%s24596_s4 + $0x2e8] ss:$40 sps:$4 sm:$0xff]  }
 0x5a3   : > { %16330 = vmatprep.mubr.bf16.mxu0 %v24695_v63  ;;  %v22913_v63 = vld [vmem:[%s24596_s4 + $0x15c] ss:$40 sps:$4 sm:$0xff]  }
 0x5a4   : > { %15727 = vmatpush1.bf16.msra.mxu1 %v22893_v34  ;;  %v22944_v34 = vld [vmem:[%s24596_s4 + $0x2f0] ss:$40 sps:$4 sm:$0xff]  }
 0x5a5   : > { %16301 = vmatpush1.bf16.msra.mxu0 %v22896_v37  ;;  %15728 = vmatprep.subr.bf16.mxu1 %v22901_v38  ;;  %v22949_v37 = vld [vmem:[%s24596_s4 + $0x33c] ss:$40 sps:$4 sm:$0xff]  }
 0x5a6   : > { %16302 = vmatprep.subr.bf16.mxu0 %v22904_v39  ;;  %v22952_v38 = vld [vmem:[%s24596_s4 + $0x344] ss:$40 sps:$4 sm:$0xff]   ;;  %v22947_v39 = vld [vmem:[%s24596_s4 + $0x338] ss:$40 sps:$4 sm:$0xff]  }
 0x5a8   : > { %15729 = vmatpush1.bf16.msra.mxu1 %v22899_v62  ;;  %v22950_v62 = vld [vmem:[%s24596_s4 + $0x340] ss:$40 sps:$4 sm:$0xff]  }
 0x5a9   : > { %16303 = vmatpush1.bf16.msra.mxu0 %v22902_v44  ;;  %15730 = vmatprep.subr.bf16.mxu1 %v22907_v49  ;;  %v22955_v44 = vld [vmem:[%s24596_s4 + $0x38c] ss:$40 sps:$4 sm:$0xff]  }
 0x5aa   : > { %16304 = vmatprep.subr.bf16.mxu0 %v22910_v51  ;;  %v22958_v49 = vld [vmem:[%s24596_s4 + $0x394] ss:$40 sps:$4 sm:$0xff]   ;;  %v22953_v51 = vld [vmem:[%s24596_s4 + $0x388] ss:$40 sps:$4 sm:$0xff]  }
 0x5ac   : > { %15731 = vmatpush1.bf16.msra.mxu1 %v22905_v52  ;;  %v22956_v52 = vld [vmem:[%s24596_s4 + $0x390] ss:$40 sps:$4 sm:$0xff]  }
 0x5ad   : > { %16305 = vmatpush1.bf16.msra.mxu0 %v22908_v55  ;;  %15732 = vmatprep.subr.bf16.mxu1 %v22913_v63  ;;  %v22961_v55 = vld [vmem:[%s24596_s4 + $0x3dc] ss:$40 sps:$4 sm:$0xff]  }
 0x5ae   : > { %16306 = vmatprep.subr.bf16.mxu0 %v22916_v56  ;;  %v22964_v63 = vld [vmem:[%s24596_s4 + $0x3e4] ss:$40 sps:$4 sm:$0xff]   ;;  %v22959_v56 = vld [vmem:[%s24596_s4 + $0x3d8] ss:$40 sps:$4 sm:$0xff]  }
 0x5b0   : > { %15733 = vmatpush1.bf16.msra.mxu1 %v22911_v57  ;;  %v22962_v57 = vld [vmem:[%s24596_s4 + $0x3e0] ss:$40 sps:$4 sm:$0xff]  }
 0x5b1   : > { %16307 = vmatpush1.bf16.msra.mxu0 %v22914_v58  ;;  %15734 = vmatprep.subr.bf16.mxu1 %v22919_v0  ;;  %v22967_v58 = vld [vmem:[%s24596_s4 + $0x42c] ss:$40 sps:$4 sm:$0xff]  }
 0x5b2   : > { %16308 = vmatprep.subr.bf16.mxu0 %v22922_v1  ;;  %v22970_v0 = vld [vmem:[%s24596_s4 + $0x434] ss:$40 sps:$4 sm:$0xff]   ;;  %v22965_v1 = vld [vmem:[%s24596_s4 + $0x428] ss:$40 sps:$4 sm:$0xff]  }
 0x5b4   : > { %15735 = vmatpush1.bf16.msra.mxu1 %v22917_v3  ;;  %v22968_v3 = vld [vmem:[%s24596_s4 + $0x430] ss:$40 sps:$4 sm:$0xff]  }
 0x5b5   : > { %16309 = vmatpush1.bf16.msra.mxu0 %v22920_v2  ;;  %15736 = vmatprep.subr.bf16.mxu1 %v22925_v8  ;;  %v22973_v2 = vld [vmem:[%s24596_s4 + $0x47c] ss:$40 sps:$4 sm:$0xff]  }
 0x5b6   : > { %16310 = vmatprep.subr.bf16.mxu0 %v22928_v9  ;;  %v22976_v8 = vld [vmem:[%s24596_s4 + $0x484] ss:$40 sps:$4 sm:$0xff]   ;;  %v22971_v9 = vld [vmem:[%s24596_s4 + $0x478] ss:$40 sps:$4 sm:$0xff]  }
 0x5b8   : > { %15737 = vmatpush1.bf16.msra.mxu1 %v22923_v10  ;;  %v22974_v10 = vld [vmem:[%s24596_s4 + $0x480] ss:$40 sps:$4 sm:$0xff]  }
 0x5b9   : > { %16311 = vmatpush1.bf16.msra.mxu0 %v22926_v13  ;;  %15738 = vmatprep.subr.bf16.mxu1 %v22931_v14  ;;  %v22979_v13 = vld [vmem:[%s24596_s4 + $0x4cc] ss:$40 sps:$4 sm:$0xff]  }
 0x5ba   : > { %16312 = vmatprep.subr.bf16.mxu0 %v22934_v18  ;;  %v22982_v14 = vld [vmem:[%s24596_s4 + $0x4d4] ss:$40 sps:$4 sm:$0xff]   ;;  %v22977_v18 = vld [vmem:[%s24596_s4 + $0x4c8] ss:$40 sps:$4 sm:$0xff]  }
 0x5bc   : > { %15739 = vmatpush1.bf16.msra.mxu1 %v22929_v19  ;;  %v22980_v19 = vld [vmem:[%s24596_s4 + $0x4d0] ss:$40 sps:$4 sm:$0xff]  }
 0x5bd   : > { %16313 = vmatpush1.bf16.msra.mxu0 %v22932_v24  ;;  %15740 = vmatprep.subr.bf16.mxu1 %v22937_v25  ;;  %v22985_v24 = vld [vmem:[%s24596_s4 + $0x51c] ss:$40 sps:$4 sm:$0xff]  }
 0x5be   : > { %16314 = vmatprep.subr.bf16.mxu0 %v22940_v26  ;;  %v22988_v25 = vld [vmem:[%s24596_s4 + $0x524] ss:$40 sps:$4 sm:$0xff]   ;;  %v22983_v26 = vld [vmem:[%s24596_s4 + $0x518] ss:$40 sps:$4 sm:$0xff]  }
 0x5c0   : > { %15741 = vmatpush1.bf16.msra.mxu1 %v22935_v29  ;;  %v22986_v29 = vld [vmem:[%s24596_s4 + $0x520] ss:$40 sps:$4 sm:$0xff]  }
 0x5c1   : > { %16315 = vmatpush1.bf16.msra.mxu0 %v22938_v30  ;;  %15742 = vmatprep.subr.bf16.mxu1 %v22943_v31  ;;  %v22991_v30 = vld [vmem:[%s24596_s4 + $0x56c] ss:$40 sps:$4 sm:$0xff]  }
 0x5c2   : > { %16316 = vmatprep.subr.bf16.mxu0 %v22946_v32  ;;  %v22994_v31 = vld [vmem:[%s24596_s4 + $0x574] ss:$40 sps:$4 sm:$0xff]   ;;  %v22989_v32 = vld [vmem:[%s24596_s4 + $0x568] ss:$40 sps:$4 sm:$0xff]  }
 0x5c4   : > { %15743 = vmatpush1.bf16.msra.mxu1 %v22941_v33  ;;  %v22992_v33 = vld [vmem:[%s24596_s4 + $0x570] ss:$40 sps:$4 sm:$0xff]  }
 0x5c5   : > { %16317 = vmatpush1.bf16.msra.mxu0 %v22944_v34  ;;  %15744 = vmatprep.subr.bf16.mxu1 %v22949_v37  ;;  %v22997_v34 = vld [vmem:[%s24596_s4 + $0x5bc] ss:$40 sps:$4 sm:$0xff]  }
 0x5c6   : > { %16318 = vmatprep.subr.bf16.mxu0 %v22952_v38  ;;  %v23000_v37 = vld [vmem:[%s24596_s4 + $0x5c4] ss:$40 sps:$4 sm:$0xff]   ;;  %v22998_v38 = vld [vmem:[%s24596_s4 + $0x5c0] ss:$40 sps:$4 sm:$0xff]  }
 0x5c8   : > { %15745 = vmatpush1.bf16.msra.mxu1 %v22947_v39  ;;  %v23003_v39 = vld [vmem:[%s24596_s4 + $0x60c] ss:$40 sps:$4 sm:$0xff]  }
 0x5c9   : > { %16319 = vmatpush1.bf16.msra.mxu0 %v22950_v62  ;;  %15746 = vmatprep.subr.bf16.mxu1 %v22955_v44  ;;  %v23006_v62 = vld [vmem:[%s24596_s4 + $0x614] ss:$40 sps:$4 sm:$0xff]   ;;  %v23001_v44 = vld [vmem:[%s24596_s4 + $0x608] ss:$40 sps:$4 sm:$0xff]  }
 0x5ca   : > { %16320 = vmatprep.subr.bf16.mxu0 %v22958_v49  ;;  %v23004_v49 = vld [vmem:[%s24596_s4 + $0x610] ss:$40 sps:$4 sm:$0xff]  }
 0x5cc   : > { %15747 = vmatpush1.bf16.msra.mxu1 %v22953_v51  ;;  %v23012_v51 = vld [vmem:[%s24596_s4 + $0x664] ss:$40 sps:$4 sm:$0xff]  }
 0x5cd   : > { %16321 = vmatpush1.bf16.msra.mxu0 %v22956_v52  ;;  %15748 = vmatprep.subr.bf16.mxu1 %v22961_v55  ;;  %v23007_v52 = vld [vmem:[%s24596_s4 + $0x658] ss:$40 sps:$4 sm:$0xff]  }
 0x5ce   : > { %16322 = vmatprep.subr.bf16.mxu0 %v22964_v63  ;;  %v23010_v55 = vld [vmem:[%s24596_s4 + $0x660] ss:$40 sps:$4 sm:$0xff]   ;;  %v23015_v63 = vld [vmem:[%s24596_s4 + $0x6ac] ss:$40 sps:$4 sm:$0xff]  }
 0x5d0   : > { %15749 = vmatpush1.bf16.msra.mxu1 %v22959_v56  ;;  %v23018_v56 = vld [vmem:[%s24596_s4 + $0x6b4] ss:$40 sps:$4 sm:$0xff]  }
 0x5d1   : > { %16323 = vmatpush1.bf16.msra.mxu0 %v22962_v57  ;;  %15750 = vmatprep.subr.bf16.mxu1 %v22967_v58  ;;  %v23013_v57 = vld [vmem:[%s24596_s4 + $0x6a8] ss:$40 sps:$4 sm:$0xff]  }
 0x5d2   : > { %16324 = vmatprep.subr.bf16.mxu0 %v22970_v0  ;;  %v23016_v58 = vld [vmem:[%s24596_s4 + $0x6b0] ss:$40 sps:$4 sm:$0xff]   ;;  %v23021_v0 = vld [vmem:[%s24596_s4 + $0x6fc] ss:$40 sps:$4 sm:$0xff]  }
 0x5d4   : > { %15751 = vmatpush1.bf16.msra.mxu1 %v22965_v1  ;;  %v23024_v1 = vld [vmem:[%s24596_s4 + $0x704] ss:$40 sps:$4 sm:$0xff]  }
 0x5d5   : > { %16325 = vmatpush1.bf16.msra.mxu0 %v22968_v3  ;;  %15752 = vmatprep.subr.bf16.mxu1 %v22973_v2  ;;  %v23019_v3 = vld [vmem:[%s24596_s4 + $0x6f8] ss:$40 sps:$4 sm:$0xff]  }
 0x5d6   : > { %16326 = vmatprep.subr.bf16.mxu0 %v22976_v8  ;;  %v23022_v2 = vld [vmem:[%s24596_s4 + $0x700] ss:$40 sps:$4 sm:$0xff]   ;;  %v23027_v8 = vld [vmem:[%s24596_s4 + $0x74c] ss:$40 sps:$4 sm:$0xff]  }
 0x5d8   : > { %15753 = vmatpush1.bf16.msra.mxu1 %v22971_v9  ;;  %v23030_v9 = vld [vmem:[%s24596_s4 + $0x754] ss:$40 sps:$4 sm:$0xff]  }
 0x5d9   : > { %16327 = vmatpush1.bf16.msra.mxu0 %v22974_v10  ;;  %15754 = vmatprep.subr.bf16.mxu1 %v22979_v13  ;;  %v23025_v10 = vld [vmem:[%s24596_s4 + $0x748] ss:$40 sps:$4 sm:$0xff]  }
 0x5da   : > { %16328 = vmatprep.subr.bf16.mxu0 %v22982_v14  ;;  %v23028_v13 = vld [vmem:[%s24596_s4 + $0x750] ss:$40 sps:$4 sm:$0xff]   ;;  %v23033_v14 = vld [vmem:[%s24596_s4 + $0x79c] ss:$40 sps:$4 sm:$0xff]  }
 0x5dc   : > { %15755 = vmatpush1.bf16.msra.mxu1 %v22977_v18  ;;  %v23036_v18 = vld [vmem:[%s24596_s4 + $0x7a4] ss:$40 sps:$4 sm:$0xff]  }
 0x5dd   : > { %16329 = vmatpush1.bf16.msra.mxu0 %v22980_v19  ;;  %15765 = vmatprep.subr.bf16.mxu1 %v22985_v24  ;;  %v23031_v19 = vld [vmem:[%s24596_s4 + $0x798] ss:$40 sps:$4 sm:$0xff]  }
 0x5de   : > { %16339 = vmatprep.subr.bf16.mxu0 %v22988_v25  ;;  %v23034_v24 = vld [vmem:[%s24596_s4 + $0x7a0] ss:$40 sps:$4 sm:$0xff]   ;;  %v23039_v25 = vld [vmem:[%s24596_s4 + $0x7ec] ss:$40 sps:$4 sm:$0xff]  }
 0x5df   : > { %15757 = vmatmul.mubr.bf16.vlgmr.msra.gmra.mrb[8].mxu1 %v24727_v21 }
 0x5e0   : > { %16331 = vmatmul.mubr.bf16.vlgmr.msra.gmra.mrb[8].mxu0 %v24727_v21  ;;  %15766 = vmatpush1.bf16.msra.mxu1 %v22983_v26  ;;  %v22995_v21 = vld [vmem:[%s24596_s4 + $0x5b8] ss:$40 sps:$4 sm:$0xff]   ;;  %v23042_v26 = vld [vmem:[%s24596_s4 + $0x7f4] ss:$40 sps:$4 sm:$0xff]  }
 0x5e1   : > { %16340 = vmatpush1.bf16.msra.mxu0 %v22986_v29  ;;  %15767 = vmatprep.subr.bf16.mxu1 %v22991_v30  ;;  %v23037_v29 = vld [vmem:[%s24596_s4 + $0x7e8] ss:$40 sps:$4 sm:$0xff]  }
 0x5e2   : > { %16341 = vmatprep.subr.bf16.mxu0 %v22994_v31  ;;  %15797 = vmatprep.mubr.bf16.mxu1 %v24739_v27  ;;  %v23040_v30 = vld [vmem:[%s24596_s4 + $0x7f0] ss:$40 sps:$4 sm:$0xff]   ;;  %v23045_v31 = vld [vmem:[%s24596_s4 + $0x83c] ss:$40 sps:$4 sm:$0xff]  }
 0x5e3   : > { %16371 = vmatprep.mubr.bf16.mxu0 %v24739_v27  ;;  %v23009_v27 = vld [vmem:[%s24596_s4 + $0x65c] ss:$40 sps:$4 sm:$0xff]  }
 0x5e4   : > { %15768 = vmatpush1.bf16.msra.mxu1 %v22989_v32  ;;  %v23048_v32 = vld [vmem:[%s24596_s4 + $0x844] ss:$40 sps:$4 sm:$0xff]  }
 0x5e5   : > { %16342 = vmatpush1.bf16.msra.mxu0 %v22992_v33  ;;  %15769 = vmatprep.subr.bf16.mxu1 %v22997_v34  ;;  %v23043_v33 = vld [vmem:[%s24596_s4 + $0x838] ss:$40 sps:$4 sm:$0xff]  }
 0x5e6   : > { %16343 = vmatprep.subr.bf16.mxu0 %v23000_v37  ;;  %v23046_v34 = vld [vmem:[%s24596_s4 + $0x840] ss:$40 sps:$4 sm:$0xff]   ;;  %v23051_v37 = vld [vmem:[%s24596_s4 + $0x88c] ss:$40 sps:$4 sm:$0xff]  }
 0x5e8   : > { %15770 = vmatpush1.bf16.msra.mxu1 %v22995_v21  ;;  %v23054_v21 = vld [vmem:[%s24596_s4 + $0x894] ss:$40 sps:$4 sm:$0xff]  }
 0x5e9   : > { %16344 = vmatpush1.bf16.msra.mxu0 %v22998_v38  ;;  %15771 = vmatprep.subr.bf16.mxu1 %v23003_v39  ;;  %v23049_v38 = vld [vmem:[%s24596_s4 + $0x888] ss:$40 sps:$4 sm:$0xff]  }
 0x5ea   : > { %16345 = vmatprep.subr.bf16.mxu0 %v23006_v62  ;;  %v23052_v39 = vld [vmem:[%s24596_s4 + $0x890] ss:$40 sps:$4 sm:$0xff]   ;;  %v23057_v62 = vld [vmem:[%s24596_s4 + $0x8dc] ss:$40 sps:$4 sm:$0xff]  }
 0x5ec   : > { %15772 = vmatpush1.bf16.msra.mxu1 %v23001_v44  ;;  %v23060_v44 = vld [vmem:[%s24596_s4 + $0x8e4] ss:$40 sps:$4 sm:$0xff]  }
 0x5ed   : > { %16346 = vmatpush1.bf16.msra.mxu0 %v23004_v49  ;;  %15773 = vmatprep.subr.bf16.mxu1 %v23009_v27  ;;  %v23055_v49 = vld [vmem:[%s24596_s4 + $0x8d8] ss:$40 sps:$4 sm:$0xff]  }
 0x5ee   : > { %16347 = vmatprep.subr.bf16.mxu0 %v23012_v51  ;;  %v23058_v27 = vld [vmem:[%s24596_s4 + $0x8e0] ss:$40 sps:$4 sm:$0xff]   ;;  %v23063_v51 = vld [vmem:[%s24596_s4 + $0x92c] ss:$40 sps:$4 sm:$0xff]  }
 0x5f0   : > { %15774 = vmatpush1.bf16.msra.mxu1 %v23007_v52  ;;  %v23066_v52 = vld [vmem:[%s24596_s4 + $0x934] ss:$40 sps:$4 sm:$0xff]  }
 0x5f1   : > { %16348 = vmatpush1.bf16.msra.mxu0 %v23010_v55  ;;  %15775 = vmatprep.subr.bf16.mxu1 %v23015_v63  ;;  %v23061_v55 = vld [vmem:[%s24596_s4 + $0x928] ss:$40 sps:$4 sm:$0xff]  }
 0x5f2   : > { %16349 = vmatprep.subr.bf16.mxu0 %v23018_v56  ;;  %v23064_v63 = vld [vmem:[%s24596_s4 + $0x930] ss:$40 sps:$4 sm:$0xff]   ;;  %v23069_v56 = vld [vmem:[%s24596_s4 + $0x97c] ss:$40 sps:$4 sm:$0xff]  }
 0x5f4   : > { %15776 = vmatpush1.bf16.msra.mxu1 %v23013_v57  ;;  %v23072_v57 = vld [vmem:[%s24596_s4 + $0x984] ss:$40 sps:$4 sm:$0xff]  }
 0x5f5   : > { %16350 = vmatpush1.bf16.msra.mxu0 %v23016_v58  ;;  %15777 = vmatprep.subr.bf16.mxu1 %v23021_v0  ;;  %v23067_v58 = vld [vmem:[%s24596_s4 + $0x978] ss:$40 sps:$4 sm:$0xff]  }
 0x5f6   : > { %16351 = vmatprep.subr.bf16.mxu0 %v23024_v1  ;;  %v23070_v0 = vld [vmem:[%s24596_s4 + $0x980] ss:$40 sps:$4 sm:$0xff]   ;;  %v23075_v1 = vld [vmem:[%s24596_s4 + $0x9cc] ss:$40 sps:$4 sm:$0xff]  }
 0x5f8   : > { %15778 = vmatpush1.bf16.msra.mxu1 %v23019_v3  ;;  %v23078_v3 = vld [vmem:[%s24596_s4 + $0x9d4] ss:$40 sps:$4 sm:$0xff]  }
 0x5f9   : > { %16352 = vmatpush1.bf16.msra.mxu0 %v23022_v2  ;;  %15779 = vmatprep.subr.bf16.mxu1 %v23027_v8  ;;  %v23073_v2 = vld [vmem:[%s24596_s4 + $0x9c8] ss:$40 sps:$4 sm:$0xff]  }
 0x5fa   : > { %16353 = vmatprep.subr.bf16.mxu0 %v23030_v9  ;;  %v23076_v8 = vld [vmem:[%s24596_s4 + $0x9d0] ss:$40 sps:$4 sm:$0xff]   ;;  %v23081_v9 = vld [vmem:[%s24596_s4 + $0xa1c] ss:$40 sps:$4 sm:$0xff]  }
 0x5fc   : > { %15780 = vmatpush1.bf16.msra.mxu1 %v23025_v10  ;;  %v23084_v10 = vld [vmem:[%s24596_s4 + $0xa24] ss:$40 sps:$4 sm:$0xff]  }
 0x5fd   : > { %16354 = vmatpush1.bf16.msra.mxu0 %v23028_v13  ;;  %15781 = vmatprep.subr.bf16.mxu1 %v23033_v14  ;;  %v23079_v13 = vld [vmem:[%s24596_s4 + $0xa18] ss:$40 sps:$4 sm:$0xff]  }
 0x5fe   : > { %16355 = vmatprep.subr.bf16.mxu0 %v23036_v18  ;;  %v23082_v14 = vld [vmem:[%s24596_s4 + $0xa20] ss:$40 sps:$4 sm:$0xff]   ;;  %v23087_v18 = vld [vmem:[%s24596_s4 + $0xa6c] ss:$40 sps:$4 sm:$0xff]  }
 0x600   : > { %15782 = vmatpush1.bf16.msra.mxu1 %v23031_v19  ;;  %v23090_v19 = vld [vmem:[%s24596_s4 + $0xa74] ss:$40 sps:$4 sm:$0xff]  }
 0x601   : > { %16356 = vmatpush1.bf16.msra.mxu0 %v23034_v24  ;;  %15783 = vmatprep.subr.bf16.mxu1 %v23039_v25  ;;  %v23085_v24 = vld [vmem:[%s24596_s4 + $0xa68] ss:$40 sps:$4 sm:$0xff]  }
 0x602   : > { %16357 = vmatprep.subr.bf16.mxu0 %v23042_v26  ;;  %v23088_v25 = vld [vmem:[%s24596_s4 + $0xa70] ss:$40 sps:$4 sm:$0xff]   ;;  %v23093_v26 = vld [vmem:[%s24596_s4 + $0xabc] ss:$40 sps:$4 sm:$0xff]  }
 0x604   : > { %15784 = vmatpush1.bf16.msra.mxu1 %v23037_v29  ;;  %v23096_v29 = vld [vmem:[%s24596_s4 + $0xac4] ss:$40 sps:$4 sm:$0xff]  }
 0x605   : > { %16358 = vmatpush1.bf16.msra.mxu0 %v23040_v30  ;;  %15785 = vmatprep.subr.bf16.mxu1 %v23045_v31  ;;  %v23094_v30 = vld [vmem:[%s24596_s4 + $0xac0] ss:$40 sps:$4 sm:$0xff]   ;;  %v23099_v31 = vld [vmem:[%s24596_s4 + $0xb0c] ss:$40 sps:$4 sm:$0xff]  }
 0x606   : > { %16359 = vmatprep.subr.bf16.mxu0 %v23048_v32  ;;  %v23102_v32 = vld [vmem:[%s24596_s4 + $0xb14] ss:$40 sps:$4 sm:$0xff]  }
 0x608   : > { %15786 = vmatpush1.bf16.msra.mxu1 %v23043_v33  ;;  %v23097_v33 = vld [vmem:[%s24596_s4 + $0xb08] ss:$40 sps:$4 sm:$0xff]  }
 0x609   : > { %16360 = vmatpush1.bf16.msra.mxu0 %v23046_v34  ;;  %15787 = vmatprep.subr.bf16.mxu1 %v23051_v37  ;;  %v23100_v34 = vld [vmem:[%s24596_s4 + $0xb10] ss:$40 sps:$4 sm:$0xff]   ;;  %v23108_v37 = vld [vmem:[%s24596_s4 + $0xb64] ss:$40 sps:$4 sm:$0xff]  }
 0x60a   : > { %16361 = vmatprep.subr.bf16.mxu0 %v23054_v21  ;;  %v23103_v21 = vld [vmem:[%s24596_s4 + $0xb58] ss:$40 sps:$4 sm:$0xff]  }
 0x60c   : > { %15788 = vmatpush1.bf16.msra.mxu1 %v23049_v38  ;;  %v23106_v38 = vld [vmem:[%s24596_s4 + $0xb60] ss:$40 sps:$4 sm:$0xff]  }
 0x60d   : > { %16362 = vmatpush1.bf16.msra.mxu0 %v23052_v39  ;;  %15789 = vmatprep.subr.bf16.mxu1 %v23057_v62  ;;  %v23111_v39 = vld [vmem:[%s24596_s4 + $0xbac] ss:$40 sps:$4 sm:$0xff]  }
 0x60e   : > { %16363 = vmatprep.subr.bf16.mxu0 %v23060_v44  ;;  %v23114_v62 = vld [vmem:[%s24596_s4 + $0xbb4] ss:$40 sps:$4 sm:$0xff]   ;;  %v23109_v44 = vld [vmem:[%s24596_s4 + $0xba8] ss:$40 sps:$4 sm:$0xff]  }
 0x610   : > { %15790 = vmatpush1.bf16.msra.mxu1 %v23055_v49  ;;  %v23112_v49 = vld [vmem:[%s24596_s4 + $0xbb0] ss:$40 sps:$4 sm:$0xff]  }
 0x611   : > { %16364 = vmatpush1.bf16.msra.mxu0 %v23058_v27  ;;  %15791 = vmatprep.subr.bf16.mxu1 %v23063_v51  ;;  %v23117_v27 = vld [vmem:[%s24596_s4 + $0xbfc] ss:$40 sps:$4 sm:$0xff]  }
 0x612   : > { %16365 = vmatprep.subr.bf16.mxu0 %v23066_v52  ;;  %v23120_v51 = vld [vmem:[%s24596_s4 + $0xc04] ss:$40 sps:$4 sm:$0xff]   ;;  %v23115_v52 = vld [vmem:[%s24596_s4 + $0xbf8] ss:$40 sps:$4 sm:$0xff]  }
 0x614   : > { %15792 = vmatpush1.bf16.msra.mxu1 %v23061_v55  ;;  %v23118_v55 = vld [vmem:[%s24596_s4 + $0xc00] ss:$40 sps:$4 sm:$0xff]  }
 0x615   : > { %16366 = vmatpush1.bf16.msra.mxu0 %v23064_v63  ;;  %15793 = vmatprep.subr.bf16.mxu1 %v23069_v56  ;;  %v23123_v63 = vld [vmem:[%s24596_s4 + $0xc4c] ss:$40 sps:$4 sm:$0xff]  }
 0x616   : > { %16367 = vmatprep.subr.bf16.mxu0 %v23072_v57  ;;  %v23126_v56 = vld [vmem:[%s24596_s4 + $0xc54] ss:$40 sps:$4 sm:$0xff]   ;;  %v23121_v57 = vld [vmem:[%s24596_s4 + $0xc48] ss:$40 sps:$4 sm:$0xff]  }
 0x618   : > { %15794 = vmatpush1.bf16.msra.mxu1 %v23067_v58  ;;  %v23124_v58 = vld [vmem:[%s24596_s4 + $0xc50] ss:$40 sps:$4 sm:$0xff]  }
 0x619   : > { %16368 = vmatpush1.bf16.msra.mxu0 %v23070_v0  ;;  %15795 = vmatprep.subr.bf16.mxu1 %v23075_v1  ;;  %v23129_v0 = vld [vmem:[%s24596_s4 + $0xc9c] ss:$40 sps:$4 sm:$0xff]  }
 0x61a   : > { %16369 = vmatprep.subr.bf16.mxu0 %v23078_v3  ;;  %v23132_v1 = vld [vmem:[%s24596_s4 + $0xca4] ss:$40 sps:$4 sm:$0xff]   ;;  %v23127_v3 = vld [vmem:[%s24596_s4 + $0xc98] ss:$40 sps:$4 sm:$0xff]  }
 0x61c   : > { %15796 = vmatpush1.bf16.msra.mxu1 %v23073_v2  ;;  %v23130_v2 = vld [vmem:[%s24596_s4 + $0xca0] ss:$40 sps:$4 sm:$0xff]  }
 0x61d   : > { %16370 = vmatpush1.bf16.msra.mxu0 %v23076_v8  ;;  %15806 = vmatprep.subr.bf16.mxu1 %v23081_v9  ;;  %v23135_v8 = vld [vmem:[%s24596_s4 + $0xcec] ss:$40 sps:$4 sm:$0xff]  }
 0x61e   : > { %16380 = vmatprep.subr.bf16.mxu0 %v23084_v10  ;;  %v23138_v9 = vld [vmem:[%s24596_s4 + $0xcf4] ss:$40 sps:$4 sm:$0xff]   ;;  %v23133_v10 = vld [vmem:[%s24596_s4 + $0xce8] ss:$40 sps:$4 sm:$0xff]  }
 0x61f   : > { %15798 = vmatmul.mubr.bf16.vlgmr.msra.gmra.mrb[8].mxu1 %v24827_v41 }
 0x620   : > { %16372 = vmatmul.mubr.bf16.vlgmr.msra.gmra.mrb[8].mxu0 %v24827_v41  ;;  %15807 = vmatpush1.bf16.msra.mxu1 %v23079_v13  ;;  %v23091_v41 = vld [vmem:[%s24596_s4 + $0xab8] ss:$40 sps:$4 sm:$0xff]  }
 0x621   : > { %16381 = vmatpush1.bf16.msra.mxu0 %v23082_v14  ;;  %15808 = vmatprep.subr.bf16.mxu1 %v23087_v18  ;;  %v23136_v13 = vld [vmem:[%s24596_s4 + $0xcf0] ss:$40 sps:$4 sm:$0xff]   ;;  %v23141_v14 = vld [vmem:[%s24596_s4 + $0xd3c] ss:$40 sps:$4 sm:$0xff]  }
 0x622   : > { %16382 = vmatprep.subr.bf16.mxu0 %v23090_v19  ;;  %15838 = vmatprep.mubr.bf16.mxu1 %v24837_v46  ;;  %v23144_v18 = vld [vmem:[%s24596_s4 + $0xd44] ss:$40 sps:$4 sm:$0xff]   ;;  %v23139_v19 = vld [vmem:[%s24596_s4 + $0xd38] ss:$40 sps:$4 sm:$0xff]  }
 0x623   : > { %16412 = vmatprep.mubr.bf16.mxu0 %v24837_v46  ;;  %v23105_v46 = vld [vmem:[%s24596_s4 + $0xb5c] ss:$40 sps:$4 sm:$0xff]  }
 0x624   : > { %15809 = vmatpush1.bf16.msra.mxu1 %v23085_v24  ;;  %v23142_v24 = vld [vmem:[%s24596_s4 + $0xd40] ss:$40 sps:$4 sm:$0xff]  }
 0x625   : > { %16383 = vmatpush1.bf16.msra.mxu0 %v23088_v25  ;;  %15810 = vmatprep.subr.bf16.mxu1 %v23093_v26  ;;  %v23147_v25 = vld [vmem:[%s24596_s4 + $0xd8c] ss:$40 sps:$4 sm:$0xff]  }
 0x626   : > { %16384 = vmatprep.subr.bf16.mxu0 %v23096_v29  ;;  %v23150_v26 = vld [vmem:[%s24596_s4 + $0xd94] ss:$40 sps:$4 sm:$0xff]   ;;  %v23145_v29 = vld [vmem:[%s24596_s4 + $0xd88] ss:$40 sps:$4 sm:$0xff]  }
 0x628   : > { %15811 = vmatpush1.bf16.msra.mxu1 %v23091_v41  ;;  %v23148_v41 = vld [vmem:[%s24596_s4 + $0xd90] ss:$40 sps:$4 sm:$0xff]  }
 0x629   : > { %16385 = vmatpush1.bf16.msra.mxu0 %v23094_v30  ;;  %15812 = vmatprep.subr.bf16.mxu1 %v23099_v31  ;;  %v23153_v30 = vld [vmem:[%s24596_s4 + $0xddc] ss:$40 sps:$4 sm:$0xff]  }
 0x62a   : > { %16386 = vmatprep.subr.bf16.mxu0 %v23102_v32  ;;  %v23156_v31 = vld [vmem:[%s24596_s4 + $0xde4] ss:$40 sps:$4 sm:$0xff]   ;;  %v23151_v32 = vld [vmem:[%s24596_s4 + $0xdd8] ss:$40 sps:$4 sm:$0xff]  }
 0x62c   : > { %15813 = vmatpush1.bf16.msra.mxu1 %v23097_v33  ;;  %v23154_v33 = vld [vmem:[%s24596_s4 + $0xde0] ss:$40 sps:$4 sm:$0xff]  }
 0x62d   : > { %16387 = vmatpush1.bf16.msra.mxu0 %v23100_v34  ;;  %15814 = vmatprep.subr.bf16.mxu1 %v23105_v46  ;;  %v23159_v34 = vld [vmem:[%s24596_s4 + $0xe2c] ss:$40 sps:$4 sm:$0xff]  }
 0x62e   : > { %16388 = vmatprep.subr.bf16.mxu0 %v23108_v37  ;;  %v23162_v46 = vld [vmem:[%s24596_s4 + $0xe34] ss:$40 sps:$4 sm:$0xff]   ;;  %v23157_v37 = vld [vmem:[%s24596_s4 + $0xe28] ss:$40 sps:$4 sm:$0xff]  }
 0x630   : > { %15815 = vmatpush1.bf16.msra.mxu1 %v23103_v21  ;;  %v23160_v21 = vld [vmem:[%s24596_s4 + $0xe30] ss:$40 sps:$4 sm:$0xff]  }
 0x631   : > { %16389 = vmatpush1.bf16.msra.mxu0 %v23106_v38  ;;  %15816 = vmatprep.subr.bf16.mxu1 %v23111_v39  ;;  %v23165_v38 = vld [vmem:[%s24596_s4 + $0xe7c] ss:$40 sps:$4 sm:$0xff]  }
 0x632   : > { %16390 = vmatprep.subr.bf16.mxu0 %v23114_v62  ;;  %v23168_v39 = vld [vmem:[%s24596_s4 + $0xe84] ss:$40 sps:$4 sm:$0xff]   ;;  %v23163_v62 = vld [vmem:[%s24596_s4 + $0xe78] ss:$40 sps:$4 sm:$0xff]  }
 0x634   : > { %15817 = vmatpush1.bf16.msra.mxu1 %v23109_v44  ;;  %v23166_v44 = vld [vmem:[%s24596_s4 + $0xe80] ss:$40 sps:$4 sm:$0xff]  }
 0x635   : > { %16391 = vmatpush1.bf16.msra.mxu0 %v23112_v49  ;;  %15818 = vmatprep.subr.bf16.mxu1 %v23117_v27  ;;  %v23171_v49 = vld [vmem:[%s24596_s4 + $0xecc] ss:$40 sps:$4 sm:$0xff]  }
 0x636   : > { %16392 = vmatprep.subr.bf16.mxu0 %v23120_v51  ;;  %v23174_v27 = vld [vmem:[%s24596_s4 + $0xed4] ss:$40 sps:$4 sm:$0xff]   ;;  %v23169_v51 = vld [vmem:[%s24596_s4 + $0xec8] ss:$40 sps:$4 sm:$0xff]  }
 0x638   : > { %15819 = vmatpush1.bf16.msra.mxu1 %v23115_v52  ;;  %v23172_v52 = vld [vmem:[%s24596_s4 + $0xed0] ss:$40 sps:$4 sm:$0xff]  }
 0x639   : > { %16393 = vmatpush1.bf16.msra.mxu0 %v23118_v55  ;;  %15820 = vmatprep.subr.bf16.mxu1 %v23123_v63  ;;  %v23177_v55 = vld [vmem:[%s24596_s4 + $0xf1c] ss:$40 sps:$4 sm:$0xff]  }
 0x63a   : > { %16394 = vmatprep.subr.bf16.mxu0 %v23126_v56  ;;  %v23180_v63 = vld [vmem:[%s24596_s4 + $0xf24] ss:$40 sps:$4 sm:$0xff]   ;;  %v23175_v56 = vld [vmem:[%s24596_s4 + $0xf18] ss:$40 sps:$4 sm:$0xff]  }
 0x63c   : > { %15821 = vmatpush1.bf16.msra.mxu1 %v23121_v57  ;;  %v23178_v57 = vld [vmem:[%s24596_s4 + $0xf20] ss:$40 sps:$4 sm:$0xff]  }
 0x63d   : > { %16395 = vmatpush1.bf16.msra.mxu0 %v23124_v58  ;;  %15822 = vmatprep.subr.bf16.mxu1 %v23129_v0  ;;  %v23183_v58 = vld [vmem:[%s24596_s4 + $0xf6c] ss:$40 sps:$4 sm:$0xff]  }
 0x63e   : > { %16396 = vmatprep.subr.bf16.mxu0 %v23132_v1  ;;  %v23186_v0 = vld [vmem:[%s24596_s4 + $0xf74] ss:$40 sps:$4 sm:$0xff]   ;;  %v23181_v1 = vld [vmem:[%s24596_s4 + $0xf68] ss:$40 sps:$4 sm:$0xff]  }
 0x640   : > { %15823 = vmatpush1.bf16.msra.mxu1 %v23127_v3  ;;  %v23184_v3 = vld [vmem:[%s24596_s4 + $0xf70] ss:$40 sps:$4 sm:$0xff]  }
 0x641   : > { %16397 = vmatpush1.bf16.msra.mxu0 %v23130_v2  ;;  %15824 = vmatprep.subr.bf16.mxu1 %v23135_v8  ;;  %v23189_v2 = vld [vmem:[%s24596_s4 + $0xfbc] ss:$40 sps:$4 sm:$0xff]  }
 0x642   : > { %16398 = vmatprep.subr.bf16.mxu0 %v23138_v9  ;;  %v23192_v8 = vld [vmem:[%s24596_s4 + $0xfc4] ss:$40 sps:$4 sm:$0xff]   ;;  %v23190_v9 = vld [vmem:[%s24596_s4 + $0xfc0] ss:$40 sps:$4 sm:$0xff]  }
 0x644   : > { %15825 = vmatpush1.bf16.msra.mxu1 %v23133_v10  ;;  %v23195_v10 = vld [vmem:[%s24596_s4 + $0x100c] ss:$40 sps:$4 sm:$0xff]  }
 0x645   : > { %16399 = vmatpush1.bf16.msra.mxu0 %v23136_v13  ;;  %15826 = vmatprep.subr.bf16.mxu1 %v23141_v14  ;;  %v23198_v13 = vld [vmem:[%s24596_s4 + $0x1014] ss:$40 sps:$4 sm:$0xff]   ;;  %v23193_v14 = vld [vmem:[%s24596_s4 + $0x1008] ss:$40 sps:$4 sm:$0xff]  }
 0x646   : > { %16400 = vmatprep.subr.bf16.mxu0 %v23144_v18  ;;  %v23196_v18 = vld [vmem:[%s24596_s4 + $0x1010] ss:$40 sps:$4 sm:$0xff]  }
 0x648   : > { %15827 = vmatpush1.bf16.msra.mxu1 %v23139_v19  ;;  %v23204_v19 = vld [vmem:[%s24596_s4 + $0x1064] ss:$40 sps:$4 sm:$0xff]  }
 0x649   : > { %16401 = vmatpush1.bf16.msra.mxu0 %v23142_v24  ;;  %15828 = vmatprep.subr.bf16.mxu1 %v23147_v25  ;;  %v24434_v24 = vmov 1983009808  }
 0x64a   : > { %16402 = vmatprep.subr.bf16.mxu0 %v23150_v26  ;;  %v16885_v25 = vunpack.c.l.s4 %v24434_v24  ;;  %v23199_v26 = vld [vmem:[%s24596_s4 + $0x1058] ss:$40 sps:$4 sm:$0xff]   ;;  %v23240_v24 = vld [vmem:[%s24596_s4 + $0x1244] ss:$40 sps:$4 sm:$0xff]  }
 0x64c   : > { %15829 = vmatpush1.bf16.msra.mxu1 %v23145_v29  ;;  %v23202_v29 = vld [vmem:[%s24596_s4 + $0x1060] ss:$40 sps:$4 sm:$0xff]  }
 0x64d   : > { %16403 = vmatpush1.bf16.msra.mxu0 %v23148_v41  ;;  %15830 = vmatprep.subr.bf16.mxu1 %v23153_v30  ;;  %v23207_v41 = vld [vmem:[%s24596_s4 + $0x10ac] ss:$40 sps:$4 sm:$0xff]  }
 0x64e   : > { %16404 = vmatprep.subr.bf16.mxu0 %v23156_v31  ;;  %v23210_v30 = vld [vmem:[%s24596_s4 + $0x10b4] ss:$40 sps:$4 sm:$0xff]   ;;  %v16886_v31 = vunpack.c.0.s8 %v16885_v25  ;;  %v23235_v25 = vld [vmem:[%s24596_s4 + $0x1238] ss:$40 sps:$4 sm:$0xff]  }
 0x650   : > { %15831 = vmatpush1.bf16.msra.mxu1 %v23151_v32  ;;  %v23205_v32 = vld [vmem:[%s24596_s4 + $0x10a8] ss:$40 sps:$4 sm:$0xff]  }
 0x651   : > { %16405 = vmatpush1.bf16.msra.mxu0 %v23154_v33  ;;  %15832 = vmatprep.subr.bf16.mxu1 %v23159_v34  ;;  %v23208_v33 = vld [vmem:[%s24596_s4 + $0x10b0] ss:$40 sps:$4 sm:$0xff]   ;;  %v23213_v34 = vld [vmem:[%s24596_s4 + $0x10fc] ss:$40 sps:$4 sm:$0xff]  }
 0x652   : > { %16406 = vmatprep.subr.bf16.mxu0 %v23162_v46  ;;  %v23216_v46 = vld [vmem:[%s24596_s4 + $0x1104] ss:$40 sps:$4 sm:$0xff]  }
 0x654   : > { %15833 = vmatpush1.bf16.msra.mxu1 %v23157_v37  ;;  %v26448_v37 = vsub.s32 %v16886_v31, %v24675_v48  ;;  %v23244_v31 = vld [vmem:[%s24596_s4 + $0x1290] ss:$40 sps:$4 sm:$0xff]  }
 0x655   : > { %16407 = vmatpush1.bf16.msra.mxu0 %v23160_v21  ;;  %15834 = vmatprep.subr.bf16.mxu1 %v23165_v38 }
 0x656   : > { %16408 = vmatprep.subr.bf16.mxu0 %v23168_v39 }
 0x658   : > { %15835 = vmatpush1.bf16.msra.mxu1 %v23163_v62 }
 0x659   : > { %16409 = vmatpush1.bf16.msra.mxu0 %v23166_v44  ;;  %15836 = vmatprep.subr.bf16.mxu1 %v23171_v49 }
 0x65a   : > { %16410 = vmatprep.subr.bf16.mxu0 %v23174_v27 }
 0x65c   : > { %15837 = vmatpush1.bf16.msra.mxu1 %v23169_v51 }
 0x65d   : > { %16411 = vmatpush1.bf16.msra.mxu0 %v23172_v52  ;;  %15847 = vmatprep.subr.bf16.mxu1 %v23177_v55  ;;  %v23211_v52 = vld [vmem:[%s24596_s4 + $0x10f8] ss:$40 sps:$4 sm:$0xff]  }
 0x65e   : > { %16421 = vmatprep.subr.bf16.mxu0 %v23180_v63  ;;  %v23214_v55 = vld [vmem:[%s24596_s4 + $0x1100] ss:$40 sps:$4 sm:$0xff]  }
 0x65f   : > { %15839 = vmatmul.mubr.bf16.vlgmr.msra.gmra.mrb[8].mxu1 %v24917_v5 }
 0x660   : > { %16413 = vmatmul.mubr.bf16.vlgmr.msra.gmra.mrb[8].mxu0 %v24917_v5  ;;  %15848 = vmatpush1.bf16.msra.mxu1 %v23175_v56  ;;  %v23187_v5 = vld [vmem:[%s24596_s4 + $0xfb8] ss:$40 sps:$4 sm:$0xff]  }
 0x661   : > { %16422 = vmatpush1.bf16.msra.mxu0 %v23178_v57  ;;  %15849 = vmatprep.subr.bf16.mxu1 %v23183_v58  ;;  %v23219_v57 = vld [vmem:[%s24596_s4 + $0x114c] ss:$40 sps:$4 sm:$0xff]  }
 0x662   : > { %16423 = vmatprep.subr.bf16.mxu0 %v23186_v0  ;;  %15879 = vmatprep.mubr.bf16.mxu1 %v24928_v12  ;;  %v23222_v58 = vld [vmem:[%s24596_s4 + $0x1154] ss:$40 sps:$4 sm:$0xff]   ;;  %v16890_v0 = vrot.slane %v16882_v23, %v26448_v37  ;;  %v23226_v23 = vld [vmem:[%s24596_s4 + $0x11a0] ss:$40 sps:$4 sm:$0xff]  }
 0x663   : > { %16453 = vmatprep.mubr.bf16.mxu0 %v24928_v12  ;;  %v23201_v12 = vld [vmem:[%s24596_s4 + $0x105c] ss:$40 sps:$4 sm:$0xff]  }
 0x664   : > { %15850 = vmatpush1.bf16.msra.mxu1 %v23181_v1 }
 0x665   : > { %16424 = vmatpush1.bf16.msra.mxu0 %v23184_v3  ;;  %15851 = vmatprep.subr.bf16.mxu1 %v23189_v2  ;;  %v352_v3 = vld [vmem:[#allocation2] sm:$0xff] }
 0x666   : > { %16425 = vmatprep.subr.bf16.mxu0 %v23192_v8  ;;  %v23217_v8 = vld [vmem:[%s24596_s4 + $0x1148] ss:$40 sps:$4 sm:$0xff]  }
 0x668   : > { %15852 = vmatpush1.bf16.msra.mxu1 %v23187_v5  ;;  %v23220_v5 = vld [vmem:[%s24596_s4 + $0x1150] ss:$40 sps:$4 sm:$0xff]  }
 0x669   : > { %16426 = vmatpush1.bf16.msra.mxu0 %v23190_v9  ;;  %15853 = vmatprep.subr.bf16.mxu1 %v23195_v10  ;;  %v23225_v9 = vld [vmem:[%s24596_s4 + $0x119c] ss:$40 sps:$4 sm:$0xff]  }
 0x66a   : > { %16427 = vmatprep.subr.bf16.mxu0 %v23198_v13  ;;  %v23228_v10 = vld [vmem:[%s24596_s4 + $0x11a4] ss:$40 sps:$4 sm:$0xff]  }
 0x66b   : > { %v23231_v13 = vld [vmem:[%s24596_s4 + $0x11ec] ss:$40 sps:$4 sm:$0xff]  }
 0x66c   : > { %15854 = vmatpush1.bf16.msra.mxu1 %v23193_v14  ;;  %v23234_v14 = vld [vmem:[%s24596_s4 + $0x11f4] ss:$40 sps:$4 sm:$0xff]  }
 0x66d   : > { %16428 = vmatpush1.bf16.msra.mxu0 %v23196_v18  ;;  %15855 = vmatprep.subr.bf16.mxu1 %v23201_v12  ;;  %v23229_v18 = vld [vmem:[%s24596_s4 + $0x11e8] ss:$40 sps:$4 sm:$0xff]  }
 0x66e   : > { %16429 = vmatprep.subr.bf16.mxu0 %v23204_v19  ;;  %v23232_v12 = vld [vmem:[%s24596_s4 + $0x11f0] ss:$40 sps:$4 sm:$0xff]   ;;  %v23237_v19 = vld [vmem:[%s24596_s4 + $0x123c] ss:$40 sps:$4 sm:$0xff]  }
 0x670   : > { %15856 = vmatpush1.bf16.msra.mxu1 %v23199_v26  ;;  %v23238_v26 = vld [vmem:[%s24596_s4 + $0x1240] ss:$40 sps:$4 sm:$0xff]  }
 0x671   : > { %16430 = vmatpush1.bf16.msra.mxu0 %v23202_v29  ;;  %15857 = vmatprep.subr.bf16.mxu1 %v23207_v41  ;;  %v23243_v29 = vld [vmem:[%s24596_s4 + $0x128c] ss:$40 sps:$4 sm:$0xff]  }
 0x672   : > { %16431 = vmatprep.subr.bf16.mxu0 %v23210_v30  ;;  %v15143_v21 = vpop.f32.mrb[4].mxu1  ;;  %v23246_v41 = vld [vmem:[%s24596_s4 + $0x1294] ss:$40 sps:$4 sm:$0xff]   ;;  %v23241_v30 = vld [vmem:[%s24596_s4 + $0x1288] ss:$40 sps:$4 sm:$0xff]  }
 0x673   : > { %v26450_v38 = vpop.f32.mrb[4].mxu0  ;;  %v15145_v39 = vpop.f32.mrb[5].mxu1 }
 0x674   : > { %v26452_v62 = vpop.f32.mrb[5].mxu0  ;;  %v16883_v44 = vcombine.low %v15143_v21, %v15145_v39  ;;  %v15147_v27 = vpop.f32.mrb[6].mxu1  ;;  %15858 = vmatpush1.bf16.msra.mxu1 %v23205_v32  ;;  %v23249_v32 = vld [vmem:[%s24596_s4 + $0x12dc] ss:$40 sps:$4 sm:$0xff]   ;;  %v23255_v21 = vld [vmem:[%s24596_s4 + $0x132c] ss:$40 sps:$4 sm:$0xff]  }
 0x675   : > { %v16899_v49 = vcombine.low %v26450_v38, %v26452_v62  ;;  %v15721_v51 = vpop.f32.mrb[6].mxu0  ;;  %16432 = vmatpush1.bf16.msra.mxu0 %v23208_v33  ;;  %v15148_v63 = vpop.f32.mrb[7].mxu1  ;;  %15859 = vmatprep.subr.bf16.mxu1 %v23213_v34  ;;  %v23252_v33 = vld [vmem:[%s24596_s4 + $0x12e4] ss:$40 sps:$4 sm:$0xff]   ;;  %v23247_v34 = vld [vmem:[%s24596_s4 + $0x12d8] ss:$40 sps:$4 sm:$0xff]  }
 0x676   : > { %v15722_v56 = vpop.f32.mrb[7].mxu0  ;;  %16433 = vmatprep.subr.bf16.mxu0 %v23216_v46  ;;  %v16897_v1 = vrot.slane %v16883_v44, %v26448_v37  ;;  %v23250_v46 = vld [vmem:[%s24596_s4 + $0x12e0] ss:$40 sps:$4 sm:$0xff]   ;;  %v23258_v39 = vld [vmem:[%s24596_s4 + $0x1334] ss:$40 sps:$4 sm:$0xff]   ;;  %v24232_v38 = vld [vmem:[%s24621_s11 + $0x40] sm:$0xff] (!%p20319_p3)  }
 0x677   : > { %v23253_v44 = vld [vmem:[%s24596_s4 + $0x1328] ss:$40 sps:$4 sm:$0xff]   ;;  %v23261_v51 = vld [vmem:[%s24596_s4 + $0x137c] ss:$40 sps:$4 sm:$0xff]   ;;  %v23267_v56 = vld [vmem:[%s24596_s4 + $0x13cc] ss:$40 sps:$4 sm:$0xff]  }
 0x678   : > { %v16898_v2 = vcombine.low %v16890_v0, %v16897_v1  ;;  %15860 = vmatpush1.bf16.msra.mxu1 %v23211_v52  ;;  %v23256_v27 = vld [vmem:[%s24596_s4 + $0x1330] ss:$40 sps:$4 sm:$0xff]   ;;  %v23264_v52 = vld [vmem:[%s24596_s4 + $0x1384] ss:$40 sps:$4 sm:$0xff]   ;;  %v23262_v63 = vld [vmem:[%s24596_s4 + $0x1380] ss:$40 sps:$4 sm:$0xff]  }
 0x679   : > { %16434 = vmatpush1.bf16.msra.mxu0 %v23214_v55  ;;  %15861 = vmatprep.subr.bf16.mxu1 %v23219_v57  ;;  %v23259_v55 = vld [vmem:[%s24596_s4 + $0x1378] ss:$40 sps:$4 sm:$0xff]   ;;  %v23270_v57 = vld [vmem:[%s24596_s4 + $0x13d4] ss:$40 sps:$4 sm:$0xff]   ;;  %v24233_v62 = vld [vmem:[%s24621_s11 + $0xc0] sm:$0xff] (!%p20319_p3)  }
 0x67a   : > { %16435 = vmatprep.subr.bf16.mxu0 %v23222_v58  ;;  %v16927_v50 = vadd.f32 %v16898_v2, %v352_v3  ;;  %v23265_v58 = vld [vmem:[%s24596_s4 + $0x13c8] ss:$40 sps:$4 sm:$0xff]   ;;  %v23273_v1 = vld [vmem:[%s24596_s4 + $0x141c] ss:$40 sps:$4 sm:$0xff]   ;;  %v23271_v2 = vld [vmem:[%s24596_s4 + $0x1418] ss:$40 sps:$4 sm:$0xff]  }
 0x67b   : > { %v23268_v0 = vld [vmem:[%s24596_s4 + $0x13d0] ss:$40 sps:$4 sm:$0xff]   ;;  %v23276_v3 = vld [vmem:[%s24596_s4 + $0x1424] ss:$40 sps:$4 sm:$0xff]  }
 0x67c   : > { %16930 = vst [vmem:[#allocation2] sm:$0xff] %v16927_v50  ;;  %15862 = vmatpush1.bf16.msra.mxu1 %v23217_v8  ;;  %v23274_v8 = vld [vmem:[%s24596_s4 + $0x1420] ss:$40 sps:$4 sm:$0xff]   ;;  %v23280_v50 = vld [vmem:[%s24596_s4 + $0x1470] ss:$40 sps:$4 sm:$0xff]  }
 0x67d   : > { %16436 = vmatpush1.bf16.msra.mxu0 %v23220_v5  ;;  %15863 = vmatprep.subr.bf16.mxu1 %v23225_v9  ;;  %v23279_v5 = vld [vmem:[%s24596_s4 + $0x146c] ss:$40 sps:$4 sm:$0xff]  }
 0x67e   : > { %16437 = vmatprep.subr.bf16.mxu0 %v23228_v10  ;;  %v23282_v9 = vld [vmem:[%s24596_s4 + $0x1474] ss:$40 sps:$4 sm:$0xff]   ;;  %v23277_v10 = vld [vmem:[%s24596_s4 + $0x1468] ss:$40 sps:$4 sm:$0xff]  }
 0x680   : > { %15864 = vmatpush1.bf16.msra.mxu1 %v23223_v53  ;;  %v23285_v53 = vld [vmem:[%s24596_s4 + $0x14bc] ss:$40 sps:$4 sm:$0xff]  }
 0x681   : > { %16438 = vmatpush1.bf16.msra.mxu0 %v23226_v23  ;;  %15865 = vmatprep.subr.bf16.mxu1 %v23231_v13  ;;  %v23288_v23 = vld [vmem:[%s24596_s4 + $0x14c4] ss:$40 sps:$4 sm:$0xff]   ;;  %v23286_v13 = vld [vmem:[%s24596_s4 + $0x14c0] ss:$40 sps:$4 sm:$0xff]  }
 0x682   : > { %16439 = vmatprep.subr.bf16.mxu0 %v23234_v14  ;;  %v23291_v14 = vld [vmem:[%s24596_s4 + $0x150c] ss:$40 sps:$4 sm:$0xff]  }
 0x684   : > { %15866 = vmatpush1.bf16.msra.mxu1 %v23229_v18  ;;  %v23294_v18 = vld [vmem:[%s24596_s4 + $0x1514] ss:$40 sps:$4 sm:$0xff]  }
 0x685   : > { %16440 = vmatpush1.bf16.msra.mxu0 %v23232_v12  ;;  %15867 = vmatprep.subr.bf16.mxu1 %v23237_v19  ;;  %v23289_v12 = vld [vmem:[%s24596_s4 + $0x1508] ss:$40 sps:$4 sm:$0xff]  }
 0x686   : > { %16441 = vmatprep.subr.bf16.mxu0 %v23240_v24  ;;  %v23292_v19 = vld [vmem:[%s24596_s4 + $0x1510] ss:$40 sps:$4 sm:$0xff]   ;;  %v23300_v24 = vld [vmem:[%s24596_s4 + $0x1564] ss:$40 sps:$4 sm:$0xff]  }
 0x688   : > { %15868 = vmatpush1.bf16.msra.mxu1 %v23235_v25  ;;  %v23295_v25 = vld [vmem:[%s24596_s4 + $0x1558] ss:$40 sps:$4 sm:$0xff]  }
 0x689   : > { %16442 = vmatpush1.bf16.msra.mxu0 %v23238_v26  ;;  %15869 = vmatprep.subr.bf16.mxu1 %v23243_v29  ;;  %v23298_v26 = vld [vmem:[%s24596_s4 + $0x1560] ss:$40 sps:$4 sm:$0xff]   ;;  %v23303_v29 = vld [vmem:[%s24596_s4 + $0x15ac] ss:$40 sps:$4 sm:$0xff]  }
 0x68a   : > { %16443 = vmatprep.subr.bf16.mxu0 %v23246_v41  ;;  %v23306_v41 = vld [vmem:[%s24596_s4 + $0x15b4] ss:$40 sps:$4 sm:$0xff]  }
 0x68c   : > { %15870 = vmatpush1.bf16.msra.mxu1 %v23241_v30  ;;  %v23301_v30 = vld [vmem:[%s24596_s4 + $0x15a8] ss:$40 sps:$4 sm:$0xff]  }
 0x68d   : > { %16444 = vmatpush1.bf16.msra.mxu0 %v23244_v31  ;;  %15871 = vmatprep.subr.bf16.mxu1 %v23249_v32  ;;  %v23304_v31 = vld [vmem:[%s24596_s4 + $0x15b0] ss:$40 sps:$4 sm:$0xff]   ;;  %v23309_v32 = vld [vmem:[%s24596_s4 + $0x15fc] ss:$40 sps:$4 sm:$0xff]  }
 0x68e   : > { %16445 = vmatprep.subr.bf16.mxu0 %v23252_v33  ;;  %v23312_v33 = vld [vmem:[%s24596_s4 + $0x1604] ss:$40 sps:$4 sm:$0xff]  }
 0x690   : > { %15872 = vmatpush1.bf16.msra.mxu1 %v23247_v34  ;;  %v23307_v34 = vld [vmem:[%s24596_s4 + $0x15f8] ss:$40 sps:$4 sm:$0xff]  }
 0x691   : > { %16446 = vmatpush1.bf16.msra.mxu0 %v23250_v46  ;;  %15873 = vmatprep.subr.bf16.mxu1 %v23255_v21  ;;  %v23310_v46 = vld [vmem:[%s24596_s4 + $0x1600] ss:$40 sps:$4 sm:$0xff]   ;;  %v23315_v21 = vld [vmem:[%s24596_s4 + $0x164c] ss:$40 sps:$4 sm:$0xff]  }
 0x692   : > { %16447 = vmatprep.subr.bf16.mxu0 %v23258_v39  ;;  %v23318_v39 = vld [vmem:[%s24596_s4 + $0x1654] ss:$40 sps:$4 sm:$0xff]  }
 0x694   : > { %15874 = vmatpush1.bf16.msra.mxu1 %v23253_v44  ;;  %v23313_v44 = vld [vmem:[%s24596_s4 + $0x1648] ss:$40 sps:$4 sm:$0xff]  }
 0x695   : > { %16448 = vmatpush1.bf16.msra.mxu0 %v23256_v27  ;;  %15875 = vmatprep.subr.bf16.mxu1 %v23261_v51  ;;  %v23316_v27 = vld [vmem:[%s24596_s4 + $0x1650] ss:$40 sps:$4 sm:$0xff]   ;;  %v23321_v51 = vld [vmem:[%s24596_s4 + $0x169c] ss:$40 sps:$4 sm:$0xff]  }
 0x696   : > { %16449 = vmatprep.subr.bf16.mxu0 %v23264_v52  ;;  %v23324_v52 = vld [vmem:[%s24596_s4 + $0x16a4] ss:$40 sps:$4 sm:$0xff]  }
 0x698   : > { %15876 = vmatpush1.bf16.msra.mxu1 %v23259_v55  ;;  %v23319_v55 = vld [vmem:[%s24596_s4 + $0x1698] ss:$40 sps:$4 sm:$0xff]  }
 0x699   : > { %16450 = vmatpush1.bf16.msra.mxu0 %v23262_v63  ;;  %15877 = vmatprep.subr.bf16.mxu1 %v23267_v56  ;;  %v23322_v63 = vld [vmem:[%s24596_s4 + $0x16a0] ss:$40 sps:$4 sm:$0xff]   ;;  %v23327_v56 = vld [vmem:[%s24596_s4 + $0x16ec] ss:$40 sps:$4 sm:$0xff]  }
 0x69a   : > { %16451 = vmatprep.subr.bf16.mxu0 %v23270_v57  ;;  %v23330_v57 = vld [vmem:[%s24596_s4 + $0x16f4] ss:$40 sps:$4 sm:$0xff]  }
 0x69c   : > { %15878 = vmatpush1.bf16.msra.mxu1 %v23265_v58  ;;  %v23325_v58 = vld [vmem:[%s24596_s4 + $0x16e8] ss:$40 sps:$4 sm:$0xff]  }
 0x69d   : > { %16452 = vmatpush1.bf16.msra.mxu0 %v23268_v0  ;;  %15888 = vmatprep.subr.bf16.mxu1 %v23273_v1  ;;  %v23328_v0 = vld [vmem:[%s24596_s4 + $0x16f0] ss:$40 sps:$4 sm:$0xff]   ;;  %v23333_v1 = vld [vmem:[%s24596_s4 + $0x173c] ss:$40 sps:$4 sm:$0xff]  }
 0x69e   : > { %16462 = vmatprep.subr.bf16.mxu0 %v23276_v3  ;;  %v23336_v3 = vld [vmem:[%s24596_s4 + $0x1744] ss:$40 sps:$4 sm:$0xff]  }
 0x69f   : > { %15880 = vmatmul.mubr.bf16.vlgmr.msra.gmra.mrb[8].mxu1 %v25005_v36 }
 0x6a0   : > { %16454 = vmatmul.mubr.bf16.vlgmr.msra.gmra.mrb[8].mxu0 %v25005_v36  ;;  %15889 = vmatpush1.bf16.msra.mxu1 %v23271_v2  ;;  %v23283_v36 = vld [vmem:[%s24596_s4 + $0x14b8] ss:$40 sps:$4 sm:$0xff]  }
 0x6a1   : > { %16463 = vmatpush1.bf16.msra.mxu0 %v23274_v8  ;;  %15890 = vmatprep.subr.bf16.mxu1 %v23279_v5  ;;  %v23331_v2 = vld [vmem:[%s24596_s4 + $0x1738] ss:$40 sps:$4 sm:$0xff]   ;;  %v23339_v5 = vld [vmem:[%s24596_s4 + $0x178c] ss:$40 sps:$4 sm:$0xff]  }
 0x6a2   : > { %16464 = vmatprep.subr.bf16.mxu0 %v23282_v9  ;;  %15920 = vmatprep.mubr.bf16.mxu1 %v25015_v40  ;;  %v23334_v8 = vld [vmem:[%s24596_s4 + $0x1740] ss:$40 sps:$4 sm:$0xff]   ;;  %v23342_v9 = vld [vmem:[%s24596_s4 + $0x1794] ss:$40 sps:$4 sm:$0xff]  }
 0x6a3   : > { %16494 = vmatprep.mubr.bf16.mxu0 %v25015_v40  ;;  %v23297_v40 = vld [vmem:[%s24596_s4 + $0x155c] ss:$40 sps:$4 sm:$0xff]  }
 0x6a4   : > { %15891 = vmatpush1.bf16.msra.mxu1 %v23277_v10  ;;  %v23337_v10 = vld [vmem:[%s24596_s4 + $0x1788] ss:$40 sps:$4 sm:$0xff]  }
 0x6a5   : > { %16465 = vmatpush1.bf16.msra.mxu0 %v23280_v50  ;;  %15892 = vmatprep.subr.bf16.mxu1 %v23285_v53  ;;  %v23340_v50 = vld [vmem:[%s24596_s4 + $0x1790] ss:$40 sps:$4 sm:$0xff]   ;;  %v23345_v53 = vld [vmem:[%s24596_s4 + $0x17dc] ss:$40 sps:$4 sm:$0xff]  }
 0x6a6   : > { %16466 = vmatprep.subr.bf16.mxu0 %v23288_v23  ;;  %v23348_v23 = vld [vmem:[%s24596_s4 + $0x17e4] ss:$40 sps:$4 sm:$0xff]  }
 0x6a8   : > { %15893 = vmatpush1.bf16.msra.mxu1 %v23283_v36  ;;  %v23343_v36 = vld [vmem:[%s24596_s4 + $0x17d8] ss:$40 sps:$4 sm:$0xff]  }
 0x6a9   : > { %16467 = vmatpush1.bf16.msra.mxu0 %v23286_v13  ;;  %15894 = vmatprep.subr.bf16.mxu1 %v23291_v14  ;;  %v23346_v13 = vld [vmem:[%s24596_s4 + $0x17e0] ss:$40 sps:$4 sm:$0xff]   ;;  %v23351_v14 = vld [vmem:[%s24596_s4 + $0x182c] ss:$40 sps:$4 sm:$0xff]  }
 0x6aa   : > { %16468 = vmatprep.subr.bf16.mxu0 %v23294_v18  ;;  %v23354_v18 = vld [vmem:[%s24596_s4 + $0x1834] ss:$40 sps:$4 sm:$0xff]  }
 0x6ac   : > { %15895 = vmatpush1.bf16.msra.mxu1 %v23289_v12  ;;  %v23349_v12 = vld [vmem:[%s24596_s4 + $0x1828] ss:$40 sps:$4 sm:$0xff]  }
 0x6ad   : > { %16469 = vmatpush1.bf16.msra.mxu0 %v23292_v19  ;;  %15896 = vmatprep.subr.bf16.mxu1 %v23297_v40  ;;  %v23352_v19 = vld [vmem:[%s24596_s4 + $0x1830] ss:$40 sps:$4 sm:$0xff]   ;;  %v23357_v40 = vld [vmem:[%s24596_s4 + $0x187c] ss:$40 sps:$4 sm:$0xff]  }
 0x6ae   : > { %16470 = vmatprep.subr.bf16.mxu0 %v23300_v24  ;;  %v23360_v24 = vld [vmem:[%s24596_s4 + $0x1884] ss:$40 sps:$4 sm:$0xff]  }
 0x6b0   : > { %15897 = vmatpush1.bf16.msra.mxu1 %v23295_v25  ;;  %v23355_v25 = vld [vmem:[%s24596_s4 + $0x1878] ss:$40 sps:$4 sm:$0xff]  }
 0x6b1   : > { %16471 = vmatpush1.bf16.msra.mxu0 %v23298_v26  ;;  %15898 = vmatprep.subr.bf16.mxu1 %v23303_v29  ;;  %v23358_v26 = vld [vmem:[%s24596_s4 + $0x1880] ss:$40 sps:$4 sm:$0xff]   ;;  %v23363_v29 = vld [vmem:[%s24596_s4 + $0x18cc] ss:$40 sps:$4 sm:$0xff]  }
 0x6b2   : > { %16472 = vmatprep.subr.bf16.mxu0 %v23306_v41  ;;  %v23366_v41 = vld [vmem:[%s24596_s4 + $0x18d4] ss:$40 sps:$4 sm:$0xff]  }
 0x6b4   : > { %15899 = vmatpush1.bf16.msra.mxu1 %v23301_v30  ;;  %v23361_v30 = vld [vmem:[%s24596_s4 + $0x18c8] ss:$40 sps:$4 sm:$0xff]  }
 0x6b5   : > { %16473 = vmatpush1.bf16.msra.mxu0 %v23304_v31  ;;  %15900 = vmatprep.subr.bf16.mxu1 %v23309_v32  ;;  %v23364_v31 = vld [vmem:[%s24596_s4 + $0x18d0] ss:$40 sps:$4 sm:$0xff]   ;;  %v23369_v32 = vld [vmem:[%s24596_s4 + $0x191c] ss:$40 sps:$4 sm:$0xff]  }
 0x6b6   : > { %16474 = vmatprep.subr.bf16.mxu0 %v23312_v33  ;;  %v23372_v33 = vld [vmem:[%s24596_s4 + $0x1924] ss:$40 sps:$4 sm:$0xff]  }
 0x6b8   : > { %15901 = vmatpush1.bf16.msra.mxu1 %v23307_v34  ;;  %v23367_v34 = vld [vmem:[%s24596_s4 + $0x1918] ss:$40 sps:$4 sm:$0xff]  }
 0x6b9   : > { %16475 = vmatpush1.bf16.msra.mxu0 %v23310_v46  ;;  %15902 = vmatprep.subr.bf16.mxu1 %v23315_v21  ;;  %v23370_v46 = vld [vmem:[%s24596_s4 + $0x1920] ss:$40 sps:$4 sm:$0xff]   ;;  %v23375_v21 = vld [vmem:[%s24596_s4 + $0x196c] ss:$40 sps:$4 sm:$0xff]  }
 0x6ba   : > { %16476 = vmatprep.subr.bf16.mxu0 %v23318_v39  ;;  %v23378_v39 = vld [vmem:[%s24596_s4 + $0x1974] ss:$40 sps:$4 sm:$0xff]  }
 0x6bc   : > { %15903 = vmatpush1.bf16.msra.mxu1 %v23313_v44  ;;  %v23373_v44 = vld [vmem:[%s24596_s4 + $0x1968] ss:$40 sps:$4 sm:$0xff]  }
 0x6bd   : > { %16477 = vmatpush1.bf16.msra.mxu0 %v23316_v27  ;;  %15904 = vmatprep.subr.bf16.mxu1 %v23321_v51  ;;  %v23376_v27 = vld [vmem:[%s24596_s4 + $0x1970] ss:$40 sps:$4 sm:$0xff]   ;;  %v23381_v51 = vld [vmem:[%s24596_s4 + $0x19bc] ss:$40 sps:$4 sm:$0xff]  }
 0x6be   : > { %16478 = vmatprep.subr.bf16.mxu0 %v23324_v52  ;;  %v23384_v52 = vld [vmem:[%s24596_s4 + $0x19c4] ss:$40 sps:$4 sm:$0xff]  }
 0x6c0   : > { %15905 = vmatpush1.bf16.msra.mxu1 %v23319_v55  ;;  %v23382_v55 = vld [vmem:[%s24596_s4 + $0x19c0] ss:$40 sps:$4 sm:$0xff]  }
 0x6c1   : > { %16479 = vmatpush1.bf16.msra.mxu0 %v23322_v63  ;;  %15906 = vmatprep.subr.bf16.mxu1 %v23327_v56  ;;  %v23387_v63 = vld [vmem:[%s24596_s4 + $0x1a0c] ss:$40 sps:$4 sm:$0xff]  }
 0x6c2   : > { %16480 = vmatprep.subr.bf16.mxu0 %v23330_v57  ;;  %v23390_v56 = vld [vmem:[%s24596_s4 + $0x1a14] ss:$40 sps:$4 sm:$0xff]   ;;  %v23385_v57 = vld [vmem:[%s24596_s4 + $0x1a08] ss:$40 sps:$4 sm:$0xff]  }
 0x6c4   : > { %15907 = vmatpush1.bf16.msra.mxu1 %v23325_v58  ;;  %v23388_v58 = vld [vmem:[%s24596_s4 + $0x1a10] ss:$40 sps:$4 sm:$0xff]  }
 0x6c5   : > { %16481 = vmatpush1.bf16.msra.mxu0 %v23328_v0  ;;  %15908 = vmatprep.subr.bf16.mxu1 %v23333_v1  ;;  %v23396_v0 = vld [vmem:[%s24596_s4 + $0x1a64] ss:$40 sps:$4 sm:$0xff]   ;;  %v23391_v1 = vld [vmem:[%s24596_s4 + $0x1a58] ss:$40 sps:$4 sm:$0xff]  }
 0x6c6   : > { %16482 = vmatprep.subr.bf16.mxu0 %v23336_v3  ;;  %v23394_v3 = vld [vmem:[%s24596_s4 + $0x1a60] ss:$40 sps:$4 sm:$0xff]  }
 0x6c8   : > { %15909 = vmatpush1.bf16.msra.mxu1 %v23331_v2  ;;  %v23399_v2 = vld [vmem:[%s24596_s4 + $0x1aac] ss:$40 sps:$4 sm:$0xff]  }
 0x6c9   : > { %16483 = vmatpush1.bf16.msra.mxu0 %v23334_v8  ;;  %15910 = vmatprep.subr.bf16.mxu1 %v23339_v5  ;;  %v23402_v8 = vld [vmem:[%s24596_s4 + $0x1ab4] ss:$40 sps:$4 sm:$0xff]   ;;  %v23397_v5 = vld [vmem:[%s24596_s4 + $0x1aa8] ss:$40 sps:$4 sm:$0xff]  }
 0x6ca   : > { %16484 = vmatprep.subr.bf16.mxu0 %v23342_v9  ;;  %v23400_v9 = vld [vmem:[%s24596_s4 + $0x1ab0] ss:$40 sps:$4 sm:$0xff]  }
 0x6cc   : > { %15911 = vmatpush1.bf16.msra.mxu1 %v23337_v10  ;;  %v23405_v10 = vld [vmem:[%s24596_s4 + $0x1afc] ss:$40 sps:$4 sm:$0xff]  }
 0x6cd   : > { %16485 = vmatpush1.bf16.msra.mxu0 %v23340_v50  ;;  %15912 = vmatprep.subr.bf16.mxu1 %v23345_v53  ;;  %v23408_v50 = vld [vmem:[%s24596_s4 + $0x1b04] ss:$40 sps:$4 sm:$0xff]   ;;  %v23403_v53 = vld [vmem:[%s24596_s4 + $0x1af8] ss:$40 sps:$4 sm:$0xff]  }
 0x6ce   : > { %16486 = vmatprep.subr.bf16.mxu0 %v23348_v23  ;;  %v23406_v23 = vld [vmem:[%s24596_s4 + $0x1b00] ss:$40 sps:$4 sm:$0xff]  }
 0x6d0   : > { %15913 = vmatpush1.bf16.msra.mxu1 %v23343_v36  ;;  %v23411_v36 = vld [vmem:[%s24596_s4 + $0x1b4c] ss:$40 sps:$4 sm:$0xff]  }
 0x6d1   : > { %16487 = vmatpush1.bf16.msra.mxu0 %v23346_v13  ;;  %15914 = vmatprep.subr.bf16.mxu1 %v23351_v14  ;;  %v23414_v13 = vld [vmem:[%s24596_s4 + $0x1b54] ss:$40 sps:$4 sm:$0xff]   ;;  %v23409_v14 = vld [vmem:[%s24596_s4 + $0x1b48] ss:$40 sps:$4 sm:$0xff]  }
 0x6d2   : > { %16488 = vmatprep.subr.bf16.mxu0 %v23354_v18  ;;  %v23412_v18 = vld [vmem:[%s24596_s4 + $0x1b50] ss:$40 sps:$4 sm:$0xff]  }
 0x6d4   : > { %15915 = vmatpush1.bf16.msra.mxu1 %v23349_v12  ;;  %v23417_v12 = vld [vmem:[%s24596_s4 + $0x1b9c] ss:$40 sps:$4 sm:$0xff]  }
 0x6d5   : > { %16489 = vmatpush1.bf16.msra.mxu0 %v23352_v19  ;;  %15916 = vmatprep.subr.bf16.mxu1 %v23357_v40  ;;  %v23420_v19 = vld [vmem:[%s24596_s4 + $0x1ba4] ss:$40 sps:$4 sm:$0xff]   ;;  %v23415_v40 = vld [vmem:[%s24596_s4 + $0x1b98] ss:$40 sps:$4 sm:$0xff]  }
 0x6d6   : > { %16490 = vmatprep.subr.bf16.mxu0 %v23360_v24  ;;  %v23418_v24 = vld [vmem:[%s24596_s4 + $0x1ba0] ss:$40 sps:$4 sm:$0xff]  }
 0x6d8   : > { %15917 = vmatpush1.bf16.msra.mxu1 %v23355_v25  ;;  %v23423_v25 = vld [vmem:[%s24596_s4 + $0x1bec] ss:$40 sps:$4 sm:$0xff]  }
 0x6d9   : > { %16491 = vmatpush1.bf16.msra.mxu0 %v23358_v26  ;;  %15918 = vmatprep.subr.bf16.mxu1 %v23363_v29  ;;  %v23426_v26 = vld [vmem:[%s24596_s4 + $0x1bf4] ss:$40 sps:$4 sm:$0xff]   ;;  %v23421_v29 = vld [vmem:[%s24596_s4 + $0x1be8] ss:$40 sps:$4 sm:$0xff]  }
 0x6da   : > { %16492 = vmatprep.subr.bf16.mxu0 %v23366_v41  ;;  %v23424_v41 = vld [vmem:[%s24596_s4 + $0x1bf0] ss:$40 sps:$4 sm:$0xff]  }
 0x6dc   : > { %15919 = vmatpush1.bf16.msra.mxu1 %v23361_v30  ;;  %v23429_v30 = vld [vmem:[%s24596_s4 + $0x1c3c] ss:$40 sps:$4 sm:$0xff]  }
 0x6dd   : > { %16493 = vmatpush1.bf16.msra.mxu0 %v23364_v31  ;;  %15929 = vmatprep.subr.bf16.mxu1 %v23369_v32  ;;  %v23432_v31 = vld [vmem:[%s24596_s4 + $0x1c44] ss:$40 sps:$4 sm:$0xff]   ;;  %v23427_v32 = vld [vmem:[%s24596_s4 + $0x1c38] ss:$40 sps:$4 sm:$0xff]  }
 0x6de   : > { %16503 = vmatprep.subr.bf16.mxu0 %v23372_v33  ;;  %v23430_v33 = vld [vmem:[%s24596_s4 + $0x1c40] ss:$40 sps:$4 sm:$0xff]  }
 0x6df   : > { %15921 = vmatmul.mubr.bf16.vlgmr.msra.gmra.mrb[8].mxu1 %v25094_v15 }
 0x6e0   : > { %16495 = vmatmul.mubr.bf16.vlgmr.msra.gmra.mrb[8].mxu0 %v25094_v15  ;;  %15930 = vmatpush1.bf16.msra.mxu1 %v23367_v34  ;;  %v23379_v15 = vld [vmem:[%s24596_s4 + $0x19b8] ss:$40 sps:$4 sm:$0xff]   ;;  %v23435_v34 = vld [vmem:[%s24596_s4 + $0x1c8c] ss:$40 sps:$4 sm:$0xff]  }
 0x6e1   : > { %16504 = vmatpush1.bf16.msra.mxu0 %v23370_v46  ;;  %15931 = vmatprep.subr.bf16.mxu1 %v23375_v21  ;;  %v23438_v46 = vld [vmem:[%s24596_s4 + $0x1c94] ss:$40 sps:$4 sm:$0xff]   ;;  %v23433_v21 = vld [vmem:[%s24596_s4 + $0x1c88] ss:$40 sps:$4 sm:$0xff]  }
 0x6e2   : > { %16505 = vmatprep.subr.bf16.mxu0 %v23378_v39  ;;  %15961 = vmatprep.mubr.bf16.mxu1 %v25104_v20  ;;  %v23436_v39 = vld [vmem:[%s24596_s4 + $0x1c90] ss:$40 sps:$4 sm:$0xff]  }
 0x6e3   : > { %16535 = vmatprep.mubr.bf16.mxu0 %v25104_v20  ;;  %v23393_v20 = vld [vmem:[%s24596_s4 + $0x1a5c] ss:$40 sps:$4 sm:$0xff]  }
 0x6e4   : > { %15932 = vmatpush1.bf16.msra.mxu1 %v23373_v44  ;;  %v23441_v44 = vld [vmem:[%s24596_s4 + $0x1cdc] ss:$40 sps:$4 sm:$0xff]  }
 0x6e5   : > { %16506 = vmatpush1.bf16.msra.mxu0 %v23376_v27  ;;  %15933 = vmatprep.subr.bf16.mxu1 %v23381_v51  ;;  %v23444_v27 = vld [vmem:[%s24596_s4 + $0x1ce4] ss:$40 sps:$4 sm:$0xff]   ;;  %v23439_v51 = vld [vmem:[%s24596_s4 + $0x1cd8] ss:$40 sps:$4 sm:$0xff]  }
 0x6e6   : > { %16507 = vmatprep.subr.bf16.mxu0 %v23384_v52  ;;  %v23442_v52 = vld [vmem:[%s24596_s4 + $0x1ce0] ss:$40 sps:$4 sm:$0xff]  }
 0x6e8   : > { %15934 = vmatpush1.bf16.msra.mxu1 %v23379_v15  ;;  %v23447_v15 = vld [vmem:[%s24596_s4 + $0x1d2c] ss:$40 sps:$4 sm:$0xff]  }
 0x6e9   : > { %16508 = vmatpush1.bf16.msra.mxu0 %v23382_v55  ;;  %15935 = vmatprep.subr.bf16.mxu1 %v23387_v63  ;;  %v23450_v55 = vld [vmem:[%s24596_s4 + $0x1d34] ss:$40 sps:$4 sm:$0xff]   ;;  %v23445_v63 = vld [vmem:[%s24596_s4 + $0x1d28] ss:$40 sps:$4 sm:$0xff]  }
 0x6ea   : > { %16509 = vmatprep.subr.bf16.mxu0 %v23390_v56  ;;  %v23448_v56 = vld [vmem:[%s24596_s4 + $0x1d30] ss:$40 sps:$4 sm:$0xff]  }
 0x6ec   : > { %15936 = vmatpush1.bf16.msra.mxu1 %v23385_v57  ;;  %v23453_v57 = vld [vmem:[%s24596_s4 + $0x1d7c] ss:$40 sps:$4 sm:$0xff]  }
 0x6ed   : > { %16510 = vmatpush1.bf16.msra.mxu0 %v23388_v58  ;;  %15937 = vmatprep.subr.bf16.mxu1 %v23393_v20  ;;  %v23456_v58 = vld [vmem:[%s24596_s4 + $0x1d84] ss:$40 sps:$4 sm:$0xff]   ;;  %v23451_v20 = vld [vmem:[%s24596_s4 + $0x1d78] ss:$40 sps:$4 sm:$0xff]  }
 0x6ee   : > { %16511 = vmatprep.subr.bf16.mxu0 %v23396_v0  ;;  %v23454_v0 = vld [vmem:[%s24596_s4 + $0x1d80] ss:$40 sps:$4 sm:$0xff]  }
 0x6f0   : > { %15938 = vmatpush1.bf16.msra.mxu1 %v23391_v1  ;;  %v23459_v1 = vld [vmem:[%s24596_s4 + $0x1dcc] ss:$40 sps:$4 sm:$0xff]  }
 0x6f1   : > { %16512 = vmatpush1.bf16.msra.mxu0 %v23394_v3  ;;  %15939 = vmatprep.subr.bf16.mxu1 %v23399_v2  ;;  %v23462_v3 = vld [vmem:[%s24596_s4 + $0x1dd4] ss:$40 sps:$4 sm:$0xff]   ;;  %v23457_v2 = vld [vmem:[%s24596_s4 + $0x1dc8] ss:$40 sps:$4 sm:$0xff]  }
 0x6f2   : > { %16513 = vmatprep.subr.bf16.mxu0 %v23402_v8  ;;  %v23460_v8 = vld [vmem:[%s24596_s4 + $0x1dd0] ss:$40 sps:$4 sm:$0xff]  }
 0x6f4   : > { %15940 = vmatpush1.bf16.msra.mxu1 %v23397_v5  ;;  %v23465_v5 = vld [vmem:[%s24596_s4 + $0x1e1c] ss:$40 sps:$4 sm:$0xff]  }
 0x6f5   : > { %16514 = vmatpush1.bf16.msra.mxu0 %v23400_v9  ;;  %15941 = vmatprep.subr.bf16.mxu1 %v23405_v10  ;;  %v23468_v9 = vld [vmem:[%s24596_s4 + $0x1e24] ss:$40 sps:$4 sm:$0xff]   ;;  %v23463_v10 = vld [vmem:[%s24596_s4 + $0x1e18] ss:$40 sps:$4 sm:$0xff]  }
 0x6f6   : > { %16515 = vmatprep.subr.bf16.mxu0 %v23408_v50  ;;  %v23466_v50 = vld [vmem:[%s24596_s4 + $0x1e20] ss:$40 sps:$4 sm:$0xff]  }
 0x6f8   : > { %15942 = vmatpush1.bf16.msra.mxu1 %v23403_v53  ;;  %v23471_v53 = vld [vmem:[%s24596_s4 + $0x1e6c] ss:$40 sps:$4 sm:$0xff]  }
 0x6f9   : > { %16516 = vmatpush1.bf16.msra.mxu0 %v23406_v23  ;;  %15943 = vmatprep.subr.bf16.mxu1 %v23411_v36  ;;  %v23474_v23 = vld [vmem:[%s24596_s4 + $0x1e74] ss:$40 sps:$4 sm:$0xff]   ;;  %v23469_v36 = vld [vmem:[%s24596_s4 + $0x1e68] ss:$40 sps:$4 sm:$0xff]  }
 0x6fa   : > { %16517 = vmatprep.subr.bf16.mxu0 %v23414_v13  ;;  %v23472_v13 = vld [vmem:[%s24596_s4 + $0x1e70] ss:$40 sps:$4 sm:$0xff]  }
 0x6fc   : > { %15944 = vmatpush1.bf16.msra.mxu1 %v23409_v14  ;;  %v23477_v14 = vld [vmem:[%s24596_s4 + $0x1ebc] ss:$40 sps:$4 sm:$0xff]  }
 0x6fd   : > { %16518 = vmatpush1.bf16.msra.mxu0 %v23412_v18  ;;  %15945 = vmatprep.subr.bf16.mxu1 %v23417_v12  ;;  %v23480_v18 = vld [vmem:[%s24596_s4 + $0x1ec4] ss:$40 sps:$4 sm:$0xff]   ;;  %v23478_v12 = vld [vmem:[%s24596_s4 + $0x1ec0] ss:$40 sps:$4 sm:$0xff]  }
 0x6fe   : > { %16519 = vmatprep.subr.bf16.mxu0 %v23420_v19  ;;  %v23483_v19 = vld [vmem:[%s24596_s4 + $0x1f0c] ss:$40 sps:$4 sm:$0xff]  }
 0x700   : > { %15946 = vmatpush1.bf16.msra.mxu1 %v23415_v40  ;;  %v23486_v40 = vld [vmem:[%s24596_s4 + $0x1f14] ss:$40 sps:$4 sm:$0xff]  }
 0x701   : > { %16520 = vmatpush1.bf16.msra.mxu0 %v23418_v24  ;;  %15947 = vmatprep.subr.bf16.mxu1 %v23423_v25  ;;  %v23481_v24 = vld [vmem:[%s24596_s4 + $0x1f08] ss:$40 sps:$4 sm:$0xff]  }
 0x702   : > { %16521 = vmatprep.subr.bf16.mxu0 %v23426_v26  ;;  %v23484_v25 = vld [vmem:[%s24596_s4 + $0x1f10] ss:$40 sps:$4 sm:$0xff]   ;;  %v23492_v26 = vld [vmem:[%s24596_s4 + $0x1f64] ss:$40 sps:$4 sm:$0xff]  }
 0x704   : > { %15948 = vmatpush1.bf16.msra.mxu1 %v23421_v29  ;;  %v23487_v29 = vld [vmem:[%s24596_s4 + $0x1f58] ss:$40 sps:$4 sm:$0xff]  }
 0x705   : > { %16522 = vmatpush1.bf16.msra.mxu0 %v23424_v41  ;;  %15949 = vmatprep.subr.bf16.mxu1 %v23429_v30  ;;  %v23490_v41 = vld [vmem:[%s24596_s4 + $0x1f60] ss:$40 sps:$4 sm:$0xff]   ;;  %v23495_v30 = vld [vmem:[%s24596_s4 + $0x1fac] ss:$40 sps:$4 sm:$0xff]  }
 0x706   : > { %16523 = vmatprep.subr.bf16.mxu0 %v23432_v31  ;;  %v23498_v31 = vld [vmem:[%s24596_s4 + $0x1fb4] ss:$40 sps:$4 sm:$0xff]  }
 0x708   : > { %15950 = vmatpush1.bf16.msra.mxu1 %v23427_v32  ;;  %v23493_v32 = vld [vmem:[%s24596_s4 + $0x1fa8] ss:$40 sps:$4 sm:$0xff]  }
 0x709   : > { %16524 = vmatpush1.bf16.msra.mxu0 %v23430_v33  ;;  %15951 = vmatprep.subr.bf16.mxu1 %v23435_v34  ;;  %v23496_v33 = vld [vmem:[%s24596_s4 + $0x1fb0] ss:$40 sps:$4 sm:$0xff]   ;;  %v23501_v34 = vld [vmem:[%s24596_s4 + $0x1ffc] ss:$40 sps:$4 sm:$0xff]  }
 0x70a   : > { %16525 = vmatprep.subr.bf16.mxu0 %v23438_v46  ;;  %v23504_v46 = vld [vmem:[%s24596_s4 + $0x2004] ss:$40 sps:$4 sm:$0xff]  }
 0x70c   : > { %15952 = vmatpush1.bf16.msra.mxu1 %v23433_v21  ;;  %v23499_v21 = vld [vmem:[%s24596_s4 + $0x1ff8] ss:$40 sps:$4 sm:$0xff]  }
 0x70d   : > { %16526 = vmatpush1.bf16.msra.mxu0 %v23436_v39  ;;  %15953 = vmatprep.subr.bf16.mxu1 %v23441_v44  ;;  %v23502_v39 = vld [vmem:[%s24596_s4 + $0x2000] ss:$40 sps:$4 sm:$0xff]   ;;  %v23507_v44 = vld [vmem:[%s24596_s4 + $0x204c] ss:$40 sps:$4 sm:$0xff]  }
 0x70e   : > { %16527 = vmatprep.subr.bf16.mxu0 %v23444_v27  ;;  %v23510_v27 = vld [vmem:[%s24596_s4 + $0x2054] ss:$40 sps:$4 sm:$0xff]  }
 0x710   : > { %15954 = vmatpush1.bf16.msra.mxu1 %v23439_v51  ;;  %v23505_v51 = vld [vmem:[%s24596_s4 + $0x2048] ss:$40 sps:$4 sm:$0xff]  }
 0x711   : > { %16528 = vmatpush1.bf16.msra.mxu0 %v23442_v52  ;;  %15955 = vmatprep.subr.bf16.mxu1 %v23447_v15  ;;  %v23508_v52 = vld [vmem:[%s24596_s4 + $0x2050] ss:$40 sps:$4 sm:$0xff]   ;;  %v23513_v15 = vld [vmem:[%s24596_s4 + $0x209c] ss:$40 sps:$4 sm:$0xff]  }
 0x712   : > { %16529 = vmatprep.subr.bf16.mxu0 %v23450_v55  ;;  %v23516_v55 = vld [vmem:[%s24596_s4 + $0x20a4] ss:$40 sps:$4 sm:$0xff]  }
 0x714   : > { %15956 = vmatpush1.bf16.msra.mxu1 %v23445_v63  ;;  %v23511_v63 = vld [vmem:[%s24596_s4 + $0x2098] ss:$40 sps:$4 sm:$0xff]  }
 0x715   : > { %16530 = vmatpush1.bf16.msra.mxu0 %v23448_v56  ;;  %15957 = vmatprep.subr.bf16.mxu1 %v23453_v57  ;;  %v23514_v56 = vld [vmem:[%s24596_s4 + $0x20a0] ss:$40 sps:$4 sm:$0xff]   ;;  %v23519_v57 = vld [vmem:[%s24596_s4 + $0x20ec] ss:$40 sps:$4 sm:$0xff]  }
 0x716   : > { %16531 = vmatprep.subr.bf16.mxu0 %v23456_v58  ;;  %v23522_v58 = vld [vmem:[%s24596_s4 + $0x20f4] ss:$40 sps:$4 sm:$0xff]  }
 0x718   : > { %15958 = vmatpush1.bf16.msra.mxu1 %v23451_v20  ;;  %v23517_v20 = vld [vmem:[%s24596_s4 + $0x20e8] ss:$40 sps:$4 sm:$0xff]  }
 0x719   : > { %16532 = vmatpush1.bf16.msra.mxu0 %v23454_v0  ;;  %15959 = vmatprep.subr.bf16.mxu1 %v23459_v1  ;;  %v23520_v0 = vld [vmem:[%s24596_s4 + $0x20f0] ss:$40 sps:$4 sm:$0xff]   ;;  %v23525_v1 = vld [vmem:[%s24596_s4 + $0x213c] ss:$40 sps:$4 sm:$0xff]  }
 0x71a   : > { %16533 = vmatprep.subr.bf16.mxu0 %v23462_v3  ;;  %v23528_v3 = vld [vmem:[%s24596_s4 + $0x2144] ss:$40 sps:$4 sm:$0xff]  }
 0x71c   : > { %15960 = vmatpush1.bf16.msra.mxu1 %v23457_v2  ;;  %v23523_v2 = vld [vmem:[%s24596_s4 + $0x2138] ss:$40 sps:$4 sm:$0xff]  }
 0x71d   : > { %16534 = vmatpush1.bf16.msra.mxu0 %v23460_v8  ;;  %15970 = vmatprep.subr.bf16.mxu1 %v23465_v5  ;;  %v23526_v8 = vld [vmem:[%s24596_s4 + $0x2140] ss:$40 sps:$4 sm:$0xff]   ;;  %v23531_v5 = vld [vmem:[%s24596_s4 + $0x218c] ss:$40 sps:$4 sm:$0xff]  }
 0x71e   : > { %16544 = vmatprep.subr.bf16.mxu0 %v23468_v9  ;;  %v23534_v9 = vld [vmem:[%s24596_s4 + $0x2194] ss:$40 sps:$4 sm:$0xff]  }
 0x71f   : > { %15962 = vmatmul.mubr.bf16.vlgmr.msra.gmra.mrb[8].mxu1 %v25175_v59 }
 0x720   : > { %16536 = vmatmul.mubr.bf16.vlgmr.msra.gmra.mrb[8].mxu0 %v25175_v59  ;;  %15971 = vmatpush1.bf16.msra.mxu1 %v23463_v10  ;;  %v23475_v59 = vld [vmem:[%s24596_s4 + $0x1eb8] ss:$40 sps:$4 sm:$0xff]   ;;  %v23529_v10 = vld [vmem:[%s24596_s4 + $0x2188] ss:$40 sps:$4 sm:$0xff]  }
 0x721   : > { %16545 = vmatpush1.bf16.msra.mxu0 %v23466_v50  ;;  %15972 = vmatprep.subr.bf16.mxu1 %v23471_v53  ;;  %v23532_v50 = vld [vmem:[%s24596_s4 + $0x2190] ss:$40 sps:$4 sm:$0xff]   ;;  %v23537_v53 = vld [vmem:[%s24596_s4 + $0x21dc] ss:$40 sps:$4 sm:$0xff]  }
 0x722   : > { %16546 = vmatprep.subr.bf16.mxu0 %v23474_v23  ;;  %16002 = vmatprep.mubr.bf16.mxu1 %v24704_v6  ;;  %v23540_v23 = vld [vmem:[%s24596_s4 + $0x21e4] ss:$40 sps:$4 sm:$0xff]  }
 0x723   : > { %16576 = vmatprep.mubr.bf16.mxu0 %v24704_v6  ;;  %v23489_v6 = vld [vmem:[%s24596_s4 + $0x1f5c] ss:$40 sps:$4 sm:$0xff]  }
 0x724   : > { %15973 = vmatpush1.bf16.msra.mxu1 %v23469_v36  ;;  %v23535_v36 = vld [vmem:[%s24596_s4 + $0x21d8] ss:$40 sps:$4 sm:$0xff]  }
 0x725   : > { %16547 = vmatpush1.bf16.msra.mxu0 %v23472_v13  ;;  %15974 = vmatprep.subr.bf16.mxu1 %v23477_v14  ;;  %v23538_v13 = vld [vmem:[%s24596_s4 + $0x21e0] ss:$40 sps:$4 sm:$0xff]   ;;  %v23543_v14 = vld [vmem:[%s24596_s4 + $0x222c] ss:$40 sps:$4 sm:$0xff]  }
 0x726   : > { %16548 = vmatprep.subr.bf16.mxu0 %v23480_v18  ;;  %v23546_v18 = vld [vmem:[%s24596_s4 + $0x2234] ss:$40 sps:$4 sm:$0xff]  }
 0x728   : > { %15975 = vmatpush1.bf16.msra.mxu1 %v23475_v59  ;;  %v23541_v59 = vld [vmem:[%s24596_s4 + $0x2228] ss:$40 sps:$4 sm:$0xff]  }
 0x729   : > { %16549 = vmatpush1.bf16.msra.mxu0 %v23478_v12  ;;  %15976 = vmatprep.subr.bf16.mxu1 %v23483_v19  ;;  %v23544_v12 = vld [vmem:[%s24596_s4 + $0x2230] ss:$40 sps:$4 sm:$0xff]   ;;  %v23549_v19 = vld [vmem:[%s24596_s4 + $0x227c] ss:$40 sps:$4 sm:$0xff]  }
 0x72a   : > { %16550 = vmatprep.subr.bf16.mxu0 %v23486_v40  ;;  %v23552_v40 = vld [vmem:[%s24596_s4 + $0x2284] ss:$40 sps:$4 sm:$0xff]  }
 0x72c   : > { %15977 = vmatpush1.bf16.msra.mxu1 %v23481_v24  ;;  %v23547_v24 = vld [vmem:[%s24596_s4 + $0x2278] ss:$40 sps:$4 sm:$0xff]  }
 0x72d   : > { %16551 = vmatpush1.bf16.msra.mxu0 %v23484_v25  ;;  %15978 = vmatprep.subr.bf16.mxu1 %v23489_v6  ;;  %v23550_v25 = vld [vmem:[%s24596_s4 + $0x2280] ss:$40 sps:$4 sm:$0xff]   ;;  %v23555_v6 = vld [vmem:[%s24596_s4 + $0x22cc] ss:$40 sps:$4 sm:$0xff]  }
 0x72e   : > { %16552 = vmatprep.subr.bf16.mxu0 %v23492_v26  ;;  %v23558_v26 = vld [vmem:[%s24596_s4 + $0x22d4] ss:$40 sps:$4 sm:$0xff]  }
 0x730   : > { %15979 = vmatpush1.bf16.msra.mxu1 %v23487_v29  ;;  %v23553_v29 = vld [vmem:[%s24596_s4 + $0x22c8] ss:$40 sps:$4 sm:$0xff]  }
 0x731   : > { %16553 = vmatpush1.bf16.msra.mxu0 %v23490_v41  ;;  %15980 = vmatprep.subr.bf16.mxu1 %v23495_v30  ;;  %v23556_v41 = vld [vmem:[%s24596_s4 + $0x22d0] ss:$40 sps:$4 sm:$0xff]   ;;  %v23561_v30 = vld [vmem:[%s24596_s4 + $0x231c] ss:$40 sps:$4 sm:$0xff]  }
 0x732   : > { %16554 = vmatprep.subr.bf16.mxu0 %v23498_v31  ;;  %v23564_v31 = vld [vmem:[%s24596_s4 + $0x2324] ss:$40 sps:$4 sm:$0xff]  }
 0x734   : > { %15981 = vmatpush1.bf16.msra.mxu1 %v23493_v32  ;;  %v23559_v32 = vld [vmem:[%s24596_s4 + $0x2318] ss:$40 sps:$4 sm:$0xff]  }
 0x735   : > { %16555 = vmatpush1.bf16.msra.mxu0 %v23496_v33  ;;  %15982 = vmatprep.subr.bf16.mxu1 %v23501_v34  ;;  %v23562_v33 = vld [vmem:[%s24596_s4 + $0x2320] ss:$40 sps:$4 sm:$0xff]   ;;  %v23567_v34 = vld [vmem:[%s24596_s4 + $0x236c] ss:$40 sps:$4 sm:$0xff]  }
 0x736   : > { %16556 = vmatprep.subr.bf16.mxu0 %v23504_v46  ;;  %v23570_v46 = vld [vmem:[%s24596_s4 + $0x2374] ss:$40 sps:$4 sm:$0xff]  }
 0x738   : > { %15983 = vmatpush1.bf16.msra.mxu1 %v23499_v21  ;;  %v23565_v21 = vld [vmem:[%s24596_s4 + $0x2368] ss:$40 sps:$4 sm:$0xff]  }
 0x739   : > { %16557 = vmatpush1.bf16.msra.mxu0 %v23502_v39  ;;  %15984 = vmatprep.subr.bf16.mxu1 %v23507_v44  ;;  %v23568_v39 = vld [vmem:[%s24596_s4 + $0x2370] ss:$40 sps:$4 sm:$0xff]   ;;  %v23573_v44 = vld [vmem:[%s24596_s4 + $0x23bc] ss:$40 sps:$4 sm:$0xff]  }
 0x73a   : > { %16558 = vmatprep.subr.bf16.mxu0 %v23510_v27  ;;  %v23576_v27 = vld [vmem:[%s24596_s4 + $0x23c4] ss:$40 sps:$4 sm:$0xff]  }
 0x73c   : > { %15985 = vmatpush1.bf16.msra.mxu1 %v23505_v51  ;;  %v23574_v51 = vld [vmem:[%s24596_s4 + $0x23c0] ss:$40 sps:$4 sm:$0xff]  }
 0x73d   : > { %16559 = vmatpush1.bf16.msra.mxu0 %v23508_v52  ;;  %15986 = vmatprep.subr.bf16.mxu1 %v23513_v15  ;;  %v23579_v52 = vld [vmem:[%s24596_s4 + $0x240c] ss:$40 sps:$4 sm:$0xff]  }
 0x73e   : > { %16560 = vmatprep.subr.bf16.mxu0 %v23516_v55  ;;  %v23582_v15 = vld [vmem:[%s24596_s4 + $0x2414] ss:$40 sps:$4 sm:$0xff]   ;;  %v23577_v55 = vld [vmem:[%s24596_s4 + $0x2408] ss:$40 sps:$4 sm:$0xff]  }
 0x740   : > { %15987 = vmatpush1.bf16.msra.mxu1 %v23511_v63  ;;  %v23580_v63 = vld [vmem:[%s24596_s4 + $0x2410] ss:$40 sps:$4 sm:$0xff]  }
 0x741   : > { %16561 = vmatpush1.bf16.msra.mxu0 %v23514_v56  ;;  %15988 = vmatprep.subr.bf16.mxu1 %v23519_v57  ;;  %v23588_v56 = vld [vmem:[%s24596_s4 + $0x2464] ss:$40 sps:$4 sm:$0xff]   ;;  %v23583_v57 = vld [vmem:[%s24596_s4 + $0x2458] ss:$40 sps:$4 sm:$0xff]  }
 0x742   : > { %16562 = vmatprep.subr.bf16.mxu0 %v23522_v58  ;;  %v23586_v58 = vld [vmem:[%s24596_s4 + $0x2460] ss:$40 sps:$4 sm:$0xff]  }
 0x744   : > { %15989 = vmatpush1.bf16.msra.mxu1 %v23517_v20  ;;  %v23591_v20 = vld [vmem:[%s24596_s4 + $0x24ac] ss:$40 sps:$4 sm:$0xff]  }
 0x745   : > { %16563 = vmatpush1.bf16.msra.mxu0 %v23520_v0  ;;  %15990 = vmatprep.subr.bf16.mxu1 %v23525_v1  ;;  %v23594_v0 = vld [vmem:[%s24596_s4 + $0x24b4] ss:$40 sps:$4 sm:$0xff]   ;;  %v23589_v1 = vld [vmem:[%s24596_s4 + $0x24a8] ss:$40 sps:$4 sm:$0xff]  }
 0x746   : > { %16564 = vmatprep.subr.bf16.mxu0 %v23528_v3  ;;  %v23592_v3 = vld [vmem:[%s24596_s4 + $0x24b0] ss:$40 sps:$4 sm:$0xff]  }
 0x748   : > { %15991 = vmatpush1.bf16.msra.mxu1 %v23523_v2  ;;  %v23597_v2 = vld [vmem:[%s24596_s4 + $0x24fc] ss:$40 sps:$4 sm:$0xff]  }
 0x749   : > { %16565 = vmatpush1.bf16.msra.mxu0 %v23526_v8  ;;  %15992 = vmatprep.subr.bf16.mxu1 %v23531_v5  ;;  %v23600_v8 = vld [vmem:[%s24596_s4 + $0x2504] ss:$40 sps:$4 sm:$0xff]   ;;  %v23595_v5 = vld [vmem:[%s24596_s4 + $0x24f8] ss:$40 sps:$4 sm:$0xff]  }
 0x74a   : > { %16566 = vmatprep.subr.bf16.mxu0 %v23534_v9  ;;  %v23598_v9 = vld [vmem:[%s24596_s4 + $0x2500] ss:$40 sps:$4 sm:$0xff]  }
 0x74c   : > { %15993 = vmatpush1.bf16.msra.mxu1 %v23529_v10  ;;  %v23603_v10 = vld [vmem:[%s24596_s4 + $0x254c] ss:$40 sps:$4 sm:$0xff]  }
 0x74d   : > { %16567 = vmatpush1.bf16.msra.mxu0 %v23532_v50  ;;  %15994 = vmatprep.subr.bf16.mxu1 %v23537_v53  ;;  %v23606_v50 = vld [vmem:[%s24596_s4 + $0x2554] ss:$40 sps:$4 sm:$0xff]   ;;  %v23601_v53 = vld [vmem:[%s24596_s4 + $0x2548] ss:$40 sps:$4 sm:$0xff]  }
 0x74e   : > { %16568 = vmatprep.subr.bf16.mxu0 %v23540_v23  ;;  %v23604_v23 = vld [vmem:[%s24596_s4 + $0x2550] ss:$40 sps:$4 sm:$0xff]  }
 0x750   : > { %15995 = vmatpush1.bf16.msra.mxu1 %v23535_v36  ;;  %v23609_v36 = vld [vmem:[%s24596_s4 + $0x259c] ss:$40 sps:$4 sm:$0xff]  }
 0x751   : > { %16569 = vmatpush1.bf16.msra.mxu0 %v23538_v13  ;;  %15996 = vmatprep.subr.bf16.mxu1 %v23543_v14  ;;  %v23612_v13 = vld [vmem:[%s24596_s4 + $0x25a4] ss:$40 sps:$4 sm:$0xff]   ;;  %v23607_v14 = vld [vmem:[%s24596_s4 + $0x2598] ss:$40 sps:$4 sm:$0xff]  }
 0x752   : > { %16570 = vmatprep.subr.bf16.mxu0 %v23546_v18  ;;  %v23610_v18 = vld [vmem:[%s24596_s4 + $0x25a0] ss:$40 sps:$4 sm:$0xff]  }
 0x754   : > { %15997 = vmatpush1.bf16.msra.mxu1 %v23541_v59  ;;  %v23615_v59 = vld [vmem:[%s24596_s4 + $0x25ec] ss:$40 sps:$4 sm:$0xff]  }
 0x755   : > { %16571 = vmatpush1.bf16.msra.mxu0 %v23544_v12  ;;  %15998 = vmatprep.subr.bf16.mxu1 %v23549_v19  ;;  %v23618_v12 = vld [vmem:[%s24596_s4 + $0x25f4] ss:$40 sps:$4 sm:$0xff]   ;;  %v23613_v19 = vld [vmem:[%s24596_s4 + $0x25e8] ss:$40 sps:$4 sm:$0xff]  }
 0x756   : > { %16572 = vmatprep.subr.bf16.mxu0 %v23552_v40  ;;  %v23616_v40 = vld [vmem:[%s24596_s4 + $0x25f0] ss:$40 sps:$4 sm:$0xff]  }
 0x758   : > { %15999 = vmatpush1.bf16.msra.mxu1 %v23547_v24  ;;  %v23621_v24 = vld [vmem:[%s24596_s4 + $0x263c] ss:$40 sps:$4 sm:$0xff]  }
 0x759   : > { %16573 = vmatpush1.bf16.msra.mxu0 %v23550_v25  ;;  %16000 = vmatprep.subr.bf16.mxu1 %v23555_v6  ;;  %v23624_v25 = vld [vmem:[%s24596_s4 + $0x2644] ss:$40 sps:$4 sm:$0xff]   ;;  %v23619_v6 = vld [vmem:[%s24596_s4 + $0x2638] ss:$40 sps:$4 sm:$0xff]  }
 0x75a   : > { %16574 = vmatprep.subr.bf16.mxu0 %v23558_v26  ;;  %v23622_v26 = vld [vmem:[%s24596_s4 + $0x2640] ss:$40 sps:$4 sm:$0xff]  }
 0x75c   : > { %16001 = vmatpush1.bf16.msra.mxu1 %v23553_v29  ;;  %v23627_v29 = vld [vmem:[%s24596_s4 + $0x268c] ss:$40 sps:$4 sm:$0xff]  }
 0x75d   : > { %16575 = vmatpush1.bf16.msra.mxu0 %v23556_v41  ;;  %16011 = vmatprep.subr.bf16.mxu1 %v23561_v30  ;;  %v23630_v41 = vld [vmem:[%s24596_s4 + $0x2694] ss:$40 sps:$4 sm:$0xff]   ;;  %v23625_v30 = vld [vmem:[%s24596_s4 + $0x2688] ss:$40 sps:$4 sm:$0xff]  }
 0x75e   : > { %16585 = vmatprep.subr.bf16.mxu0 %v23564_v31  ;;  %v23628_v31 = vld [vmem:[%s24596_s4 + $0x2690] ss:$40 sps:$4 sm:$0xff]  }
 0x75f   : > { %16003 = vmatmul.mubr.bf16.vlgmr.msra.gmra.mrb[8].mxu1 %v24720_v16 }
 0x760   : > { %16577 = vmatmul.mubr.bf16.vlgmr.msra.gmra.mrb[8].mxu0 %v24720_v16  ;;  %16012 = vmatpush1.bf16.msra.mxu1 %v23559_v32  ;;  %v23571_v16 = vld [vmem:[%s24596_s4 + $0x23b8] ss:$40 sps:$4 sm:$0xff]   ;;  %v23633_v32 = vld [vmem:[%s24596_s4 + $0x26dc] ss:$40 sps:$4 sm:$0xff]  }
 0x761   : > { %16586 = vmatpush1.bf16.msra.mxu0 %v23562_v33  ;;  %16013 = vmatprep.subr.bf16.mxu1 %v23567_v34  ;;  %v23636_v33 = vld [vmem:[%s24596_s4 + $0x26e4] ss:$40 sps:$4 sm:$0xff]   ;;  %v23631_v34 = vld [vmem:[%s24596_s4 + $0x26d8] ss:$40 sps:$4 sm:$0xff]  }
 0x762   : > { %16587 = vmatprep.subr.bf16.mxu0 %v23570_v46  ;;  %16043 = vmatprep.mubr.bf16.mxu1 %v24712_v11  ;;  %v23634_v46 = vld [vmem:[%s24596_s4 + $0x26e0] ss:$40 sps:$4 sm:$0xff]  }
 0x763   : > { %16617 = vmatprep.mubr.bf16.mxu0 %v24712_v11  ;;  %v23585_v11 = vld [vmem:[%s24596_s4 + $0x245c] ss:$40 sps:$4 sm:$0xff]  }
 0x764   : > { %16014 = vmatpush1.bf16.msra.mxu1 %v23565_v21  ;;  %v23639_v21 = vld [vmem:[%s24596_s4 + $0x272c] ss:$40 sps:$4 sm:$0xff]  }
 0x765   : > { %16588 = vmatpush1.bf16.msra.mxu0 %v23568_v39  ;;  %16015 = vmatprep.subr.bf16.mxu1 %v23573_v44  ;;  %v23642_v39 = vld [vmem:[%s24596_s4 + $0x2734] ss:$40 sps:$4 sm:$0xff]   ;;  %v23637_v44 = vld [vmem:[%s24596_s4 + $0x2728] ss:$40 sps:$4 sm:$0xff]  }
 0x766   : > { %16589 = vmatprep.subr.bf16.mxu0 %v23576_v27  ;;  %v23640_v27 = vld [vmem:[%s24596_s4 + $0x2730] ss:$40 sps:$4 sm:$0xff]  }
 0x768   : > { %16016 = vmatpush1.bf16.msra.mxu1 %v23571_v16  ;;  %v23645_v16 = vld [vmem:[%s24596_s4 + $0x277c] ss:$40 sps:$4 sm:$0xff]  }
 0x769   : > { %16590 = vmatpush1.bf16.msra.mxu0 %v23574_v51  ;;  %16017 = vmatprep.subr.bf16.mxu1 %v23579_v52  ;;  %v23648_v51 = vld [vmem:[%s24596_s4 + $0x2784] ss:$40 sps:$4 sm:$0xff]   ;;  %v23643_v52 = vld [vmem:[%s24596_s4 + $0x2778] ss:$40 sps:$4 sm:$0xff]  }
 0x76a   : > { %16591 = vmatprep.subr.bf16.mxu0 %v23582_v15  ;;  %v23646_v15 = vld [vmem:[%s24596_s4 + $0x2780] ss:$40 sps:$4 sm:$0xff]  }
 0x76c   : > { %16018 = vmatpush1.bf16.msra.mxu1 %v23577_v55  ;;  %v23651_v55 = vld [vmem:[%s24596_s4 + $0x27cc] ss:$40 sps:$4 sm:$0xff]  }
 0x76d   : > { %16592 = vmatpush1.bf16.msra.mxu0 %v23580_v63  ;;  %16019 = vmatprep.subr.bf16.mxu1 %v23585_v11  ;;  %v23654_v63 = vld [vmem:[%s24596_s4 + $0x27d4] ss:$40 sps:$4 sm:$0xff]   ;;  %v23649_v11 = vld [vmem:[%s24596_s4 + $0x27c8] ss:$40 sps:$4 sm:$0xff]  }
 0x76e   : > { %16593 = vmatprep.subr.bf16.mxu0 %v23588_v56  ;;  %v23652_v56 = vld [vmem:[%s24596_s4 + $0x27d0] ss:$40 sps:$4 sm:$0xff]  }
 0x770   : > { %16020 = vmatpush1.bf16.msra.mxu1 %v23583_v57  ;;  %v23657_v57 = vld [vmem:[%s24596_s4 + $0x281c] ss:$40 sps:$4 sm:$0xff]  }
 0x771   : > { %16594 = vmatpush1.bf16.msra.mxu0 %v23586_v58  ;;  %16021 = vmatprep.subr.bf16.mxu1 %v23591_v20  ;;  %v23660_v58 = vld [vmem:[%s24596_s4 + $0x2824] ss:$40 sps:$4 sm:$0xff]   ;;  %v23655_v20 = vld [vmem:[%s24596_s4 + $0x2818] ss:$40 sps:$4 sm:$0xff]  }
 0x772   : > { %16595 = vmatprep.subr.bf16.mxu0 %v23594_v0  ;;  %v23658_v0 = vld [vmem:[%s24596_s4 + $0x2820] ss:$40 sps:$4 sm:$0xff]  }
 0x774   : > { %16022 = vmatpush1.bf16.msra.mxu1 %v23589_v1  ;;  %v23663_v1 = vld [vmem:[%s24596_s4 + $0x286c] ss:$40 sps:$4 sm:$0xff]  }
 0x775   : > { %16596 = vmatpush1.bf16.msra.mxu0 %v23592_v3  ;;  %16023 = vmatprep.subr.bf16.mxu1 %v23597_v2  ;;  %v23666_v3 = vld [vmem:[%s24596_s4 + $0x2874] ss:$40 sps:$4 sm:$0xff]   ;;  %v23661_v2 = vld [vmem:[%s24596_s4 + $0x2868] ss:$40 sps:$4 sm:$0xff]  }
 0x776   : > { %16597 = vmatprep.subr.bf16.mxu0 %v23600_v8  ;;  %v23664_v8 = vld [vmem:[%s24596_s4 + $0x2870] ss:$40 sps:$4 sm:$0xff]  }
 0x778   : > { %16024 = vmatpush1.bf16.msra.mxu1 %v23595_v5  ;;  %v23669_v5 = vld [vmem:[%s24596_s4 + $0x28bc] ss:$40 sps:$4 sm:$0xff]  }
 0x779   : > { %16598 = vmatpush1.bf16.msra.mxu0 %v23598_v9  ;;  %16025 = vmatprep.subr.bf16.mxu1 %v23603_v10  ;;  %v23672_v9 = vld [vmem:[%s24596_s4 + $0x28c4] ss:$40 sps:$4 sm:$0xff]   ;;  %v23670_v10 = vld [vmem:[%s24596_s4 + $0x28c0] ss:$40 sps:$4 sm:$0xff]  }
 0x77a   : > { %16599 = vmatprep.subr.bf16.mxu0 %v23606_v50  ;;  %v23675_v50 = vld [vmem:[%s24596_s4 + $0x290c] ss:$40 sps:$4 sm:$0xff]  }
 0x77c   : > { %16026 = vmatpush1.bf16.msra.mxu1 %v23601_v53  ;;  %v23678_v53 = vld [vmem:[%s24596_s4 + $0x2914] ss:$40 sps:$4 sm:$0xff]  }
 0x77d   : > { %16600 = vmatpush1.bf16.msra.mxu0 %v23604_v23  ;;  %16027 = vmatprep.subr.bf16.mxu1 %v23609_v36  ;;  %v23673_v23 = vld [vmem:[%s24596_s4 + $0x2908] ss:$40 sps:$4 sm:$0xff]  }
 0x77e   : > { %16601 = vmatprep.subr.bf16.mxu0 %v23612_v13  ;;  %v23676_v36 = vld [vmem:[%s24596_s4 + $0x2910] ss:$40 sps:$4 sm:$0xff]   ;;  %v23684_v13 = vld [vmem:[%s24596_s4 + $0x2964] ss:$40 sps:$4 sm:$0xff]  }
 0x780   : > { %16028 = vmatpush1.bf16.msra.mxu1 %v23607_v14  ;;  %v23679_v14 = vld [vmem:[%s24596_s4 + $0x2958] ss:$40 sps:$4 sm:$0xff]  }
 0x781   : > { %16602 = vmatpush1.bf16.msra.mxu0 %v23610_v18  ;;  %16029 = vmatprep.subr.bf16.mxu1 %v23615_v59  ;;  %v23682_v18 = vld [vmem:[%s24596_s4 + $0x2960] ss:$40 sps:$4 sm:$0xff]   ;;  %v23687_v59 = vld [vmem:[%s24596_s4 + $0x29ac] ss:$40 sps:$4 sm:$0xff]  }
 0x782   : > { %16603 = vmatprep.subr.bf16.mxu0 %v23618_v12  ;;  %v23690_v12 = vld [vmem:[%s24596_s4 + $0x29b4] ss:$40 sps:$4 sm:$0xff]  }
 0x784   : > { %16030 = vmatpush1.bf16.msra.mxu1 %v23613_v19  ;;  %v23685_v19 = vld [vmem:[%s24596_s4 + $0x29a8] ss:$40 sps:$4 sm:$0xff]  }
 0x785   : > { %16604 = vmatpush1.bf16.msra.mxu0 %v23616_v40  ;;  %16031 = vmatprep.subr.bf16.mxu1 %v23621_v24  ;;  %v23688_v40 = vld [vmem:[%s24596_s4 + $0x29b0] ss:$40 sps:$4 sm:$0xff]   ;;  %v23693_v24 = vld [vmem:[%s24596_s4 + $0x29fc] ss:$40 sps:$4 sm:$0xff]  }
 0x786   : > { %16605 = vmatprep.subr.bf16.mxu0 %v23624_v25  ;;  %v23696_v25 = vld [vmem:[%s24596_s4 + $0x2a04] ss:$40 sps:$4 sm:$0xff]  }
 0x788   : > { %16032 = vmatpush1.bf16.msra.mxu1 %v23619_v6  ;;  %v23691_v6 = vld [vmem:[%s24596_s4 + $0x29f8] ss:$40 sps:$4 sm:$0xff]  }
 0x789   : > { %16606 = vmatpush1.bf16.msra.mxu0 %v23622_v26  ;;  %16033 = vmatprep.subr.bf16.mxu1 %v23627_v29  ;;  %v23694_v26 = vld [vmem:[%s24596_s4 + $0x2a00] ss:$40 sps:$4 sm:$0xff]   ;;  %v23699_v29 = vld [vmem:[%s24596_s4 + $0x2a4c] ss:$40 sps:$4 sm:$0xff]  }
 0x78a   : > { %16607 = vmatprep.subr.bf16.mxu0 %v23630_v41  ;;  %v23702_v41 = vld [vmem:[%s24596_s4 + $0x2a54] ss:$40 sps:$4 sm:$0xff]  }
 0x78c   : > { %16034 = vmatpush1.bf16.msra.mxu1 %v23625_v30  ;;  %v23697_v30 = vld [vmem:[%s24596_s4 + $0x2a48] ss:$40 sps:$4 sm:$0xff]  }
 0x78d   : > { %16608 = vmatpush1.bf16.msra.mxu0 %v23628_v31  ;;  %16035 = vmatprep.subr.bf16.mxu1 %v23633_v32  ;;  %v23700_v31 = vld [vmem:[%s24596_s4 + $0x2a50] ss:$40 sps:$4 sm:$0xff]   ;;  %v23705_v32 = vld [vmem:[%s24596_s4 + $0x2a9c] ss:$40 sps:$4 sm:$0xff]  }
 0x78e   : > { %16609 = vmatprep.subr.bf16.mxu0 %v23636_v33  ;;  %v23708_v33 = vld [vmem:[%s24596_s4 + $0x2aa4] ss:$40 sps:$4 sm:$0xff]  }
 0x790   : > { %16036 = vmatpush1.bf16.msra.mxu1 %v23631_v34  ;;  %v23703_v34 = vld [vmem:[%s24596_s4 + $0x2a98] ss:$40 sps:$4 sm:$0xff]  }
 0x791   : > { %16610 = vmatpush1.bf16.msra.mxu0 %v23634_v46  ;;  %16037 = vmatprep.subr.bf16.mxu1 %v23639_v21  ;;  %v23706_v46 = vld [vmem:[%s24596_s4 + $0x2aa0] ss:$40 sps:$4 sm:$0xff]   ;;  %v23711_v21 = vld [vmem:[%s24596_s4 + $0x2aec] ss:$40 sps:$4 sm:$0xff]  }
 0x792   : > { %16611 = vmatprep.subr.bf16.mxu0 %v23642_v39  ;;  %v23714_v39 = vld [vmem:[%s24596_s4 + $0x2af4] ss:$40 sps:$4 sm:$0xff]  }
 0x794   : > { %16038 = vmatpush1.bf16.msra.mxu1 %v23637_v44  ;;  %v23709_v44 = vld [vmem:[%s24596_s4 + $0x2ae8] ss:$40 sps:$4 sm:$0xff]  }
 0x795   : > { %16612 = vmatpush1.bf16.msra.mxu0 %v23640_v27  ;;  %16039 = vmatprep.subr.bf16.mxu1 %v23645_v16  ;;  %v23712_v27 = vld [vmem:[%s24596_s4 + $0x2af0] ss:$40 sps:$4 sm:$0xff]   ;;  %v23717_v16 = vld [vmem:[%s24596_s4 + $0x2b3c] ss:$40 sps:$4 sm:$0xff]  }
 0x796   : > { %16613 = vmatprep.subr.bf16.mxu0 %v23648_v51  ;;  %v23720_v51 = vld [vmem:[%s24596_s4 + $0x2b44] ss:$40 sps:$4 sm:$0xff]  }
 0x798   : > { %16040 = vmatpush1.bf16.msra.mxu1 %v23643_v52  ;;  %v23715_v52 = vld [vmem:[%s24596_s4 + $0x2b38] ss:$40 sps:$4 sm:$0xff]  }
 0x799   : > { %16614 = vmatpush1.bf16.msra.mxu0 %v23646_v15  ;;  %16041 = vmatprep.subr.bf16.mxu1 %v23651_v55  ;;  %v23718_v15 = vld [vmem:[%s24596_s4 + $0x2b40] ss:$40 sps:$4 sm:$0xff]   ;;  %v23723_v55 = vld [vmem:[%s24596_s4 + $0x2b8c] ss:$40 sps:$4 sm:$0xff]  }
 0x79a   : > { %16615 = vmatprep.subr.bf16.mxu0 %v23654_v63  ;;  %v23726_v63 = vld [vmem:[%s24596_s4 + $0x2b94] ss:$40 sps:$4 sm:$0xff]  }
 0x79c   : > { %16042 = vmatpush1.bf16.msra.mxu1 %v23649_v11  ;;  %v23721_v11 = vld [vmem:[%s24596_s4 + $0x2b88] ss:$40 sps:$4 sm:$0xff]  }
 0x79d   : > { %16616 = vmatpush1.bf16.msra.mxu0 %v23652_v56  ;;  %16052 = vmatprep.subr.bf16.mxu1 %v23657_v57  ;;  %v23724_v56 = vld [vmem:[%s24596_s4 + $0x2b90] ss:$40 sps:$4 sm:$0xff]   ;;  %v23729_v57 = vld [vmem:[%s24596_s4 + $0x2bdc] ss:$40 sps:$4 sm:$0xff]  }
 0x79e   : > { %16626 = vmatprep.subr.bf16.mxu0 %v23660_v58  ;;  %v23732_v58 = vld [vmem:[%s24596_s4 + $0x2be4] ss:$40 sps:$4 sm:$0xff]  }
 0x79f   : > { %16044 = vmatmul.mubr.bf16.vlgmr.msra.gmra.mrb[8].mxu1 %v24731_v22 }
 0x7a0   : > { %16618 = vmatmul.mubr.bf16.vlgmr.msra.gmra.mrb[8].mxu0 %v24731_v22  ;;  %16053 = vmatpush1.bf16.msra.mxu1 %v23655_v20  ;;  %v23667_v22 = vld [vmem:[%s24596_s4 + $0x28b8] ss:$40 sps:$4 sm:$0xff]  }
 0x7a1   : > { %16627 = vmatpush1.bf16.msra.mxu0 %v23658_v0  ;;  %16054 = vmatprep.subr.bf16.mxu1 %v23663_v1  ;;  %v23727_v20 = vld [vmem:[%s24596_s4 + $0x2bd8] ss:$40 sps:$4 sm:$0xff]   ;;  %v23735_v1 = vld [vmem:[%s24596_s4 + $0x2c2c] ss:$40 sps:$4 sm:$0xff]  }
 0x7a2   : > { %16628 = vmatprep.subr.bf16.mxu0 %v23666_v3  ;;  %16084 = vmatprep.mubr.bf16.mxu1 %v24781_v61  ;;  %v23730_v0 = vld [vmem:[%s24596_s4 + $0x2be0] ss:$40 sps:$4 sm:$0xff]   ;;  %v23738_v3 = vld [vmem:[%s24596_s4 + $0x2c34] ss:$40 sps:$4 sm:$0xff]  }
 0x7a3   : > { %16658 = vmatprep.mubr.bf16.mxu0 %v24781_v61  ;;  %v23681_v61 = vld [vmem:[%s24596_s4 + $0x295c] ss:$40 sps:$4 sm:$0xff]  }
 0x7a4   : > { %16055 = vmatpush1.bf16.msra.mxu1 %v23661_v2  ;;  %v23733_v2 = vld [vmem:[%s24596_s4 + $0x2c28] ss:$40 sps:$4 sm:$0xff]  }
 0x7a5   : > { %16629 = vmatpush1.bf16.msra.mxu0 %v23664_v8  ;;  %16056 = vmatprep.subr.bf16.mxu1 %v23669_v5  ;;  %v23736_v8 = vld [vmem:[%s24596_s4 + $0x2c30] ss:$40 sps:$4 sm:$0xff]   ;;  %v23741_v5 = vld [vmem:[%s24596_s4 + $0x2c7c] ss:$40 sps:$4 sm:$0xff]  }
 0x7a6   : > { %16630 = vmatprep.subr.bf16.mxu0 %v23672_v9  ;;  %v23744_v9 = vld [vmem:[%s24596_s4 + $0x2c84] ss:$40 sps:$4 sm:$0xff]  }
 0x7a8   : > { %16057 = vmatpush1.bf16.msra.mxu1 %v23667_v22  ;;  %v23739_v22 = vld [vmem:[%s24596_s4 + $0x2c78] ss:$40 sps:$4 sm:$0xff]  }
 0x7a9   : > { %16631 = vmatpush1.bf16.msra.mxu0 %v23670_v10  ;;  %16058 = vmatprep.subr.bf16.mxu1 %v23675_v50  ;;  %v23742_v10 = vld [vmem:[%s24596_s4 + $0x2c80] ss:$40 sps:$4 sm:$0xff]   ;;  %v23747_v50 = vld [vmem:[%s24596_s4 + $0x2ccc] ss:$40 sps:$4 sm:$0xff]  }
 0x7aa   : > { %16632 = vmatprep.subr.bf16.mxu0 %v23678_v53  ;;  %v23750_v53 = vld [vmem:[%s24596_s4 + $0x2cd4] ss:$40 sps:$4 sm:$0xff]  }
 0x7ac   : > { %16059 = vmatpush1.bf16.msra.mxu1 %v23673_v23  ;;  %v23745_v23 = vld [vmem:[%s24596_s4 + $0x2cc8] ss:$40 sps:$4 sm:$0xff]  }
 0x7ad   : > { %16633 = vmatpush1.bf16.msra.mxu0 %v23676_v36  ;;  %16060 = vmatprep.subr.bf16.mxu1 %v23681_v61  ;;  %v23748_v36 = vld [vmem:[%s24596_s4 + $0x2cd0] ss:$40 sps:$4 sm:$0xff]   ;;  %v23753_v61 = vld [vmem:[%s24596_s4 + $0x2d1c] ss:$40 sps:$4 sm:$0xff]  }
 0x7ae   : > { %16634 = vmatprep.subr.bf16.mxu0 %v23684_v13  ;;  %v23756_v13 = vld [vmem:[%s24596_s4 + $0x2d24] ss:$40 sps:$4 sm:$0xff]  }
 0x7b0   : > { %16061 = vmatpush1.bf16.msra.mxu1 %v23679_v14  ;;  %v23751_v14 = vld [vmem:[%s24596_s4 + $0x2d18] ss:$40 sps:$4 sm:$0xff]  }
 0x7b1   : > { %16635 = vmatpush1.bf16.msra.mxu0 %v23682_v18  ;;  %16062 = vmatprep.subr.bf16.mxu1 %v23687_v59  ;;  %v23754_v18 = vld [vmem:[%s24596_s4 + $0x2d20] ss:$40 sps:$4 sm:$0xff]   ;;  %v23759_v59 = vld [vmem:[%s24596_s4 + $0x2d6c] ss:$40 sps:$4 sm:$0xff]  }
 0x7b2   : > { %16636 = vmatprep.subr.bf16.mxu0 %v23690_v12  ;;  %v23762_v12 = vld [vmem:[%s24596_s4 + $0x2d74] ss:$40 sps:$4 sm:$0xff]  }
 0x7b4   : > { %16063 = vmatpush1.bf16.msra.mxu1 %v23685_v19  ;;  %v23757_v19 = vld [vmem:[%s24596_s4 + $0x2d68] ss:$40 sps:$4 sm:$0xff]  }
 0x7b5   : > { %16637 = vmatpush1.bf16.msra.mxu0 %v23688_v40  ;;  %16064 = vmatprep.subr.bf16.mxu1 %v23693_v24  ;;  %v23760_v40 = vld [vmem:[%s24596_s4 + $0x2d70] ss:$40 sps:$4 sm:$0xff]   ;;  %v23765_v24 = vld [vmem:[%s24596_s4 + $0x2dbc] ss:$40 sps:$4 sm:$0xff]  }
 0x7b6   : > { %16638 = vmatprep.subr.bf16.mxu0 %v23696_v25  ;;  %v23768_v25 = vld [vmem:[%s24596_s4 + $0x2dc4] ss:$40 sps:$4 sm:$0xff]  }
 0x7b8   : > { %16065 = vmatpush1.bf16.msra.mxu1 %v23691_v6  ;;  %v23766_v6 = vld [vmem:[%s24596_s4 + $0x2dc0] ss:$40 sps:$4 sm:$0xff]  }
 0x7b9   : > { %16639 = vmatpush1.bf16.msra.mxu0 %v23694_v26  ;;  %16066 = vmatprep.subr.bf16.mxu1 %v23699_v29  ;;  %v23771_v26 = vld [vmem:[%s24596_s4 + $0x2e0c] ss:$40 sps:$4 sm:$0xff]  }
 0x7ba   : > { %16640 = vmatprep.subr.bf16.mxu0 %v23702_v41  ;;  %v23774_v29 = vld [vmem:[%s24596_s4 + $0x2e14] ss:$40 sps:$4 sm:$0xff]   ;;  %v23769_v41 = vld [vmem:[%s24596_s4 + $0x2e08] ss:$40 sps:$4 sm:$0xff]  }
 0x7bc   : > { %16067 = vmatpush1.bf16.msra.mxu1 %v23697_v30  ;;  %v23772_v30 = vld [vmem:[%s24596_s4 + $0x2e10] ss:$40 sps:$4 sm:$0xff]  }
 0x7bd   : > { %16641 = vmatpush1.bf16.msra.mxu0 %v23700_v31  ;;  %16068 = vmatprep.subr.bf16.mxu1 %v23705_v32  ;;  %v23780_v31 = vld [vmem:[%s24596_s4 + $0x2e64] ss:$40 sps:$4 sm:$0xff]   ;;  %v23775_v32 = vld [vmem:[%s24596_s4 + $0x2e58] ss:$40 sps:$4 sm:$0xff]  }
 0x7be   : > { %16642 = vmatprep.subr.bf16.mxu0 %v23708_v33  ;;  %v23778_v33 = vld [vmem:[%s24596_s4 + $0x2e60] ss:$40 sps:$4 sm:$0xff]  }
 0x7c0   : > { %16069 = vmatpush1.bf16.msra.mxu1 %v23703_v34  ;;  %v23783_v34 = vld [vmem:[%s24596_s4 + $0x2eac] ss:$40 sps:$4 sm:$0xff]  }
 0x7c1   : > { %16643 = vmatpush1.bf16.msra.mxu0 %v23706_v46  ;;  %16070 = vmatprep.subr.bf16.mxu1 %v23711_v21  ;;  %v23786_v46 = vld [vmem:[%s24596_s4 + $0x2eb4] ss:$40 sps:$4 sm:$0xff]   ;;  %v23781_v21 = vld [vmem:[%s24596_s4 + $0x2ea8] ss:$40 sps:$4 sm:$0xff]  }
 0x7c2   : > { %16644 = vmatprep.subr.bf16.mxu0 %v23714_v39  ;;  %v23784_v39 = vld [vmem:[%s24596_s4 + $0x2eb0] ss:$40 sps:$4 sm:$0xff]  }
 0x7c4   : > { %16071 = vmatpush1.bf16.msra.mxu1 %v23709_v44  ;;  %v23789_v44 = vld [vmem:[%s24596_s4 + $0x2efc] ss:$40 sps:$4 sm:$0xff]  }
 0x7c5   : > { %16645 = vmatpush1.bf16.msra.mxu0 %v23712_v27  ;;  %16072 = vmatprep.subr.bf16.mxu1 %v23717_v16  ;;  %v23792_v27 = vld [vmem:[%s24596_s4 + $0x2f04] ss:$40 sps:$4 sm:$0xff]   ;;  %v23787_v16 = vld [vmem:[%s24596_s4 + $0x2ef8] ss:$40 sps:$4 sm:$0xff]  }
 0x7c6   : > { %16646 = vmatprep.subr.bf16.mxu0 %v23720_v51  ;;  %v23790_v51 = vld [vmem:[%s24596_s4 + $0x2f00] ss:$40 sps:$4 sm:$0xff]  }
 0x7c8   : > { %16073 = vmatpush1.bf16.msra.mxu1 %v23715_v52  ;;  %v23795_v52 = vld [vmem:[%s24596_s4 + $0x2f4c] ss:$40 sps:$4 sm:$0xff]  }
 0x7c9   : > { %16647 = vmatpush1.bf16.msra.mxu0 %v23718_v15  ;;  %16074 = vmatprep.subr.bf16.mxu1 %v23723_v55  ;;  %v23798_v15 = vld [vmem:[%s24596_s4 + $0x2f54] ss:$40 sps:$4 sm:$0xff]   ;;  %v23793_v55 = vld [vmem:[%s24596_s4 + $0x2f48] ss:$40 sps:$4 sm:$0xff]  }
 0x7ca   : > { %16648 = vmatprep.subr.bf16.mxu0 %v23726_v63  ;;  %v23796_v63 = vld [vmem:[%s24596_s4 + $0x2f50] ss:$40 sps:$4 sm:$0xff]  }
 0x7cc   : > { %16075 = vmatpush1.bf16.msra.mxu1 %v23721_v11  ;;  %v23801_v11 = vld [vmem:[%s24596_s4 + $0x2f9c] ss:$40 sps:$4 sm:$0xff]  }
 0x7cd   : > { %16649 = vmatpush1.bf16.msra.mxu0 %v23724_v56  ;;  %16076 = vmatprep.subr.bf16.mxu1 %v23729_v57  ;;  %v23804_v56 = vld [vmem:[%s24596_s4 + $0x2fa4] ss:$40 sps:$4 sm:$0xff]   ;;  %v23799_v57 = vld [vmem:[%s24596_s4 + $0x2f98] ss:$40 sps:$4 sm:$0xff]  }
 0x7ce   : > { %16650 = vmatprep.subr.bf16.mxu0 %v23732_v58  ;;  %v23802_v58 = vld [vmem:[%s24596_s4 + $0x2fa0] ss:$40 sps:$4 sm:$0xff]  }
 0x7d0   : > { %16077 = vmatpush1.bf16.msra.mxu1 %v23727_v20  ;;  %v23807_v20 = vld [vmem:[%s24596_s4 + $0x2fec] ss:$40 sps:$4 sm:$0xff]  }
 0x7d1   : > { %16651 = vmatpush1.bf16.msra.mxu0 %v23730_v0  ;;  %16078 = vmatprep.subr.bf16.mxu1 %v23735_v1  ;;  %v23810_v0 = vld [vmem:[%s24596_s4 + $0x2ff4] ss:$40 sps:$4 sm:$0xff]   ;;  %v23805_v1 = vld [vmem:[%s24596_s4 + $0x2fe8] ss:$40 sps:$4 sm:$0xff]  }
 0x7d2   : > { %16652 = vmatprep.subr.bf16.mxu0 %v23738_v3  ;;  %v23808_v3 = vld [vmem:[%s24596_s4 + $0x2ff0] ss:$40 sps:$4 sm:$0xff]  }
 0x7d4   : > { %16079 = vmatpush1.bf16.msra.mxu1 %v23733_v2  ;;  %v23813_v2 = vld [vmem:[%s24596_s4 + $0x303c] ss:$40 sps:$4 sm:$0xff]  }
 0x7d5   : > { %16653 = vmatpush1.bf16.msra.mxu0 %v23736_v8  ;;  %16080 = vmatprep.subr.bf16.mxu1 %v23741_v5  ;;  %v23816_v8 = vld [vmem:[%s24596_s4 + $0x3044] ss:$40 sps:$4 sm:$0xff]   ;;  %v23811_v5 = vld [vmem:[%s24596_s4 + $0x3038] ss:$40 sps:$4 sm:$0xff]  }
 0x7d6   : > { %16654 = vmatprep.subr.bf16.mxu0 %v23744_v9  ;;  %v23814_v9 = vld [vmem:[%s24596_s4 + $0x3040] ss:$40 sps:$4 sm:$0xff]  }
 0x7d8   : > { %16081 = vmatpush1.bf16.msra.mxu1 %v23739_v22  ;;  %v23819_v22 = vld [vmem:[%s24596_s4 + $0x308c] ss:$40 sps:$4 sm:$0xff]  }
 0x7d9   : > { %16655 = vmatpush1.bf16.msra.mxu0 %v23742_v10  ;;  %16082 = vmatprep.subr.bf16.mxu1 %v23747_v50  ;;  %v23822_v10 = vld [vmem:[%s24596_s4 + $0x3094] ss:$40 sps:$4 sm:$0xff]   ;;  %v23817_v50 = vld [vmem:[%s24596_s4 + $0x3088] ss:$40 sps:$4 sm:$0xff]  }
 0x7da   : > { %16656 = vmatprep.subr.bf16.mxu0 %v23750_v53  ;;  %v23820_v53 = vld [vmem:[%s24596_s4 + $0x3090] ss:$40 sps:$4 sm:$0xff]  }
 0x7dc   : > { %16083 = vmatpush1.bf16.msra.mxu1 %v23745_v23  ;;  %v23825_v23 = vld [vmem:[%s24596_s4 + $0x30dc] ss:$40 sps:$4 sm:$0xff]  }
 0x7dd   : > { %16657 = vmatpush1.bf16.msra.mxu0 %v23748_v36  ;;  %16093 = vmatprep.subr.bf16.mxu1 %v23753_v61  ;;  %v23828_v36 = vld [vmem:[%s24596_s4 + $0x30e4] ss:$40 sps:$4 sm:$0xff]   ;;  %v23823_v61 = vld [vmem:[%s24596_s4 + $0x30d8] ss:$40 sps:$4 sm:$0xff]  }
 0x7de   : > { %16667 = vmatprep.subr.bf16.mxu0 %v23756_v13  ;;  %v23826_v13 = vld [vmem:[%s24596_s4 + $0x30e0] ss:$40 sps:$4 sm:$0xff]  }
 0x7df   : > { %16085 = vmatmul.mubr.bf16.vlgmr.msra.gmra.mrb[8].mxu1 %v24831_v42 }
 0x7e0   : > { %16659 = vmatmul.mubr.bf16.vlgmr.msra.gmra.mrb[8].mxu0 %v24831_v42  ;;  %16094 = vmatpush1.bf16.msra.mxu1 %v23751_v14  ;;  %v23763_v42 = vld [vmem:[%s24596_s4 + $0x2db8] ss:$40 sps:$4 sm:$0xff]   ;;  %v23831_v14 = vld [vmem:[%s24596_s4 + $0x312c] ss:$40 sps:$4 sm:$0xff]  }
 0x7e1   : > { %16668 = vmatpush1.bf16.msra.mxu0 %v23754_v18  ;;  %16095 = vmatprep.subr.bf16.mxu1 %v23759_v59  ;;  %v23834_v18 = vld [vmem:[%s24596_s4 + $0x3134] ss:$40 sps:$4 sm:$0xff]   ;;  %v23829_v59 = vld [vmem:[%s24596_s4 + $0x3128] ss:$40 sps:$4 sm:$0xff]  }
 0x7e2   : > { %16669 = vmatprep.subr.bf16.mxu0 %v23762_v12  ;;  %16125 = vmatprep.mubr.bf16.mxu1 %v24841_v47  ;;  %v23832_v12 = vld [vmem:[%s24596_s4 + $0x3130] ss:$40 sps:$4 sm:$0xff]  }
 0x7e3   : > { %16699 = vmatprep.mubr.bf16.mxu0 %v24841_v47  ;;  %v23777_v47 = vld [vmem:[%s24596_s4 + $0x2e5c] ss:$40 sps:$4 sm:$0xff]  }
 0x7e4   : > { %16096 = vmatpush1.bf16.msra.mxu1 %v23757_v19  ;;  %v23837_v19 = vld [vmem:[%s24596_s4 + $0x317c] ss:$40 sps:$4 sm:$0xff]  }
 0x7e5   : > { %16670 = vmatpush1.bf16.msra.mxu0 %v23760_v40  ;;  %16097 = vmatprep.subr.bf16.mxu1 %v23765_v24  ;;  %v23840_v40 = vld [vmem:[%s24596_s4 + $0x3184] ss:$40 sps:$4 sm:$0xff]   ;;  %v23835_v24 = vld [vmem:[%s24596_s4 + $0x3178] ss:$40 sps:$4 sm:$0xff]  }
 0x7e6   : > { %16671 = vmatprep.subr.bf16.mxu0 %v23768_v25  ;;  %v23838_v25 = vld [vmem:[%s24596_s4 + $0x3180] ss:$40 sps:$4 sm:$0xff]  }
 0x7e8   : > { %16098 = vmatpush1.bf16.msra.mxu1 %v23763_v42  ;;  %v23843_v42 = vld [vmem:[%s24596_s4 + $0x31cc] ss:$40 sps:$4 sm:$0xff]  }
 0x7e9   : > { %16672 = vmatpush1.bf16.msra.mxu0 %v23766_v6  ;;  %16099 = vmatprep.subr.bf16.mxu1 %v23771_v26  ;;  %v23846_v6 = vld [vmem:[%s24596_s4 + $0x31d4] ss:$40 sps:$4 sm:$0xff]   ;;  %v23841_v26 = vld [vmem:[%s24596_s4 + $0x31c8] ss:$40 sps:$4 sm:$0xff]  }
 0x7ea   : > { %16673 = vmatprep.subr.bf16.mxu0 %v23774_v29  ;;  %v23844_v29 = vld [vmem:[%s24596_s4 + $0x31d0] ss:$40 sps:$4 sm:$0xff]  }
 0x7ec   : > { %16100 = vmatpush1.bf16.msra.mxu1 %v23769_v41  ;;  %v23849_v41 = vld [vmem:[%s24596_s4 + $0x321c] ss:$40 sps:$4 sm:$0xff]  }
 0x7ed   : > { %16674 = vmatpush1.bf16.msra.mxu0 %v23772_v30  ;;  %16101 = vmatprep.subr.bf16.mxu1 %v23777_v47  ;;  %v23852_v30 = vld [vmem:[%s24596_s4 + $0x3224] ss:$40 sps:$4 sm:$0xff]   ;;  %v23847_v47 = vld [vmem:[%s24596_s4 + $0x3218] ss:$40 sps:$4 sm:$0xff]  }
 0x7ee   : > { %16675 = vmatprep.subr.bf16.mxu0 %v23780_v31  ;;  %v23850_v31 = vld [vmem:[%s24596_s4 + $0x3220] ss:$40 sps:$4 sm:$0xff]  }
 0x7f0   : > { %16102 = vmatpush1.bf16.msra.mxu1 %v23775_v32  ;;  %v23855_v32 = vld [vmem:[%s24596_s4 + $0x326c] ss:$40 sps:$4 sm:$0xff]  }
 0x7f1   : > { %16676 = vmatpush1.bf16.msra.mxu0 %v23778_v33  ;;  %16103 = vmatprep.subr.bf16.mxu1 %v23783_v34  ;;  %v23858_v33 = vld [vmem:[%s24596_s4 + $0x3274] ss:$40 sps:$4 sm:$0xff]   ;;  %v23853_v34 = vld [vmem:[%s24596_s4 + $0x3268] ss:$40 sps:$4 sm:$0xff]  }
 0x7f2   : > { %16677 = vmatprep.subr.bf16.mxu0 %v23786_v46  ;;  %v23856_v46 = vld [vmem:[%s24596_s4 + $0x3270] ss:$40 sps:$4 sm:$0xff]  }
 0x7f4   : > { %16104 = vmatpush1.bf16.msra.mxu1 %v23781_v21  ;;  %v23861_v21 = vld [vmem:[%s24596_s4 + $0x32bc] ss:$40 sps:$4 sm:$0xff]  }
 0x7f5   : > { %16678 = vmatpush1.bf16.msra.mxu0 %v23784_v39  ;;  %16105 = vmatprep.subr.bf16.mxu1 %v23789_v44  ;;  %v23864_v39 = vld [vmem:[%s24596_s4 + $0x32c4] ss:$40 sps:$4 sm:$0xff]   ;;  %v23862_v44 = vld [vmem:[%s24596_s4 + $0x32c0] ss:$40 sps:$4 sm:$0xff]  }
 0x7f6   : > { %16679 = vmatprep.subr.bf16.mxu0 %v23792_v27  ;;  %v23867_v27 = vld [vmem:[%s24596_s4 + $0x330c] ss:$40 sps:$4 sm:$0xff]  }
 0x7f8   : > { %16106 = vmatpush1.bf16.msra.mxu1 %v23787_v16  ;;  %v23870_v16 = vld [vmem:[%s24596_s4 + $0x3314] ss:$40 sps:$4 sm:$0xff]  }
 0x7f9   : > { %16680 = vmatpush1.bf16.msra.mxu0 %v23790_v51  ;;  %16107 = vmatprep.subr.bf16.mxu1 %v23795_v52  ;;  %v23865_v51 = vld [vmem:[%s24596_s4 + $0x3308] ss:$40 sps:$4 sm:$0xff]  }
 0x7fa   : > { %16681 = vmatprep.subr.bf16.mxu0 %v23798_v15  ;;  %v23868_v52 = vld [vmem:[%s24596_s4 + $0x3310] ss:$40 sps:$4 sm:$0xff]   ;;  %v23876_v15 = vld [vmem:[%s24596_s4 + $0x3364] ss:$40 sps:$4 sm:$0xff]  }
 0x7fc   : > { %16108 = vmatpush1.bf16.msra.mxu1 %v23793_v55  ;;  %v23871_v55 = vld [vmem:[%s24596_s4 + $0x3358] ss:$40 sps:$4 sm:$0xff]  }
 0x7fd   : > { %16682 = vmatpush1.bf16.msra.mxu0 %v23796_v63  ;;  %16109 = vmatprep.subr.bf16.mxu1 %v23801_v11  ;;  %v23874_v63 = vld [vmem:[%s24596_s4 + $0x3360] ss:$40 sps:$4 sm:$0xff]   ;;  %v23879_v11 = vld [vmem:[%s24596_s4 + $0x33ac] ss:$40 sps:$4 sm:$0xff]  }
 0x7fe   : > { %16683 = vmatprep.subr.bf16.mxu0 %v23804_v56  ;;  %v23882_v56 = vld [vmem:[%s24596_s4 + $0x33b4] ss:$40 sps:$4 sm:$0xff]  }
 0x800   : > { %16110 = vmatpush1.bf16.msra.mxu1 %v23799_v57  ;;  %v23877_v57 = vld [vmem:[%s24596_s4 + $0x33a8] ss:$40 sps:$4 sm:$0xff]  }
 0x801   : > { %16684 = vmatpush1.bf16.msra.mxu0 %v23802_v58  ;;  %16111 = vmatprep.subr.bf16.mxu1 %v23807_v20  ;;  %v23880_v58 = vld [vmem:[%s24596_s4 + $0x33b0] ss:$40 sps:$4 sm:$0xff]   ;;  %v23885_v20 = vld [vmem:[%s24596_s4 + $0x33fc] ss:$40 sps:$4 sm:$0xff]  }
 0x802   : > { %16685 = vmatprep.subr.bf16.mxu0 %v23810_v0  ;;  %v23888_v0 = vld [vmem:[%s24596_s4 + $0x3404] ss:$40 sps:$4 sm:$0xff]  }
 0x804   : > { %16112 = vmatpush1.bf16.msra.mxu1 %v23805_v1  ;;  %v23883_v1 = vld [vmem:[%s24596_s4 + $0x33f8] ss:$40 sps:$4 sm:$0xff]  }
 0x805   : > { %16686 = vmatpush1.bf16.msra.mxu0 %v23808_v3  ;;  %16113 = vmatprep.subr.bf16.mxu1 %v23813_v2  ;;  %v23886_v3 = vld [vmem:[%s24596_s4 + $0x3400] ss:$40 sps:$4 sm:$0xff]   ;;  %v23891_v2 = vld [vmem:[%s24596_s4 + $0x344c] ss:$40 sps:$4 sm:$0xff]  }
 0x806   : > { %16687 = vmatprep.subr.bf16.mxu0 %v23816_v8  ;;  %v23894_v8 = vld [vmem:[%s24596_s4 + $0x3454] ss:$40 sps:$4 sm:$0xff]  }
 0x808   : > { %16114 = vmatpush1.bf16.msra.mxu1 %v23811_v5  ;;  %v23889_v5 = vld [vmem:[%s24596_s4 + $0x3448] ss:$40 sps:$4 sm:$0xff]  }
 0x809   : > { %16688 = vmatpush1.bf16.msra.mxu0 %v23814_v9  ;;  %16115 = vmatprep.subr.bf16.mxu1 %v23819_v22  ;;  %v23892_v9 = vld [vmem:[%s24596_s4 + $0x3450] ss:$40 sps:$4 sm:$0xff]   ;;  %v23897_v22 = vld [vmem:[%s24596_s4 + $0x349c] ss:$40 sps:$4 sm:$0xff]  }
 0x80a   : > { %16689 = vmatprep.subr.bf16.mxu0 %v23822_v10  ;;  %v23900_v10 = vld [vmem:[%s24596_s4 + $0x34a4] ss:$40 sps:$4 sm:$0xff]  }
 0x80c   : > { %16116 = vmatpush1.bf16.msra.mxu1 %v23817_v50  ;;  %v23895_v50 = vld [vmem:[%s24596_s4 + $0x3498] ss:$40 sps:$4 sm:$0xff]  }
 0x80d   : > { %16690 = vmatpush1.bf16.msra.mxu0 %v23820_v53  ;;  %16117 = vmatprep.subr.bf16.mxu1 %v23825_v23  ;;  %v23898_v53 = vld [vmem:[%s24596_s4 + $0x34a0] ss:$40 sps:$4 sm:$0xff]   ;;  %v23903_v23 = vld [vmem:[%s24596_s4 + $0x34ec] ss:$40 sps:$4 sm:$0xff]  }
 0x80e   : > { %16691 = vmatprep.subr.bf16.mxu0 %v23828_v36  ;;  %v23906_v36 = vld [vmem:[%s24596_s4 + $0x34f4] ss:$40 sps:$4 sm:$0xff]  }
 0x810   : > { %16118 = vmatpush1.bf16.msra.mxu1 %v23823_v61  ;;  %v23901_v61 = vld [vmem:[%s24596_s4 + $0x34e8] ss:$40 sps:$4 sm:$0xff]  }
 0x811   : > { %16692 = vmatpush1.bf16.msra.mxu0 %v23826_v13  ;;  %16119 = vmatprep.subr.bf16.mxu1 %v23831_v14  ;;  %v23904_v13 = vld [vmem:[%s24596_s4 + $0x34f0] ss:$40 sps:$4 sm:$0xff]   ;;  %v23909_v14 = vld [vmem:[%s24596_s4 + $0x353c] ss:$40 sps:$4 sm:$0xff]  }
 0x812   : > { %16693 = vmatprep.subr.bf16.mxu0 %v23834_v18  ;;  %v23912_v18 = vld [vmem:[%s24596_s4 + $0x3544] ss:$40 sps:$4 sm:$0xff]  }
 0x814   : > { %16120 = vmatpush1.bf16.msra.mxu1 %v23829_v59  ;;  %v23907_v59 = vld [vmem:[%s24596_s4 + $0x3538] ss:$40 sps:$4 sm:$0xff]  }
 0x815   : > { %16694 = vmatpush1.bf16.msra.mxu0 %v23832_v12  ;;  %16121 = vmatprep.subr.bf16.mxu1 %v23837_v19  ;;  %v23910_v12 = vld [vmem:[%s24596_s4 + $0x3540] ss:$40 sps:$4 sm:$0xff]   ;;  %v23915_v19 = vld [vmem:[%s24596_s4 + $0x358c] ss:$40 sps:$4 sm:$0xff]  }
 0x816   : > { %16695 = vmatprep.subr.bf16.mxu0 %v23840_v40  ;;  %v23918_v40 = vld [vmem:[%s24596_s4 + $0x3594] ss:$40 sps:$4 sm:$0xff]  }
 0x818   : > { %16122 = vmatpush1.bf16.msra.mxu1 %v23835_v24  ;;  %v23913_v24 = vld [vmem:[%s24596_s4 + $0x3588] ss:$40 sps:$4 sm:$0xff]  }
 0x819   : > { %16696 = vmatpush1.bf16.msra.mxu0 %v23838_v25  ;;  %16123 = vmatprep.subr.bf16.mxu1 %v23843_v42  ;;  %v23916_v25 = vld [vmem:[%s24596_s4 + $0x3590] ss:$40 sps:$4 sm:$0xff]   ;;  %v23921_v42 = vld [vmem:[%s24596_s4 + $0x35dc] ss:$40 sps:$4 sm:$0xff]  }
 0x81a   : > { %16697 = vmatprep.subr.bf16.mxu0 %v23846_v6  ;;  %v23924_v6 = vld [vmem:[%s24596_s4 + $0x35e4] ss:$40 sps:$4 sm:$0xff]  }
 0x81c   : > { %16124 = vmatpush1.bf16.msra.mxu1 %v23841_v26  ;;  %v23919_v26 = vld [vmem:[%s24596_s4 + $0x35d8] ss:$40 sps:$4 sm:$0xff]  }
 0x81d   : > { %16698 = vmatpush1.bf16.msra.mxu0 %v23844_v29  ;;  %16134 = vmatprep.subr.bf16.mxu1 %v23849_v41  ;;  %v23922_v29 = vld [vmem:[%s24596_s4 + $0x35e0] ss:$40 sps:$4 sm:$0xff]   ;;  %v23927_v41 = vld [vmem:[%s24596_s4 + $0x362c] ss:$40 sps:$4 sm:$0xff]  }
 0x81e   : > { %16708 = vmatprep.subr.bf16.mxu0 %v23852_v30  ;;  %v23930_v30 = vld [vmem:[%s24596_s4 + $0x3634] ss:$40 sps:$4 sm:$0xff]  }
 0x81f   : > { %16126 = vmatmul.mubr.bf16.vlgmr.msra.gmra.mrb[8].mxu1 %v24921_v7 }
 0x820   : > { %16700 = vmatmul.mubr.bf16.vlgmr.msra.gmra.mrb[8].mxu0 %v24921_v7  ;;  %16135 = vmatpush1.bf16.msra.mxu1 %v23847_v47  ;;  %v23859_v7 = vld [vmem:[%s24596_s4 + $0x32b8] ss:$40 sps:$4 sm:$0xff]   ;;  %v23925_v47 = vld [vmem:[%s24596_s4 + $0x3628] ss:$40 sps:$4 sm:$0xff]  }
 0x821   : > { %16709 = vmatpush1.bf16.msra.mxu0 %v23850_v31  ;;  %16136 = vmatprep.subr.bf16.mxu1 %v23855_v32  ;;  %v23928_v31 = vld [vmem:[%s24596_s4 + $0x3630] ss:$40 sps:$4 sm:$0xff]   ;;  %v23933_v32 = vld [vmem:[%s24596_s4 + $0x367c] ss:$40 sps:$4 sm:$0xff]  }
 0x822   : > { %16710 = vmatprep.subr.bf16.mxu0 %v23858_v33  ;;  %16166 = vmatprep.mubr.bf16.mxu1 %v24931_v35  ;;  %v23936_v33 = vld [vmem:[%s24596_s4 + $0x3684] ss:$40 sps:$4 sm:$0xff]  }
 0x823   : > { %16740 = vmatprep.mubr.bf16.mxu0 %v24931_v35  ;;  %v23873_v35 = vld [vmem:[%s24596_s4 + $0x335c] ss:$40 sps:$4 sm:$0xff]  }
 0x824   : > { %16137 = vmatpush1.bf16.msra.mxu1 %v23853_v34  ;;  %v23931_v34 = vld [vmem:[%s24596_s4 + $0x3678] ss:$40 sps:$4 sm:$0xff]  }
 0x825   : > { %16711 = vmatpush1.bf16.msra.mxu0 %v23856_v46  ;;  %16138 = vmatprep.subr.bf16.mxu1 %v23861_v21  ;;  %v23934_v46 = vld [vmem:[%s24596_s4 + $0x3680] ss:$40 sps:$4 sm:$0xff]   ;;  %v23939_v21 = vld [vmem:[%s24596_s4 + $0x36cc] ss:$40 sps:$4 sm:$0xff]  }
 0x826   : > { %16712 = vmatprep.subr.bf16.mxu0 %v23864_v39  ;;  %v23942_v39 = vld [vmem:[%s24596_s4 + $0x36d4] ss:$40 sps:$4 sm:$0xff]  }
 0x828   : > { %16139 = vmatpush1.bf16.msra.mxu1 %v23859_v7  ;;  %v23937_v7 = vld [vmem:[%s24596_s4 + $0x36c8] ss:$40 sps:$4 sm:$0xff]  }
 0x829   : > { %16713 = vmatpush1.bf16.msra.mxu0 %v23862_v44  ;;  %16140 = vmatprep.subr.bf16.mxu1 %v23867_v27  ;;  %v23940_v44 = vld [vmem:[%s24596_s4 + $0x36d0] ss:$40 sps:$4 sm:$0xff]   ;;  %v23945_v27 = vld [vmem:[%s24596_s4 + $0x371c] ss:$40 sps:$4 sm:$0xff]  }
 0x82a   : > { %16714 = vmatprep.subr.bf16.mxu0 %v23870_v16  ;;  %v23948_v16 = vld [vmem:[%s24596_s4 + $0x3724] ss:$40 sps:$4 sm:$0xff]  }
 0x82c   : > { %16141 = vmatpush1.bf16.msra.mxu1 %v23865_v51  ;;  %v23943_v51 = vld [vmem:[%s24596_s4 + $0x3718] ss:$40 sps:$4 sm:$0xff]  }
 0x82d   : > { %16715 = vmatpush1.bf16.msra.mxu0 %v23868_v52  ;;  %16142 = vmatprep.subr.bf16.mxu1 %v23873_v35  ;;  %v23946_v52 = vld [vmem:[%s24596_s4 + $0x3720] ss:$40 sps:$4 sm:$0xff]   ;;  %v23951_v35 = vld [vmem:[%s24596_s4 + $0x376c] ss:$40 sps:$4 sm:$0xff]  }
 0x82e   : > { %16716 = vmatprep.subr.bf16.mxu0 %v23876_v15  ;;  %v23954_v15 = vld [vmem:[%s24596_s4 + $0x3774] ss:$40 sps:$4 sm:$0xff]  }
 0x830   : > { %16143 = vmatpush1.bf16.msra.mxu1 %v23871_v55  ;;  %v23949_v55 = vld [vmem:[%s24596_s4 + $0x3768] ss:$40 sps:$4 sm:$0xff]  }
 0x831   : > { %16717 = vmatpush1.bf16.msra.mxu0 %v23874_v63  ;;  %16144 = vmatprep.subr.bf16.mxu1 %v23879_v11  ;;  %v23952_v63 = vld [vmem:[%s24596_s4 + $0x3770] ss:$40 sps:$4 sm:$0xff]   ;;  %v23957_v11 = vld [vmem:[%s24596_s4 + $0x37bc] ss:$40 sps:$4 sm:$0xff]  }
 0x832   : > { %16718 = vmatprep.subr.bf16.mxu0 %v23882_v56  ;;  %v23960_v56 = vld [vmem:[%s24596_s4 + $0x37c4] ss:$40 sps:$4 sm:$0xff]  }
 0x834   : > { %16145 = vmatpush1.bf16.msra.mxu1 %v23877_v57  ;;  %v23958_v57 = vld [vmem:[%s24596_s4 + $0x37c0] ss:$40 sps:$4 sm:$0xff]  }
 0x835   : > { %16719 = vmatpush1.bf16.msra.mxu0 %v23880_v58  ;;  %16146 = vmatprep.subr.bf16.mxu1 %v23885_v20  ;;  %v23963_v58 = vld [vmem:[%s24596_s4 + $0x380c] ss:$40 sps:$4 sm:$0xff]  }
 0x836   : > { %16720 = vmatprep.subr.bf16.mxu0 %v23888_v0  ;;  %v23966_v20 = vld [vmem:[%s24596_s4 + $0x3814] ss:$40 sps:$4 sm:$0xff]   ;;  %v23961_v0 = vld [vmem:[%s24596_s4 + $0x3808] ss:$40 sps:$4 sm:$0xff]  }
 0x838   : > { %16147 = vmatpush1.bf16.msra.mxu1 %v23883_v1  ;;  %v23964_v1 = vld [vmem:[%s24596_s4 + $0x3810] ss:$40 sps:$4 sm:$0xff]  }
 0x839   : > { %16721 = vmatpush1.bf16.msra.mxu0 %v23886_v3  ;;  %16148 = vmatprep.subr.bf16.mxu1 %v23891_v2  ;;  %v23972_v3 = vld [vmem:[%s24596_s4 + $0x3864] ss:$40 sps:$4 sm:$0xff]   ;;  %v23967_v2 = vld [vmem:[%s24596_s4 + $0x3858] ss:$40 sps:$4 sm:$0xff]  }
 0x83a   : > { %16722 = vmatprep.subr.bf16.mxu0 %v23894_v8  ;;  %v23970_v8 = vld [vmem:[%s24596_s4 + $0x3860] ss:$40 sps:$4 sm:$0xff]  }
 0x83c   : > { %16149 = vmatpush1.bf16.msra.mxu1 %v23889_v5  ;;  %v23975_v5 = vld [vmem:[%s24596_s4 + $0x38ac] ss:$40 sps:$4 sm:$0xff]  }
 0x83d   : > { %16723 = vmatpush1.bf16.msra.mxu0 %v23892_v9  ;;  %16150 = vmatprep.subr.bf16.mxu1 %v23897_v22  ;;  %v23978_v9 = vld [vmem:[%s24596_s4 + $0x38b4] ss:$40 sps:$4 sm:$0xff]   ;;  %v23973_v22 = vld [vmem:[%s24596_s4 + $0x38a8] ss:$40 sps:$4 sm:$0xff]  }
 0x83e   : > { %16724 = vmatprep.subr.bf16.mxu0 %v23900_v10  ;;  %v23976_v10 = vld [vmem:[%s24596_s4 + $0x38b0] ss:$40 sps:$4 sm:$0xff]  }
 0x840   : > { %16151 = vmatpush1.bf16.msra.mxu1 %v23895_v50  ;;  %v23981_v50 = vld [vmem:[%s24596_s4 + $0x38fc] ss:$40 sps:$4 sm:$0xff]  }
 0x841   : > { %16725 = vmatpush1.bf16.msra.mxu0 %v23898_v53  ;;  %16152 = vmatprep.subr.bf16.mxu1 %v23903_v23  ;;  %v23984_v53 = vld [vmem:[%s24596_s4 + $0x3904] ss:$40 sps:$4 sm:$0xff]   ;;  %v23979_v23 = vld [vmem:[%s24596_s4 + $0x38f8] ss:$40 sps:$4 sm:$0xff]  }
 0x842   : > { %16726 = vmatprep.subr.bf16.mxu0 %v23906_v36  ;;  %v23982_v36 = vld [vmem:[%s24596_s4 + $0x3900] ss:$40 sps:$4 sm:$0xff]  }
 0x844   : > { %16153 = vmatpush1.bf16.msra.mxu1 %v23901_v61  ;;  %v23987_v61 = vld [vmem:[%s24596_s4 + $0x394c] ss:$40 sps:$4 sm:$0xff]  }
 0x845   : > { %16727 = vmatpush1.bf16.msra.mxu0 %v23904_v13  ;;  %16154 = vmatprep.subr.bf16.mxu1 %v23909_v14  ;;  %v23990_v13 = vld [vmem:[%s24596_s4 + $0x3954] ss:$40 sps:$4 sm:$0xff]   ;;  %v23985_v14 = vld [vmem:[%s24596_s4 + $0x3948] ss:$40 sps:$4 sm:$0xff]  }
 0x846   : > { %16728 = vmatprep.subr.bf16.mxu0 %v23912_v18  ;;  %v23988_v18 = vld [vmem:[%s24596_s4 + $0x3950] ss:$40 sps:$4 sm:$0xff]  }
 0x848   : > { %16155 = vmatpush1.bf16.msra.mxu1 %v23907_v59  ;;  %v23993_v59 = vld [vmem:[%s24596_s4 + $0x399c] ss:$40 sps:$4 sm:$0xff]  }
 0x849   : > { %16729 = vmatpush1.bf16.msra.mxu0 %v23910_v12  ;;  %16156 = vmatprep.subr.bf16.mxu1 %v23915_v19  ;;  %v23996_v12 = vld [vmem:[%s24596_s4 + $0x39a4] ss:$40 sps:$4 sm:$0xff]   ;;  %v23991_v19 = vld [vmem:[%s24596_s4 + $0x3998] ss:$40 sps:$4 sm:$0xff]  }
 0x84a   : > { %16730 = vmatprep.subr.bf16.mxu0 %v23918_v40  ;;  %v23994_v40 = vld [vmem:[%s24596_s4 + $0x39a0] ss:$40 sps:$4 sm:$0xff]  }
 0x84c   : > { %16157 = vmatpush1.bf16.msra.mxu1 %v23913_v24  ;;  %v23999_v24 = vld [vmem:[%s24596_s4 + $0x39ec] ss:$40 sps:$4 sm:$0xff]  }
 0x84d   : > { %16731 = vmatpush1.bf16.msra.mxu0 %v23916_v25  ;;  %16158 = vmatprep.subr.bf16.mxu1 %v23921_v42  ;;  %v24002_v25 = vld [vmem:[%s24596_s4 + $0x39f4] ss:$40 sps:$4 sm:$0xff]   ;;  %v23997_v42 = vld [vmem:[%s24596_s4 + $0x39e8] ss:$40 sps:$4 sm:$0xff]  }
 0x84e   : > { %16732 = vmatprep.subr.bf16.mxu0 %v23924_v6  ;;  %v24000_v6 = vld [vmem:[%s24596_s4 + $0x39f0] ss:$40 sps:$4 sm:$0xff]  }
 0x850   : > { %16159 = vmatpush1.bf16.msra.mxu1 %v23919_v26  ;;  %v24005_v26 = vld [vmem:[%s24596_s4 + $0x3a3c] ss:$40 sps:$4 sm:$0xff]  }
 0x851   : > { %16733 = vmatpush1.bf16.msra.mxu0 %v23922_v29  ;;  %16160 = vmatprep.subr.bf16.mxu1 %v23927_v41  ;;  %v24008_v29 = vld [vmem:[%s24596_s4 + $0x3a44] ss:$40 sps:$4 sm:$0xff]   ;;  %v24003_v41 = vld [vmem:[%s24596_s4 + $0x3a38] ss:$40 sps:$4 sm:$0xff]  }
 0x852   : > { %16734 = vmatprep.subr.bf16.mxu0 %v23930_v30  ;;  %v24006_v30 = vld [vmem:[%s24596_s4 + $0x3a40] ss:$40 sps:$4 sm:$0xff]  }
 0x854   : > { %16161 = vmatpush1.bf16.msra.mxu1 %v23925_v47  ;;  %v24011_v47 = vld [vmem:[%s24596_s4 + $0x3a8c] ss:$40 sps:$4 sm:$0xff]  }
 0x855   : > { %16735 = vmatpush1.bf16.msra.mxu0 %v23928_v31  ;;  %16162 = vmatprep.subr.bf16.mxu1 %v23933_v32  ;;  %v24014_v31 = vld [vmem:[%s24596_s4 + $0x3a94] ss:$40 sps:$4 sm:$0xff]   ;;  %v24009_v32 = vld [vmem:[%s24596_s4 + $0x3a88] ss:$40 sps:$4 sm:$0xff]  }
 0x856   : > { %16736 = vmatprep.subr.bf16.mxu0 %v23936_v33  ;;  %v24012_v33 = vld [vmem:[%s24596_s4 + $0x3a90] ss:$40 sps:$4 sm:$0xff]  }
 0x858   : > { %16163 = vmatpush1.bf16.msra.mxu1 %v23931_v34  ;;  %v24017_v34 = vld [vmem:[%s24596_s4 + $0x3adc] ss:$40 sps:$4 sm:$0xff]  }
 0x859   : > { %16737 = vmatpush1.bf16.msra.mxu0 %v23934_v46  ;;  %16164 = vmatprep.subr.bf16.mxu1 %v23939_v21  ;;  %v24020_v46 = vld [vmem:[%s24596_s4 + $0x3ae4] ss:$40 sps:$4 sm:$0xff]   ;;  %v24015_v21 = vld [vmem:[%s24596_s4 + $0x3ad8] ss:$40 sps:$4 sm:$0xff]  }
 0x85a   : > { %16738 = vmatprep.subr.bf16.mxu0 %v23942_v39  ;;  %v24018_v39 = vld [vmem:[%s24596_s4 + $0x3ae0] ss:$40 sps:$4 sm:$0xff]  }
 0x85c   : > { %16165 = vmatpush1.bf16.msra.mxu1 %v23937_v7  ;;  %v24023_v7 = vld [vmem:[%s24596_s4 + $0x3b2c] ss:$40 sps:$4 sm:$0xff]  }
 0x85d   : > { %16739 = vmatpush1.bf16.msra.mxu0 %v23940_v44  ;;  %16175 = vmatprep.subr.bf16.mxu1 %v23945_v27  ;;  %v24026_v44 = vld [vmem:[%s24596_s4 + $0x3b34] ss:$40 sps:$4 sm:$0xff]   ;;  %v24021_v27 = vld [vmem:[%s24596_s4 + $0x3b28] ss:$40 sps:$4 sm:$0xff]  }
 0x85e   : > { %16749 = vmatprep.subr.bf16.mxu0 %v23948_v16  ;;  %v24024_v16 = vld [vmem:[%s24596_s4 + $0x3b30] ss:$40 sps:$4 sm:$0xff]  }
 0x85f   : > { %16167 = vmatmul.mubr.bf16.vlgmr.msra.gmra.mrb[8].mxu1 %v25009_v54 }
 0x860   : > { %16741 = vmatmul.mubr.bf16.vlgmr.msra.gmra.mrb[8].mxu0 %v25009_v54  ;;  %16176 = vmatpush1.bf16.msra.mxu1 %v23943_v51  ;;  %v23955_v54 = vld [vmem:[%s24596_s4 + $0x37b8] ss:$40 sps:$4 sm:$0xff]   ;;  %v24029_v51 = vld [vmem:[%s24596_s4 + $0x3b7c] ss:$40 sps:$4 sm:$0xff]  }
 0x861   : > { %16750 = vmatpush1.bf16.msra.mxu0 %v23946_v52  ;;  %16177 = vmatprep.subr.bf16.mxu1 %v23951_v35  ;;  %v24032_v52 = vld [vmem:[%s24596_s4 + $0x3b84] ss:$40 sps:$4 sm:$0xff]   ;;  %v24027_v35 = vld [vmem:[%s24596_s4 + $0x3b78] ss:$40 sps:$4 sm:$0xff]  }
 0x862   : > { %16751 = vmatprep.subr.bf16.mxu0 %v23954_v15  ;;  %16207 = vmatprep.mubr.bf16.mxu1 %v25019_v43  ;;  %v24030_v15 = vld [vmem:[%s24596_s4 + $0x3b80] ss:$40 sps:$4 sm:$0xff]  }
 0x863   : > { %16781 = vmatprep.mubr.bf16.mxu0 %v25019_v43  ;;  %v23969_v43 = vld [vmem:[%s24596_s4 + $0x385c] ss:$40 sps:$4 sm:$0xff]  }
 0x864   : > { %16178 = vmatpush1.bf16.msra.mxu1 %v23949_v55  ;;  %v24035_v55 = vld [vmem:[%s24596_s4 + $0x3bcc] ss:$40 sps:$4 sm:$0xff]  }
 0x865   : > { %16752 = vmatpush1.bf16.msra.mxu0 %v23952_v63  ;;  %16179 = vmatprep.subr.bf16.mxu1 %v23957_v11  ;;  %v24038_v63 = vld [vmem:[%s24596_s4 + $0x3bd4] ss:$40 sps:$4 sm:$0xff]   ;;  %v24033_v11 = vld [vmem:[%s24596_s4 + $0x3bc8] ss:$40 sps:$4 sm:$0xff]  }
 0x866   : > { %16753 = vmatprep.subr.bf16.mxu0 %v23960_v56  ;;  %v24036_v56 = vld [vmem:[%s24596_s4 + $0x3bd0] ss:$40 sps:$4 sm:$0xff]  }
 0x868   : > { %16180 = vmatpush1.bf16.msra.mxu1 %v23955_v54  ;;  %v24041_v54 = vld [vmem:[%s24596_s4 + $0x3c1c] ss:$40 sps:$4 sm:$0xff]  }
 0x869   : > { %16754 = vmatpush1.bf16.msra.mxu0 %v23958_v57  ;;  %16181 = vmatprep.subr.bf16.mxu1 %v23963_v58  ;;  %v24044_v57 = vld [vmem:[%s24596_s4 + $0x3c24] ss:$40 sps:$4 sm:$0xff]   ;;  %v24039_v58 = vld [vmem:[%s24596_s4 + $0x3c18] ss:$40 sps:$4 sm:$0xff]  }
 0x86a   : > { %16755 = vmatprep.subr.bf16.mxu0 %v23966_v20  ;;  %v24042_v20 = vld [vmem:[%s24596_s4 + $0x3c20] ss:$40 sps:$4 sm:$0xff]  }
 0x86c   : > { %16182 = vmatpush1.bf16.msra.mxu1 %v23961_v0  ;;  %v24047_v0 = vld [vmem:[%s24596_s4 + $0x3c6c] ss:$40 sps:$4 sm:$0xff]  }
 0x86d   : > { %16756 = vmatpush1.bf16.msra.mxu0 %v23964_v1  ;;  %16183 = vmatprep.subr.bf16.mxu1 %v23969_v43  ;;  %v24050_v1 = vld [vmem:[%s24596_s4 + $0x3c74] ss:$40 sps:$4 sm:$0xff]   ;;  %v24045_v43 = vld [vmem:[%s24596_s4 + $0x3c68] ss:$40 sps:$4 sm:$0xff]  }
 0x86e   : > { %16757 = vmatprep.subr.bf16.mxu0 %v23972_v3  ;;  %v24048_v3 = vld [vmem:[%s24596_s4 + $0x3c70] ss:$40 sps:$4 sm:$0xff]  }
 0x870   : > { %16184 = vmatpush1.bf16.msra.mxu1 %v23967_v2  ;;  %v24053_v2 = vld [vmem:[%s24596_s4 + $0x3cbc] ss:$40 sps:$4 sm:$0xff]  }
 0x871   : > { %16758 = vmatpush1.bf16.msra.mxu0 %v23970_v8  ;;  %16185 = vmatprep.subr.bf16.mxu1 %v23975_v5  ;;  %v24056_v8 = vld [vmem:[%s24596_s4 + $0x3cc4] ss:$40 sps:$4 sm:$0xff]   ;;  %v24054_v5 = vld [vmem:[%s24596_s4 + $0x3cc0] ss:$40 sps:$4 sm:$0xff]  }
 0x872   : > { %16759 = vmatprep.subr.bf16.mxu0 %v23978_v9  ;;  %v24059_v9 = vld [vmem:[%s24596_s4 + $0x3d0c] ss:$40 sps:$4 sm:$0xff]  }
 0x874   : > { %16186 = vmatpush1.bf16.msra.mxu1 %v23973_v22  ;;  %v24062_v22 = vld [vmem:[%s24596_s4 + $0x3d14] ss:$40 sps:$4 sm:$0xff]  }
 0x875   : > { %16760 = vmatpush1.bf16.msra.mxu0 %v23976_v10  ;;  %16187 = vmatprep.subr.bf16.mxu1 %v23981_v50  ;;  %v24057_v10 = vld [vmem:[%s24596_s4 + $0x3d08] ss:$40 sps:$4 sm:$0xff]  }
 0x876   : > { %16761 = vmatprep.subr.bf16.mxu0 %v23984_v53  ;;  %v24060_v50 = vld [vmem:[%s24596_s4 + $0x3d10] ss:$40 sps:$4 sm:$0xff]   ;;  %v24068_v53 = vld [vmem:[%s24596_s4 + $0x3d64] ss:$40 sps:$4 sm:$0xff]  }
 0x878   : > { %16188 = vmatpush1.bf16.msra.mxu1 %v23979_v23  ;;  %v24063_v23 = vld [vmem:[%s24596_s4 + $0x3d58] ss:$40 sps:$4 sm:$0xff]  }
 0x879   : > { %16762 = vmatpush1.bf16.msra.mxu0 %v23982_v36  ;;  %16189 = vmatprep.subr.bf16.mxu1 %v23987_v61  ;;  %v24066_v36 = vld [vmem:[%s24596_s4 + $0x3d60] ss:$40 sps:$4 sm:$0xff]   ;;  %v24071_v61 = vld [vmem:[%s24596_s4 + $0x3dac] ss:$40 sps:$4 sm:$0xff]  }
 0x87a   : > { %16763 = vmatprep.subr.bf16.mxu0 %v23990_v13  ;;  %v24074_v13 = vld [vmem:[%s24596_s4 + $0x3db4] ss:$40 sps:$4 sm:$0xff]  }
 0x87c   : > { %16190 = vmatpush1.bf16.msra.mxu1 %v23985_v14  ;;  %v24069_v14 = vld [vmem:[%s24596_s4 + $0x3da8] ss:$40 sps:$4 sm:$0xff]  }
 0x87d   : > { %16764 = vmatpush1.bf16.msra.mxu0 %v23988_v18  ;;  %16191 = vmatprep.subr.bf16.mxu1 %v23993_v59  ;;  %v24072_v18 = vld [vmem:[%s24596_s4 + $0x3db0] ss:$40 sps:$4 sm:$0xff]   ;;  %v24077_v59 = vld [vmem:[%s24596_s4 + $0x3dfc] ss:$40 sps:$4 sm:$0xff]  }
 0x87e   : > { %16765 = vmatprep.subr.bf16.mxu0 %v23996_v12  ;;  %v24080_v12 = vld [vmem:[%s24596_s4 + $0x3e04] ss:$40 sps:$4 sm:$0xff]  }
 0x880   : > { %16192 = vmatpush1.bf16.msra.mxu1 %v23991_v19  ;;  %v24075_v19 = vld [vmem:[%s24596_s4 + $0x3df8] ss:$40 sps:$4 sm:$0xff]  }
 0x881   : > { %16766 = vmatpush1.bf16.msra.mxu0 %v23994_v40  ;;  %16193 = vmatprep.subr.bf16.mxu1 %v23999_v24  ;;  %v24078_v40 = vld [vmem:[%s24596_s4 + $0x3e00] ss:$40 sps:$4 sm:$0xff]   ;;  %v24083_v24 = vld [vmem:[%s24596_s4 + $0x3e4c] ss:$40 sps:$4 sm:$0xff]  }
 0x882   : > { %16767 = vmatprep.subr.bf16.mxu0 %v24002_v25  ;;  %v24086_v25 = vld [vmem:[%s24596_s4 + $0x3e54] ss:$40 sps:$4 sm:$0xff]  }
 0x884   : > { %16194 = vmatpush1.bf16.msra.mxu1 %v23997_v42  ;;  %v24081_v42 = vld [vmem:[%s24596_s4 + $0x3e48] ss:$40 sps:$4 sm:$0xff]  }
 0x885   : > { %16768 = vmatpush1.bf16.msra.mxu0 %v24000_v6  ;;  %16195 = vmatprep.subr.bf16.mxu1 %v24005_v26  ;;  %v24084_v6 = vld [vmem:[%s24596_s4 + $0x3e50] ss:$40 sps:$4 sm:$0xff]   ;;  %v24089_v26 = vld [vmem:[%s24596_s4 + $0x3e9c] ss:$40 sps:$4 sm:$0xff]  }
 0x886   : > { %16769 = vmatprep.subr.bf16.mxu0 %v24008_v29  ;;  %v24092_v29 = vld [vmem:[%s24596_s4 + $0x3ea4] ss:$40 sps:$4 sm:$0xff]  }
 0x888   : > { %16196 = vmatpush1.bf16.msra.mxu1 %v24003_v41  ;;  %v24087_v41 = vld [vmem:[%s24596_s4 + $0x3e98] ss:$40 sps:$4 sm:$0xff]  }
 0x889   : > { %16770 = vmatpush1.bf16.msra.mxu0 %v24006_v30  ;;  %16197 = vmatprep.subr.bf16.mxu1 %v24011_v47  ;;  %v24090_v30 = vld [vmem:[%s24596_s4 + $0x3ea0] ss:$40 sps:$4 sm:$0xff]   ;;  %v24095_v47 = vld [vmem:[%s24596_s4 + $0x3eec] ss:$40 sps:$4 sm:$0xff]  }
 0x88a   : > { %16771 = vmatprep.subr.bf16.mxu0 %v24014_v31  ;;  %v24098_v31 = vld [vmem:[%s24596_s4 + $0x3ef4] ss:$40 sps:$4 sm:$0xff]  }
 0x88c   : > { %16198 = vmatpush1.bf16.msra.mxu1 %v24009_v32  ;;  %v24093_v32 = vld [vmem:[%s24596_s4 + $0x3ee8] ss:$40 sps:$4 sm:$0xff]  }
 0x88d   : > { %16772 = vmatpush1.bf16.msra.mxu0 %v24012_v33  ;;  %16199 = vmatprep.subr.bf16.mxu1 %v24017_v34  ;;  %v24096_v33 = vld [vmem:[%s24596_s4 + $0x3ef0] ss:$40 sps:$4 sm:$0xff]   ;;  %v24101_v34 = vld [vmem:[%s24596_s4 + $0x3f3c] ss:$40 sps:$4 sm:$0xff]  }
 0x88e   : > { %16773 = vmatprep.subr.bf16.mxu0 %v24020_v46  ;;  %v24104_v46 = vld [vmem:[%s24596_s4 + $0x3f44] ss:$40 sps:$4 sm:$0xff]  }
 0x890   : > { %16200 = vmatpush1.bf16.msra.mxu1 %v24015_v21  ;;  %v24099_v21 = vld [vmem:[%s24596_s4 + $0x3f38] ss:$40 sps:$4 sm:$0xff]  }
 0x891   : > { %16774 = vmatpush1.bf16.msra.mxu0 %v24018_v39  ;;  %16201 = vmatprep.subr.bf16.mxu1 %v24023_v7  ;;  %v24102_v39 = vld [vmem:[%s24596_s4 + $0x3f40] ss:$40 sps:$4 sm:$0xff]   ;;  %v24107_v7 = vld [vmem:[%s24596_s4 + $0x3f8c] ss:$40 sps:$4 sm:$0xff]  }
 0x892   : > { %16775 = vmatprep.subr.bf16.mxu0 %v24026_v44  ;;  %v24110_v44 = vld [vmem:[%s24596_s4 + $0x3f94] ss:$40 sps:$4 sm:$0xff]  }
 0x894   : > { %16202 = vmatpush1.bf16.msra.mxu1 %v24021_v27  ;;  %v24105_v27 = vld [vmem:[%s24596_s4 + $0x3f88] ss:$40 sps:$4 sm:$0xff]  }
 0x895   : > { %16776 = vmatpush1.bf16.msra.mxu0 %v24024_v16  ;;  %16203 = vmatprep.subr.bf16.mxu1 %v24029_v51  ;;  %v24108_v16 = vld [vmem:[%s24596_s4 + $0x3f90] ss:$40 sps:$4 sm:$0xff]   ;;  %v24113_v51 = vld [vmem:[%s24596_s4 + $0x3fdc] ss:$40 sps:$4 sm:$0xff]  }
 0x896   : > { %16777 = vmatprep.subr.bf16.mxu0 %v24032_v52  ;;  %v24116_v52 = vld [vmem:[%s24596_s4 + $0x3fe4] ss:$40 sps:$4 sm:$0xff]  }
 0x898   : > { %16204 = vmatpush1.bf16.msra.mxu1 %v24027_v35  ;;  %v24111_v35 = vld [vmem:[%s24596_s4 + $0x3fd8] ss:$40 sps:$4 sm:$0xff]  }
 0x899   : > { %16778 = vmatpush1.bf16.msra.mxu0 %v24030_v15  ;;  %16205 = vmatprep.subr.bf16.mxu1 %v24035_v55  ;;  %v24114_v15 = vld [vmem:[%s24596_s4 + $0x3fe0] ss:$40 sps:$4 sm:$0xff]   ;;  %v24119_v55 = vld [vmem:[%s24596_s4 + $0x402c] ss:$40 sps:$4 sm:$0xff]  }
 0x89a   : > { %16779 = vmatprep.subr.bf16.mxu0 %v24038_v63  ;;  %v24122_v63 = vld [vmem:[%s24596_s4 + $0x4034] ss:$40 sps:$4 sm:$0xff]  }
 0x89c   : > { %16206 = vmatpush1.bf16.msra.mxu1 %v24033_v11  ;;  %v24117_v11 = vld [vmem:[%s24596_s4 + $0x4028] ss:$40 sps:$4 sm:$0xff]  }
 0x89d   : > { %16780 = vmatpush1.bf16.msra.mxu0 %v24036_v56  ;;  %16216 = vmatprep.subr.bf16.mxu1 %v24041_v54  ;;  %v24120_v56 = vld [vmem:[%s24596_s4 + $0x4030] ss:$40 sps:$4 sm:$0xff]   ;;  %v24125_v54 = vld [vmem:[%s24596_s4 + $0x407c] ss:$40 sps:$4 sm:$0xff]  }
 0x89e   : > { %16790 = vmatprep.subr.bf16.mxu0 %v24044_v57  ;;  %v24128_v57 = vld [vmem:[%s24596_s4 + $0x4084] ss:$40 sps:$4 sm:$0xff]  }
 0x89f   : > { %16208 = vmatmul.mubr.bf16.vlgmr.msra.gmra.mrb[8].mxu1 %v25098_v17 }
 0x8a0   : > { %16782 = vmatmul.mubr.bf16.vlgmr.msra.gmra.mrb[8].mxu0 %v25098_v17  ;;  %16217 = vmatpush1.bf16.msra.mxu1 %v24039_v58  ;;  %v24051_v17 = vld [vmem:[%s24596_s4 + $0x3cb8] ss:$40 sps:$4 sm:$0xff]  }
 0x8a1   : > { %16791 = vmatpush1.bf16.msra.mxu0 %v24042_v20  ;;  %16218 = vmatprep.subr.bf16.mxu1 %v24047_v0  ;;  %v24123_v58 = vld [vmem:[%s24596_s4 + $0x4078] ss:$40 sps:$4 sm:$0xff]   ;;  %v24131_v0 = vld [vmem:[%s24596_s4 + $0x40cc] ss:$40 sps:$4 sm:$0xff]  }
 0x8a2   : > { %16792 = vmatprep.subr.bf16.mxu0 %v24050_v1  ;;  %16248 = vmatprep.mubr.bf16.mxu1 %v25107_v28  ;;  %v24126_v20 = vld [vmem:[%s24596_s4 + $0x4080] ss:$40 sps:$4 sm:$0xff]   ;;  %v24134_v1 = vld [vmem:[%s24596_s4 + $0x40d4] ss:$40 sps:$4 sm:$0xff]  }
 0x8a3   : > { %16822 = vmatprep.mubr.bf16.mxu0 %v25107_v28  ;;  %v24065_v28 = vld [vmem:[%s24596_s4 + $0x3d5c] ss:$40 sps:$4 sm:$0xff]  }
 0x8a4   : > { %16219 = vmatpush1.bf16.msra.mxu1 %v24045_v43  ;;  %v24129_v43 = vld [vmem:[%s24596_s4 + $0x40c8] ss:$40 sps:$4 sm:$0xff]  }
 0x8a5   : > { %16793 = vmatpush1.bf16.msra.mxu0 %v24048_v3  ;;  %16220 = vmatprep.subr.bf16.mxu1 %v24053_v2  ;;  %v24132_v3 = vld [vmem:[%s24596_s4 + $0x40d0] ss:$40 sps:$4 sm:$0xff]   ;;  %v24137_v2 = vld [vmem:[%s24596_s4 + $0x411c] ss:$40 sps:$4 sm:$0xff]  }
 0x8a6   : > { %16794 = vmatprep.subr.bf16.mxu0 %v24056_v8  ;;  %v24140_v8 = vld [vmem:[%s24596_s4 + $0x4124] ss:$40 sps:$4 sm:$0xff]  }
 0x8a8   : > { %16221 = vmatpush1.bf16.msra.mxu1 %v24051_v17  ;;  %v24135_v17 = vld [vmem:[%s24596_s4 + $0x4118] ss:$40 sps:$4 sm:$0xff]  }
 0x8a9   : > { %16795 = vmatpush1.bf16.msra.mxu0 %v24054_v5  ;;  %16222 = vmatprep.subr.bf16.mxu1 %v24059_v9  ;;  %v24138_v5 = vld [vmem:[%s24596_s4 + $0x4120] ss:$40 sps:$4 sm:$0xff]   ;;  %v24143_v9 = vld [vmem:[%s24596_s4 + $0x416c] ss:$40 sps:$4 sm:$0xff]  }
 0x8aa   : > { %16796 = vmatprep.subr.bf16.mxu0 %v24062_v22  ;;  %v24146_v22 = vld [vmem:[%s24596_s4 + $0x4174] ss:$40 sps:$4 sm:$0xff]  }
 0x8ac   : > { %16223 = vmatpush1.bf16.msra.mxu1 %v24057_v10  ;;  %v24141_v10 = vld [vmem:[%s24596_s4 + $0x4168] ss:$40 sps:$4 sm:$0xff]  }
 0x8ad   : > { %16797 = vmatpush1.bf16.msra.mxu0 %v24060_v50  ;;  %16224 = vmatprep.subr.bf16.mxu1 %v24065_v28  ;;  %v24144_v50 = vld [vmem:[%s24596_s4 + $0x4170] ss:$40 sps:$4 sm:$0xff]   ;;  %v24149_v28 = vld [vmem:[%s24596_s4 + $0x41bc] ss:$40 sps:$4 sm:$0xff]  }
 0x8ae   : > { %16798 = vmatprep.subr.bf16.mxu0 %v24068_v53  ;;  %v24152_v53 = vld [vmem:[%s24596_s4 + $0x41c4] ss:$40 sps:$4 sm:$0xff]  }
 0x8b0   : > { %16225 = vmatpush1.bf16.msra.mxu1 %v24063_v23  ;;  %v24150_v23 = vld [vmem:[%s24596_s4 + $0x41c0] ss:$40 sps:$4 sm:$0xff]  }
 0x8b1   : > { %16799 = vmatpush1.bf16.msra.mxu0 %v24066_v36  ;;  %16226 = vmatprep.subr.bf16.mxu1 %v24071_v61  ;;  %v24155_v36 = vld [vmem:[%s24596_s4 + $0x420c] ss:$40 sps:$4 sm:$0xff]  }
 0x8b2   : > { %16800 = vmatprep.subr.bf16.mxu0 %v24074_v13  ;;  %v24158_v61 = vld [vmem:[%s24596_s4 + $0x4214] ss:$40 sps:$4 sm:$0xff]   ;;  %v24153_v13 = vld [vmem:[%s24596_s4 + $0x4208] ss:$40 sps:$4 sm:$0xff]  }
 0x8b4   : > { %16227 = vmatpush1.bf16.msra.mxu1 %v24069_v14  ;;  %v24156_v14 = vld [vmem:[%s24596_s4 + $0x4210] ss:$40 sps:$4 sm:$0xff]  }
 0x8b5   : > { %16801 = vmatpush1.bf16.msra.mxu0 %v24072_v18  ;;  %16228 = vmatprep.subr.bf16.mxu1 %v24077_v59  ;;  %v24164_v18 = vld [vmem:[%s24596_s4 + $0x4264] ss:$40 sps:$4 sm:$0xff]   ;;  %v24159_v59 = vld [vmem:[%s24596_s4 + $0x4258] ss:$40 sps:$4 sm:$0xff]  }
 0x8b6   : > { %16802 = vmatprep.subr.bf16.mxu0 %v24080_v12  ;;  %v24162_v12 = vld [vmem:[%s24596_s4 + $0x4260] ss:$40 sps:$4 sm:$0xff]  }
 0x8b8   : > { %16229 = vmatpush1.bf16.msra.mxu1 %v24075_v19  ;;  %v24167_v19 = vld [vmem:[%s24596_s4 + $0x42ac] ss:$40 sps:$4 sm:$0xff]  }
 0x8b9   : > { %16803 = vmatpush1.bf16.msra.mxu0 %v24078_v40  ;;  %16230 = vmatprep.subr.bf16.mxu1 %v24083_v24  ;;  %v24170_v40 = vld [vmem:[%s24596_s4 + $0x42b4] ss:$40 sps:$4 sm:$0xff]   ;;  %v24165_v24 = vld [vmem:[%s24596_s4 + $0x42a8] ss:$40 sps:$4 sm:$0xff]  }
 0x8ba   : > { %16804 = vmatprep.subr.bf16.mxu0 %v24086_v25  ;;  %v24168_v25 = vld [vmem:[%s24596_s4 + $0x42b0] ss:$40 sps:$4 sm:$0xff]  }
 0x8bc   : > { %16231 = vmatpush1.bf16.msra.mxu1 %v24081_v42  ;;  %v24173_v42 = vld [vmem:[%s24596_s4 + $0x42fc] ss:$40 sps:$4 sm:$0xff]  }
 0x8bd   : > { %16805 = vmatpush1.bf16.msra.mxu0 %v24084_v6  ;;  %16232 = vmatprep.subr.bf16.mxu1 %v24089_v26  ;;  %v24176_v6 = vld [vmem:[%s24596_s4 + $0x4304] ss:$40 sps:$4 sm:$0xff]   ;;  %v24171_v26 = vld [vmem:[%s24596_s4 + $0x42f8] ss:$40 sps:$4 sm:$0xff]  }
 0x8be   : > { %16806 = vmatprep.subr.bf16.mxu0 %v24092_v29  ;;  %v24174_v29 = vld [vmem:[%s24596_s4 + $0x4300] ss:$40 sps:$4 sm:$0xff]  }
 0x8c0   : > { %16233 = vmatpush1.bf16.msra.mxu1 %v24087_v41  ;;  %v24179_v41 = vld [vmem:[%s24596_s4 + $0x434c] ss:$40 sps:$4 sm:$0xff]  }
 0x8c1   : > { %16807 = vmatpush1.bf16.msra.mxu0 %v24090_v30  ;;  %16234 = vmatprep.subr.bf16.mxu1 %v24095_v47  ;;  %v24182_v30 = vld [vmem:[%s24596_s4 + $0x4354] ss:$40 sps:$4 sm:$0xff]   ;;  %v24177_v47 = vld [vmem:[%s24596_s4 + $0x4348] ss:$40 sps:$4 sm:$0xff]  }
 0x8c2   : > { %16808 = vmatprep.subr.bf16.mxu0 %v24098_v31  ;;  %v24180_v31 = vld [vmem:[%s24596_s4 + $0x4350] ss:$40 sps:$4 sm:$0xff]  }
 0x8c4   : > { %16235 = vmatpush1.bf16.msra.mxu1 %v24093_v32  ;;  %v24185_v32 = vld [vmem:[%s24596_s4 + $0x439c] ss:$40 sps:$4 sm:$0xff]  }
 0x8c5   : > { %16809 = vmatpush1.bf16.msra.mxu0 %v24096_v33  ;;  %16236 = vmatprep.subr.bf16.mxu1 %v24101_v34  ;;  %v24188_v33 = vld [vmem:[%s24596_s4 + $0x43a4] ss:$40 sps:$4 sm:$0xff]   ;;  %v24183_v34 = vld [vmem:[%s24596_s4 + $0x4398] ss:$40 sps:$4 sm:$0xff]  }
 0x8c6   : > { %16810 = vmatprep.subr.bf16.mxu0 %v24104_v46  ;;  %v24186_v46 = vld [vmem:[%s24596_s4 + $0x43a0] ss:$40 sps:$4 sm:$0xff]  }
 0x8c8   : > { %16237 = vmatpush1.bf16.msra.mxu1 %v24099_v21  ;;  %v24191_v21 = vld [vmem:[%s24596_s4 + $0x43ec] ss:$40 sps:$4 sm:$0xff]  }
 0x8c9   : > { %16811 = vmatpush1.bf16.msra.mxu0 %v24102_v39  ;;  %16238 = vmatprep.subr.bf16.mxu1 %v24107_v7  ;;  %v24194_v39 = vld [vmem:[%s24596_s4 + $0x43f4] ss:$40 sps:$4 sm:$0xff]   ;;  %v24189_v7 = vld [vmem:[%s24596_s4 + $0x43e8] ss:$40 sps:$4 sm:$0xff]  }
 0x8ca   : > { %16812 = vmatprep.subr.bf16.mxu0 %v24110_v44  ;;  %v24192_v44 = vld [vmem:[%s24596_s4 + $0x43f0] ss:$40 sps:$4 sm:$0xff]  }
 0x8cc   : > { %16239 = vmatpush1.bf16.msra.mxu1 %v24105_v27  ;;  %v24197_v27 = vld [vmem:[%s24596_s4 + $0x443c] ss:$40 sps:$4 sm:$0xff]  }
 0x8cd   : > { %16813 = vmatpush1.bf16.msra.mxu0 %v24108_v16  ;;  %16240 = vmatprep.subr.bf16.mxu1 %v24113_v51  ;;  %v24200_v16 = vld [vmem:[%s24596_s4 + $0x4444] ss:$40 sps:$4 sm:$0xff]   ;;  %v24195_v51 = vld [vmem:[%s24596_s4 + $0x4438] ss:$40 sps:$4 sm:$0xff]  }
 0x8ce   : > { %16814 = vmatprep.subr.bf16.mxu0 %v24116_v52  ;;  %v24198_v52 = vld [vmem:[%s24596_s4 + $0x4440] ss:$40 sps:$4 sm:$0xff]  }
 0x8d0   : > { %16241 = vmatpush1.bf16.msra.mxu1 %v24111_v35  ;;  %v24203_v35 = vld [vmem:[%s24596_s4 + $0x448c] ss:$40 sps:$4 sm:$0xff]  }
 0x8d1   : > { %16815 = vmatpush1.bf16.msra.mxu0 %v24114_v15  ;;  %16242 = vmatprep.subr.bf16.mxu1 %v24119_v55  ;;  %v24206_v15 = vld [vmem:[%s24596_s4 + $0x4494] ss:$40 sps:$4 sm:$0xff]   ;;  %v24201_v55 = vld [vmem:[%s24596_s4 + $0x4488] ss:$40 sps:$4 sm:$0xff]  }
 0x8d2   : > { %16816 = vmatprep.subr.bf16.mxu0 %v24122_v63  ;;  %v24204_v63 = vld [vmem:[%s24596_s4 + $0x4490] ss:$40 sps:$4 sm:$0xff]  }
 0x8d4   : > { %16243 = vmatpush1.bf16.msra.mxu1 %v24117_v11  ;;  %v24209_v11 = vld [vmem:[%s24596_s4 + $0x44dc] ss:$40 sps:$4 sm:$0xff]  }
 0x8d5   : > { %16817 = vmatpush1.bf16.msra.mxu0 %v24120_v56  ;;  %16244 = vmatprep.subr.bf16.mxu1 %v24125_v54  ;;  %v24212_v56 = vld [vmem:[%s24596_s4 + $0x44e4] ss:$40 sps:$4 sm:$0xff]   ;;  %v24207_v54 = vld [vmem:[%s24596_s4 + $0x44d8] ss:$40 sps:$4 sm:$0xff]  }
 0x8d6   : > { %16818 = vmatprep.subr.bf16.mxu0 %v24128_v57  ;;  %v24210_v57 = vld [vmem:[%s24596_s4 + $0x44e0] ss:$40 sps:$4 sm:$0xff]  }
 0x8d8   : > { %16245 = vmatpush1.bf16.msra.mxu1 %v24123_v58  ;;  %v24215_v58 = vld [vmem:[%s24596_s4 + $0x452c] ss:$40 sps:$4 sm:$0xff]  }
 0x8d9   : > { %16819 = vmatpush1.bf16.msra.mxu0 %v24126_v20  ;;  %16246 = vmatprep.subr.bf16.mxu1 %v24131_v0  ;;  %v24218_v20 = vld [vmem:[%s24596_s4 + $0x4534] ss:$40 sps:$4 sm:$0xff]   ;;  %v24213_v0 = vld [vmem:[%s24596_s4 + $0x4528] ss:$40 sps:$4 sm:$0xff]  }
 0x8da   : > { %16820 = vmatprep.subr.bf16.mxu0 %v24134_v1  ;;  %v24216_v1 = vld [vmem:[%s24596_s4 + $0x4530] ss:$40 sps:$4 sm:$0xff]  }
 0x8dc   : > { %16247 = vmatpush1.bf16.msra.mxu1 %v24129_v43  ;;  %v24221_v43 = vld [vmem:[%s24596_s4 + $0x457c] ss:$40 sps:$4 sm:$0xff]  }
 0x8dd   : > { %16821 = vmatpush1.bf16.msra.mxu0 %v24132_v3  ;;  %16257 = vmatprep.subr.bf16.mxu1 %v24137_v2  ;;  %v24224_v3 = vld [vmem:[%s24596_s4 + $0x4584] ss:$40 sps:$4 sm:$0xff]   ;;  %v24219_v2 = vld [vmem:[%s24596_s4 + $0x4578] ss:$40 sps:$4 sm:$0xff]  }
 0x8de   : > { %16831 = vmatprep.subr.bf16.mxu0 %v24140_v8  ;;  %v24222_v8 = vld [vmem:[%s24596_s4 + $0x4580] ss:$40 sps:$4 sm:$0xff]  }
 0x8df   : > { %16249 = vmatmul.mubr.bf16.vlgmr.msra.gmra.mrb[8].mxu1 %v25179_v60 }
 0x8e0   : > { %16823 = vmatmul.mubr.bf16.vlgmr.msra.gmra.mrb[8].mxu0 %v25179_v60  ;;  %16258 = vmatpush1.bf16.msra.mxu1 %v24135_v17  ;;  %v24147_v60 = vld [vmem:[%s24596_s4 + $0x41b8] ss:$40 sps:$4 sm:$0xff]   ;;  %v24227_v17 = vld [vmem:[%s24596_s4 + $0x45cc] ss:$40 sps:$4 sm:$0xff]  }
 0x8e1   : > { %16832 = vmatpush1.bf16.msra.mxu0 %v24138_v5  ;;  %16259 = vmatprep.subr.bf16.mxu1 %v24143_v9  ;;  %v24230_v5 = vld [vmem:[%s24596_s4 + $0x45d4] ss:$40 sps:$4 sm:$0xff]   ;;  %v24225_v9 = vld [vmem:[%s24596_s4 + $0x45c8] ss:$40 sps:$4 sm:$0xff]  }
 0x8e2   : > { %16833 = vmatprep.subr.bf16.mxu0 %v24146_v22  ;;  %16289 = vmatprep.mubr.bf16.mxu1 %v25187_v4  ;;  %v24228_v22 = vld [vmem:[%s24596_s4 + $0x45d0] ss:$40 sps:$4 sm:$0xff]  }
 0x8e3   : > { %16863 = vmatprep.mubr.bf16.mxu0 %v25187_v4  ;;  %v24161_v4 = vld [vmem:[%s24596_s4 + $0x425c] ss:$40 sps:$4 sm:$0xff]  }
 0x8e4   : > { %16260 = vmatpush1.bf16.msra.mxu1 %v24141_v10 }
 0x8e5   : > { %16834 = vmatpush1.bf16.msra.mxu0 %v24144_v50  ;;  %16261 = vmatprep.subr.bf16.mxu1 %v24149_v28 }
 0x8e6   : > { %16835 = vmatprep.subr.bf16.mxu0 %v24152_v53 }
 0x8e8   : > { %16262 = vmatpush1.bf16.msra.mxu1 %v24147_v60 }
 0x8e9   : > { %16836 = vmatpush1.bf16.msra.mxu0 %v24150_v23  ;;  %16263 = vmatprep.subr.bf16.mxu1 %v24155_v36 }
 0x8ea   : > { %16837 = vmatprep.subr.bf16.mxu0 %v24158_v61 }
 0x8ec   : > { %16264 = vmatpush1.bf16.msra.mxu1 %v24153_v13  ;;  %v354_v13 = vld [vmem:[#allocation2 + $0x10] sm:$0xf] }
 0x8ed   : > { %16838 = vmatpush1.bf16.msra.mxu0 %v24156_v14  ;;  %16265 = vmatprep.subr.bf16.mxu1 %v24161_v4 }
 0x8ee   : > { %16839 = vmatprep.subr.bf16.mxu0 %v24164_v18  ;;  %v16907_v18 = vrot.slane %v16899_v49, %v26448_v37  ;;  %v24234_v49 = vld [vmem:[%s24621_s11] sm:$0xff] (!%p20319_p3)  }
 0x8f0   : > { %16266 = vmatpush1.bf16.msra.mxu1 %v24159_v59 }
 0x8f1   : > { %16840 = vmatpush1.bf16.msra.mxu0 %v24162_v12  ;;  %16267 = vmatprep.subr.bf16.mxu1 %v24167_v19  ;;  %v353_v12 = vld [vmem:[#allocation2 + $0x8] sm:$0xff] }
 0x8f2   : > { %16841 = vmatprep.subr.bf16.mxu0 %v24170_v40 }
 0x8f4   : > { %16268 = vmatpush1.bf16.msra.mxu1 %v24165_v24 }
 0x8f5   : > { %16842 = vmatpush1.bf16.msra.mxu0 %v24168_v25  ;;  %16269 = vmatprep.subr.bf16.mxu1 %v24173_v42  ;;  %v24235_v25 = vld [vmem:[%s24621_s11 + $0x80] sm:$0xff] (!%p20319_p3)   ;;  %v24236_v42 = vld [vmem:[%s24621_s11 + $0x48] sm:$0xff] (!%p20319_p3)  }
 0x8f6   : > { %16843 = vmatprep.subr.bf16.mxu0 %v24176_v6  ;;  %v24237_v6 = vld [vmem:[%s24621_s11 + $0xc8] sm:$0xff] (!%p20319_p3)  }
 0x8f8   : > { %16270 = vmatpush1.bf16.msra.mxu1 %v24171_v26  ;;  %v24238_v26 = vld [vmem:[%s24621_s11 + $0x8] sm:$0xff] (!%p20319_p3)  }
 0x8f9   : > { %16844 = vmatpush1.bf16.msra.mxu0 %v24174_v29  ;;  %16271 = vmatprep.subr.bf16.mxu1 %v24179_v41  ;;  %v24239_v29 = vld [vmem:[%s24621_s11 + $0x88] sm:$0xff] (!%p20319_p3)   ;;  %v24240_v41 = vld [vmem:[%s24621_s11 + $0x50] sm:$0xff] (!%p20319_p3)  }
 0x8fa   : > { %16845 = vmatprep.subr.bf16.mxu0 %v24182_v30  ;;  %v24241_v30 = vld [vmem:[%s24621_s11 + $0xd0] sm:$0xff] (!%p20319_p3)  }
 0x8fc   : > { %16272 = vmatpush1.bf16.msra.mxu1 %v24177_v47  ;;  %v24242_v47 = vld [vmem:[%s24621_s11 + $0x10] sm:$0xff] (!%p20319_p3)  }
 0x8fd   : > { %16846 = vmatpush1.bf16.msra.mxu0 %v24180_v31  ;;  %16273 = vmatprep.subr.bf16.mxu1 %v24185_v32  ;;  %v24243_v31 = vld [vmem:[%s24621_s11 + $0x90] sm:$0xff] (!%p20319_p3)   ;;  %v24244_v32 = vld [vmem:[%s24621_s11 + $0x58] sm:$0xff] (!%p20319_p3)  }
 0x8fe   : > { %16847 = vmatprep.subr.bf16.mxu0 %v24188_v33  ;;  %v24245_v33 = vld [vmem:[%s24621_s11 + $0xd8] sm:$0xff] (!%p20319_p3)  }
 0x900   : > { %16274 = vmatpush1.bf16.msra.mxu1 %v24183_v34  ;;  %v24246_v34 = vld [vmem:[%s24621_s11 + $0x18] sm:$0xff] (!%p20319_p3)  }
 0x901   : > { %16848 = vmatpush1.bf16.msra.mxu0 %v24186_v46  ;;  %16275 = vmatprep.subr.bf16.mxu1 %v24191_v21  ;;  %v24247_v46 = vld [vmem:[%s24621_s11 + $0x98] sm:$0xff] (!%p20319_p3)   ;;  %v24248_v21 = vld [vmem:[%s24621_s11 + $0x60] sm:$0xff] (!%p20319_p3)  }
 0x902   : > { %16849 = vmatprep.subr.bf16.mxu0 %v24194_v39  ;;  %v24249_v39 = vld [vmem:[%s24621_s11 + $0xe0] sm:$0xff] (!%p20319_p3)  }
 0x904   : > { %16276 = vmatpush1.bf16.msra.mxu1 %v24189_v7  ;;  %v24250_v7 = vld [vmem:[%s24621_s11 + $0x20] sm:$0xff] (!%p20319_p3)  }
 0x905   : > { %16850 = vmatpush1.bf16.msra.mxu0 %v24192_v44  ;;  %16277 = vmatprep.subr.bf16.mxu1 %v24197_v27  ;;  %v24251_v44 = vld [vmem:[%s24621_s11 + $0xa0] sm:$0xff] (!%p20319_p3)   ;;  %v24252_v27 = vld [vmem:[%s24621_s11 + $0x68] sm:$0xff] (!%p20319_p3)  }
 0x906   : > { %16851 = vmatprep.subr.bf16.mxu0 %v24200_v16  ;;  %v24253_v16 = vld [vmem:[%s24621_s11 + $0xe8] sm:$0xff] (!%p20319_p3)  }
 0x908   : > { %16278 = vmatpush1.bf16.msra.mxu1 %v24195_v51  ;;  %v24254_v51 = vld [vmem:[%s24621_s11 + $0x28] sm:$0xff] (!%p20319_p3)  }
 0x909   : > { %16852 = vmatpush1.bf16.msra.mxu0 %v24198_v52  ;;  %16279 = vmatprep.subr.bf16.mxu1 %v24203_v35  ;;  %v24255_v52 = vld [vmem:[%s24621_s11 + $0xa8] sm:$0xff] (!%p20319_p3)   ;;  %v24256_v35 = vld [vmem:[%s24621_s11 + $0x70] sm:$0xff] (!%p20319_p3)  }
 0x90a   : > { %16853 = vmatprep.subr.bf16.mxu0 %v24206_v15  ;;  %v24257_v15 = vld [vmem:[%s24621_s11 + $0xf0] sm:$0xff] (!%p20319_p3)  }
 0x90c   : > { %16280 = vmatpush1.bf16.msra.mxu1 %v24201_v55  ;;  %v24258_v55 = vld [vmem:[%s24621_s11 + $0x30] sm:$0xff] (!%p20319_p3)  }
 0x90d   : > { %16854 = vmatpush1.bf16.msra.mxu0 %v24204_v63  ;;  %16281 = vmatprep.subr.bf16.mxu1 %v24209_v11  ;;  %v16946_v63 = vsub.s32 (!%p20319_p3), 0, %v24675_v48  ;;  %v24259_v11 = vld [vmem:[%s24621_s11 + $0xb0] sm:$0xff] (!%p20319_p3)  }
 0x90e   : > { %16855 = vmatprep.subr.bf16.mxu0 %v24212_v56  ;;  %v16950_v56 = vsub.s32 (!%p20319_p3), 1, %v24675_v48 }
 0x910   : > { %16282 = vmatpush1.bf16.msra.mxu1 %v24207_v54  ;;  %v24260_v54 = vld [vmem:[%s24621_s11 + $0x78] sm:$0xff] (!%p20319_p3)  }
 0x911   : > { %16856 = vmatpush1.bf16.msra.mxu0 %v24210_v57  ;;  %16283 = vmatprep.subr.bf16.mxu1 %v24215_v58  ;;  %v16954_v57 = vsub.s32 (!%p20319_p3), 2, %v24675_v48  ;;  %v24261_v58 = vld [vmem:[%s24621_s11 + $0xf8] sm:$0xff] (!%p20319_p3)  }
 0x912   : > { %16857 = vmatprep.subr.bf16.mxu0 %v24218_v20  ;;  %v16958_v20 = vsub.s32 (!%p20319_p3), 3, %v24675_v48 }
 0x914   : > { %16284 = vmatpush1.bf16.msra.mxu1 %v24213_v0  ;;  %v24262_v0 = vld [vmem:[%s24621_s11 + $0x38] sm:$0xff] (!%p20319_p3)  }
 0x915   : > { %16858 = vmatpush1.bf16.msra.mxu0 %v24216_v1  ;;  %16285 = vmatprep.subr.bf16.mxu1 %v24221_v43  ;;  %v24263_v1 = vld [vmem:[%s24621_s11 + $0xb8] sm:$0xff] (!%p20319_p3)   ;;  %v16940_v43 = vld [vmem:[%s24616_s25] sm:$0xff] (!%p20319_p3) }
 0x916   : > { %16859 = vmatprep.subr.bf16.mxu0 %v24224_v3  ;;  %v16947_v3 = vrot.slane (!%p20319_p3), %v16940_v43, %v16946_v63 }
 0x918   : > { %16286 = vmatpush1.bf16.msra.mxu1 %v24219_v2  ;;  %v16951_v2 = vrot.slane (!%p20319_p3), %v16940_v43, %v16950_v56 }
 0x919   : > { %16860 = vmatpush1.bf16.msra.mxu0 %v24222_v8  ;;  %16287 = vmatprep.subr.bf16.mxu1 %v24227_v17  ;;  %v16955_v8 = vrot.slane (!%p20319_p3), %v16940_v43, %v16954_v57  ;;  %v16959_v17 = vrot.slane (!%p20319_p3), %v16940_v43, %v16958_v20  ;;  %v24281_v57 = vld [vmem:[%s24621_s11 + $0x120] sm:$0xff] (!%p20319_p3)  }
 0x91a   : > { %16861 = vmatprep.subr.bf16.mxu0 %v24230_v5  ;;  %v24264_v5 = vld [vmem:[%s24621_s11 + $0x140] sm:$0xff] (!%p20319_p3)  }
 0x91c   : > { %16288 = vmatpush1.bf16.msra.mxu1 %v24225_v9  ;;  %v16984_v9 = vcombine.low (!%p20319_p3), %v16947_v3, %v16951_v2  ;;  %v24285_v2 = vld [vmem:[%s24621_s11 + $0x128] sm:$0xff] (!%p20319_p3)  }
 0x91d   : > { %16862 = vmatpush1.bf16.msra.mxu0 %v24228_v22  ;;  %20424 = vmatprep.subr.bf16.mxu1 (!%p20319_p3), %v24233_v62  ;;  %v16985_v22 = vcombine.low (!%p20319_p3), %v16955_v8, %v16959_v17  ;;  %v24288_v8 = vld [vmem:[%s24621_s11 + $0x170] sm:$0xff] (!%p20319_p3)  }
 0x91e   : > { %20402 = vmatprep.subr.bf16.mxu0 (!%p20319_p3), %v24232_v38 }
 0x91f   : > { %16290 = vmatmul.mubr.bf16.vlgmr.msra.gmra.mrb[8].mxu1 %v25255_v45 }
 0x920   : > { %16864 = vmatmul.mubr.bf16.vlgmr.msra.gmra.mrb[8].mxu0 %v25255_v45  ;;  %20425 = vmatpush3.bf16.msra.mxu1 (!%p20319_p3), %v24235_v25 }
 0x921   : > { %20403 = vmatpush3.bf16.msra.mxu0 (!%p20319_p3), %v24234_v49  ;;  %20426 = vmatprep.subr.bf16.mxu1 (!%p20319_p3), %v24237_v6 }
 0x922   : > { %20404 = vmatprep.subr.bf16.mxu0 (!%p20319_p3), %v24236_v42  ;;  %v24265_v42 = vld [vmem:[%s24621_s11 + $0x100] sm:$0xff] (!%p20319_p3)  }
 0x924   : > { %20427 = vmatpush3.bf16.msra.mxu1 (!%p20319_p3), %v24239_v29 }
 0x925   : > { %20405 = vmatpush3.bf16.msra.mxu0 (!%p20319_p3), %v24238_v26  ;;  %20428 = vmatprep.subr.bf16.mxu1 (!%p20319_p3), %v24241_v30  ;;  %v24268_v26 = vld [vmem:[%s24621_s11 + $0x148] sm:$0xff] (!%p20319_p3)  }
 0x926   : > { %20406 = vmatprep.subr.bf16.mxu0 (!%p20319_p3), %v24240_v41  ;;  %v24267_v41 = vld [vmem:[%s24621_s11 + $0x180] sm:$0xff] (!%p20319_p3)   ;;  %v24270_v30 = vld [vmem:[%s24621_s11 + $0x1c8] sm:$0xff] (!%p20319_p3)  }
 0x928   : > { %20429 = vmatpush3.bf16.msra.mxu1 (!%p20319_p3), %v24243_v31 }
 0x929   : > { %20407 = vmatpush3.bf16.msra.mxu0 (!%p20319_p3), %v24242_v47  ;;  %20430 = vmatprep.subr.bf16.mxu1 (!%p20319_p3), %v24245_v33  ;;  %v24272_v33 = vld [vmem:[%s24621_s11 + $0x150] sm:$0xff] (!%p20319_p3)  }
 0x92a   : > { %20408 = vmatprep.subr.bf16.mxu0 (!%p20319_p3), %v24244_v32  ;;  %v24269_v32 = vld [vmem:[%s24621_s11 + $0x108] sm:$0xff] (!%p20319_p3)  }
 0x92c   : > { %20431 = vmatpush3.bf16.msra.mxu1 (!%p20319_p3), %v24247_v46  ;;  %v24274_v46 = vld [vmem:[%s24621_s11 + $0x1d0] sm:$0xff] (!%p20319_p3)  }
 0x92d   : > { %20409 = vmatpush3.bf16.msra.mxu0 (!%p20319_p3), %v24246_v34  ;;  %20432 = vmatprep.subr.bf16.mxu1 (!%p20319_p3), %v24249_v39  ;;  %v24271_v34 = vld [vmem:[%s24621_s11 + $0x188] sm:$0xff] (!%p20319_p3)  }
 0x92e   : > { %20410 = vmatprep.subr.bf16.mxu0 (!%p20319_p3), %v24248_v21 }
 0x930   : > { %20433 = vmatpush3.bf16.msra.mxu1 (!%p20319_p3), %v24251_v44  ;;  %v24276_v44 = vld [vmem:[%s24621_s11 + $0x158] sm:$0xff] (!%p20319_p3)  }
 0x931   : > { %20411 = vmatpush3.bf16.msra.mxu0 (!%p20319_p3), %v24250_v7  ;;  %20434 = vmatprep.subr.bf16.mxu1 (!%p20319_p3), %v24253_v16  ;;  %v24273_v7 = vld [vmem:[%s24621_s11 + $0x110] sm:$0xff] (!%p20319_p3)   ;;  %v24278_v16 = vld [vmem:[%s24621_s11 + $0x1d8] sm:$0xff] (!%p20319_p3)  }
 0x932   : > { %20412 = vmatprep.subr.bf16.mxu0 (!%p20319_p3), %v24252_v27  ;;  %v24275_v27 = vld [vmem:[%s24621_s11 + $0x190] sm:$0xff] (!%p20319_p3)  }
 0x934   : > { %20435 = vmatpush3.bf16.msra.mxu1 (!%p20319_p3), %v24255_v52  ;;  %v24277_v52 = vld [vmem:[%s24621_s11 + $0x118] sm:$0xff] (!%p20319_p3)  }
 0x935   : > { %20413 = vmatpush3.bf16.msra.mxu0 (!%p20319_p3), %v24254_v51  ;;  %20436 = vmatprep.subr.bf16.mxu1 (!%p20319_p3), %v24257_v15  ;;  %v24279_v15 = vld [vmem:[%s24621_s11 + $0x198] sm:$0xff] (!%p20319_p3)  }
 0x936   : > { %20414 = vmatprep.subr.bf16.mxu0 (!%p20319_p3), %v24256_v35  ;;  %v24280_v35 = vld [vmem:[%s24621_s11 + $0x160] sm:$0xff] (!%p20319_p3)  }
 0x938   : > { %20437 = vmatpush3.bf16.msra.mxu1 (!%p20319_p3), %v24259_v11  ;;  %v24282_v11 = vld [vmem:[%s24621_s11 + $0x1e0] sm:$0xff] (!%p20319_p3)  }
 0x939   : > { %20415 = vmatpush3.bf16.msra.mxu0 (!%p20319_p3), %v24258_v55  ;;  %20438 = vmatprep.subr.bf16.mxu1 (!%p20319_p3), %v24261_v58  ;;  %v24284_v58 = vld [vmem:[%s24621_s11 + $0x168] sm:$0xff] (!%p20319_p3)  }
 0x93a   : > { %20416 = vmatprep.subr.bf16.mxu0 (!%p20319_p3), %v24260_v54 }
 0x93c   : > { %20439 = vmatpush3.bf16.msra.mxu1 (!%p20319_p3), %v24263_v1  ;;  %v24286_v1 = vld [vmem:[%s24621_s11 + $0x1e8] sm:$0xff] (!%p20319_p3)  }
 0x93d   : > { %20417 = vmatpush3.bf16.msra.mxu0 (!%p20319_p3), %v24262_v0  ;;  %v24283_v0 = vld [vmem:[%s24621_s11 + $0x1a0] sm:$0xff] (!%p20319_p3)  }
 0x93e   : > { %20446 = vmatprep.subr.bf16.mxu0 (!%p20319_p3), %v24264_v5 }
 0x9f2   : > { %v16291_v10 = vpop.f32.mrb[8].mxu1 }
 0x9f3   : > { %v16865_v50 = vpop.f32.mrb[8].mxu0  ;;  %v16293_v28 = vpop.f32.mrb[9].mxu1 }
 0x9f4   : > { %v16867_v53 = vpop.f32.mrb[9].mxu0  ;;  %v16900_v60 = vcombine.low %v16291_v10, %v16293_v28  ;;  %v16295_v36 = vpop.f32.mrb[10].mxu1  ;;  %v24266_v10 = vld [vmem:[%s24621_s11 + $0x1c0] sm:$0xff] (!%p20319_p3)   ;;  %v16999_v28 = vrot.slane (!%p20319_p3), %v16985_v22, %v26448_v37  ;;  %v24290_v22 = vld [vmem:[%s24621_s11 + $0x1f0] sm:$0xff] (!%p20319_p3)  }
 0x9f5   : > { %v16916_v23 = vcombine.low %v16865_v50, %v16867_v53  ;;  %v16869_v61 = vpop.f32.mrb[10].mxu0  ;;  %v16296_v14 = vpop.f32.mrb[11].mxu1  ;;  %v16992_v50 = vrot.slane (!%p20319_p3), %v16984_v9, %v26448_v37  ;;  %20468 = vmatprep.subr.bf16.mxu1 (!%p20319_p3), %v24266_v10  ;;  %v16937_v53 = vld [vmem:[#allocation2] sm:$0xff] (!%p20319_p3)  ;;  %v16962_v36 = vsub.s32 (!%p20319_p3), 4, %v24675_v48  ;;  %v24287_v9 = vld [vmem:[%s24621_s11 + $0x1a8] sm:$0xff] (!%p20319_p3)  }
 0x9f6   : > { %v16870_v4 = vpop.f32.mrb[11].mxu0  ;;  %v16914_v59 = vrot.slane %v16900_v60, %v26448_v37  ;;  %16936 = sbr.rel (%p20319_p3) target bundleno = 2848 (0xb20), region = 52  ;;  %v16970_v14 = vsub.s32 (!%p20319_p3), 6, %v24675_v48 }
 0x9f7   : > { %v16923_v45 = vrot.slane %v16916_v23, %v26448_v37  ;;  %v17000_v60 = vcombine.low (!%p20319_p3), %v16992_v50, %v16999_v28  ;;  %v16974_v4 = vsub.s32 (!%p20319_p3), 7, %v24675_v48  ;;  %v24289_v28 = vld [vmem:[%s24621_s11 + $0x130] sm:$0xff] (!%p20319_p3)  }
 0x9f8   : > { %v16915_v19 = vcombine.low %v16907_v18, %v16914_v59  ;;  %v16971_v38 = vrot.slane (!%p20319_p3), %v16940_v43, %v16970_v14  ;;  %v24295_v14 = vld [vmem:[%s24621_s11 + $0x1b8] sm:$0xff] (!%p20319_p3)  }
 0x9f9   : > { %v16929_v40 = vadd.f32 %v16923_v45, %v354_v13  ;;  %v17029_v23 = vadd.f32 (!%p20319_p3), %v17000_v60, %v16937_v53  ;;  %v16966_v13 = vsub.s32 (!%p20319_p3), 5, %v24675_v48  ;;  %v16975_v62 = vrot.slane (!%p20319_p3), %v16940_v43, %v16974_v4  ;;  %v24292_v53 = vld [vmem:[%s24621_s11 + $0x178] sm:$0xff] (!%p20319_p3)   ;;  %v24301_v48 = vld [vmem:[%s24621_s11 + $0x210] sm:$0xff] (!%p20319_p3)  }
 0x9fa   : > { %v16928_v24 = vadd.f32 %v16915_v19, %v353_v12  ;;  %v16963_v19 = vrot.slane (!%p20319_p3), %v16940_v43, %v16962_v36  ;;  %v24294_v36 = vld [vmem:[%s24621_s11 + $0x1f8] sm:$0xff] (!%p20319_p3)  }
 0x9fb   : > { %16932 = vst [vmem:[#allocation2 + $0x10] sm:$0xf] %v16929_v40  ;;  %v17032_v61 = vmax.f32 (!%p20319_p3), %v17029_v23, 0.0  ;;  %v17002_v31 = vcombine.low (!%p20319_p3), %v16971_v38, %v16975_v62  ;;  %v24291_v23 = vld [vmem:[%s24621_s11 + $0x1b0] sm:$0xff] (!%p20319_p3)   ;;  %v24299_v38 = vld [vmem:[%s24621_s11 + $0x208] sm:$0xff] (!%p20319_p3)  }
 0x9fc   : > { %16931 = vst [vmem:[#allocation2 + $0x8] sm:$0xff] %v16928_v24  ;;  %v16967_v24 = vrot.slane (!%p20319_p3), %v16940_v43, %v16966_v13  ;;  %v24296_v13 = vld [vmem:[%s24621_s11 + $0x240] sm:$0xff] (!%p20319_p3)  }
 0x9fd   : > { %v17045_v18 = vrot.slane %v17032_v61, %v26448_v37  ;;  %v17038_v59 = vcombine.high %v17032_v61, %v17032_v61  ;;  %v17016_v39 = vrot.slane %v17002_v31, %v26448_v37  ;;  %v24293_v61 = vld [vmem:[%s24621_s11 + $0x138] sm:$0xff]   ;;  %v24306_v31 = vld [vmem:[%s24621_s11 + $0x268] sm:$0xff]  }
 0x9fe   : > { %v17001_v47 = vcombine.low %v16963_v19, %v16967_v24 }
 0x9ff   : > { %v17053_v45 = vcombine.high %v17045_v18, %v17045_v18  ;;  %v17052_v12 = vrot.slane %v17038_v59, %v26448_v37  ;;  %v17090_v40 = vpack.c.bf16 %v17045_v18, %v17045_v18  ;;  %v24297_v18 = vld [vmem:[%s24621_s11 + $0x200] sm:$0xff]   ;;  %v16941_v59 = vld [vmem:[%s24616_s25 + $0x8] sm:$0x3] }
 0xa00   : > { %v17009_v21 = vrot.slane %v17001_v47, %v26448_v37  ;;  %v16979_v19 = vrot.slane %v16941_v59, %v16946_v63  ;;  %v24302_v63 = vld [vmem:[%s24621_s11 + $0x258] sm:$0xff]   ;;  %v24305_v47 = vld [vmem:[%s24621_s11 + $0x220] sm:$0xff]  }
 0xa01   : > { %v17091_v49 = vpack.c.bf16 %v17053_v45, %v17053_v45  ;;  %v17054_v25 = vcombine.high %v17052_v12, %v17052_v12  ;;  %v17092_v6 = vpack.c.bf16 %v17052_v12, %v17052_v12  ;;  %v24298_v12 = vld [vmem:[%s24621_s11 + $0x248] sm:$0xff]  }
 0xa02   : > { %v17017_v51 = vcombine.low %v17009_v21, %v17016_v39  ;;  %v16939_v62 = vld [vmem:[#allocation2 + $0x10] sm:$0xf] }
 0xa03   : > { %17773 = vmatprep.mubr.bf16.mxu0 %v17091_v49  ;;  %v17093_v29 = vpack.c.bf16 %v17054_v25, %v17054_v25  ;;  %v16938_v55 = vld [vmem:[#allocation2 + $0x8] sm:$0xff]  ;;  %v24300_v49 = vld [vmem:[%s24621_s11 + $0x250] sm:$0xff]  }
 0xa04   : > { %17774 = vmatmul.mubr.bf16.vlgmr.msra.gmra.mrb[0].mxu0 %v17090_v40  ;;  %v17030_v54 = vadd.f32 %v17017_v51, %v16938_v55  ;;  %v16983_v40 = vrot.slane %v16941_v59, %v16950_v56 }
 0xa05   : > { %17813 = vmatprep.mubr.bf16.mxu1 %v17093_v29  ;;  %20447 = vmatpush3.bf16.msra.mxu0 %v24265_v42  ;;  %v24304_v29 = vld [vmem:[%s24621_s11 + $0x260] sm:$0xff]  }
 0xa06   : > { %17814 = vmatmul.mubr.bf16.vlgmr.msra.gmra.mrb[0].mxu1 %v17092_v6  ;;  %20448 = vmatprep.subr.bf16.mxu0 %v24268_v26  ;;  %v17033_v20 = vmax.f32 %v17030_v54, 0.0  ;;  %v17018_v24 = vcombine.low %v16979_v19, %v16983_v40  ;;  %v24303_v26 = vld [vmem:[%s24621_s11 + $0x218] sm:$0xff]  }
 0xa07   : > { %20469 = vmatpush3.bf16.msra.mxu1 %v24267_v41 }
 0xa08   : > { %20470 = vmatprep.subr.bf16.mxu1 %v24270_v30  ;;  %v17062_v43 = vrot.slane %v17033_v20, %v26448_v37  ;;  %v17055_v3 = vcombine.high %v17033_v20, %v17033_v20  ;;  %v17025_v25 = vrot.slane %v17018_v24, %v26448_v37 }
 0xa09   : > { %20449 = vmatpush3.bf16.msra.mxu0 %v24269_v32  ;;  %v24307_v32 = vld [vmem:[%s24621_s11 + $0x228] sm:$0xff]  }
 0xa0a   : > { %20450 = vmatprep.subr.bf16.mxu0 %v24272_v33  ;;  %v17070_v17 = vcombine.high %v17062_v43, %v17062_v43  ;;  %v17069_v5 = vrot.slane %v17055_v3, %v26448_v37  ;;  %v17094_v4 = vpack.c.bf16 %v17062_v43, %v17062_v43  ;;  %v17031_v42 = vadd.f32 %v17025_v25, %v16939_v62  ;;  %v24308_v33 = vld [vmem:[%s24621_s11 + $0x270] sm:$0xff]  }
 0xa0b   : > { %20471 = vmatpush3.bf16.msra.mxu1 %v24271_v34  ;;  %v24310_v34 = vld [vmem:[%s24621_s11 + $0x278] sm:$0xff]  }
 0xa0c   : > { %20472 = vmatprep.subr.bf16.mxu1 %v24274_v46  ;;  %v17095_v10 = vpack.c.bf16 %v17070_v17, %v17070_v17  ;;  %v17071_v50 = vcombine.high %v17069_v5, %v17069_v5  ;;  %v17096_v45 = vpack.c.bf16 %v17069_v5, %v17069_v5  ;;  %v17034_v56 = vmax.f32 %v17031_v42, 0.0  ;;  %v24311_v46 = vld [vmem:[%s24621_s11 + $0x238] sm:$0xff]  }
 0xa0d   : > { %20451 = vmatpush3.bf16.msra.mxu0 %v24273_v7 }
 0xa0e   : > { %20452 = vmatprep.subr.bf16.mxu0 %v24276_v44  ;;  %17853 = vmatprep.mubr.bf16.mxu0 %v17095_v10  ;;  %v17097_v60 = vpack.c.bf16 %v17071_v50, %v17071_v50  ;;  %v17078_v6 = vrot.slane %v17034_v56, %v26448_v37  ;;  %v24309_v37 = vld [vmem:[%s24621_s11 + $0x230] sm:$0xff]  }
 0xa0f   : > { %20473 = vmatpush3.bf16.msra.mxu1 %v24275_v27 }
 0xa10   : > { %20474 = vmatprep.subr.bf16.mxu1 %v24278_v16  ;;  %17893 = vmatprep.mubr.bf16.mxu1 %v17097_v60  ;;  %v17079_v41 = vcombine.high %v17078_v6, %v17078_v6  ;;  %v17098_v21 = vpack.c.bf16 %v17078_v6, %v17078_v6 }
 0xa11   : > { %20453 = vmatpush3.bf16.msra.mxu0 %v24277_v52 }
 0xa12   : > { %20454 = vmatprep.subr.bf16.mxu0 %v24280_v35  ;;  %v17099_v30 = vpack.c.bf16 %v17079_v41, %v17079_v41 }
 0xa13   : > { %20475 = vmatpush3.bf16.msra.mxu1 %v24279_v15 }
 0xa14   : > { %20476 = vmatprep.subr.bf16.mxu1 %v24282_v11 }
 0xa15   : > { %20455 = vmatpush3.bf16.msra.mxu0 %v24281_v57 }
 0xa16   : > { %20456 = vmatprep.subr.bf16.mxu0 %v24284_v58 }
 0xa17   : > { %20477 = vmatpush3.bf16.msra.mxu1 %v24283_v0 }
 0xa18   : > { %20478 = vmatprep.subr.bf16.mxu1 %v24286_v1 }
 0xa19   : > { %20457 = vmatpush3.bf16.msra.mxu0 %v24285_v2 }
 0xa1a   : > { %20458 = vmatprep.subr.bf16.mxu0 %v24288_v8 }
 0xa1b   : > { %20479 = vmatpush3.bf16.msra.mxu1 %v24287_v9 }
 0xa1c   : > { %20480 = vmatprep.subr.bf16.mxu1 %v24290_v22 }
 0xa1d   : > { %20459 = vmatpush3.bf16.msra.mxu0 %v24289_v28  ;;  %v17100_v28 = vld [vmem:[%s24629_s28] sm:$0x3] }
 0xa1e   : > { %20460 = vmatprep.subr.bf16.mxu0 %v24292_v53 }
 0xa1f   : > { %20481 = vmatpush3.bf16.msra.mxu1 %v24291_v23 }
 0xa20   : > { %20482 = vmatprep.subr.bf16.mxu1 %v24294_v36 }
 0xa21   : > { %20461 = vmatpush3.bf16.msra.mxu0 %v24293_v61 }
 0xa22   : > { %20490 = vmatprep.subr.bf16.mxu0 %v24296_v13 }
 0xa23   : > { %20483 = vmatpush3.bf16.msra.mxu1 %v24295_v14 }
 0xa24   : > { %17854 = vmatmul.mubr.bf16.vlgmr.msra.gmra.mrb[4].mxu0 %v17094_v4 }
 0xa25   : > { %20491 = vmatpush3.bf16.msra.mxu0 %v24297_v18  ;;  %17933 = vmatprep.mubr.bf16.mxu0 %v17099_v30 }
 0xa26   : > { %17894 = vmatmul.mubr.bf16.vlgmr.msra.gmra.mrb[4].mxu1 %v17096_v45  ;;  %20492 = vmatprep.subr.bf16.mxu0 %v24298_v12 }
 0xa29   : > { %20493 = vmatpush3.bf16.msra.mxu0 %v24299_v38 }
 0xa2a   : > { %20494 = vmatprep.subr.bf16.mxu0 %v24300_v49 }
 0xa2d   : > { %20495 = vmatpush3.bf16.msra.mxu0 %v24301_v48 }
 0xa2e   : > { %20496 = vmatprep.subr.bf16.mxu0 %v24302_v63 }
 0xa31   : > { %20497 = vmatpush3.bf16.msra.mxu0 %v24303_v26 }
 0xa32   : > { %20498 = vmatprep.subr.bf16.mxu0 %v24304_v29 }
 0xa35   : > { %20499 = vmatpush3.bf16.msra.mxu0 %v24305_v47 }
 0xa36   : > { %20500 = vmatprep.subr.bf16.mxu0 %v24306_v31 }
 0xa39   : > { %20501 = vmatpush3.bf16.msra.mxu0 %v24307_v32 }
 0xa3a   : > { %20502 = vmatprep.subr.bf16.mxu0 %v24308_v33 }
 0xa3d   : > { %20503 = vmatpush3.bf16.msra.mxu0 %v24309_v37 }
 0xa3e   : > { %20504 = vmatprep.subr.bf16.mxu0 %v24310_v34 }
 0xa41   : > { %20505 = vmatpush3.bf16.msra.mxu0 %v24311_v46 }
 0xa44   : > { %17934 = vmatmul.mubr.bf16.vlgmr.msra.gmra.mrb[8].mxu0 %v17098_v21 }
 0xad7   : > { %v20418_v39 = vpop.f32.mrb[0].mxu0 }
 0xad8   : > { %v20419_v7 = vpop.f32.mrb[1].mxu0 }
 0xad9   : > { %v20440_v44 = vpop.f32.mrb[0].mxu1  ;;  %v20420_v27 = vadd.f32 %v20419_v7, %v20418_v39  ;;  %v20421_v16 = vpop.f32.mrb[2].mxu0 }
 0xada   : > { %v20441_v51 = vpop.f32.mrb[1].mxu1  ;;  %v20422_v52 = vpop.f32.mrb[3].mxu0 }
 0xadb   : > { %v20442_v35 = vadd.f32 %v20441_v51, %v20440_v44  ;;  %v20443_v15 = vpop.f32.mrb[2].mxu1 }
 0xadc   : > { %v20444_v55 = vpop.f32.mrb[3].mxu1 }
 0xadd   : > { %v17816_v11 = vadd.f32 %v20442_v35, %v20420_v27 }
 0xaf7   : > { %v20462_v54 = vpop.f32.mrb[4].mxu0 }
 0xaf8   : > { %v20463_v57 = vpop.f32.mrb[5].mxu0 }
 0xaf9   : > { %v20464_v58 = vadd.f32 %v20463_v57, %v20462_v54  ;;  %v20465_v20 = vpop.f32.mrb[6].mxu0  ;;  %v20484_v0 = vpop.f32.mrb[4].mxu1 }
 0xafa   : > { %v20466_v1 = vpop.f32.mrb[7].mxu0  ;;  %v20485_v43 = vpop.f32.mrb[5].mxu1 }
 0xafb   : > { %v17856_v3 = vadd.f32 %v20464_v58, %v17816_v11  ;;  %v20486_v2 = vadd.f32 %v20485_v43, %v20484_v0  ;;  %v20487_v8 = vpop.f32.mrb[6].mxu1 }
 0xafc   : > { %v20488_v17 = vpop.f32.mrb[7].mxu1 }
 0xafd   : > { %v17896_v5 = vadd.f32 %v20486_v2, %v17856_v3 }
 0xb17   : > { %v20506_v9 = vpop.f32.mrb[8].mxu0 }
 0xb18   : > { %v20507_v22 = vpop.f32.mrb[9].mxu0 }
 0xb19   : > { %v20508_v10 = vadd.f32 %v20507_v22, %v20506_v9  ;;  %v20509_v50 = vpop.f32.mrb[10].mxu0 }
 0xb1a   : > { %v20510_v53 = vpop.f32.mrb[11].mxu0 }
 0xb1b   : > { %v17936_v60 = vadd.f32 %v20508_v10, %v17896_v5 }
 0xb1d   : > { %v17941_v23 = vadd.f32 %v17936_v60, %v17100_v28 }
 0xb1f   : > { %17942 = vst [vmem:[%s24629_s28] sm:$0x3] %v17941_v23 }
 0xb20 PF: > { %s17_s24 = sadd.s32 1, %s24425_s24   ;;  %s27347_s19 = sld [smem:[#allocation6_spill]] }
 0xb21   : > { %p14_p4 = scmp.ge.s32.totalorder %s17_s24, 30   ;;  %s27348_s20 = sld [smem:[#allocation7_spill]] }
 0xb22   : > { %s27349_s4 = sld [smem:[#allocation8_spill]]  ;;  %s27350_s30 = sld [smem:[#allocation9_spill]] }
 0xb23   : > { %s27351_s15 = smov %s24393_s16  ;;  %s27352_s16 = smov %s24397_s17 }
 0xb24   : > { %s27353_s17 = smov %s24546_s23  ;;  %s27354_s18 = smov %s24413_s21 }
 0xb25   : > { %s27356_s22 = smov %s27363_s27  ;;  %16 = sbr.rel (!%p14_p4) target bundleno = 8 (0x8), region = 97 }
 0xb28   : > { %s27355_s21 = smov %s27349_s4  ;;  %s27357_s23 = smov %s27350_s30 }
 0xb2c   :  { %17962 = vsyncpa [#allocation4], 1 }
 0xb2d   :  { %17964 = vsyncpa [#allocation4 + $0x1], 1 }

</bundles_post_ra>
